<compile_context>
chip_gen: v7x
topology: tpu7x:2x2x1
jax: 0.10.0
libtpu: 0.0.40
codegen_flags: <defaults>
</compile_context>

<pallas_src>
import functools
import numpy as np
import jax
import jax.numpy as jnp
from jax.experimental import pallas as pl
from jax.experimental.pallas import tpu as pltpu


H_KERNEL = (409, 330)
W_KERNEL = 3
STRIDES = (6, 1)
BN_EPS = 1e-5
_FLAT_STRIDE = STRIDES[0] * W_KERNEL          # 18: conv1 stride in the flat mesh


# ------------------------------ fused kernel -------------------------------

def _fused_kernel(mesh_ref, w1a_ref, w2t_ref, b2_ref, gx_ref, alpha_ref,
                  wq_ref, bq_ref, wk_ref, bk_ref, wv_ref, bv_ref,
                  wfc_ref, bfc_ref, o_ref, *, n_chunks, h1, n_q2,
                  num_heads, head_size):
    f32 = jnp.float32

    # ---- conv1 (BN1 scale folded into weights): channel-major (3, H1) -----
    mt = mesh_ref[...]                                          # (18, V//6)
    c1 = jnp.zeros((3, h1), f32)
    for a in range(n_chunks):                                   # 69 shifted matmuls
        c1 = c1 + jnp.dot(w1a_ref[a], mt[:, a:a + h1],
                          preferred_element_type=f32)

    # ---- conv2 + BN2 (conv biases / BN shifts folded into b2_ref) ---------
    # PyTorch's .view(B,1,-1,3) between the convs is folded into w2t_ref.
    c2 = b2_ref[...]                                            # (1, 3*H2)
    for c in range(3):
        c2 = c2 + jnp.dot(c1[c:c + 1, :], w2t_ref[c],
                          preferred_element_type=f32)

    # ---- 2nd .view + AdaptiveAvgPool2d + reshape to (F, D), via gx_ref ----
    x = jnp.zeros(gx_ref.shape[1:], f32)                        # (F, D)
    for qq in range(n_q2):
        x = x + c2[:, qq:qq + 1] * gx_ref[qq]                   # (1,1)*(F,D)
    # PReLU (commutes with the permutations folded above)
    x = jnp.where(x > 0, x, alpha_ref[...] * x)

    # ---- multi-head attention (scale folded into wq/bq) + fc_out ----------
    q = jnp.dot(x, wq_ref[...], preferred_element_type=f32) + bq_ref[...]
    k = jnp.dot(x, wk_ref[...], preferred_element_type=f32) + bk_ref[...]
    v = jnp.dot(x, wv_ref[...], preferred_element_type=f32) + bv_ref[...]
    pieces = []
    for h in range(num_heads):
        lo = h * head_size
        qh = q[:, lo:lo + head_size]
        kh = k[:, lo:lo + head_size]
        vh = v[:, lo:lo + head_size]
        s = jnp.dot(qh, kh.T, preferred_element_type=f32)       # (F, F)
        s = s - jnp.max(s, axis=-1, keepdims=True)
        p = jnp.exp(s)
        p = p * pl.reciprocal(jnp.sum(p, axis=-1, keepdims=True), approx=True)
        ah = jnp.dot(p, vh, preferred_element_type=f32)         # (F, hs)
        ahT = ah.T                                              # (hs, F)
        for c in range(head_size):
            pieces.append(ahT[c:c + 1, :])                      # (1, F)
    row = jnp.concatenate(pieces, axis=1)                       # (1, hidden*F)
    o_ref[...] = jnp.dot(row, wfc_ref[...],
                         preferred_element_type=f32) + bfc_ref[...]


# ------------------------------- wrapper -----------------------------------

def forward(mesh, params, *, num_features, input_size, num_heads,
            hidden_size, out_features):
    B, V, _ = mesh.shape
    H1 = (V - H_KERNEL[0]) // STRIDES[0] + 1
    H2 = H1 - H_KERNEL[1] + 1
    assert H2 >= 1, "need num_verts >= 2383 for the hard-coded conv kernels"
    F, D = num_features, input_size
    assert (F * D) % 3 == 0 and hidden_size % num_heads == 0
    P = F * D // 3
    head_size = hidden_size // num_heads
    K1 = H_KERNEL[0] * W_KERNEL                                 # 1227
    K2 = H_KERNEL[1] * W_KERNEL                                 # 990
    NA = -(-K1 // _FLAT_STRIDE)                                 # 69 chunks

    # ---- mesh: flatten, pad to a multiple of 18, lane-dense (B, 18, V/6) --
    flat = mesh.reshape(B, V * 3)
    padded = -(-(V * 3) // _FLAT_STRIDE) * _FLAT_STRIDE
    if padded > V * 3:
        flat = jnp.pad(flat, ((0, 0), (0, padded - V * 3)))
    V6 = padded // _FLAT_STRIDE
    mesh_t = jnp.transpose(flat.reshape(B, V6, _FLAT_STRIDE), (0, 2, 1))

    # ---- conv1 weights: BN1 scale folded, chunked by the flat stride ------
    s1 = params['bn1_gamma'] / jnp.sqrt(params['bn1_var'] + BN_EPS)
    t1 = params['bn1_beta'] + (params['b1'] - params['bn1_mean']) * s1
    w1flat = params['w1'].reshape(3, K1) * s1[:, None]
    w1pad = jnp.pad(w1flat, ((0, 0), (0, NA * _FLAT_STRIDE - K1)))
    w1a = jnp.transpose(w1pad.reshape(3, NA, _FLAT_STRIDE), (1, 0, 2))  # (NA,3,18)

    # ---- conv2+BN2 as an effective weight acting on the channel-major -----
    # conv1 rows (the PyTorch .view between the convs is folded in here).
    s2 = params['bn2_gamma'] / jnp.sqrt(params['bn2_var'] + BN_EPS)
    t2 = params['bn2_beta'] + (params['b2'] - params['bn2_mean']) * s2
    w2flat = params['w2'].reshape(3, K2)
    c1_idx = np.arange(3)[:, None, None]
    h_idx = np.arange(H1)[None, :, None]
    q_idx = np.arange(3 * H2)[None, None, :]
    c2_idx = q_idx // H2
    h2_idx = q_idx % H2
    j_idx = c1_idx * H1 + h_idx - 3 * h2_idx
    valid = jnp.asarray((j_idx >= 0) & (j_idx < K2))
    j_clip = np.clip(j_idx, 0, K2 - 1)
    w2eff = jnp.where(valid, w2flat[c2_idx, j_clip] * s2[c2_idx], 0.0)  # (3,H1,3H2)
    c2_of_q = np.arange(3 * H2) // H2
    bias2 = (t2[c2_of_q] + jnp.einsum('c,chq->q', t1, w2eff))[None, :]  # (1,3H2)

    # ---- 2nd .view + adaptive pool + reshape-to-(F,D): constant Gx --------
    fd = np.arange(F)[:, None] * D + np.arange(D)[None, :]     # (F, D)
    p_map = fd // 3
    col_map = fd % 3
    sp = (p_map * H2) // P
    ep = -((-(p_map + 1) * H2) // P)
    qv = np.arange(3 * H2)
    m_of_q = (qv // 3)[:, None, None]
    col_of_q = (qv % 3)[:, None, None]
    gx = (((col_of_q == col_map[None]) &
           (m_of_q >= sp[None]) & (m_of_q < ep[None])).astype(np.float32)
          / (ep - sp)[None].astype(np.float32))
    gx = jnp.asarray(gx)                                        # (3H2, F, D)

    # ---- attention weights: 1/sqrt(head_size) folded into Q ---------------
    inv = 1.0 / float(np.sqrt(head_size))
    wq = params['wq'].T * inv
    bq = (params['bq'] * inv)[None, :]
    wk = params['wk'].T
    bk = params['bk'][None, :]
    wv = params['wv'].T
    bv = params['bv'][None, :]
    # fc_out weight, rows reordered to match the lane-concat ordering c*F + f
    wfc = jnp.transpose(params['w_fc'].reshape(out_features, F, hidden_size),
                        (2, 1, 0)).reshape(hidden_size * F, out_features)
    bfc = params['b_fc'][None, :]
    alpha = params['prelu_alpha'].reshape(1, 1)

    kernel = functools.partial(_fused_kernel, n_chunks=NA, h1=H1, n_q2=3 * H2,
                               num_heads=num_heads, head_size=head_size)

    def _full(a):
        nd = a.ndim
        return pl.BlockSpec(a.shape, lambda *_: (0,) * nd)

    weights = [w1a, w2eff, bias2, gx, alpha, wq, bq, wk, bk, wv, bv, wfc, bfc]
    out3 = pl.pallas_call(
        kernel,
        out_shape=jax.ShapeDtypeStruct((B, 1, out_features), jnp.float32),
        grid=(B,),
        in_specs=[pl.BlockSpec((None, _FLAT_STRIDE, V6), lambda b: (b, 0, 0))]
                 + [_full(w) for w in weights],
        out_specs=pl.BlockSpec((None, 1, out_features), lambda b: (b, 0, 0)),
        compiler_params=pltpu.CompilerParams(
            dimension_semantics=("parallel",)),   # 2 batches -> 2 TCs on v7x
    )(mesh_t, *weights)
    return out3[:, 0, :]


# ------------------- pure-jnp reference (for validation) -------------------

def _adaptive_pool_matrix(out_size, in_size):
    m = np.zeros((out_size, in_size), np.float32)
    for i in range(out_size):
        s = (i * in_size) // out_size
        e = -((-(i + 1) * in_size) // out_size)
        m[i, s:e] = 1.0 / (e - s)
    return jnp.asarray(m)


def reference_forward(mesh, params, *, num_features, input_size, num_heads,
                      hidden_size, out_features):
    B, V, _ = mesh.shape
    H1 = (V - H_KERNEL[0]) // STRIDES[0] + 1
    H2 = H1 - H_KERNEL[1] + 1
    F, D = num_features, input_size
    hs = hidden_size // num_heads
    s1 = params['bn1_gamma'] / jnp.sqrt(params['bn1_var'] + BN_EPS)
    t1 = params['bn1_beta'] + (params['b1'] - params['bn1_mean']) * s1
    rows1 = (np.arange(H1) * STRIDES[0])[:, None] + np.arange(H_KERNEL[0])[None, :]
    p1 = mesh[:, rows1, :].reshape(B, H1, H_KERNEL[0] * W_KERNEL)
    c1 = jnp.einsum('bhk,ck->bhc', p1, params['w1'].reshape(3, -1)) * s1 + t1
    x = jnp.transpose(c1, (0, 2, 1)).reshape(B, H1, 3)
    s2 = params['bn2_gamma'] / jnp.sqrt(params['bn2_var'] + BN_EPS)
    t2 = params['bn2_beta'] + (params['b2'] - params['bn2_mean']) * s2
    rows2 = np.arange(H2)[:, None] + np.arange(H_KERNEL[1])[None, :]
    p2 = x[:, rows2, :].reshape(B, H2, H_KERNEL[1] * W_KERNEL)
    c2 = jnp.einsum('bhk,ck->bhc', p2, params['w2'].reshape(3, -1)) * s2 + t2
    x = jnp.transpose(c2, (0, 2, 1)).reshape(B, H2, 3)
    pm = _adaptive_pool_matrix(F * D // 3, H2)
    x = jnp.einsum('ph,bhw->bpw', pm, x)
    x = jnp.where(x > 0, x, params['prelu_alpha'][0, 0] * x)
    x = x.reshape(B, F, D)
    q = x @ params['wq'].T + params['bq']
    k = x @ params['wk'].T + params['bk']
    v = x @ params['wv'].T + params['bv']
    split = lambda z: z.reshape(B, F, num_heads, hs).transpose(0, 2, 1, 3)
    qh, kh, vh = split(q), split(k), split(v)
    sc = jnp.einsum('bhqd,bhkd->bhqk', qh, kh) / np.sqrt(hs)
    w = jax.nn.softmax(sc, axis=-1)
    att = jnp.einsum('bhqk,bhkd->bhqd', w, vh)
    att = att.transpose(0, 2, 1, 3).reshape(B, F * hidden_size)
    return att @ params['w_fc'].T + params['b_fc']


# ---------------------------------- main -----------------------------------

if __name__ == "__main__":
    B = 2
    NUM_VERTS = 2400       # >= 409 + 6*329 = 2383 (hard-coded conv kernels)
    NUM_FEATURES = 128     # small stand-in for the default 1024
    INPUT_SIZE = 9
    NUM_HEADS = 2
    HIDDEN_SIZE = 4
    OUT_FEATURES = 64

    key = jax.random.PRNGKey(0)
    keys = jax.random.split(key, 20)
    rnd = lambda k, shp, sc=0.05: sc * jax.random.normal(k, shp, dtype=jnp.float32)

    params = {
        'w1': rnd(keys[0], (3, 1, H_KERNEL[0], W_KERNEL)),
        'b1': rnd(keys[1], (3,)),
        'bn1_gamma': 1.0 + rnd(keys[2], (3,)),
        'bn1_beta': rnd(keys[3], (3,)),
        'bn1_mean': jnp.zeros((3,), jnp.float32),
        'bn1_var': jnp.ones((3,), jnp.float32),
        'w2': rnd(keys[4], (3, 1, H_KERNEL[1], W_KERNEL)),
        'b2': rnd(keys[5], (3,)),
        'bn2_gamma': 1.0 + rnd(keys[6], (3,)),
        'bn2_beta': rnd(keys[7], (3,)),
        'bn2_mean': jnp.zeros((3,), jnp.float32),
        'bn2_var': jnp.ones((3,), jnp.float32),
        'prelu_alpha': jnp.full((1, 1), 0.25, jnp.float32),    # nn.PReLU default
        'wq': rnd(keys[8], (HIDDEN_SIZE, INPUT_SIZE)),
        'bq': rnd(keys[9], (HIDDEN_SIZE,)),
        'wk': rnd(keys[10], (HIDDEN_SIZE, INPUT_SIZE)),
        'bk': rnd(keys[11], (HIDDEN_SIZE,)),
        'wv': rnd(keys[12], (HIDDEN_SIZE, INPUT_SIZE)),
        'bv': rnd(keys[13], (HIDDEN_SIZE,)),
        'w_fc': rnd(keys[14], (OUT_FEATURES, NUM_FEATURES * HIDDEN_SIZE)),
        'b_fc': rnd(keys[15], (OUT_FEATURES,)),
    }
    mesh = jax.random.normal(keys[16], (B, NUM_VERTS, 3), dtype=jnp.float32)

    cfg = dict(num_features=NUM_FEATURES, input_size=INPUT_SIZE,
               num_heads=NUM_HEADS, hidden_size=HIDDEN_SIZE,
               out_features=OUT_FEATURES)
    fwd = jax.jit(functools.partial(forward, **cfg))
    out = jax.block_until_ready(fwd(mesh, params))
    assert out.shape == (B, OUT_FEATURES), out.shape
    assert bool(jnp.all(jnp.isfinite(out)))

    # numerical check against a pure-jnp mirror of the PyTorch module
    ref = jax.jit(functools.partial(reference_forward, **cfg))(mesh, params)
    np.testing.assert_allclose(np.asarray(out), np.asarray(ref),
                               rtol=5e-2, atol=5e-3)
    print("KERNEL_OK")
</pallas_src>

<mosaic_0001>
module attributes {stable_mosaic.version = 11 : i64} {
  func.func @_fused_kernel(%arg0: i32, %arg1: memref<1x18x400xf32, #tpu.memory_space<vmem>>, %arg2: memref<69x3x18xf32, #tpu.memory_space<vmem>>, %arg3: memref<3x332x9xf32, #tpu.memory_space<vmem>>, %arg4: memref<1x9xf32, #tpu.memory_space<vmem>>, %arg5: memref<9x128x9xf32, #tpu.memory_space<vmem>>, %arg6: memref<1x1xf32, #tpu.memory_space<vmem>>, %arg7: memref<9x4xf32, #tpu.memory_space<vmem>>, %arg8: memref<1x4xf32, #tpu.memory_space<vmem>>, %arg9: memref<9x4xf32, #tpu.memory_space<vmem>>, %arg10: memref<1x4xf32, #tpu.memory_space<vmem>>, %arg11: memref<9x4xf32, #tpu.memory_space<vmem>>, %arg12: memref<1x4xf32, #tpu.memory_space<vmem>>, %arg13: memref<512x64xf32, #tpu.memory_space<vmem>>, %arg14: memref<1x64xf32, #tpu.memory_space<vmem>>, %arg15: memref<1x1x64xf32, #tpu.memory_space<vmem>>) attributes {dimension_semantics = [#tpu.dimension_semantics<parallel>], iteration_bounds = array<i64: 2>, scalar_prefetch = 0 : i64, scratch_operands = 0 : i64, tpu.core_type = #tpu.core_type<tc>, window_params = [{transform_indices = @transform_0, window_bounds = array<i64: 1, 18, 400>}, {pipeline_mode = #tpu.pipeline_mode<synchronous>, transform_indices = @transform_1, window_bounds = array<i64: 69, 3, 18>}, {pipeline_mode = #tpu.pipeline_mode<synchronous>, transform_indices = @transform_2, window_bounds = array<i64: 3, 332, 9>}, {pipeline_mode = #tpu.pipeline_mode<synchronous>, transform_indices = @transform_3, window_bounds = array<i64: 1, 9>}, {pipeline_mode = #tpu.pipeline_mode<synchronous>, transform_indices = @transform_4, window_bounds = array<i64: 9, 128, 9>}, {pipeline_mode = #tpu.pipeline_mode<synchronous>, transform_indices = @transform_5, window_bounds = array<i64: 1, 1>}, {pipeline_mode = #tpu.pipeline_mode<synchronous>, transform_indices = @transform_6, window_bounds = array<i64: 9, 4>}, {pipeline_mode = #tpu.pipeline_mode<synchronous>, transform_indices = @transform_7, window_bounds = array<i64: 1, 4>}, {pipeline_mode = #tpu.pipeline_mode<synchronous>, transform_indices = @transform_8, window_bounds = array<i64: 9, 4>}, {pipeline_mode = #tpu.pipeline_mode<synchronous>, transform_indices = @transform_9, window_bounds = array<i64: 1, 4>}, {pipeline_mode = #tpu.pipeline_mode<synchronous>, transform_indices = @transform_10, window_bounds = array<i64: 9, 4>}, {pipeline_mode = #tpu.pipeline_mode<synchronous>, transform_indices = @transform_11, window_bounds = array<i64: 1, 4>}, {pipeline_mode = #tpu.pipeline_mode<synchronous>, transform_indices = @transform_12, window_bounds = array<i64: 512, 64>}, {pipeline_mode = #tpu.pipeline_mode<synchronous>, transform_indices = @transform_13, window_bounds = array<i64: 1, 64>}, {transform_indices = @transform_14, window_bounds = array<i64: 1, 1, 64>}]} {
    %c0 = arith.constant 0 : index
    %c0_0 = arith.constant 0 : index
    %c0_1 = arith.constant 0 : index
    %0 = vector.load %arg1[%c0, %c0_0, %c0_1] : memref<1x18x400xf32, #tpu.memory_space<vmem>>, vector<1x18x400xf32>
    %1 = vector.shape_cast %0 : vector<1x18x400xf32> to vector<18x400xf32>
    %cst = arith.constant 0.000000e+00 : f32
    %2 = vector.broadcast %cst : f32 to vector<3x332xf32>
    %c0_2 = arith.constant 0 : index
    %c0_3 = arith.constant 0 : index
    %c0_4 = arith.constant 0 : index
    %3 = vector.load %arg2[%c0_2, %c0_3, %c0_4] : memref<69x3x18xf32, #tpu.memory_space<vmem>>, vector<1x3x18xf32>
    %4 = vector.shape_cast %3 : vector<1x3x18xf32> to vector<3x18xf32>
    %5 = vector.extract_strided_slice %1 {offsets = [0, 0], sizes = [18, 332], strides = [1, 1]} : vector<18x400xf32> to vector<18x332xf32>
    %cst_5 = arith.constant dense<0.000000e+00> : vector<3x332xf32>
    %6 = tpu.matmul %4, %5, %cst_5 {dimension_numbers = #tpu.dot_dimension_numbers<[1], [0], [0], [1], [0, 0, 1, 1], [], []>} : vector<3x18xf32>, vector<18x332xf32>, vector<3x332xf32> -> vector<3x332xf32>
    %7 = arith.addf %2, %6 : vector<3x332xf32>
    %c1 = arith.constant 1 : index
    %c0_6 = arith.constant 0 : index
    %c0_7 = arith.constant 0 : index
    %8 = vector.load %arg2[%c1, %c0_6, %c0_7] : memref<69x3x18xf32, #tpu.memory_space<vmem>>, vector<1x3x18xf32>
    %9 = vector.shape_cast %8 : vector<1x3x18xf32> to vector<3x18xf32>
    %10 = vector.extract_strided_slice %1 {offsets = [0, 1], sizes = [18, 332], strides = [1, 1]} : vector<18x400xf32> to vector<18x332xf32>
    %cst_8 = arith.constant dense<0.000000e+00> : vector<3x332xf32>
    %11 = tpu.matmul %9, %10, %cst_8 {dimension_numbers = #tpu.dot_dimension_numbers<[1], [0], [0], [1], [0, 0, 1, 1], [], []>} : vector<3x18xf32>, vector<18x332xf32>, vector<3x332xf32> -> vector<3x332xf32>
    %12 = arith.addf %7, %11 : vector<3x332xf32>
    %c2 = arith.constant 2 : index
    %c0_9 = arith.constant 0 : index
    %c0_10 = arith.constant 0 : index
    %13 = vector.load %arg2[%c2, %c0_9, %c0_10] : memref<69x3x18xf32, #tpu.memory_space<vmem>>, vector<1x3x18xf32>
    %14 = vector.shape_cast %13 : vector<1x3x18xf32> to vector<3x18xf32>
    %15 = vector.extract_strided_slice %1 {offsets = [0, 2], sizes = [18, 332], strides = [1, 1]} : vector<18x400xf32> to vector<18x332xf32>
    %cst_11 = arith.constant dense<0.000000e+00> : vector<3x332xf32>
    %16 = tpu.matmul %14, %15, %cst_11 {dimension_numbers = #tpu.dot_dimension_numbers<[1], [0], [0], [1], [0, 0, 1, 1], [], []>} : vector<3x18xf32>, vector<18x332xf32>, vector<3x332xf32> -> vector<3x332xf32>
    %17 = arith.addf %12, %16 : vector<3x332xf32>
    %c3 = arith.constant 3 : index
    %c0_12 = arith.constant 0 : index
    %c0_13 = arith.constant 0 : index
    %18 = vector.load %arg2[%c3, %c0_12, %c0_13] : memref<69x3x18xf32, #tpu.memory_space<vmem>>, vector<1x3x18xf32>
    %19 = vector.shape_cast %18 : vector<1x3x18xf32> to vector<3x18xf32>
    %20 = vector.extract_strided_slice %1 {offsets = [0, 3], sizes = [18, 332], strides = [1, 1]} : vector<18x400xf32> to vector<18x332xf32>
    %cst_14 = arith.constant dense<0.000000e+00> : vector<3x332xf32>
    %21 = tpu.matmul %19, %20, %cst_14 {dimension_numbers = #tpu.dot_dimension_numbers<[1], [0], [0], [1], [0, 0, 1, 1], [], []>} : vector<3x18xf32>, vector<18x332xf32>, vector<3x332xf32> -> vector<3x332xf32>
    %22 = arith.addf %17, %21 : vector<3x332xf32>
    %c4 = arith.constant 4 : index
    %c0_15 = arith.constant 0 : index
    %c0_16 = arith.constant 0 : index
    %23 = vector.load %arg2[%c4, %c0_15, %c0_16] : memref<69x3x18xf32, #tpu.memory_space<vmem>>, vector<1x3x18xf32>
    %24 = vector.shape_cast %23 : vector<1x3x18xf32> to vector<3x18xf32>
    %25 = vector.extract_strided_slice %1 {offsets = [0, 4], sizes = [18, 332], strides = [1, 1]} : vector<18x400xf32> to vector<18x332xf32>
    %cst_17 = arith.constant dense<0.000000e+00> : vector<3x332xf32>
    %26 = tpu.matmul %24, %25, %cst_17 {dimension_numbers = #tpu.dot_dimension_numbers<[1], [0], [0], [1], [0, 0, 1, 1], [], []>} : vector<3x18xf32>, vector<18x332xf32>, vector<3x332xf32> -> vector<3x332xf32>
    %27 = arith.addf %22, %26 : vector<3x332xf32>
    %c5 = arith.constant 5 : index
    %c0_18 = arith.constant 0 : index
    %c0_19 = arith.constant 0 : index
    %28 = vector.load %arg2[%c5, %c0_18, %c0_19] : memref<69x3x18xf32, #tpu.memory_space<vmem>>, vector<1x3x18xf32>
    %29 = vector.shape_cast %28 : vector<1x3x18xf32> to vector<3x18xf32>
    %30 = vector.extract_strided_slice %1 {offsets = [0, 5], sizes = [18, 332], strides = [1, 1]} : vector<18x400xf32> to vector<18x332xf32>
    %cst_20 = arith.constant dense<0.000000e+00> : vector<3x332xf32>
    %31 = tpu.matmul %29, %30, %cst_20 {dimension_numbers = #tpu.dot_dimension_numbers<[1], [0], [0], [1], [0, 0, 1, 1], [], []>} : vector<3x18xf32>, vector<18x332xf32>, vector<3x332xf32> -> vector<3x332xf32>
    %32 = arith.addf %27, %31 : vector<3x332xf32>
    %c6 = arith.constant 6 : index
    %c0_21 = arith.constant 0 : index
    %c0_22 = arith.constant 0 : index
    %33 = vector.load %arg2[%c6, %c0_21, %c0_22] : memref<69x3x18xf32, #tpu.memory_space<vmem>>, vector<1x3x18xf32>
    %34 = vector.shape_cast %33 : vector<1x3x18xf32> to vector<3x18xf32>
    %35 = vector.extract_strided_slice %1 {offsets = [0, 6], sizes = [18, 332], strides = [1, 1]} : vector<18x400xf32> to vector<18x332xf32>
    %cst_23 = arith.constant dense<0.000000e+00> : vector<3x332xf32>
    %36 = tpu.matmul %34, %35, %cst_23 {dimension_numbers = #tpu.dot_dimension_numbers<[1], [0], [0], [1], [0, 0, 1, 1], [], []>} : vector<3x18xf32>, vector<18x332xf32>, vector<3x332xf32> -> vector<3x332xf32>
    %37 = arith.addf %32, %36 : vector<3x332xf32>
    %c7 = arith.constant 7 : index
    %c0_24 = arith.constant 0 : index
    %c0_25 = arith.constant 0 : index
    %38 = vector.load %arg2[%c7, %c0_24, %c0_25] : memref<69x3x18xf32, #tpu.memory_space<vmem>>, vector<1x3x18xf32>
    %39 = vector.shape_cast %38 : vector<1x3x18xf32> to vector<3x18xf32>
    %40 = vector.extract_strided_slice %1 {offsets = [0, 7], sizes = [18, 332], strides = [1, 1]} : vector<18x400xf32> to vector<18x332xf32>
    %cst_26 = arith.constant dense<0.000000e+00> : vector<3x332xf32>
    %41 = tpu.matmul %39, %40, %cst_26 {dimension_numbers = #tpu.dot_dimension_numbers<[1], [0], [0], [1], [0, 0, 1, 1], [], []>} : vector<3x18xf32>, vector<18x332xf32>, vector<3x332xf32> -> vector<3x332xf32>
    %42 = arith.addf %37, %41 : vector<3x332xf32>
    %c8 = arith.constant 8 : index
    %c0_27 = arith.constant 0 : index
    %c0_28 = arith.constant 0 : index
    %43 = vector.load %arg2[%c8, %c0_27, %c0_28] : memref<69x3x18xf32, #tpu.memory_space<vmem>>, vector<1x3x18xf32>
    %44 = vector.shape_cast %43 : vector<1x3x18xf32> to vector<3x18xf32>
    %45 = vector.extract_strided_slice %1 {offsets = [0, 8], sizes = [18, 332], strides = [1, 1]} : vector<18x400xf32> to vector<18x332xf32>
    %cst_29 = arith.constant dense<0.000000e+00> : vector<3x332xf32>
    %46 = tpu.matmul %44, %45, %cst_29 {dimension_numbers = #tpu.dot_dimension_numbers<[1], [0], [0], [1], [0, 0, 1, 1], [], []>} : vector<3x18xf32>, vector<18x332xf32>, vector<3x332xf32> -> vector<3x332xf32>
    %47 = arith.addf %42, %46 : vector<3x332xf32>
    %c9 = arith.constant 9 : index
    %c0_30 = arith.constant 0 : index
    %c0_31 = arith.constant 0 : index
    %48 = vector.load %arg2[%c9, %c0_30, %c0_31] : memref<69x3x18xf32, #tpu.memory_space<vmem>>, vector<1x3x18xf32>
    %49 = vector.shape_cast %48 : vector<1x3x18xf32> to vector<3x18xf32>
    %50 = vector.extract_strided_slice %1 {offsets = [0, 9], sizes = [18, 332], strides = [1, 1]} : vector<18x400xf32> to vector<18x332xf32>
    %cst_32 = arith.constant dense<0.000000e+00> : vector<3x332xf32>
    %51 = tpu.matmul %49, %50, %cst_32 {dimension_numbers = #tpu.dot_dimension_numbers<[1], [0], [0], [1], [0, 0, 1, 1], [], []>} : vector<3x18xf32>, vector<18x332xf32>, vector<3x332xf32> -> vector<3x332xf32>
    %52 = arith.addf %47, %51 : vector<3x332xf32>
    %c10 = arith.constant 10 : index
    %c0_33 = arith.constant 0 : index
    %c0_34 = arith.constant 0 : index
    %53 = vector.load %arg2[%c10, %c0_33, %c0_34] : memref<69x3x18xf32, #tpu.memory_space<vmem>>, vector<1x3x18xf32>
    %54 = vector.shape_cast %53 : vector<1x3x18xf32> to vector<3x18xf32>
    %55 = vector.extract_strided_slice %1 {offsets = [0, 10], sizes = [18, 332], strides = [1, 1]} : vector<18x400xf32> to vector<18x332xf32>
    %cst_35 = arith.constant dense<0.000000e+00> : vector<3x332xf32>
    %56 = tpu.matmul %54, %55, %cst_35 {dimension_numbers = #tpu.dot_dimension_numbers<[1], [0], [0], [1], [0, 0, 1, 1], [], []>} : vector<3x18xf32>, vector<18x332xf32>, vector<3x332xf32> -> vector<3x332xf32>
    %57 = arith.addf %52, %56 : vector<3x332xf32>
    %c11 = arith.constant 11 : index
    %c0_36 = arith.constant 0 : index
    %c0_37 = arith.constant 0 : index
    %58 = vector.load %arg2[%c11, %c0_36, %c0_37] : memref<69x3x18xf32, #tpu.memory_space<vmem>>, vector<1x3x18xf32>
    %59 = vector.shape_cast %58 : vector<1x3x18xf32> to vector<3x18xf32>
    %60 = vector.extract_strided_slice %1 {offsets = [0, 11], sizes = [18, 332], strides = [1, 1]} : vector<18x400xf32> to vector<18x332xf32>
    %cst_38 = arith.constant dense<0.000000e+00> : vector<3x332xf32>
    %61 = tpu.matmul %59, %60, %cst_38 {dimension_numbers = #tpu.dot_dimension_numbers<[1], [0], [0], [1], [0, 0, 1, 1], [], []>} : vector<3x18xf32>, vector<18x332xf32>, vector<3x332xf32> -> vector<3x332xf32>
    %62 = arith.addf %57, %61 : vector<3x332xf32>
    %c12 = arith.constant 12 : index
    %c0_39 = arith.constant 0 : index
    %c0_40 = arith.constant 0 : index
    %63 = vector.load %arg2[%c12, %c0_39, %c0_40] : memref<69x3x18xf32, #tpu.memory_space<vmem>>, vector<1x3x18xf32>
    %64 = vector.shape_cast %63 : vector<1x3x18xf32> to vector<3x18xf32>
    %65 = vector.extract_strided_slice %1 {offsets = [0, 12], sizes = [18, 332], strides = [1, 1]} : vector<18x400xf32> to vector<18x332xf32>
    %cst_41 = arith.constant dense<0.000000e+00> : vector<3x332xf32>
    %66 = tpu.matmul %64, %65, %cst_41 {dimension_numbers = #tpu.dot_dimension_numbers<[1], [0], [0], [1], [0, 0, 1, 1], [], []>} : vector<3x18xf32>, vector<18x332xf32>, vector<3x332xf32> -> vector<3x332xf32>
    %67 = arith.addf %62, %66 : vector<3x332xf32>
    %c13 = arith.constant 13 : index
    %c0_42 = arith.constant 0 : index
    %c0_43 = arith.constant 0 : index
    %68 = vector.load %arg2[%c13, %c0_42, %c0_43] : memref<69x3x18xf32, #tpu.memory_space<vmem>>, vector<1x3x18xf32>
    %69 = vector.shape_cast %68 : vector<1x3x18xf32> to vector<3x18xf32>
    %70 = vector.extract_strided_slice %1 {offsets = [0, 13], sizes = [18, 332], strides = [1, 1]} : vector<18x400xf32> to vector<18x332xf32>
    %cst_44 = arith.constant dense<0.000000e+00> : vector<3x332xf32>
    %71 = tpu.matmul %69, %70, %cst_44 {dimension_numbers = #tpu.dot_dimension_numbers<[1], [0], [0], [1], [0, 0, 1, 1], [], []>} : vector<3x18xf32>, vector<18x332xf32>, vector<3x332xf32> -> vector<3x332xf32>
    %72 = arith.addf %67, %71 : vector<3x332xf32>
    %c14 = arith.constant 14 : index
    %c0_45 = arith.constant 0 : index
    %c0_46 = arith.constant 0 : index
    %73 = vector.load %arg2[%c14, %c0_45, %c0_46] : memref<69x3x18xf32, #tpu.memory_space<vmem>>, vector<1x3x18xf32>
    %74 = vector.shape_cast %73 : vector<1x3x18xf32> to vector<3x18xf32>
    %75 = vector.extract_strided_slice %1 {offsets = [0, 14], sizes = [18, 332], strides = [1, 1]} : vector<18x400xf32> to vector<18x332xf32>
    %cst_47 = arith.constant dense<0.000000e+00> : vector<3x332xf32>
    %76 = tpu.matmul %74, %75, %cst_47 {dimension_numbers = #tpu.dot_dimension_numbers<[1], [0], [0], [1], [0, 0, 1, 1], [], []>} : vector<3x18xf32>, vector<18x332xf32>, vector<3x332xf32> -> vector<3x332xf32>
    %77 = arith.addf %72, %76 : vector<3x332xf32>
    %c15 = arith.constant 15 : index
    %c0_48 = arith.constant 0 : index
    %c0_49 = arith.constant 0 : index
    %78 = vector.load %arg2[%c15, %c0_48, %c0_49] : memref<69x3x18xf32, #tpu.memory_space<vmem>>, vector<1x3x18xf32>
    %79 = vector.shape_cast %78 : vector<1x3x18xf32> to vector<3x18xf32>
    %80 = vector.extract_strided_slice %1 {offsets = [0, 15], sizes = [18, 332], strides = [1, 1]} : vector<18x400xf32> to vector<18x332xf32>
    %cst_50 = arith.constant dense<0.000000e+00> : vector<3x332xf32>
    %81 = tpu.matmul %79, %80, %cst_50 {dimension_numbers = #tpu.dot_dimension_numbers<[1], [0], [0], [1], [0, 0, 1, 1], [], []>} : vector<3x18xf32>, vector<18x332xf32>, vector<3x332xf32> -> vector<3x332xf32>
    %82 = arith.addf %77, %81 : vector<3x332xf32>
    %c16 = arith.constant 16 : index
    %c0_51 = arith.constant 0 : index
    %c0_52 = arith.constant 0 : index
    %83 = vector.load %arg2[%c16, %c0_51, %c0_52] : memref<69x3x18xf32, #tpu.memory_space<vmem>>, vector<1x3x18xf32>
    %84 = vector.shape_cast %83 : vector<1x3x18xf32> to vector<3x18xf32>
    %85 = vector.extract_strided_slice %1 {offsets = [0, 16], sizes = [18, 332], strides = [1, 1]} : vector<18x400xf32> to vector<18x332xf32>
    %cst_53 = arith.constant dense<0.000000e+00> : vector<3x332xf32>
    %86 = tpu.matmul %84, %85, %cst_53 {dimension_numbers = #tpu.dot_dimension_numbers<[1], [0], [0], [1], [0, 0, 1, 1], [], []>} : vector<3x18xf32>, vector<18x332xf32>, vector<3x332xf32> -> vector<3x332xf32>
    %87 = arith.addf %82, %86 : vector<3x332xf32>
    %c17 = arith.constant 17 : index
    %c0_54 = arith.constant 0 : index
    %c0_55 = arith.constant 0 : index
    %88 = vector.load %arg2[%c17, %c0_54, %c0_55] : memref<69x3x18xf32, #tpu.memory_space<vmem>>, vector<1x3x18xf32>
    %89 = vector.shape_cast %88 : vector<1x3x18xf32> to vector<3x18xf32>
    %90 = vector.extract_strided_slice %1 {offsets = [0, 17], sizes = [18, 332], strides = [1, 1]} : vector<18x400xf32> to vector<18x332xf32>
    %cst_56 = arith.constant dense<0.000000e+00> : vector<3x332xf32>
    %91 = tpu.matmul %89, %90, %cst_56 {dimension_numbers = #tpu.dot_dimension_numbers<[1], [0], [0], [1], [0, 0, 1, 1], [], []>} : vector<3x18xf32>, vector<18x332xf32>, vector<3x332xf32> -> vector<3x332xf32>
    %92 = arith.addf %87, %91 : vector<3x332xf32>
    %c18 = arith.constant 18 : index
    %c0_57 = arith.constant 0 : index
    %c0_58 = arith.constant 0 : index
    %93 = vector.load %arg2[%c18, %c0_57, %c0_58] : memref<69x3x18xf32, #tpu.memory_space<vmem>>, vector<1x3x18xf32>
    %94 = vector.shape_cast %93 : vector<1x3x18xf32> to vector<3x18xf32>
    %95 = vector.extract_strided_slice %1 {offsets = [0, 18], sizes = [18, 332], strides = [1, 1]} : vector<18x400xf32> to vector<18x332xf32>
    %cst_59 = arith.constant dense<0.000000e+00> : vector<3x332xf32>
    %96 = tpu.matmul %94, %95, %cst_59 {dimension_numbers = #tpu.dot_dimension_numbers<[1], [0], [0], [1], [0, 0, 1, 1], [], []>} : vector<3x18xf32>, vector<18x332xf32>, vector<3x332xf32> -> vector<3x332xf32>
    %97 = arith.addf %92, %96 : vector<3x332xf32>
    %c19 = arith.constant 19 : index
    %c0_60 = arith.constant 0 : index
    %c0_61 = arith.constant 0 : index
    %98 = vector.load %arg2[%c19, %c0_60, %c0_61] : memref<69x3x18xf32, #tpu.memory_space<vmem>>, vector<1x3x18xf32>
    %99 = vector.shape_cast %98 : vector<1x3x18xf32> to vector<3x18xf32>
    %100 = vector.extract_strided_slice %1 {offsets = [0, 19], sizes = [18, 332], strides = [1, 1]} : vector<18x400xf32> to vector<18x332xf32>
    %cst_62 = arith.constant dense<0.000000e+00> : vector<3x332xf32>
    %101 = tpu.matmul %99, %100, %cst_62 {dimension_numbers = #tpu.dot_dimension_numbers<[1], [0], [0], [1], [0, 0, 1, 1], [], []>} : vector<3x18xf32>, vector<18x332xf32>, vector<3x332xf32> -> vector<3x332xf32>
    %102 = arith.addf %97, %101 : vector<3x332xf32>
    %c20 = arith.constant 20 : index
    %c0_63 = arith.constant 0 : index
    %c0_64 = arith.constant 0 : index
    %103 = vector.load %arg2[%c20, %c0_63, %c0_64] : memref<69x3x18xf32, #tpu.memory_space<vmem>>, vector<1x3x18xf32>
    %104 = vector.shape_cast %103 : vector<1x3x18xf32> to vector<3x18xf32>
    %105 = vector.extract_strided_slice %1 {offsets = [0, 20], sizes = [18, 332], strides = [1, 1]} : vector<18x400xf32> to vector<18x332xf32>
    %cst_65 = arith.constant dense<0.000000e+00> : vector<3x332xf32>
    %106 = tpu.matmul %104, %105, %cst_65 {dimension_numbers = #tpu.dot_dimension_numbers<[1], [0], [0], [1], [0, 0, 1, 1], [], []>} : vector<3x18xf32>, vector<18x332xf32>, vector<3x332xf32> -> vector<3x332xf32>
    %107 = arith.addf %102, %106 : vector<3x332xf32>
    %c21 = arith.constant 21 : index
    %c0_66 = arith.constant 0 : index
    %c0_67 = arith.constant 0 : index
    %108 = vector.load %arg2[%c21, %c0_66, %c0_67] : memref<69x3x18xf32, #tpu.memory_space<vmem>>, vector<1x3x18xf32>
    %109 = vector.shape_cast %108 : vector<1x3x18xf32> to vector<3x18xf32>
    %110 = vector.extract_strided_slice %1 {offsets = [0, 21], sizes = [18, 332], strides = [1, 1]} : vector<18x400xf32> to vector<18x332xf32>
    %cst_68 = arith.constant dense<0.000000e+00> : vector<3x332xf32>
    %111 = tpu.matmul %109, %110, %cst_68 {dimension_numbers = #tpu.dot_dimension_numbers<[1], [0], [0], [1], [0, 0, 1, 1], [], []>} : vector<3x18xf32>, vector<18x332xf32>, vector<3x332xf32> -> vector<3x332xf32>
    %112 = arith.addf %107, %111 : vector<3x332xf32>
    %c22 = arith.constant 22 : index
    %c0_69 = arith.constant 0 : index
    %c0_70 = arith.constant 0 : index
    %113 = vector.load %arg2[%c22, %c0_69, %c0_70] : memref<69x3x18xf32, #tpu.memory_space<vmem>>, vector<1x3x18xf32>
    %114 = vector.shape_cast %113 : vector<1x3x18xf32> to vector<3x18xf32>
    %115 = vector.extract_strided_slice %1 {offsets = [0, 22], sizes = [18, 332], strides = [1, 1]} : vector<18x400xf32> to vector<18x332xf32>
    %cst_71 = arith.constant dense<0.000000e+00> : vector<3x332xf32>
    %116 = tpu.matmul %114, %115, %cst_71 {dimension_numbers = #tpu.dot_dimension_numbers<[1], [0], [0], [1], [0, 0, 1, 1], [], []>} : vector<3x18xf32>, vector<18x332xf32>, vector<3x332xf32> -> vector<3x332xf32>
    %117 = arith.addf %112, %116 : vector<3x332xf32>
    %c23 = arith.constant 23 : index
    %c0_72 = arith.constant 0 : index
    %c0_73 = arith.constant 0 : index
    %118 = vector.load %arg2[%c23, %c0_72, %c0_73] : memref<69x3x18xf32, #tpu.memory_space<vmem>>, vector<1x3x18xf32>
    %119 = vector.shape_cast %118 : vector<1x3x18xf32> to vector<3x18xf32>
    %120 = vector.extract_strided_slice %1 {offsets = [0, 23], sizes = [18, 332], strides = [1, 1]} : vector<18x400xf32> to vector<18x332xf32>
    %cst_74 = arith.constant dense<0.000000e+00> : vector<3x332xf32>
    %121 = tpu.matmul %119, %120, %cst_74 {dimension_numbers = #tpu.dot_dimension_numbers<[1], [0], [0], [1], [0, 0, 1, 1], [], []>} : vector<3x18xf32>, vector<18x332xf32>, vector<3x332xf32> -> vector<3x332xf32>
    %122 = arith.addf %117, %121 : vector<3x332xf32>
    %c24 = arith.constant 24 : index
    %c0_75 = arith.constant 0 : index
    %c0_76 = arith.constant 0 : index
    %123 = vector.load %arg2[%c24, %c0_75, %c0_76] : memref<69x3x18xf32, #tpu.memory_space<vmem>>, vector<1x3x18xf32>
    %124 = vector.shape_cast %123 : vector<1x3x18xf32> to vector<3x18xf32>
    %125 = vector.extract_strided_slice %1 {offsets = [0, 24], sizes = [18, 332], strides = [1, 1]} : vector<18x400xf32> to vector<18x332xf32>
    %cst_77 = arith.constant dense<0.000000e+00> : vector<3x332xf32>
    %126 = tpu.matmul %124, %125, %cst_77 {dimension_numbers = #tpu.dot_dimension_numbers<[1], [0], [0], [1], [0, 0, 1, 1], [], []>} : vector<3x18xf32>, vector<18x332xf32>, vector<3x332xf32> -> vector<3x332xf32>
    %127 = arith.addf %122, %126 : vector<3x332xf32>
    %c25 = arith.constant 25 : index
    %c0_78 = arith.constant 0 : index
    %c0_79 = arith.constant 0 : index
    %128 = vector.load %arg2[%c25, %c0_78, %c0_79] : memref<69x3x18xf32, #tpu.memory_space<vmem>>, vector<1x3x18xf32>
    %129 = vector.shape_cast %128 : vector<1x3x18xf32> to vector<3x18xf32>
    %130 = vector.extract_strided_slice %1 {offsets = [0, 25], sizes = [18, 332], strides = [1, 1]} : vector<18x400xf32> to vector<18x332xf32>
    %cst_80 = arith.constant dense<0.000000e+00> : vector<3x332xf32>
    %131 = tpu.matmul %129, %130, %cst_80 {dimension_numbers = #tpu.dot_dimension_numbers<[1], [0], [0], [1], [0, 0, 1, 1], [], []>} : vector<3x18xf32>, vector<18x332xf32>, vector<3x332xf32> -> vector<3x332xf32>
    %132 = arith.addf %127, %131 : vector<3x332xf32>
    %c26 = arith.constant 26 : index
    %c0_81 = arith.constant 0 : index
    %c0_82 = arith.constant 0 : index
    %133 = vector.load %arg2[%c26, %c0_81, %c0_82] : memref<69x3x18xf32, #tpu.memory_space<vmem>>, vector<1x3x18xf32>
    %134 = vector.shape_cast %133 : vector<1x3x18xf32> to vector<3x18xf32>
    %135 = vector.extract_strided_slice %1 {offsets = [0, 26], sizes = [18, 332], strides = [1, 1]} : vector<18x400xf32> to vector<18x332xf32>
    %cst_83 = arith.constant dense<0.000000e+00> : vector<3x332xf32>
    %136 = tpu.matmul %134, %135, %cst_83 {dimension_numbers = #tpu.dot_dimension_numbers<[1], [0], [0], [1], [0, 0, 1, 1], [], []>} : vector<3x18xf32>, vector<18x332xf32>, vector<3x332xf32> -> vector<3x332xf32>
    %137 = arith.addf %132, %136 : vector<3x332xf32>
    %c27 = arith.constant 27 : index
    %c0_84 = arith.constant 0 : index
    %c0_85 = arith.constant 0 : index
    %138 = vector.load %arg2[%c27, %c0_84, %c0_85] : memref<69x3x18xf32, #tpu.memory_space<vmem>>, vector<1x3x18xf32>
    %139 = vector.shape_cast %138 : vector<1x3x18xf32> to vector<3x18xf32>
    %140 = vector.extract_strided_slice %1 {offsets = [0, 27], sizes = [18, 332], strides = [1, 1]} : vector<18x400xf32> to vector<18x332xf32>
    %cst_86 = arith.constant dense<0.000000e+00> : vector<3x332xf32>
    %141 = tpu.matmul %139, %140, %cst_86 {dimension_numbers = #tpu.dot_dimension_numbers<[1], [0], [0], [1], [0, 0, 1, 1], [], []>} : vector<3x18xf32>, vector<18x332xf32>, vector<3x332xf32> -> vector<3x332xf32>
    %142 = arith.addf %137, %141 : vector<3x332xf32>
    %c28 = arith.constant 28 : index
    %c0_87 = arith.constant 0 : index
    %c0_88 = arith.constant 0 : index
    %143 = vector.load %arg2[%c28, %c0_87, %c0_88] : memref<69x3x18xf32, #tpu.memory_space<vmem>>, vector<1x3x18xf32>
    %144 = vector.shape_cast %143 : vector<1x3x18xf32> to vector<3x18xf32>
    %145 = vector.extract_strided_slice %1 {offsets = [0, 28], sizes = [18, 332], strides = [1, 1]} : vector<18x400xf32> to vector<18x332xf32>
    %cst_89 = arith.constant dense<0.000000e+00> : vector<3x332xf32>
    %146 = tpu.matmul %144, %145, %cst_89 {dimension_numbers = #tpu.dot_dimension_numbers<[1], [0], [0], [1], [0, 0, 1, 1], [], []>} : vector<3x18xf32>, vector<18x332xf32>, vector<3x332xf32> -> vector<3x332xf32>
    %147 = arith.addf %142, %146 : vector<3x332xf32>
    %c29 = arith.constant 29 : index
    %c0_90 = arith.constant 0 : index
    %c0_91 = arith.constant 0 : index
    %148 = vector.load %arg2[%c29, %c0_90, %c0_91] : memref<69x3x18xf32, #tpu.memory_space<vmem>>, vector<1x3x18xf32>
    %149 = vector.shape_cast %148 : vector<1x3x18xf32> to vector<3x18xf32>
    %150 = vector.extract_strided_slice %1 {offsets = [0, 29], sizes = [18, 332], strides = [1, 1]} : vector<18x400xf32> to vector<18x332xf32>
    %cst_92 = arith.constant dense<0.000000e+00> : vector<3x332xf32>
    %151 = tpu.matmul %149, %150, %cst_92 {dimension_numbers = #tpu.dot_dimension_numbers<[1], [0], [0], [1], [0, 0, 1, 1], [], []>} : vector<3x18xf32>, vector<18x332xf32>, vector<3x332xf32> -> vector<3x332xf32>
    %152 = arith.addf %147, %151 : vector<3x332xf32>
    %c30 = arith.constant 30 : index
    %c0_93 = arith.constant 0 : index
    %c0_94 = arith.constant 0 : index
    %153 = vector.load %arg2[%c30, %c0_93, %c0_94] : memref<69x3x18xf32, #tpu.memory_space<vmem>>, vector<1x3x18xf32>
    %154 = vector.shape_cast %153 : vector<1x3x18xf32> to vector<3x18xf32>
    %155 = vector.extract_strided_slice %1 {offsets = [0, 30], sizes = [18, 332], strides = [1, 1]} : vector<18x400xf32> to vector<18x332xf32>
    %cst_95 = arith.constant dense<0.000000e+00> : vector<3x332xf32>
    %156 = tpu.matmul %154, %155, %cst_95 {dimension_numbers = #tpu.dot_dimension_numbers<[1], [0], [0], [1], [0, 0, 1, 1], [], []>} : vector<3x18xf32>, vector<18x332xf32>, vector<3x332xf32> -> vector<3x332xf32>
    %157 = arith.addf %152, %156 : vector<3x332xf32>
    %c31 = arith.constant 31 : index
    %c0_96 = arith.constant 0 : index
    %c0_97 = arith.constant 0 : index
    %158 = vector.load %arg2[%c31, %c0_96, %c0_97] : memref<69x3x18xf32, #tpu.memory_space<vmem>>, vector<1x3x18xf32>
    %159 = vector.shape_cast %158 : vector<1x3x18xf32> to vector<3x18xf32>
    %160 = vector.extract_strided_slice %1 {offsets = [0, 31], sizes = [18, 332], strides = [1, 1]} : vector<18x400xf32> to vector<18x332xf32>
    %cst_98 = arith.constant dense<0.000000e+00> : vector<3x332xf32>
    %161 = tpu.matmul %159, %160, %cst_98 {dimension_numbers = #tpu.dot_dimension_numbers<[1], [0], [0], [1], [0, 0, 1, 1], [], []>} : vector<3x18xf32>, vector<18x332xf32>, vector<3x332xf32> -> vector<3x332xf32>
    %162 = arith.addf %157, %161 : vector<3x332xf32>
    %c32 = arith.constant 32 : index
    %c0_99 = arith.constant 0 : index
    %c0_100 = arith.constant 0 : index
    %163 = vector.load %arg2[%c32, %c0_99, %c0_100] : memref<69x3x18xf32, #tpu.memory_space<vmem>>, vector<1x3x18xf32>
    %164 = vector.shape_cast %163 : vector<1x3x18xf32> to vector<3x18xf32>
    %165 = vector.extract_strided_slice %1 {offsets = [0, 32], sizes = [18, 332], strides = [1, 1]} : vector<18x400xf32> to vector<18x332xf32>
    %cst_101 = arith.constant dense<0.000000e+00> : vector<3x332xf32>
    %166 = tpu.matmul %164, %165, %cst_101 {dimension_numbers = #tpu.dot_dimension_numbers<[1], [0], [0], [1], [0, 0, 1, 1], [], []>} : vector<3x18xf32>, vector<18x332xf32>, vector<3x332xf32> -> vector<3x332xf32>
    %167 = arith.addf %162, %166 : vector<3x332xf32>
    %c33 = arith.constant 33 : index
    %c0_102 = arith.constant 0 : index
    %c0_103 = arith.constant 0 : index
    %168 = vector.load %arg2[%c33, %c0_102, %c0_103] : memref<69x3x18xf32, #tpu.memory_space<vmem>>, vector<1x3x18xf32>
    %169 = vector.shape_cast %168 : vector<1x3x18xf32> to vector<3x18xf32>
    %170 = vector.extract_strided_slice %1 {offsets = [0, 33], sizes = [18, 332], strides = [1, 1]} : vector<18x400xf32> to vector<18x332xf32>
    %cst_104 = arith.constant dense<0.000000e+00> : vector<3x332xf32>
    %171 = tpu.matmul %169, %170, %cst_104 {dimension_numbers = #tpu.dot_dimension_numbers<[1], [0], [0], [1], [0, 0, 1, 1], [], []>} : vector<3x18xf32>, vector<18x332xf32>, vector<3x332xf32> -> vector<3x332xf32>
    %172 = arith.addf %167, %171 : vector<3x332xf32>
    %c34 = arith.constant 34 : index
    %c0_105 = arith.constant 0 : index
    %c0_106 = arith.constant 0 : index
    %173 = vector.load %arg2[%c34, %c0_105, %c0_106] : memref<69x3x18xf32, #tpu.memory_space<vmem>>, vector<1x3x18xf32>
    %174 = vector.shape_cast %173 : vector<1x3x18xf32> to vector<3x18xf32>
    %175 = vector.extract_strided_slice %1 {offsets = [0, 34], sizes = [18, 332], strides = [1, 1]} : vector<18x400xf32> to vector<18x332xf32>
    %cst_107 = arith.constant dense<0.000000e+00> : vector<3x332xf32>
    %176 = tpu.matmul %174, %175, %cst_107 {dimension_numbers = #tpu.dot_dimension_numbers<[1], [0], [0], [1], [0, 0, 1, 1], [], []>} : vector<3x18xf32>, vector<18x332xf32>, vector<3x332xf32> -> vector<3x332xf32>
    %177 = arith.addf %172, %176 : vector<3x332xf32>
    %c35 = arith.constant 35 : index
    %c0_108 = arith.constant 0 : index
    %c0_109 = arith.constant 0 : index
    %178 = vector.load %arg2[%c35, %c0_108, %c0_109] : memref<69x3x18xf32, #tpu.memory_space<vmem>>, vector<1x3x18xf32>
    %179 = vector.shape_cast %178 : vector<1x3x18xf32> to vector<3x18xf32>
    %180 = vector.extract_strided_slice %1 {offsets = [0, 35], sizes = [18, 332], strides = [1, 1]} : vector<18x400xf32> to vector<18x332xf32>
    %cst_110 = arith.constant dense<0.000000e+00> : vector<3x332xf32>
    %181 = tpu.matmul %179, %180, %cst_110 {dimension_numbers = #tpu.dot_dimension_numbers<[1], [0], [0], [1], [0, 0, 1, 1], [], []>} : vector<3x18xf32>, vector<18x332xf32>, vector<3x332xf32> -> vector<3x332xf32>
    %182 = arith.addf %177, %181 : vector<3x332xf32>
    %c36 = arith.constant 36 : index
    %c0_111 = arith.constant 0 : index
    %c0_112 = arith.constant 0 : index
    %183 = vector.load %arg2[%c36, %c0_111, %c0_112] : memref<69x3x18xf32, #tpu.memory_space<vmem>>, vector<1x3x18xf32>
    %184 = vector.shape_cast %183 : vector<1x3x18xf32> to vector<3x18xf32>
    %185 = vector.extract_strided_slice %1 {offsets = [0, 36], sizes = [18, 332], strides = [1, 1]} : vector<18x400xf32> to vector<18x332xf32>
    %cst_113 = arith.constant dense<0.000000e+00> : vector<3x332xf32>
    %186 = tpu.matmul %184, %185, %cst_113 {dimension_numbers = #tpu.dot_dimension_numbers<[1], [0], [0], [1], [0, 0, 1, 1], [], []>} : vector<3x18xf32>, vector<18x332xf32>, vector<3x332xf32> -> vector<3x332xf32>
    %187 = arith.addf %182, %186 : vector<3x332xf32>
    %c37 = arith.constant 37 : index
    %c0_114 = arith.constant 0 : index
    %c0_115 = arith.constant 0 : index
    %188 = vector.load %arg2[%c37, %c0_114, %c0_115] : memref<69x3x18xf32, #tpu.memory_space<vmem>>, vector<1x3x18xf32>
    %189 = vector.shape_cast %188 : vector<1x3x18xf32> to vector<3x18xf32>
    %190 = vector.extract_strided_slice %1 {offsets = [0, 37], sizes = [18, 332], strides = [1, 1]} : vector<18x400xf32> to vector<18x332xf32>
    %cst_116 = arith.constant dense<0.000000e+00> : vector<3x332xf32>
    %191 = tpu.matmul %189, %190, %cst_116 {dimension_numbers = #tpu.dot_dimension_numbers<[1], [0], [0], [1], [0, 0, 1, 1], [], []>} : vector<3x18xf32>, vector<18x332xf32>, vector<3x332xf32> -> vector<3x332xf32>
    %192 = arith.addf %187, %191 : vector<3x332xf32>
    %c38 = arith.constant 38 : index
    %c0_117 = arith.constant 0 : index
    %c0_118 = arith.constant 0 : index
    %193 = vector.load %arg2[%c38, %c0_117, %c0_118] : memref<69x3x18xf32, #tpu.memory_space<vmem>>, vector<1x3x18xf32>
    %194 = vector.shape_cast %193 : vector<1x3x18xf32> to vector<3x18xf32>
    %195 = vector.extract_strided_slice %1 {offsets = [0, 38], sizes = [18, 332], strides = [1, 1]} : vector<18x400xf32> to vector<18x332xf32>
    %cst_119 = arith.constant dense<0.000000e+00> : vector<3x332xf32>
    %196 = tpu.matmul %194, %195, %cst_119 {dimension_numbers = #tpu.dot_dimension_numbers<[1], [0], [0], [1], [0, 0, 1, 1], [], []>} : vector<3x18xf32>, vector<18x332xf32>, vector<3x332xf32> -> vector<3x332xf32>
    %197 = arith.addf %192, %196 : vector<3x332xf32>
    %c39 = arith.constant 39 : index
    %c0_120 = arith.constant 0 : index
    %c0_121 = arith.constant 0 : index
    %198 = vector.load %arg2[%c39, %c0_120, %c0_121] : memref<69x3x18xf32, #tpu.memory_space<vmem>>, vector<1x3x18xf32>
    %199 = vector.shape_cast %198 : vector<1x3x18xf32> to vector<3x18xf32>
    %200 = vector.extract_strided_slice %1 {offsets = [0, 39], sizes = [18, 332], strides = [1, 1]} : vector<18x400xf32> to vector<18x332xf32>
    %cst_122 = arith.constant dense<0.000000e+00> : vector<3x332xf32>
    %201 = tpu.matmul %199, %200, %cst_122 {dimension_numbers = #tpu.dot_dimension_numbers<[1], [0], [0], [1], [0, 0, 1, 1], [], []>} : vector<3x18xf32>, vector<18x332xf32>, vector<3x332xf32> -> vector<3x332xf32>
    %202 = arith.addf %197, %201 : vector<3x332xf32>
    %c40 = arith.constant 40 : index
    %c0_123 = arith.constant 0 : index
    %c0_124 = arith.constant 0 : index
    %203 = vector.load %arg2[%c40, %c0_123, %c0_124] : memref<69x3x18xf32, #tpu.memory_space<vmem>>, vector<1x3x18xf32>
    %204 = vector.shape_cast %203 : vector<1x3x18xf32> to vector<3x18xf32>
    %205 = vector.extract_strided_slice %1 {offsets = [0, 40], sizes = [18, 332], strides = [1, 1]} : vector<18x400xf32> to vector<18x332xf32>
    %cst_125 = arith.constant dense<0.000000e+00> : vector<3x332xf32>
    %206 = tpu.matmul %204, %205, %cst_125 {dimension_numbers = #tpu.dot_dimension_numbers<[1], [0], [0], [1], [0, 0, 1, 1], [], []>} : vector<3x18xf32>, vector<18x332xf32>, vector<3x332xf32> -> vector<3x332xf32>
    %207 = arith.addf %202, %206 : vector<3x332xf32>
    %c41 = arith.constant 41 : index
    %c0_126 = arith.constant 0 : index
    %c0_127 = arith.constant 0 : index
    %208 = vector.load %arg2[%c41, %c0_126, %c0_127] : memref<69x3x18xf32, #tpu.memory_space<vmem>>, vector<1x3x18xf32>
    %209 = vector.shape_cast %208 : vector<1x3x18xf32> to vector<3x18xf32>
    %210 = vector.extract_strided_slice %1 {offsets = [0, 41], sizes = [18, 332], strides = [1, 1]} : vector<18x400xf32> to vector<18x332xf32>
    %cst_128 = arith.constant dense<0.000000e+00> : vector<3x332xf32>
    %211 = tpu.matmul %209, %210, %cst_128 {dimension_numbers = #tpu.dot_dimension_numbers<[1], [0], [0], [1], [0, 0, 1, 1], [], []>} : vector<3x18xf32>, vector<18x332xf32>, vector<3x332xf32> -> vector<3x332xf32>
    %212 = arith.addf %207, %211 : vector<3x332xf32>
    %c42 = arith.constant 42 : index
    %c0_129 = arith.constant 0 : index
    %c0_130 = arith.constant 0 : index
    %213 = vector.load %arg2[%c42, %c0_129, %c0_130] : memref<69x3x18xf32, #tpu.memory_space<vmem>>, vector<1x3x18xf32>
    %214 = vector.shape_cast %213 : vector<1x3x18xf32> to vector<3x18xf32>
    %215 = vector.extract_strided_slice %1 {offsets = [0, 42], sizes = [18, 332], strides = [1, 1]} : vector<18x400xf32> to vector<18x332xf32>
    %cst_131 = arith.constant dense<0.000000e+00> : vector<3x332xf32>
    %216 = tpu.matmul %214, %215, %cst_131 {dimension_numbers = #tpu.dot_dimension_numbers<[1], [0], [0], [1], [0, 0, 1, 1], [], []>} : vector<3x18xf32>, vector<18x332xf32>, vector<3x332xf32> -> vector<3x332xf32>
    %217 = arith.addf %212, %216 : vector<3x332xf32>
    %c43 = arith.constant 43 : index
    %c0_132 = arith.constant 0 : index
    %c0_133 = arith.constant 0 : index
    %218 = vector.load %arg2[%c43, %c0_132, %c0_133] : memref<69x3x18xf32, #tpu.memory_space<vmem>>, vector<1x3x18xf32>
    %219 = vector.shape_cast %218 : vector<1x3x18xf32> to vector<3x18xf32>
    %220 = vector.extract_strided_slice %1 {offsets = [0, 43], sizes = [18, 332], strides = [1, 1]} : vector<18x400xf32> to vector<18x332xf32>
    %cst_134 = arith.constant dense<0.000000e+00> : vector<3x332xf32>
    %221 = tpu.matmul %219, %220, %cst_134 {dimension_numbers = #tpu.dot_dimension_numbers<[1], [0], [0], [1], [0, 0, 1, 1], [], []>} : vector<3x18xf32>, vector<18x332xf32>, vector<3x332xf32> -> vector<3x332xf32>
    %222 = arith.addf %217, %221 : vector<3x332xf32>
    %c44 = arith.constant 44 : index
    %c0_135 = arith.constant 0 : index
    %c0_136 = arith.constant 0 : index
    %223 = vector.load %arg2[%c44, %c0_135, %c0_136] : memref<69x3x18xf32, #tpu.memory_space<vmem>>, vector<1x3x18xf32>
    %224 = vector.shape_cast %223 : vector<1x3x18xf32> to vector<3x18xf32>
    %225 = vector.extract_strided_slice %1 {offsets = [0, 44], sizes = [18, 332], strides = [1, 1]} : vector<18x400xf32> to vector<18x332xf32>
    %cst_137 = arith.constant dense<0.000000e+00> : vector<3x332xf32>
    %226 = tpu.matmul %224, %225, %cst_137 {dimension_numbers = #tpu.dot_dimension_numbers<[1], [0], [0], [1], [0, 0, 1, 1], [], []>} : vector<3x18xf32>, vector<18x332xf32>, vector<3x332xf32> -> vector<3x332xf32>
    %227 = arith.addf %222, %226 : vector<3x332xf32>
    %c45 = arith.constant 45 : index
    %c0_138 = arith.constant 0 : index
    %c0_139 = arith.constant 0 : index
    %228 = vector.load %arg2[%c45, %c0_138, %c0_139] : memref<69x3x18xf32, #tpu.memory_space<vmem>>, vector<1x3x18xf32>
    %229 = vector.shape_cast %228 : vector<1x3x18xf32> to vector<3x18xf32>
    %230 = vector.extract_strided_slice %1 {offsets = [0, 45], sizes = [18, 332], strides = [1, 1]} : vector<18x400xf32> to vector<18x332xf32>
    %cst_140 = arith.constant dense<0.000000e+00> : vector<3x332xf32>
    %231 = tpu.matmul %229, %230, %cst_140 {dimension_numbers = #tpu.dot_dimension_numbers<[1], [0], [0], [1], [0, 0, 1, 1], [], []>} : vector<3x18xf32>, vector<18x332xf32>, vector<3x332xf32> -> vector<3x332xf32>
    %232 = arith.addf %227, %231 : vector<3x332xf32>
    %c46 = arith.constant 46 : index
    %c0_141 = arith.constant 0 : index
    %c0_142 = arith.constant 0 : index
    %233 = vector.load %arg2[%c46, %c0_141, %c0_142] : memref<69x3x18xf32, #tpu.memory_space<vmem>>, vector<1x3x18xf32>
    %234 = vector.shape_cast %233 : vector<1x3x18xf32> to vector<3x18xf32>
    %235 = vector.extract_strided_slice %1 {offsets = [0, 46], sizes = [18, 332], strides = [1, 1]} : vector<18x400xf32> to vector<18x332xf32>
    %cst_143 = arith.constant dense<0.000000e+00> : vector<3x332xf32>
    %236 = tpu.matmul %234, %235, %cst_143 {dimension_numbers = #tpu.dot_dimension_numbers<[1], [0], [0], [1], [0, 0, 1, 1], [], []>} : vector<3x18xf32>, vector<18x332xf32>, vector<3x332xf32> -> vector<3x332xf32>
    %237 = arith.addf %232, %236 : vector<3x332xf32>
    %c47 = arith.constant 47 : index
    %c0_144 = arith.constant 0 : index
    %c0_145 = arith.constant 0 : index
    %238 = vector.load %arg2[%c47, %c0_144, %c0_145] : memref<69x3x18xf32, #tpu.memory_space<vmem>>, vector<1x3x18xf32>
    %239 = vector.shape_cast %238 : vector<1x3x18xf32> to vector<3x18xf32>
    %240 = vector.extract_strided_slice %1 {offsets = [0, 47], sizes = [18, 332], strides = [1, 1]} : vector<18x400xf32> to vector<18x332xf32>
    %cst_146 = arith.constant dense<0.000000e+00> : vector<3x332xf32>
    %241 = tpu.matmul %239, %240, %cst_146 {dimension_numbers = #tpu.dot_dimension_numbers<[1], [0], [0], [1], [0, 0, 1, 1], [], []>} : vector<3x18xf32>, vector<18x332xf32>, vector<3x332xf32> -> vector<3x332xf32>
    %242 = arith.addf %237, %241 : vector<3x332xf32>
    %c48 = arith.constant 48 : index
    %c0_147 = arith.constant 0 : index
    %c0_148 = arith.constant 0 : index
    %243 = vector.load %arg2[%c48, %c0_147, %c0_148] : memref<69x3x18xf32, #tpu.memory_space<vmem>>, vector<1x3x18xf32>
    %244 = vector.shape_cast %243 : vector<1x3x18xf32> to vector<3x18xf32>
    %245 = vector.extract_strided_slice %1 {offsets = [0, 48], sizes = [18, 332], strides = [1, 1]} : vector<18x400xf32> to vector<18x332xf32>
    %cst_149 = arith.constant dense<0.000000e+00> : vector<3x332xf32>
    %246 = tpu.matmul %244, %245, %cst_149 {dimension_numbers = #tpu.dot_dimension_numbers<[1], [0], [0], [1], [0, 0, 1, 1], [], []>} : vector<3x18xf32>, vector<18x332xf32>, vector<3x332xf32> -> vector<3x332xf32>
    %247 = arith.addf %242, %246 : vector<3x332xf32>
    %c49 = arith.constant 49 : index
    %c0_150 = arith.constant 0 : index
    %c0_151 = arith.constant 0 : index
    %248 = vector.load %arg2[%c49, %c0_150, %c0_151] : memref<69x3x18xf32, #tpu.memory_space<vmem>>, vector<1x3x18xf32>
    %249 = vector.shape_cast %248 : vector<1x3x18xf32> to vector<3x18xf32>
    %250 = vector.extract_strided_slice %1 {offsets = [0, 49], sizes = [18, 332], strides = [1, 1]} : vector<18x400xf32> to vector<18x332xf32>
    %cst_152 = arith.constant dense<0.000000e+00> : vector<3x332xf32>
    %251 = tpu.matmul %249, %250, %cst_152 {dimension_numbers = #tpu.dot_dimension_numbers<[1], [0], [0], [1], [0, 0, 1, 1], [], []>} : vector<3x18xf32>, vector<18x332xf32>, vector<3x332xf32> -> vector<3x332xf32>
    %252 = arith.addf %247, %251 : vector<3x332xf32>
    %c50 = arith.constant 50 : index
    %c0_153 = arith.constant 0 : index
    %c0_154 = arith.constant 0 : index
    %253 = vector.load %arg2[%c50, %c0_153, %c0_154] : memref<69x3x18xf32, #tpu.memory_space<vmem>>, vector<1x3x18xf32>
    %254 = vector.shape_cast %253 : vector<1x3x18xf32> to vector<3x18xf32>
    %255 = vector.extract_strided_slice %1 {offsets = [0, 50], sizes = [18, 332], strides = [1, 1]} : vector<18x400xf32> to vector<18x332xf32>
    %cst_155 = arith.constant dense<0.000000e+00> : vector<3x332xf32>
    %256 = tpu.matmul %254, %255, %cst_155 {dimension_numbers = #tpu.dot_dimension_numbers<[1], [0], [0], [1], [0, 0, 1, 1], [], []>} : vector<3x18xf32>, vector<18x332xf32>, vector<3x332xf32> -> vector<3x332xf32>
    %257 = arith.addf %252, %256 : vector<3x332xf32>
    %c51 = arith.constant 51 : index
    %c0_156 = arith.constant 0 : index
    %c0_157 = arith.constant 0 : index
    %258 = vector.load %arg2[%c51, %c0_156, %c0_157] : memref<69x3x18xf32, #tpu.memory_space<vmem>>, vector<1x3x18xf32>
    %259 = vector.shape_cast %258 : vector<1x3x18xf32> to vector<3x18xf32>
    %260 = vector.extract_strided_slice %1 {offsets = [0, 51], sizes = [18, 332], strides = [1, 1]} : vector<18x400xf32> to vector<18x332xf32>
    %cst_158 = arith.constant dense<0.000000e+00> : vector<3x332xf32>
    %261 = tpu.matmul %259, %260, %cst_158 {dimension_numbers = #tpu.dot_dimension_numbers<[1], [0], [0], [1], [0, 0, 1, 1], [], []>} : vector<3x18xf32>, vector<18x332xf32>, vector<3x332xf32> -> vector<3x332xf32>
    %262 = arith.addf %257, %261 : vector<3x332xf32>
    %c52 = arith.constant 52 : index
    %c0_159 = arith.constant 0 : index
    %c0_160 = arith.constant 0 : index
    %263 = vector.load %arg2[%c52, %c0_159, %c0_160] : memref<69x3x18xf32, #tpu.memory_space<vmem>>, vector<1x3x18xf32>
    %264 = vector.shape_cast %263 : vector<1x3x18xf32> to vector<3x18xf32>
    %265 = vector.extract_strided_slice %1 {offsets = [0, 52], sizes = [18, 332], strides = [1, 1]} : vector<18x400xf32> to vector<18x332xf32>
    %cst_161 = arith.constant dense<0.000000e+00> : vector<3x332xf32>
    %266 = tpu.matmul %264, %265, %cst_161 {dimension_numbers = #tpu.dot_dimension_numbers<[1], [0], [0], [1], [0, 0, 1, 1], [], []>} : vector<3x18xf32>, vector<18x332xf32>, vector<3x332xf32> -> vector<3x332xf32>
    %267 = arith.addf %262, %266 : vector<3x332xf32>
    %c53 = arith.constant 53 : index
    %c0_162 = arith.constant 0 : index
    %c0_163 = arith.constant 0 : index
    %268 = vector.load %arg2[%c53, %c0_162, %c0_163] : memref<69x3x18xf32, #tpu.memory_space<vmem>>, vector<1x3x18xf32>
    %269 = vector.shape_cast %268 : vector<1x3x18xf32> to vector<3x18xf32>
    %270 = vector.extract_strided_slice %1 {offsets = [0, 53], sizes = [18, 332], strides = [1, 1]} : vector<18x400xf32> to vector<18x332xf32>
    %cst_164 = arith.constant dense<0.000000e+00> : vector<3x332xf32>
    %271 = tpu.matmul %269, %270, %cst_164 {dimension_numbers = #tpu.dot_dimension_numbers<[1], [0], [0], [1], [0, 0, 1, 1], [], []>} : vector<3x18xf32>, vector<18x332xf32>, vector<3x332xf32> -> vector<3x332xf32>
    %272 = arith.addf %267, %271 : vector<3x332xf32>
    %c54 = arith.constant 54 : index
    %c0_165 = arith.constant 0 : index
    %c0_166 = arith.constant 0 : index
    %273 = vector.load %arg2[%c54, %c0_165, %c0_166] : memref<69x3x18xf32, #tpu.memory_space<vmem>>, vector<1x3x18xf32>
    %274 = vector.shape_cast %273 : vector<1x3x18xf32> to vector<3x18xf32>
    %275 = vector.extract_strided_slice %1 {offsets = [0, 54], sizes = [18, 332], strides = [1, 1]} : vector<18x400xf32> to vector<18x332xf32>
    %cst_167 = arith.constant dense<0.000000e+00> : vector<3x332xf32>
    %276 = tpu.matmul %274, %275, %cst_167 {dimension_numbers = #tpu.dot_dimension_numbers<[1], [0], [0], [1], [0, 0, 1, 1], [], []>} : vector<3x18xf32>, vector<18x332xf32>, vector<3x332xf32> -> vector<3x332xf32>
    %277 = arith.addf %272, %276 : vector<3x332xf32>
    %c55 = arith.constant 55 : index
    %c0_168 = arith.constant 0 : index
    %c0_169 = arith.constant 0 : index
    %278 = vector.load %arg2[%c55, %c0_168, %c0_169] : memref<69x3x18xf32, #tpu.memory_space<vmem>>, vector<1x3x18xf32>
    %279 = vector.shape_cast %278 : vector<1x3x18xf32> to vector<3x18xf32>
    %280 = vector.extract_strided_slice %1 {offsets = [0, 55], sizes = [18, 332], strides = [1, 1]} : vector<18x400xf32> to vector<18x332xf32>
    %cst_170 = arith.constant dense<0.000000e+00> : vector<3x332xf32>
    %281 = tpu.matmul %279, %280, %cst_170 {dimension_numbers = #tpu.dot_dimension_numbers<[1], [0], [0], [1], [0, 0, 1, 1], [], []>} : vector<3x18xf32>, vector<18x332xf32>, vector<3x332xf32> -> vector<3x332xf32>
    %282 = arith.addf %277, %281 : vector<3x332xf32>
    %c56 = arith.constant 56 : index
    %c0_171 = arith.constant 0 : index
    %c0_172 = arith.constant 0 : index
    %283 = vector.load %arg2[%c56, %c0_171, %c0_172] : memref<69x3x18xf32, #tpu.memory_space<vmem>>, vector<1x3x18xf32>
    %284 = vector.shape_cast %283 : vector<1x3x18xf32> to vector<3x18xf32>
    %285 = vector.extract_strided_slice %1 {offsets = [0, 56], sizes = [18, 332], strides = [1, 1]} : vector<18x400xf32> to vector<18x332xf32>
    %cst_173 = arith.constant dense<0.000000e+00> : vector<3x332xf32>
    %286 = tpu.matmul %284, %285, %cst_173 {dimension_numbers = #tpu.dot_dimension_numbers<[1], [0], [0], [1], [0, 0, 1, 1], [], []>} : vector<3x18xf32>, vector<18x332xf32>, vector<3x332xf32> -> vector<3x332xf32>
    %287 = arith.addf %282, %286 : vector<3x332xf32>
    %c57 = arith.constant 57 : index
    %c0_174 = arith.constant 0 : index
    %c0_175 = arith.constant 0 : index
    %288 = vector.load %arg2[%c57, %c0_174, %c0_175] : memref<69x3x18xf32, #tpu.memory_space<vmem>>, vector<1x3x18xf32>
    %289 = vector.shape_cast %288 : vector<1x3x18xf32> to vector<3x18xf32>
    %290 = vector.extract_strided_slice %1 {offsets = [0, 57], sizes = [18, 332], strides = [1, 1]} : vector<18x400xf32> to vector<18x332xf32>
    %cst_176 = arith.constant dense<0.000000e+00> : vector<3x332xf32>
    %291 = tpu.matmul %289, %290, %cst_176 {dimension_numbers = #tpu.dot_dimension_numbers<[1], [0], [0], [1], [0, 0, 1, 1], [], []>} : vector<3x18xf32>, vector<18x332xf32>, vector<3x332xf32> -> vector<3x332xf32>
    %292 = arith.addf %287, %291 : vector<3x332xf32>
    %c58 = arith.constant 58 : index
    %c0_177 = arith.constant 0 : index
    %c0_178 = arith.constant 0 : index
    %293 = vector.load %arg2[%c58, %c0_177, %c0_178] : memref<69x3x18xf32, #tpu.memory_space<vmem>>, vector<1x3x18xf32>
    %294 = vector.shape_cast %293 : vector<1x3x18xf32> to vector<3x18xf32>
    %295 = vector.extract_strided_slice %1 {offsets = [0, 58], sizes = [18, 332], strides = [1, 1]} : vector<18x400xf32> to vector<18x332xf32>
    %cst_179 = arith.constant dense<0.000000e+00> : vector<3x332xf32>
    %296 = tpu.matmul %294, %295, %cst_179 {dimension_numbers = #tpu.dot_dimension_numbers<[1], [0], [0], [1], [0, 0, 1, 1], [], []>} : vector<3x18xf32>, vector<18x332xf32>, vector<3x332xf32> -> vector<3x332xf32>
    %297 = arith.addf %292, %296 : vector<3x332xf32>
    %c59 = arith.constant 59 : index
    %c0_180 = arith.constant 0 : index
    %c0_181 = arith.constant 0 : index
    %298 = vector.load %arg2[%c59, %c0_180, %c0_181] : memref<69x3x18xf32, #tpu.memory_space<vmem>>, vector<1x3x18xf32>
    %299 = vector.shape_cast %298 : vector<1x3x18xf32> to vector<3x18xf32>
    %300 = vector.extract_strided_slice %1 {offsets = [0, 59], sizes = [18, 332], strides = [1, 1]} : vector<18x400xf32> to vector<18x332xf32>
    %cst_182 = arith.constant dense<0.000000e+00> : vector<3x332xf32>
    %301 = tpu.matmul %299, %300, %cst_182 {dimension_numbers = #tpu.dot_dimension_numbers<[1], [0], [0], [1], [0, 0, 1, 1], [], []>} : vector<3x18xf32>, vector<18x332xf32>, vector<3x332xf32> -> vector<3x332xf32>
    %302 = arith.addf %297, %301 : vector<3x332xf32>
    %c60 = arith.constant 60 : index
    %c0_183 = arith.constant 0 : index
    %c0_184 = arith.constant 0 : index
    %303 = vector.load %arg2[%c60, %c0_183, %c0_184] : memref<69x3x18xf32, #tpu.memory_space<vmem>>, vector<1x3x18xf32>
    %304 = vector.shape_cast %303 : vector<1x3x18xf32> to vector<3x18xf32>
    %305 = vector.extract_strided_slice %1 {offsets = [0, 60], sizes = [18, 332], strides = [1, 1]} : vector<18x400xf32> to vector<18x332xf32>
    %cst_185 = arith.constant dense<0.000000e+00> : vector<3x332xf32>
    %306 = tpu.matmul %304, %305, %cst_185 {dimension_numbers = #tpu.dot_dimension_numbers<[1], [0], [0], [1], [0, 0, 1, 1], [], []>} : vector<3x18xf32>, vector<18x332xf32>, vector<3x332xf32> -> vector<3x332xf32>
    %307 = arith.addf %302, %306 : vector<3x332xf32>
    %c61 = arith.constant 61 : index
    %c0_186 = arith.constant 0 : index
    %c0_187 = arith.constant 0 : index
    %308 = vector.load %arg2[%c61, %c0_186, %c0_187] : memref<69x3x18xf32, #tpu.memory_space<vmem>>, vector<1x3x18xf32>
    %309 = vector.shape_cast %308 : vector<1x3x18xf32> to vector<3x18xf32>
    %310 = vector.extract_strided_slice %1 {offsets = [0, 61], sizes = [18, 332], strides = [1, 1]} : vector<18x400xf32> to vector<18x332xf32>
    %cst_188 = arith.constant dense<0.000000e+00> : vector<3x332xf32>
    %311 = tpu.matmul %309, %310, %cst_188 {dimension_numbers = #tpu.dot_dimension_numbers<[1], [0], [0], [1], [0, 0, 1, 1], [], []>} : vector<3x18xf32>, vector<18x332xf32>, vector<3x332xf32> -> vector<3x332xf32>
    %312 = arith.addf %307, %311 : vector<3x332xf32>
    %c62 = arith.constant 62 : index
    %c0_189 = arith.constant 0 : index
    %c0_190 = arith.constant 0 : index
    %313 = vector.load %arg2[%c62, %c0_189, %c0_190] : memref<69x3x18xf32, #tpu.memory_space<vmem>>, vector<1x3x18xf32>
    %314 = vector.shape_cast %313 : vector<1x3x18xf32> to vector<3x18xf32>
    %315 = vector.extract_strided_slice %1 {offsets = [0, 62], sizes = [18, 332], strides = [1, 1]} : vector<18x400xf32> to vector<18x332xf32>
    %cst_191 = arith.constant dense<0.000000e+00> : vector<3x332xf32>
    %316 = tpu.matmul %314, %315, %cst_191 {dimension_numbers = #tpu.dot_dimension_numbers<[1], [0], [0], [1], [0, 0, 1, 1], [], []>} : vector<3x18xf32>, vector<18x332xf32>, vector<3x332xf32> -> vector<3x332xf32>
    %317 = arith.addf %312, %316 : vector<3x332xf32>
    %c63 = arith.constant 63 : index
    %c0_192 = arith.constant 0 : index
    %c0_193 = arith.constant 0 : index
    %318 = vector.load %arg2[%c63, %c0_192, %c0_193] : memref<69x3x18xf32, #tpu.memory_space<vmem>>, vector<1x3x18xf32>
    %319 = vector.shape_cast %318 : vector<1x3x18xf32> to vector<3x18xf32>
    %320 = vector.extract_strided_slice %1 {offsets = [0, 63], sizes = [18, 332], strides = [1, 1]} : vector<18x400xf32> to vector<18x332xf32>
    %cst_194 = arith.constant dense<0.000000e+00> : vector<3x332xf32>
    %321 = tpu.matmul %319, %320, %cst_194 {dimension_numbers = #tpu.dot_dimension_numbers<[1], [0], [0], [1], [0, 0, 1, 1], [], []>} : vector<3x18xf32>, vector<18x332xf32>, vector<3x332xf32> -> vector<3x332xf32>
    %322 = arith.addf %317, %321 : vector<3x332xf32>
    %c64 = arith.constant 64 : index
    %c0_195 = arith.constant 0 : index
    %c0_196 = arith.constant 0 : index
    %323 = vector.load %arg2[%c64, %c0_195, %c0_196] : memref<69x3x18xf32, #tpu.memory_space<vmem>>, vector<1x3x18xf32>
    %324 = vector.shape_cast %323 : vector<1x3x18xf32> to vector<3x18xf32>
    %325 = vector.extract_strided_slice %1 {offsets = [0, 64], sizes = [18, 332], strides = [1, 1]} : vector<18x400xf32> to vector<18x332xf32>
    %cst_197 = arith.constant dense<0.000000e+00> : vector<3x332xf32>
    %326 = tpu.matmul %324, %325, %cst_197 {dimension_numbers = #tpu.dot_dimension_numbers<[1], [0], [0], [1], [0, 0, 1, 1], [], []>} : vector<3x18xf32>, vector<18x332xf32>, vector<3x332xf32> -> vector<3x332xf32>
    %327 = arith.addf %322, %326 : vector<3x332xf32>
    %c65 = arith.constant 65 : index
    %c0_198 = arith.constant 0 : index
    %c0_199 = arith.constant 0 : index
    %328 = vector.load %arg2[%c65, %c0_198, %c0_199] : memref<69x3x18xf32, #tpu.memory_space<vmem>>, vector<1x3x18xf32>
    %329 = vector.shape_cast %328 : vector<1x3x18xf32> to vector<3x18xf32>
    %330 = vector.extract_strided_slice %1 {offsets = [0, 65], sizes = [18, 332], strides = [1, 1]} : vector<18x400xf32> to vector<18x332xf32>
    %cst_200 = arith.constant dense<0.000000e+00> : vector<3x332xf32>
    %331 = tpu.matmul %329, %330, %cst_200 {dimension_numbers = #tpu.dot_dimension_numbers<[1], [0], [0], [1], [0, 0, 1, 1], [], []>} : vector<3x18xf32>, vector<18x332xf32>, vector<3x332xf32> -> vector<3x332xf32>
    %332 = arith.addf %327, %331 : vector<3x332xf32>
    %c66 = arith.constant 66 : index
    %c0_201 = arith.constant 0 : index
    %c0_202 = arith.constant 0 : index
    %333 = vector.load %arg2[%c66, %c0_201, %c0_202] : memref<69x3x18xf32, #tpu.memory_space<vmem>>, vector<1x3x18xf32>
    %334 = vector.shape_cast %333 : vector<1x3x18xf32> to vector<3x18xf32>
    %335 = vector.extract_strided_slice %1 {offsets = [0, 66], sizes = [18, 332], strides = [1, 1]} : vector<18x400xf32> to vector<18x332xf32>
    %cst_203 = arith.constant dense<0.000000e+00> : vector<3x332xf32>
    %336 = tpu.matmul %334, %335, %cst_203 {dimension_numbers = #tpu.dot_dimension_numbers<[1], [0], [0], [1], [0, 0, 1, 1], [], []>} : vector<3x18xf32>, vector<18x332xf32>, vector<3x332xf32> -> vector<3x332xf32>
    %337 = arith.addf %332, %336 : vector<3x332xf32>
    %c67 = arith.constant 67 : index
    %c0_204 = arith.constant 0 : index
    %c0_205 = arith.constant 0 : index
    %338 = vector.load %arg2[%c67, %c0_204, %c0_205] : memref<69x3x18xf32, #tpu.memory_space<vmem>>, vector<1x3x18xf32>
    %339 = vector.shape_cast %338 : vector<1x3x18xf32> to vector<3x18xf32>
    %340 = vector.extract_strided_slice %1 {offsets = [0, 67], sizes = [18, 332], strides = [1, 1]} : vector<18x400xf32> to vector<18x332xf32>
    %cst_206 = arith.constant dense<0.000000e+00> : vector<3x332xf32>
    %341 = tpu.matmul %339, %340, %cst_206 {dimension_numbers = #tpu.dot_dimension_numbers<[1], [0], [0], [1], [0, 0, 1, 1], [], []>} : vector<3x18xf32>, vector<18x332xf32>, vector<3x332xf32> -> vector<3x332xf32>
    %342 = arith.addf %337, %341 : vector<3x332xf32>
    %c68 = arith.constant 68 : index
    %c0_207 = arith.constant 0 : index
    %c0_208 = arith.constant 0 : index
    %343 = vector.load %arg2[%c68, %c0_207, %c0_208] : memref<69x3x18xf32, #tpu.memory_space<vmem>>, vector<1x3x18xf32>
    %344 = vector.shape_cast %343 : vector<1x3x18xf32> to vector<3x18xf32>
    %345 = vector.extract_strided_slice %1 {offsets = [0, 68], sizes = [18, 332], strides = [1, 1]} : vector<18x400xf32> to vector<18x332xf32>
    %cst_209 = arith.constant dense<0.000000e+00> : vector<3x332xf32>
    %346 = tpu.matmul %344, %345, %cst_209 {dimension_numbers = #tpu.dot_dimension_numbers<[1], [0], [0], [1], [0, 0, 1, 1], [], []>} : vector<3x18xf32>, vector<18x332xf32>, vector<3x332xf32> -> vector<3x332xf32>
    %347 = arith.addf %342, %346 : vector<3x332xf32>
    %c0_210 = arith.constant 0 : index
    %c0_211 = arith.constant 0 : index
    %348 = vector.load %arg4[%c0_210, %c0_211] : memref<1x9xf32, #tpu.memory_space<vmem>>, vector<1x9xf32>
    %349 = vector.extract_strided_slice %347 {offsets = [0, 0], sizes = [1, 332], strides = [1, 1]} : vector<3x332xf32> to vector<1x332xf32>
    %c0_212 = arith.constant 0 : index
    %c0_213 = arith.constant 0 : index
    %c0_214 = arith.constant 0 : index
    %350 = vector.load %arg3[%c0_212, %c0_213, %c0_214] : memref<3x332x9xf32, #tpu.memory_space<vmem>>, vector<1x332x9xf32>
    %351 = vector.shape_cast %350 : vector<1x332x9xf32> to vector<332x9xf32>
    %cst_215 = arith.constant dense<0.000000e+00> : vector<1x9xf32>
    %352 = tpu.matmul %349, %351, %cst_215 {dimension_numbers = #tpu.dot_dimension_numbers<[1], [0], [0], [1], [0, 0, 1, 1], [], []>} : vector<1x332xf32>, vector<332x9xf32>, vector<1x9xf32> -> vector<1x9xf32>
    %353 = arith.addf %348, %352 : vector<1x9xf32>
    %354 = vector.extract_strided_slice %347 {offsets = [1, 0], sizes = [1, 332], strides = [1, 1]} : vector<3x332xf32> to vector<1x332xf32>
    %c1_216 = arith.constant 1 : index
    %c0_217 = arith.constant 0 : index
    %c0_218 = arith.constant 0 : index
    %355 = vector.load %arg3[%c1_216, %c0_217, %c0_218] : memref<3x332x9xf32, #tpu.memory_space<vmem>>, vector<1x332x9xf32>
    %356 = vector.shape_cast %355 : vector<1x332x9xf32> to vector<332x9xf32>
    %cst_219 = arith.constant dense<0.000000e+00> : vector<1x9xf32>
    %357 = tpu.matmul %354, %356, %cst_219 {dimension_numbers = #tpu.dot_dimension_numbers<[1], [0], [0], [1], [0, 0, 1, 1], [], []>} : vector<1x332xf32>, vector<332x9xf32>, vector<1x9xf32> -> vector<1x9xf32>
    %358 = arith.addf %353, %357 : vector<1x9xf32>
    %359 = vector.extract_strided_slice %347 {offsets = [2, 0], sizes = [1, 332], strides = [1, 1]} : vector<3x332xf32> to vector<1x332xf32>
    %c2_220 = arith.constant 2 : index
    %c0_221 = arith.constant 0 : index
    %c0_222 = arith.constant 0 : index
    %360 = vector.load %arg3[%c2_220, %c0_221, %c0_222] : memref<3x332x9xf32, #tpu.memory_space<vmem>>, vector<1x332x9xf32>
    %361 = vector.shape_cast %360 : vector<1x332x9xf32> to vector<332x9xf32>
    %cst_223 = arith.constant dense<0.000000e+00> : vector<1x9xf32>
    %362 = tpu.matmul %359, %361, %cst_223 {dimension_numbers = #tpu.dot_dimension_numbers<[1], [0], [0], [1], [0, 0, 1, 1], [], []>} : vector<1x332xf32>, vector<332x9xf32>, vector<1x9xf32> -> vector<1x9xf32>
    %363 = arith.addf %358, %362 : vector<1x9xf32>
    %cst_224 = arith.constant 0.000000e+00 : f32
    %364 = vector.broadcast %cst_224 : f32 to vector<128x9xf32>
    %365 = vector.extract_strided_slice %363 {offsets = [0, 0], sizes = [1, 1], strides = [1, 1]} : vector<1x9xf32> to vector<1x1xf32>
    %c0_225 = arith.constant 0 : index
    %c0_226 = arith.constant 0 : index
    %c0_227 = arith.constant 0 : index
    %366 = vector.load %arg5[%c0_225, %c0_226, %c0_227] : memref<9x128x9xf32, #tpu.memory_space<vmem>>, vector<1x128x9xf32>
    %367 = vector.shape_cast %366 : vector<1x128x9xf32> to vector<128x9xf32>
    %368 = vector.broadcast %365 : vector<1x1xf32> to vector<128x9xf32>
    %369 = arith.mulf %368, %367 : vector<128x9xf32>
    %370 = arith.addf %364, %369 : vector<128x9xf32>
    %371 = vector.extract_strided_slice %363 {offsets = [0, 1], sizes = [1, 1], strides = [1, 1]} : vector<1x9xf32> to vector<1x1xf32>
    %c1_228 = arith.constant 1 : index
    %c0_229 = arith.constant 0 : index
    %c0_230 = arith.constant 0 : index
    %372 = vector.load %arg5[%c1_228, %c0_229, %c0_230] : memref<9x128x9xf32, #tpu.memory_space<vmem>>, vector<1x128x9xf32>
    %373 = vector.shape_cast %372 : vector<1x128x9xf32> to vector<128x9xf32>
    %374 = vector.broadcast %371 : vector<1x1xf32> to vector<128x9xf32>
    %375 = arith.mulf %374, %373 : vector<128x9xf32>
    %376 = arith.addf %370, %375 : vector<128x9xf32>
    %377 = vector.extract_strided_slice %363 {offsets = [0, 2], sizes = [1, 1], strides = [1, 1]} : vector<1x9xf32> to vector<1x1xf32>
    %c2_231 = arith.constant 2 : index
    %c0_232 = arith.constant 0 : index
    %c0_233 = arith.constant 0 : index
    %378 = vector.load %arg5[%c2_231, %c0_232, %c0_233] : memref<9x128x9xf32, #tpu.memory_space<vmem>>, vector<1x128x9xf32>
    %379 = vector.shape_cast %378 : vector<1x128x9xf32> to vector<128x9xf32>
    %380 = vector.broadcast %377 : vector<1x1xf32> to vector<128x9xf32>
    %381 = arith.mulf %380, %379 : vector<128x9xf32>
    %382 = arith.addf %376, %381 : vector<128x9xf32>
    %383 = vector.extract_strided_slice %363 {offsets = [0, 3], sizes = [1, 1], strides = [1, 1]} : vector<1x9xf32> to vector<1x1xf32>
    %c3_234 = arith.constant 3 : index
    %c0_235 = arith.constant 0 : index
    %c0_236 = arith.constant 0 : index
    %384 = vector.load %arg5[%c3_234, %c0_235, %c0_236] : memref<9x128x9xf32, #tpu.memory_space<vmem>>, vector<1x128x9xf32>
    %385 = vector.shape_cast %384 : vector<1x128x9xf32> to vector<128x9xf32>
    %386 = vector.broadcast %383 : vector<1x1xf32> to vector<128x9xf32>
    %387 = arith.mulf %386, %385 : vector<128x9xf32>
    %388 = arith.addf %382, %387 : vector<128x9xf32>
    %389 = vector.extract_strided_slice %363 {offsets = [0, 4], sizes = [1, 1], strides = [1, 1]} : vector<1x9xf32> to vector<1x1xf32>
    %c4_237 = arith.constant 4 : index
    %c0_238 = arith.constant 0 : index
    %c0_239 = arith.constant 0 : index
    %390 = vector.load %arg5[%c4_237, %c0_238, %c0_239] : memref<9x128x9xf32, #tpu.memory_space<vmem>>, vector<1x128x9xf32>
    %391 = vector.shape_cast %390 : vector<1x128x9xf32> to vector<128x9xf32>
    %392 = vector.broadcast %389 : vector<1x1xf32> to vector<128x9xf32>
    %393 = arith.mulf %392, %391 : vector<128x9xf32>
    %394 = arith.addf %388, %393 : vector<128x9xf32>
    %395 = vector.extract_strided_slice %363 {offsets = [0, 5], sizes = [1, 1], strides = [1, 1]} : vector<1x9xf32> to vector<1x1xf32>
    %c5_240 = arith.constant 5 : index
    %c0_241 = arith.constant 0 : index
    %c0_242 = arith.constant 0 : index
    %396 = vector.load %arg5[%c5_240, %c0_241, %c0_242] : memref<9x128x9xf32, #tpu.memory_space<vmem>>, vector<1x128x9xf32>
    %397 = vector.shape_cast %396 : vector<1x128x9xf32> to vector<128x9xf32>
    %398 = vector.broadcast %395 : vector<1x1xf32> to vector<128x9xf32>
    %399 = arith.mulf %398, %397 : vector<128x9xf32>
    %400 = arith.addf %394, %399 : vector<128x9xf32>
    %401 = vector.extract_strided_slice %363 {offsets = [0, 6], sizes = [1, 1], strides = [1, 1]} : vector<1x9xf32> to vector<1x1xf32>
    %c6_243 = arith.constant 6 : index
    %c0_244 = arith.constant 0 : index
    %c0_245 = arith.constant 0 : index
    %402 = vector.load %arg5[%c6_243, %c0_244, %c0_245] : memref<9x128x9xf32, #tpu.memory_space<vmem>>, vector<1x128x9xf32>
    %403 = vector.shape_cast %402 : vector<1x128x9xf32> to vector<128x9xf32>
    %404 = vector.broadcast %401 : vector<1x1xf32> to vector<128x9xf32>
    %405 = arith.mulf %404, %403 : vector<128x9xf32>
    %406 = arith.addf %400, %405 : vector<128x9xf32>
    %407 = vector.extract_strided_slice %363 {offsets = [0, 7], sizes = [1, 1], strides = [1, 1]} : vector<1x9xf32> to vector<1x1xf32>
    %c7_246 = arith.constant 7 : index
    %c0_247 = arith.constant 0 : index
    %c0_248 = arith.constant 0 : index
    %408 = vector.load %arg5[%c7_246, %c0_247, %c0_248] : memref<9x128x9xf32, #tpu.memory_space<vmem>>, vector<1x128x9xf32>
    %409 = vector.shape_cast %408 : vector<1x128x9xf32> to vector<128x9xf32>
    %410 = vector.broadcast %407 : vector<1x1xf32> to vector<128x9xf32>
    %411 = arith.mulf %410, %409 : vector<128x9xf32>
    %412 = arith.addf %406, %411 : vector<128x9xf32>
    %413 = vector.extract_strided_slice %363 {offsets = [0, 8], sizes = [1, 1], strides = [1, 1]} : vector<1x9xf32> to vector<1x1xf32>
    %c8_249 = arith.constant 8 : index
    %c0_250 = arith.constant 0 : index
    %c0_251 = arith.constant 0 : index
    %414 = vector.load %arg5[%c8_249, %c0_250, %c0_251] : memref<9x128x9xf32, #tpu.memory_space<vmem>>, vector<1x128x9xf32>
    %415 = vector.shape_cast %414 : vector<1x128x9xf32> to vector<128x9xf32>
    %416 = vector.broadcast %413 : vector<1x1xf32> to vector<128x9xf32>
    %417 = arith.mulf %416, %415 : vector<128x9xf32>
    %418 = arith.addf %412, %417 : vector<128x9xf32>
    %cst_252 = arith.constant 0.000000e+00 : f32
    %419 = vector.broadcast %cst_252 : f32 to vector<128x9xf32>
    %420 = arith.cmpf ogt, %418, %419 : vector<128x9xf32>
    %c0_253 = arith.constant 0 : index
    %c0_254 = arith.constant 0 : index
    %421 = vector.load %arg6[%c0_253, %c0_254] : memref<1x1xf32, #tpu.memory_space<vmem>>, vector<1x1xf32>
    %422 = vector.broadcast %421 : vector<1x1xf32> to vector<128x9xf32>
    %423 = arith.mulf %422, %418 : vector<128x9xf32>
    %424 = arith.select %420, %418, %423 : vector<128x9xi1>, vector<128x9xf32>
    %c0_255 = arith.constant 0 : index
    %c0_256 = arith.constant 0 : index
    %425 = vector.load %arg7[%c0_255, %c0_256] : memref<9x4xf32, #tpu.memory_space<vmem>>, vector<9x4xf32>
    %cst_257 = arith.constant dense<0.000000e+00> : vector<128x4xf32>
    %426 = tpu.matmul %424, %425, %cst_257 {dimension_numbers = #tpu.dot_dimension_numbers<[1], [0], [0], [1], [0, 0, 1, 1], [], []>} : vector<128x9xf32>, vector<9x4xf32>, vector<128x4xf32> -> vector<128x4xf32>
    %c0_258 = arith.constant 0 : index
    %c0_259 = arith.constant 0 : index
    %427 = vector.load %arg8[%c0_258, %c0_259] : memref<1x4xf32, #tpu.memory_space<vmem>>, vector<1x4xf32>
    %428 = vector.broadcast %427 : vector<1x4xf32> to vector<128x4xf32>
    %429 = arith.addf %426, %428 : vector<128x4xf32>
    %c0_260 = arith.constant 0 : index
    %c0_261 = arith.constant 0 : index
    %430 = vector.load %arg9[%c0_260, %c0_261] : memref<9x4xf32, #tpu.memory_space<vmem>>, vector<9x4xf32>
    %cst_262 = arith.constant dense<0.000000e+00> : vector<128x4xf32>
    %431 = tpu.matmul %424, %430, %cst_262 {dimension_numbers = #tpu.dot_dimension_numbers<[1], [0], [0], [1], [0, 0, 1, 1], [], []>} : vector<128x9xf32>, vector<9x4xf32>, vector<128x4xf32> -> vector<128x4xf32>
    %c0_263 = arith.constant 0 : index
    %c0_264 = arith.constant 0 : index
    %432 = vector.load %arg10[%c0_263, %c0_264] : memref<1x4xf32, #tpu.memory_space<vmem>>, vector<1x4xf32>
    %433 = vector.broadcast %432 : vector<1x4xf32> to vector<128x4xf32>
    %434 = arith.addf %431, %433 : vector<128x4xf32>
    %c0_265 = arith.constant 0 : index
    %c0_266 = arith.constant 0 : index
    %435 = vector.load %arg11[%c0_265, %c0_266] : memref<9x4xf32, #tpu.memory_space<vmem>>, vector<9x4xf32>
    %cst_267 = arith.constant dense<0.000000e+00> : vector<128x4xf32>
    %436 = tpu.matmul %424, %435, %cst_267 {dimension_numbers = #tpu.dot_dimension_numbers<[1], [0], [0], [1], [0, 0, 1, 1], [], []>} : vector<128x9xf32>, vector<9x4xf32>, vector<128x4xf32> -> vector<128x4xf32>
    %c0_268 = arith.constant 0 : index
    %c0_269 = arith.constant 0 : index
    %437 = vector.load %arg12[%c0_268, %c0_269] : memref<1x4xf32, #tpu.memory_space<vmem>>, vector<1x4xf32>
    %438 = vector.broadcast %437 : vector<1x4xf32> to vector<128x4xf32>
    %439 = arith.addf %436, %438 : vector<128x4xf32>
    %440 = vector.extract_strided_slice %429 {offsets = [0, 0], sizes = [128, 2], strides = [1, 1]} : vector<128x4xf32> to vector<128x2xf32>
    %441 = vector.extract_strided_slice %434 {offsets = [0, 0], sizes = [128, 2], strides = [1, 1]} : vector<128x4xf32> to vector<128x2xf32>
    %442 = vector.extract_strided_slice %439 {offsets = [0, 0], sizes = [128, 2], strides = [1, 1]} : vector<128x4xf32> to vector<128x2xf32>
    %443 = tpu.transpose %441, [1, 0] : vector<128x2xf32> -> vector<2x128xf32>
    %cst_270 = arith.constant dense<0.000000e+00> : vector<128x128xf32>
    %444 = tpu.matmul %440, %443, %cst_270 {dimension_numbers = #tpu.dot_dimension_numbers<[1], [0], [0], [1], [0, 0, 1, 1], [], []>} : vector<128x2xf32>, vector<2x128xf32>, vector<128x128xf32> -> vector<128x128xf32>
    %cst_271 = arith.constant dense<0xFF800000> : vector<128xf32>
    %445 = vector.multi_reduction <maximumf>, %444, %cst_271 [1] : vector<128x128xf32> to vector<128xf32>
    %446 = vector.shape_cast %445 : vector<128xf32> to vector<128x1xf32>
    %447 = vector.broadcast %446 : vector<128x1xf32> to vector<128x128xf32>
    %448 = arith.subf %444, %447 : vector<128x128xf32>
    %449 = math.exp %448 : vector<128x128xf32>
    %cst_272 = arith.constant dense<0.000000e+00> : vector<128xf32>
    %450 = vector.multi_reduction <add>, %449, %cst_272 [1] : vector<128x128xf32> to vector<128xf32>
    %451 = vector.shape_cast %450 : vector<128xf32> to vector<128x1xf32>
    %452 = tpu.reciprocal %451 {approx = true} : vector<128x1xf32> -> vector<128x1xf32>
    %453 = vector.broadcast %452 : vector<128x1xf32> to vector<128x128xf32>
    %454 = arith.mulf %449, %453 : vector<128x128xf32>
    %cst_273 = arith.constant dense<0.000000e+00> : vector<128x2xf32>
    %455 = tpu.matmul %454, %442, %cst_273 {dimension_numbers = #tpu.dot_dimension_numbers<[1], [0], [0], [1], [0, 0, 1, 1], [], []>} : vector<128x128xf32>, vector<128x2xf32>, vector<128x2xf32> -> vector<128x2xf32>
    %456 = tpu.transpose %455, [1, 0] : vector<128x2xf32> -> vector<2x128xf32>
    %457 = vector.extract_strided_slice %456 {offsets = [0, 0], sizes = [1, 128], strides = [1, 1]} : vector<2x128xf32> to vector<1x128xf32>
    %458 = vector.extract_strided_slice %456 {offsets = [1, 0], sizes = [1, 128], strides = [1, 1]} : vector<2x128xf32> to vector<1x128xf32>
    %459 = vector.extract_strided_slice %429 {offsets = [0, 2], sizes = [128, 2], strides = [1, 1]} : vector<128x4xf32> to vector<128x2xf32>
    %460 = vector.extract_strided_slice %434 {offsets = [0, 2], sizes = [128, 2], strides = [1, 1]} : vector<128x4xf32> to vector<128x2xf32>
    %461 = vector.extract_strided_slice %439 {offsets = [0, 2], sizes = [128, 2], strides = [1, 1]} : vector<128x4xf32> to vector<128x2xf32>
    %462 = tpu.transpose %460, [1, 0] : vector<128x2xf32> -> vector<2x128xf32>
    %cst_274 = arith.constant dense<0.000000e+00> : vector<128x128xf32>
    %463 = tpu.matmul %459, %462, %cst_274 {dimension_numbers = #tpu.dot_dimension_numbers<[1], [0], [0], [1], [0, 0, 1, 1], [], []>} : vector<128x2xf32>, vector<2x128xf32>, vector<128x128xf32> -> vector<128x128xf32>
    %cst_275 = arith.constant dense<0xFF800000> : vector<128xf32>
    %464 = vector.multi_reduction <maximumf>, %463, %cst_275 [1] : vector<128x128xf32> to vector<128xf32>
    %465 = vector.shape_cast %464 : vector<128xf32> to vector<128x1xf32>
    %466 = vector.broadcast %465 : vector<128x1xf32> to vector<128x128xf32>
    %467 = arith.subf %463, %466 : vector<128x128xf32>
    %468 = math.exp %467 : vector<128x128xf32>
    %cst_276 = arith.constant dense<0.000000e+00> : vector<128xf32>
    %469 = vector.multi_reduction <add>, %468, %cst_276 [1] : vector<128x128xf32> to vector<128xf32>
    %470 = vector.shape_cast %469 : vector<128xf32> to vector<128x1xf32>
    %471 = tpu.reciprocal %470 {approx = true} : vector<128x1xf32> -> vector<128x1xf32>
    %472 = vector.broadcast %471 : vector<128x1xf32> to vector<128x128xf32>
    %473 = arith.mulf %468, %472 : vector<128x128xf32>
    %cst_277 = arith.constant dense<0.000000e+00> : vector<128x2xf32>
    %474 = tpu.matmul %473, %461, %cst_277 {dimension_numbers = #tpu.dot_dimension_numbers<[1], [0], [0], [1], [0, 0, 1, 1], [], []>} : vector<128x128xf32>, vector<128x2xf32>, vector<128x2xf32> -> vector<128x2xf32>
    %475 = tpu.transpose %474, [1, 0] : vector<128x2xf32> -> vector<2x128xf32>
    %476 = vector.extract_strided_slice %475 {offsets = [0, 0], sizes = [1, 128], strides = [1, 1]} : vector<2x128xf32> to vector<1x128xf32>
    %477 = vector.extract_strided_slice %475 {offsets = [1, 0], sizes = [1, 128], strides = [1, 1]} : vector<2x128xf32> to vector<1x128xf32>
    %478 = tpu.concatenate %457, %458, %476, %477 in 1 : vector<1x128xf32>, vector<1x128xf32>, vector<1x128xf32>, vector<1x128xf32> -> vector<1x512xf32>
    %c0_278 = arith.constant 0 : index
    %c0_279 = arith.constant 0 : index
    %479 = vector.load %arg13[%c0_278, %c0_279] : memref<512x64xf32, #tpu.memory_space<vmem>>, vector<512x64xf32>
    %cst_280 = arith.constant dense<0.000000e+00> : vector<1x64xf32>
    %480 = tpu.matmul %478, %479, %cst_280 {dimension_numbers = #tpu.dot_dimension_numbers<[1], [0], [0], [1], [0, 0, 1, 1], [], []>} : vector<1x512xf32>, vector<512x64xf32>, vector<1x64xf32> -> vector<1x64xf32>
    %c0_281 = arith.constant 0 : index
    %c0_282 = arith.constant 0 : index
    %481 = vector.load %arg14[%c0_281, %c0_282] : memref<1x64xf32, #tpu.memory_space<vmem>>, vector<1x64xf32>
    %482 = arith.addf %480, %481 : vector<1x64xf32>
    %c0_283 = arith.constant 0 : index
    %c0_284 = arith.constant 0 : index
    %c0_285 = arith.constant 0 : index
    %483 = vector.load %arg15[%c0_283, %c0_284, %c0_285] : memref<1x1x64xf32, #tpu.memory_space<vmem>>, vector<1x1x64xf32>
    %484 = vector.shape_cast %483 : vector<1x1x64xf32> to vector<1x64xf32>
    %485 = vector.shape_cast %482 : vector<1x64xf32> to vector<1x1x64xf32>
    tpu.vector_store %arg15[%c0_283, %c0_284, %c0_285], %485 {strides = array<i32>} : memref<1x1x64xf32, #tpu.memory_space<vmem>>, vector<1x1x64xf32>,
    return
  }
  func.func @transform_0(%arg0: i32) -> (i32, i32, i32) {
    %c0_i32 = arith.constant 0 : i32
    %c0_i32_0 = arith.constant 0 : i32
    %c0_i32_1 = arith.constant 0 : i32
    return %arg0, %c0_i32, %c0_i32_0 : i32, i32, i32
  }
  func.func @transform_1(%arg0: i32) -> (i32, i32, i32) {
    %c0_i32 = arith.constant 0 : i32
    %c0_i32_0 = arith.constant 0 : i32
    %c0_i32_1 = arith.constant 0 : i32
    %c0_i32_2 = arith.constant 0 : i32
    return %c0_i32, %c0_i32_0, %c0_i32_1 : i32, i32, i32
  }
  func.func @transform_2(%arg0: i32) -> (i32, i32, i32) {
    %c0_i32 = arith.constant 0 : i32
    %c0_i32_0 = arith.constant 0 : i32
    %c0_i32_1 = arith.constant 0 : i32
    %c0_i32_2 = arith.constant 0 : i32
    return %c0_i32, %c0_i32_0, %c0_i32_1 : i32, i32, i32
  }
  func.func @transform_3(%arg0: i32) -> (i32, i32) {
    %c0_i32 = arith.constant 0 : i32
    %c0_i32_0 = arith.constant 0 : i32
    %c0_i32_1 = arith.constant 0 : i32
    return %c0_i32, %c0_i32_0 : i32, i32
  }
  func.func @transform_4(%arg0: i32) -> (i32, i32, i32) {
    %c0_i32 = arith.constant 0 : i32
    %c0_i32_0 = arith.constant 0 : i32
    %c0_i32_1 = arith.constant 0 : i32
    %c0_i32_2 = arith.constant 0 : i32
    return %c0_i32, %c0_i32_0, %c0_i32_1 : i32, i32, i32
  }
  func.func @transform_5(%arg0: i32) -> (i32, i32) {
    %c0_i32 = arith.constant 0 : i32
    %c0_i32_0 = arith.constant 0 : i32
    %c0_i32_1 = arith.constant 0 : i32
    return %c0_i32, %c0_i32_0 : i32, i32
  }
  func.func @transform_6(%arg0: i32) -> (i32, i32) {
    %c0_i32 = arith.constant 0 : i32
    %c0_i32_0 = arith.constant 0 : i32
    %c0_i32_1 = arith.constant 0 : i32
    return %c0_i32, %c0_i32_0 : i32, i32
  }
  func.func @transform_7(%arg0: i32) -> (i32, i32) {
    %c0_i32 = arith.constant 0 : i32
    %c0_i32_0 = arith.constant 0 : i32
    %c0_i32_1 = arith.constant 0 : i32
    return %c0_i32, %c0_i32_0 : i32, i32
  }
  func.func @transform_8(%arg0: i32) -> (i32, i32) {
    %c0_i32 = arith.constant 0 : i32
    %c0_i32_0 = arith.constant 0 : i32
    %c0_i32_1 = arith.constant 0 : i32
    return %c0_i32, %c0_i32_0 : i32, i32
  }
  func.func @transform_9(%arg0: i32) -> (i32, i32) {
    %c0_i32 = arith.constant 0 : i32
    %c0_i32_0 = arith.constant 0 : i32
    %c0_i32_1 = arith.constant 0 : i32
    return %c0_i32, %c0_i32_0 : i32, i32
  }
  func.func @transform_10(%arg0: i32) -> (i32, i32) {
    %c0_i32 = arith.constant 0 : i32
    %c0_i32_0 = arith.constant 0 : i32
    %c0_i32_1 = arith.constant 0 : i32
    return %c0_i32, %c0_i32_0 : i32, i32
  }
  func.func @transform_11(%arg0: i32) -> (i32, i32) {
    %c0_i32 = arith.constant 0 : i32
    %c0_i32_0 = arith.constant 0 : i32
    %c0_i32_1 = arith.constant 0 : i32
    return %c0_i32, %c0_i32_0 : i32, i32
  }
  func.func @transform_12(%arg0: i32) -> (i32, i32) {
    %c0_i32 = arith.constant 0 : i32
    %c0_i32_0 = arith.constant 0 : i32
    %c0_i32_1 = arith.constant 0 : i32
    return %c0_i32, %c0_i32_0 : i32, i32
  }
  func.func @transform_13(%arg0: i32) -> (i32, i32) {
    %c0_i32 = arith.constant 0 : i32
    %c0_i32_0 = arith.constant 0 : i32
    %c0_i32_1 = arith.constant 0 : i32
    return %c0_i32, %c0_i32_0 : i32, i32
  }
  func.func @transform_14(%arg0: i32) -> (i32, i32, i32) {
    %c0_i32 = arith.constant 0 : i32
    %c0_i32_0 = arith.constant 0 : i32
    %c0_i32_1 = arith.constant 0 : i32
    return %arg0, %c0_i32, %c0_i32_0 : i32, i32, i32
  }
}

</mosaic_0001>

<bundles_post_ra>
// kernel: forward.1
= control target key start
LH: loop header
LB: loop body
LE: loop exit
PB: predicated region body
PF: predicated region fallthrough
CT: control target
= control target key end

     0   :  { %s27875_s0 = inlined_call_operand.vmem [shape: f32[2,18,400], index: 0, kind: input, shape index: {}]   ;;  %s27876_s1 = inlined_call_operand.vmem [shape: f32[69,3,18], index: 1, kind: input, shape index: {}]   ;;  %s27877_s2 = inlined_call_operand.vmem [shape: f32[3,332,9], index: 2, kind: input, shape index: {}]   ;;  %s27878_s3 = inlined_call_operand.vmem [shape: f32[1,9], index: 3, kind: input, shape index: {}]   ;;  %s27879_s4 = inlined_call_operand.vmem [shape: f32[9,128,9], index: 4, kind: input, shape index: {}]   ;;  %s27880_s5 = inlined_call_operand.<no memory space> [shape: f32[1,1], index: 5, kind: input, shape index: {}]   ;;  %s27881_s6 = inlined_call_operand.vmem [shape: f32[9,4], index: 6, kind: input, shape index: {}]   ;;  %s27882_s7 = inlined_call_operand.vmem [shape: f32[1,4], index: 7, kind: input, shape index: {}]   ;;  %s27883_s8 = inlined_call_operand.vmem [shape: f32[9,4], index: 8, kind: input, shape index: {}]   ;;  %s27884_s9 = inlined_call_operand.vmem [shape: f32[1,4], index: 9, kind: input, shape index: {}]   ;;  %s27885_s10 = inlined_call_operand.vmem [shape: f32[9,4], index: 10, kind: input, shape index: {}]   ;;  %s27886_s11 = inlined_call_operand.vmem [shape: f32[1,4], index: 11, kind: input, shape index: {}]   ;;  %s27887_s12 = inlined_call_operand.vmem [shape: f32[512,64], index: 12, kind: input, shape index: {}]   ;;  %s27888_s13 = inlined_call_operand.vmem [shape: f32[1,64], index: 13, kind: input, shape index: {}]   ;;  %s27889_s14 = inlined_call_operand.hbm [shape: f32[2,1,64], index: 14, kind: output, shape index: {}]  }
   0x1   :  { %27898 = sst [smem:[#allocation13_spill]] %s27875_s0  ;;  %v19_v0 = vstv %s27880_s5 }
   0x2   :  { %27899 = sst [smem:[#allocation14_spill]] %s27876_s1  ;;  %20 = vst [vmem:[#allocation2] sm:$0x1] %v19_v0 }
   0x3   :  { %27900 = sst [smem:[#allocation15_spill]] %s27877_s2 }
   0x4   :  { %21 = vsyncpa [#allocation4], 0 }
   0x5   :  { %23 = vsyncpa [#allocation4 + $0x1], 0  ;;  %s21895_s15 = smov 0   ;;  %s21897_s16 = smov 0  }
   0x6   :  { %s21899_s17 = smov 0   ;;  %s21901_s18 = smov 0  }
   0x7 LB: > { %s21916_s5 = sadd.s32 4294967295, %s21733_s18   ;;  %s16576_s19 = sadd.s32 4294967294, %s21733_s18   ;;  %s21733_s18 = sphi %s21901_s18, %s27940_s18   ;;  %s21729_s17 = sphi %s21899_s17, %s27939_s17   ;;  %s21725_s16 = sphi %s21897_s16, %s27938_s16   ;;  %s21721_s15 = sphi %s21895_s15, %s27937_s15  }
   0x8   : > { %s21920_s20 = sadd.s32 1, %s21733_s18   ;;  %s335_s21 = sadd.s32 1, %s21729_s17 }
   0x9   : > { %s332_s22 = ssub.s32 %s21733_s18, %s21920_s20  ;;  %p345_p0 = scmp.ne.s32.totalorder %s21729_s17, %s21725_s16 }
   0xa   : > { %p333_p1 = scmp.eq.s32.totalorder %s332_s22, 0  ;;  %p346_p2 = scmp.eq.s32.totalorder %s21916_s5, 1 }
   0xb   : > { %p351_p3 = scmp.ne.s32.totalorder %s21725_s16, %s21721_s15  ;;  %p352_p4 = scmp.eq.s32.totalorder %s16576_s19, 1 }
   0xc   : > { %s21931_s23 = scalar_select %p333_p1, %s21729_s17, %s335_s21  }
   0xd   : > { %p21933_p5 = por %p346_p2, %p345_p0  ;;  %p21937_p6 = por %p352_p4, %p351_p3 }
   0xe   : > { %27901 = sst [smem:[#allocation6_spill]] %s21931_s23  ;;  %p16579_p7 = scmp.ge.s32.totalorder %s21733_s18, 1 }
   0xf   : > { %p417_p8 = scmp.lt.s32.totalorder %s21733_s18, 3 }
  0x11   : > { %p418_p9 = pnand %p16579_p7, %p417_p8 }
  0x13   : > { %421 = sbr.rel (%p418_p9) target bundleno = 3709 (0xe7d), region = 76 }
  0x1a   : > { %p462_p10 = scmp.lt.s32.totalorder %s21916_s5, 1  ;;  %v21735_v1 = vmov 0.0|0.0   ;;  %v21736_v2 = vmov 0.0   ;;  %vm21737_vm0 = vmmov 0   ;;  %s27904_s0 = sld [smem:[#allocation13_spill]]  ;;  %vm526_vm1 = vcmask 1041408  }
  0x1b   : > { %19002 = vmatprep.subr.bf16.mxu1 %v21735_v1  ;;  %597 = vmatprep.mubr.f32.mxu0 %v21736_v2  ;;  %s27890_s19 = smov 126   ;;  %s21739_s21 = smov 127   ;;  %vm522_vm2 = vcmask 146432   ;;  %vm509_vm3 = vcmask 1039360   ;;  %vm844_vm4 = vcmask 1031168   ;;  %vm1030_vm5 = vcmask 1022976  }
  0x1c   : > { %s463_s26 = scalar_select %p462_p10, %s21916_s5, 1  ;;  %18006 = vmatprep.mubr.msk.f32.mxu1 %vm21737_vm0, %v21736_v2  ;;  %vm1216_vm6 = vcmask 1014784   ;;  %vm1402_vm7 = vcmask 1006592   ;;  %vm1588_vm8 = vcmask 998400   ;;  %vm1774_vm9 = vcmask 990208  }
  0x1d   : > { %s21740_s22 = smov 125   ;;  %s21743_s28 = smov 122   ;;  %vm1960_vm10 = vcmask 982016   ;;  %vm2146_vm11 = vcmask 973824   ;;  %vm2332_vm12 = vcmask 965632   ;;  %vm2518_vm13 = vcmask 957440  }
  0x1e   : > { %s20147_s27 = smul.u32 96, %s463_s26  ;;  %s21741_s26 = smov 124   ;;  %vm2704_vm14 = vcmask 949248   ;;  %vm2890_vm15 = vcmask 941056  }
  0x1f   : > { %s21744_s29 = smov 121   ;;  %s27905_s1 = sld [smem:[#allocation14_spill]] }
  0x20   : > { %s21952_s30 = scalar_lea.vmem %s27904_s0, %s20147_s27  ;;  %s21742_s27 = smov 123  }
  0x21   : > { %v21955_v3 = vld [vmem:[%s21952_s30 + $0x10] sm:$0xff]  ;;  %v21971_v7 = vld [vmem:[%s21952_s30 + $0x8] sm:$0xff]  ;;  %v21984_v10 = vld [vmem:[%s21952_s30] sm:$0xff]  ;;  %s27906_s2 = sld [smem:[#allocation15_spill]]  ;;  %s460_s0 = sand.u32 1, %s21725_s16  }
  0x22   : > { %v21958_v4 = vld [vmem:[%s21952_s30 + $0x30] sm:$0xff]  ;;  %v21974_v8 = vld [vmem:[%s21952_s30 + $0x28] sm:$0xff]  ;;  %v21987_v11 = vld [vmem:[%s21952_s30 + $0x20] sm:$0xff] }
  0x23   : > { %v21962_v5 = vpack.i.bf16 %v21958_v4, %v21955_v3  ;;  %v21968_v6 = vld [vmem:[%s21952_s30 + $0x50] sm:$0x3]  ;;  %v21981_v9 = vpack.i.bf16 %v21974_v8, %v21971_v7  ;;  %v21993_v12 = vpack.i.bf16 %v21987_v11, %v21984_v10  ;;  %v21998_v13 = vld [vmem:[%s21952_s30 + $0x48] sm:$0x3]  ;;  %v22003_v14 = vld [vmem:[%s21952_s30 + $0x40] sm:$0x3]  ;;  %v19010_v25 = vpack.c.bf16 %v21958_v4, %v21955_v3 }
  0x24   : > { %v19005_v50 = vpack.c.bf16 %v21974_v8, %v21971_v7  ;;  %v19007_v51 = vpack.c.bf16 %v21987_v11, %v21984_v10 }
  0x25   : > { %20274 = vrot.lane.b32.xlu1 %v21962_v5, %s27890_s19  ;;  %20269 = vrot.lane.b32.xlu0 %v21962_v5, %s21739_s21  ;;  %v22101_v22 = vld [vmem:[%s27905_s1 + $0x4] sm:$0x7]  ;;  %v22131_v37 = vld [vmem:[%s27905_s1] sm:$0x7] }
  0x26   : > { %v22169_v52 = vld [vmem:[%s27905_s1 + $0x8] sm:$0x7]  ;;  %v22210_v10 = vld [vmem:[%s27905_s1 + $0xc] sm:$0x7] }
  0x29   : > { %842 = vrot.lane.b32.xlu1 %v21968_v6, %s27890_s19  ;;  %507 = vrot.lane.b32.xlu0 %v21968_v6, %s21739_s21 }
  0x2d   : > { %20279 = vrot.lane.b32.xlu0 %v21962_v5, %s21740_s22  ;;  %20284 = vrot.lane.b32.xlu1 %v21981_v9, %s21739_s21 }
  0x31   : > { %1028 = vrot.lane.b32.xlu1 %v21968_v6, %s21740_s22  ;;  %20289 = vrot.lane.b32.xlu0 %v21993_v12, %s21739_s21 }
  0x35   : > { %20294 = vrot.lane.b32.xlu1 %v21962_v5, %s21741_s26  ;;  %505 = vrot.lane.b32.xlu0 %v21998_v13, %s21739_s21 }
  0x39   : > { %1214 = vrot.lane.b32.xlu1 %v21968_v6, %s21741_s26  ;;  %503 = vrot.lane.b32.xlu0 %v22003_v14, %s21739_s21  ;;  %s21745_s21 = smov 120  }
  0x3d   : > { %20304 = vrot.lane.b32.xlu1 %v21981_v9, %s27890_s19  ;;  %20299 = vrot.lane.b32.xlu0 %v21962_v5, %s21742_s27 }
  0x41   : > { %1400 = vrot.lane.b32.xlu1 %v21968_v6, %s21742_s27  ;;  %20309 = vrot.lane.b32.xlu0 %v21993_v12, %s27890_s19 }
  0x45   : > { %20314 = vrot.lane.b32.xlu1 %v21962_v5, %s21743_s28  ;;  %840 = vrot.lane.b32.xlu0 %v21998_v13, %s27890_s19 }
  0x49   : > { %20319 = vrot.lane.b32.xlu1 %v21981_v9, %s21740_s22  ;;  %838 = vrot.lane.b32.xlu0 %v22003_v14, %s27890_s19  ;;  %s21751_s19 = smov 114  }
  0x4d   : > { %1586 = vrot.lane.b32.xlu1 %v21968_v6, %s21743_s28  ;;  %20324 = vrot.lane.b32.xlu0 %v21993_v12, %s21740_s22 }
  0x51   : > { %20329 = vrot.lane.b32.xlu1 %v21962_v5, %s21744_s29  ;;  %1026 = vrot.lane.b32.xlu0 %v21998_v13, %s21740_s22 }
  0x55   : > { %20334 = vrot.lane.b32.xlu1 %v21981_v9, %s21741_s26  ;;  %1024 = vrot.lane.b32.xlu0 %v22003_v14, %s21740_s22  ;;  %s21746_s22 = smov 119  }
  0x59   : > { %1772 = vrot.lane.b32.xlu1 %v21968_v6, %s21744_s29  ;;  %20339 = vrot.lane.b32.xlu0 %v21993_v12, %s21741_s26 }
  0x5d   : > { %20344 = vrot.lane.b32.xlu1 %v21962_v5, %s21745_s21  ;;  %1212 = vrot.lane.b32.xlu0 %v21998_v13, %s21741_s26 }
  0x61   : > { %20349 = vrot.lane.b32.xlu1 %v21981_v9, %s21742_s27  ;;  %1210 = vrot.lane.b32.xlu0 %v22003_v14, %s21741_s26  ;;  %s21747_s26 = smov 118  }
  0x65   : > { %1958 = vrot.lane.b32.xlu1 %v21968_v6, %s21745_s21  ;;  %20354 = vrot.lane.b32.xlu0 %v21993_v12, %s21742_s27 }
  0x69   : > { %20359 = vrot.lane.b32.xlu1 %v21962_v5, %s21746_s22  ;;  %1398 = vrot.lane.b32.xlu0 %v21998_v13, %s21742_s27 }
  0x6d   : > { %20364 = vrot.lane.b32.xlu1 %v21981_v9, %s21743_s28  ;;  %1396 = vrot.lane.b32.xlu0 %v22003_v14, %s21742_s27  ;;  %s21748_s27 = smov 117  }
  0x71   : > { %2144 = vrot.lane.b32.xlu1 %v21968_v6, %s21746_s22  ;;  %20369 = vrot.lane.b32.xlu0 %v21993_v12, %s21743_s28 }
  0x75   : > { %20374 = vrot.lane.b32.xlu1 %v21962_v5, %s21747_s26  ;;  %1584 = vrot.lane.b32.xlu0 %v21998_v13, %s21743_s28 }
  0x79   : > { %20379 = vrot.lane.b32.xlu1 %v21981_v9, %s21744_s29  ;;  %1582 = vrot.lane.b32.xlu0 %v22003_v14, %s21743_s28  ;;  %s21749_s28 = smov 116  }
  0x7d   : > { %2330 = vrot.lane.b32.xlu1 %v21968_v6, %s21747_s26  ;;  %20384 = vrot.lane.b32.xlu0 %v21993_v12, %s21744_s29 }
  0x81   : > { %20389 = vrot.lane.b32.xlu1 %v21962_v5, %s21748_s27  ;;  %1770 = vrot.lane.b32.xlu0 %v21998_v13, %s21744_s29 }
  0x85   : > { %20394 = vrot.lane.b32.xlu1 %v21981_v9, %s21745_s21  ;;  %1768 = vrot.lane.b32.xlu0 %v22003_v14, %s21744_s29  ;;  %s21750_s29 = smov 115  }
  0x89   : > { %2516 = vrot.lane.b32.xlu1 %v21968_v6, %s21748_s27  ;;  %20399 = vrot.lane.b32.xlu0 %v21993_v12, %s21745_s21 }
  0x8d   : > { %20404 = vrot.lane.b32.xlu1 %v21962_v5, %s21749_s28  ;;  %1956 = vrot.lane.b32.xlu0 %v21998_v13, %s21745_s21 }
  0x91   : > { %20409 = vrot.lane.b32.xlu1 %v21981_v9, %s21746_s22  ;;  %1954 = vrot.lane.b32.xlu0 %v22003_v14, %s21745_s21  ;;  %s21752_s21 = smov 113  }
  0x95   : > { %2702 = vrot.lane.b32.xlu1 %v21968_v6, %s21749_s28  ;;  %20414 = vrot.lane.b32.xlu0 %v21993_v12, %s21746_s22 }
  0x97   : > { %v22085_v15 = vpop.permute.xlu1 %20274  ;;  %v20270_v16 = vpop.permute.xlu0 %20269 }
  0x98   : > { %v20272_v17 = vunpack.i.h.bf16 %v20270_v16  ;;  %v20271_v18 = vunpack.i.l.bf16 %v20270_v16  ;;  %v20277_v33 = vunpack.i.h.bf16 %v22085_v15  ;;  %v20276_v34 = vunpack.i.l.bf16 %v22085_v15 }
  0x99   : > { %20419 = vrot.lane.b32.xlu1 %v21962_v5, %s21750_s29  ;;  %2142 = vrot.lane.b32.xlu0 %v21998_v13, %s21746_s22 }
  0x9a   : > { %v19003_v19 = vpack.c.bf16 %v20272_v17, %v20271_v18  ;;  %v19017_v43 = vpack.c.bf16 %v20277_v33, %v20276_v34 }
  0x9b   : > { %v22091_v20 = vpop.permute.xlu1 %842  ;;  %v508_v21 = vpop.permute.xlu0 %507 }
  0x9c   : > { %19004 = vmatpush3.bf16.msra.mxu1 %v19003_v19 }
  0x9d   : > { %20424 = vrot.lane.b32.xlu1 %v21981_v9, %s21747_s26  ;;  %2140 = vrot.lane.b32.xlu0 %v22003_v14, %s21746_s22  ;;  %s21754_s22 = smov 111  }
  0x9e   : > { %18004 = vmatprep.subr.mxu1 %v21736_v2 }
  0x9f   : > { %v22103_v23 = vpop.permute.xlu0 %20279  ;;  %v20285_v24 = vpop.permute.xlu1 %20284 }
  0xa0   : > { %v20287_v26 = vunpack.i.h.bf16 %v20285_v24  ;;  %v20286_v27 = vunpack.i.l.bf16 %v20285_v24  ;;  %18005 = vmatpush3.msk.msra.mxu1 %vm526_vm1, %v508_v21  ;;  %v20282_v47 = vunpack.i.h.bf16 %v22103_v23  ;;  %v20281_v48 = vunpack.i.l.bf16 %v22103_v23 }
  0xa1   : > { %18007 = vmatmul.mubr.msk.f32.vlgmr.msra.gmra.mrb[0].mxu1 %vm522_vm2, %v22101_v22  ;;  %2888 = vrot.lane.b32.xlu1 %v21968_v6, %s21750_s29 }
  0xa2   : > { %20429 = vrot.lane.b32.xlu0 %v21993_v12, %s21747_s26  ;;  %19009 = vmatprep.subr.bf16.mxu1 %v21735_v1  ;;  %v511_v28 = vsel %vm509_vm3, %v20286_v27, %v20271_v18  ;;  %v513_v29 = vsel %vm509_vm3, %v20287_v26, %v20272_v17  ;;  %v19024_v55 = vpack.c.bf16 %v20282_v47, %v20281_v48 }
  0xa3   : > { %19011 = vmatpush3.bf16.msra.mxu1 %v19010_v25  ;;  %v22117_v30 = vpop.permute.xlu1 %1028  ;;  %v20290_v31 = vpop.permute.xlu0 %20289  ;;  %v18998_v32 = vpack.c.bf16 %v513_v29, %v511_v28  ;;  %18015 = vmatprep.mubr.msk.f32.mxu1 %vm21737_vm0, %v21736_v2 }
  0xa4   : > { %v20292_v35 = vunpack.i.h.bf16 %v20290_v31  ;;  %v20291_v36 = vunpack.i.l.bf16 %v20290_v31  ;;  %18013 = vmatprep.subr.mxu1 %v21736_v2 }
  0xa5   : > { %20434 = vrot.lane.b32.xlu1 %v21962_v5, %s21751_s19  ;;  %18999 = vmatprep.subr.bf16.mxu0 %v18998_v32 }
  0xa6   : > { %2328 = vrot.lane.b32.xlu0 %v21998_v13, %s21747_s26  ;;  %v510_v38 = vsel %vm509_vm3, %v20291_v36, %v20286_v27  ;;  %v512_v39 = vsel %vm509_vm3, %v20292_v35, %v20287_v26  ;;  %v22247_v27 = vld [vmem:[%s27905_s1 + $0x10] sm:$0x7] }
  0xa7   : > { %18014 = vmatpush3.msk.msra.mxu1 %vm526_vm1, %v21968_v6  ;;  %v22137_v40 = vpop.permute.xlu1 %20294  ;;  %v506_v41 = vpop.permute.xlu0 %505  ;;  %v19000_v42 = vpack.c.bf16 %v512_v39, %v510_v38 }
  0xa8   : > { %19016 = vmatprep.subr.bf16.mxu1 %v21735_v1  ;;  %v515_v44 = vsel %vm509_vm3, %v506_v41, %v508_v21  ;;  %v20297_v63 = vunpack.i.h.bf16 %v22137_v40  ;;  %v20296_v0 = vunpack.i.l.bf16 %v22137_v40 }
  0xa9   : > { %18016 = vmatmul.mubr.msk.f32.vlgmr.msra.gmra.mrb[0].mxu1 %vm522_vm2, %v22131_v37  ;;  %20439 = vrot.lane.b32.xlu1 %v21981_v9, %s21748_s27 }
  0xaa   : > { %19018 = vmatpush3.bf16.msra.mxu1 %v19017_v43  ;;  %2326 = vrot.lane.b32.xlu0 %v22003_v14, %s21747_s26  ;;  %v19031_v17 = vpack.c.bf16 %v20297_v63, %v20296_v0  ;;  %s21756_s26 = smov 109  }
  0xab   : > { %19001 = vmatpush1.bf16.msra.mxu0 %v19000_v42  ;;  %v22147_v45 = vpop.permute.xlu1 %1214  ;;  %v504_v46 = vpop.permute.xlu0 %503  ;;  %18022 = vmatprep.subr.mxu1 %v21736_v2 }
  0xac   : > { %16582 = vmatprep.subr.msk.mxu0 %vm526_vm1, %v515_v44  ;;  %v514_v49 = vsel %vm509_vm3, %v504_v46, %v506_v41  ;;  %18024 = vmatprep.mubr.msk.f32.mxu1 %vm21737_vm0, %v21736_v2  ;;  %v22291_v46 = vld [vmem:[%s27905_s1 + $0x14] sm:$0x7]  ;;  %vm3076_vm3 = vcmask 932864  }
  0xad   : > { %3074 = vrot.lane.b32.xlu1 %v21968_v6, %s21751_s19 }
  0xae   : > { %18023 = vmatpush3.msk.msra.mxu1 %vm526_vm1, %v22091_v20  ;;  %20444 = vrot.lane.b32.xlu0 %v21993_v12, %s21748_s27 }
  0xaf   : > { %16583 = vmatpush1.msk.msra.mxu0 %vm526_vm1, %v514_v49  ;;  %v20305_v53 = vpop.permute.xlu1 %20304  ;;  %v22172_v54 = vpop.permute.xlu0 %20299  ;;  %19023 = vmatprep.subr.bf16.mxu1 %v21735_v1 }
  0xb0   : > { %v20307_v56 = vunpack.i.h.bf16 %v20305_v53  ;;  %v20306_v57 = vunpack.i.l.bf16 %v20305_v53  ;;  %19006 = vmatprep.subr.bf16.mxu0 %v19005_v50  ;;  %16584 = vmatmul.mubr.msk.f32.vlgmr.msra.gmra.mrb[0].mxu0 %vm522_vm2, %v22101_v22  ;;  %v20302_v19 = vunpack.i.h.bf16 %v22172_v54 }
  0xb1   : > { %19008 = vmatpush1.bf16.msra.mxu0 %v19007_v51  ;;  %18025 = vmatmul.mubr.msk.f32.vlgmr.msra.gmra.mrb[0].mxu1 %vm522_vm2, %v22169_v52 }
  0xb2   : > { %19025 = vmatpush3.bf16.msra.mxu1 %v19024_v55  ;;  %20449 = vrot.lane.b32.xlu1 %v21962_v5, %s21752_s21  ;;  %v846_v58 = vsel %vm844_vm4, %v20306_v57, %v20276_v34  ;;  %v848_v59 = vsel %vm844_vm4, %v20307_v56, %v20277_v33 }
  0xb3   : > { %2514 = vrot.lane.b32.xlu0 %v21998_v13, %s21748_s27  ;;  %v22189_v60 = vpop.permute.xlu1 %1400  ;;  %v20310_v61 = vpop.permute.xlu0 %20309  ;;  %16587 = vmatprep.subr.msk.mxu0 %vm526_vm1, %v21998_v13  ;;  %v19012_v62 = vpack.c.bf16 %v848_v59, %v846_v58 }
  0xb4   : > { %v20312_v3 = vunpack.i.h.bf16 %v20310_v61  ;;  %v20311_v4 = vunpack.i.l.bf16 %v20310_v61  ;;  %18031 = vmatprep.subr.mxu1 %v21736_v2  ;;  %747 = vmatprep.mubr.f32.mxu0 %v21736_v2 }
  0xb5   : > { %16588 = vmatpush1.msk.msra.mxu0 %vm526_vm1, %v22003_v14  ;;  %18033 = vmatprep.mubr.msk.f32.mxu1 %vm21737_vm0, %v21736_v2 }
  0xb6   : > { %v847_v7 = vsel %vm844_vm4, %v20312_v3, %v20307_v56  ;;  %v845_v8 = vsel %vm844_vm4, %v20311_v4, %v20306_v57  ;;  %20454 = vrot.lane.b32.xlu1 %v21981_v9, %s21749_s28  ;;  %18032 = vmatpush3.msk.msra.mxu1 %vm526_vm1, %v22117_v30 }
  0xb7   : > { %2512 = vrot.lane.b32.xlu0 %v22003_v14, %s21748_s27  ;;  %19013 = vmatprep.subr.bf16.mxu0 %v19012_v62  ;;  %v22214_v11 = vpop.permute.xlu1 %20314  ;;  %v841_v15 = vpop.permute.xlu0 %840  ;;  %v19014_v16 = vpack.c.bf16 %v847_v7, %v845_v8  ;;  %s21753_s27 = smov 112  }
  0xb8   : > { %19030 = vmatprep.subr.bf16.mxu1 %v21735_v1  ;;  %16589 = vmatmul.mubr.msk.f32.vlgmr.msra.gmra.mrb[0].mxu0 %vm522_vm2, %v22131_v37  ;;  %v850_v18 = vsel %vm844_vm4, %v841_v15, %v22091_v20  ;;  %v20301_v20 = vunpack.i.l.bf16 %v22172_v54  ;;  %v20317_v42 = vunpack.i.h.bf16 %v22214_v11  ;;  %v20316_v43 = vunpack.i.l.bf16 %v22214_v11 }
  0xb9   : > { %18034 = vmatmul.mubr.msk.f32.vlgmr.msra.gmra.mrb[0].mxu1 %vm522_vm2, %v22210_v10  ;;  %19015 = vmatpush1.bf16.msra.mxu0 %v19014_v16 }
  0xba   : > { %3260 = vrot.lane.b32.xlu1 %v21968_v6, %s21752_s21  ;;  %19032 = vmatpush3.bf16.msra.mxu1 %v19031_v17  ;;  %v19038_v34 = vpack.c.bf16 %v20302_v19, %v20301_v20 }
  0xbb   : > { %20459 = vrot.lane.b32.xlu0 %v21993_v12, %s21749_s28  ;;  %16593 = vmatprep.subr.msk.mxu0 %vm526_vm1, %v850_v18  ;;  %v20320_v21 = vpop.permute.xlu1 %20319  ;;  %v839_v22 = vpop.permute.xlu0 %838 }
  0xbc   : > { %v20322_v24 = vunpack.i.h.bf16 %v20320_v21  ;;  %v20321_v25 = vunpack.i.l.bf16 %v20320_v21  ;;  %v849_v26 = vsel %vm844_vm4, %v839_v22, %v841_v15  ;;  %18040 = vmatprep.subr.mxu1 %v21736_v2  ;;  %18042 = vmatprep.mubr.msk.f32.mxu1 %vm21737_vm0, %v21736_v2  ;;  %vm3262_vm4 = vcmask 924672  }
  0xbd   : > { %16594 = vmatpush1.msk.msra.mxu0 %vm526_vm1, %v849_v26  ;;  %930 = vmatprep.mubr.f32.mxu0 %v21736_v2  ;;  %v22374_v26 = vld [vmem:[%s27905_s1 + $0x1c] sm:$0x7] }
  0xbe   : > { %20464 = vrot.lane.b32.xlu1 %v21962_v5, %s21753_s27  ;;  %18041 = vmatpush3.msk.msra.mxu1 %vm526_vm1, %v22147_v45  ;;  %v1032_v28 = vsel %vm1030_vm5, %v20321_v25, %v20281_v48  ;;  %v1034_v29 = vsel %vm1030_vm5, %v20322_v24, %v20282_v47  ;;  %v19045_v48 = vpack.c.bf16 %v20317_v42, %v20316_v43 }
  0xbf   : > { %2700 = vrot.lane.b32.xlu0 %v21998_v13, %s21749_s28  ;;  %v22257_v31 = vpop.permute.xlu1 %1586  ;;  %v20325_v32 = vpop.permute.xlu0 %20324  ;;  %19037 = vmatprep.subr.bf16.mxu1 %v21735_v1  ;;  %v19019_v33 = vpack.c.bf16 %v1034_v29, %v1032_v28 }
  0xc0   : > { %v20327_v35 = vunpack.i.h.bf16 %v20325_v32  ;;  %v20326_v36 = vunpack.i.l.bf16 %v20325_v32  ;;  %16595 = vmatmul.mubr.msk.f32.vlgmr.msra.gmra.mrb[0].mxu0 %vm522_vm2, %v22169_v52 }
  0xc1   : > { %18043 = vmatmul.mubr.msk.f32.vlgmr.msra.gmra.mrb[0].mxu1 %vm522_vm2, %v22247_v27  ;;  %19020 = vmatprep.subr.bf16.mxu0 %v19019_v33 }
  0xc2   : > { %v1033_v23 = vsel %vm1030_vm5, %v20327_v35, %v20322_v24  ;;  %v1031_v37 = vsel %vm1030_vm5, %v20326_v36, %v20321_v25  ;;  %20469 = vrot.lane.b32.xlu1 %v21981_v9, %s21750_s29  ;;  %19039 = vmatpush3.bf16.msra.mxu1 %v19038_v34 }
  0xc3   : > { %2698 = vrot.lane.b32.xlu0 %v22003_v14, %s21749_s28  ;;  %v22274_v38 = vpop.permute.xlu1 %20329  ;;  %v1027_v39 = vpop.permute.xlu0 %1026  ;;  %18049 = vmatprep.subr.mxu1 %v21736_v2  ;;  %v19021_v41 = vpack.c.bf16 %v1033_v23, %v1031_v37  ;;  %s21791_s28 = smov 74  }
  0xc4   : > { %v1036_v44 = vsel %vm1030_vm5, %v1027_v39, %v22117_v30  ;;  %18051 = vmatprep.mubr.msk.f32.mxu1 %vm21737_vm0, %v21736_v2  ;;  %1116 = vmatprep.mubr.f32.mxu0 %v21736_v2  ;;  %v20332_v58 = vunpack.i.h.bf16 %v22274_v38  ;;  %v20331_v59 = vunpack.i.l.bf16 %v22274_v38 }
  0xc5   : > { %19022 = vmatpush1.bf16.msra.mxu0 %v19021_v41 }
  0xc6   : > { %3446 = vrot.lane.b32.xlu1 %v21968_v6, %s21753_s27  ;;  %18050 = vmatpush3.msk.msra.mxu1 %vm526_vm1, %v22189_v60  ;;  %v19052_v8 = vpack.c.bf16 %v20332_v58, %v20331_v59 }
  0xc7   : > { %20474 = vrot.lane.b32.xlu0 %v21993_v12, %s21750_s29  ;;  %16599 = vmatprep.subr.msk.mxu0 %vm526_vm1, %v1036_v44  ;;  %v20335_v30 = vpop.permute.xlu1 %20334  ;;  %v1025_v47 = vpop.permute.xlu0 %1024 }
  0xc8   : > { %v20337_v49 = vunpack.i.h.bf16 %v20335_v30  ;;  %v20336_v50 = vunpack.i.l.bf16 %v20335_v30  ;;  %v1035_v51 = vsel %vm1030_vm5, %v1025_v47, %v1027_v39  ;;  %19044 = vmatprep.subr.bf16.mxu1 %v21735_v1  ;;  %vm3448_vm5 = vcmask 916480  }
  0xc9   : > { %16600 = vmatpush1.msk.msra.mxu0 %vm526_vm1, %v1035_v51  ;;  %18052 = vmatmul.mubr.msk.f32.vlgmr.msra.gmra.mrb[0].mxu1 %vm522_vm2, %v22291_v46 }
  0xca   : > { %20479 = vrot.lane.b32.xlu1 %v21962_v5, %s21754_s22  ;;  %19046 = vmatpush3.bf16.msra.mxu1 %v19045_v48  ;;  %v1218_v52 = vsel %vm1216_vm6, %v20336_v50, %v20296_v0  ;;  %v1220_v53 = vsel %vm1216_vm6, %v20337_v49, %v20297_v63  ;;  %v22334_v0 = vld [vmem:[%s27905_s1 + $0x18] sm:$0x7] }
  0xcb   : > { %2886 = vrot.lane.b32.xlu0 %v21998_v13, %s21750_s29  ;;  %v22315_v55 = vpop.permute.xlu1 %1772  ;;  %v20340_v56 = vpop.permute.xlu0 %20339  ;;  %18058 = vmatprep.subr.mxu1 %v21736_v2  ;;  %v19026_v57 = vpack.c.bf16 %v1220_v53, %v1218_v52 }
  0xcc   : > { %v20342_v61 = vunpack.i.h.bf16 %v20340_v56  ;;  %v20341_v62 = vunpack.i.l.bf16 %v20340_v56  ;;  %18060 = vmatprep.mubr.msk.f32.mxu1 %vm21737_vm0, %v21736_v2  ;;  %16601 = vmatmul.mubr.msk.f32.vlgmr.msra.gmra.mrb[0].mxu0 %vm522_vm2, %v22210_v10 }
  0xcd   : > { %19027 = vmatprep.subr.bf16.mxu0 %v19026_v57  ;;  %1302 = vmatprep.mubr.f32.mxu0 %v21736_v2 }
  0xce   : > { %v1219_v40 = vsel %vm1216_vm6, %v20342_v61, %v20337_v49  ;;  %v1217_v63 = vsel %vm1216_vm6, %v20341_v62, %v20336_v50  ;;  %20484 = vrot.lane.b32.xlu1 %v21981_v9, %s21751_s19  ;;  %18059 = vmatpush3.msk.msra.mxu1 %vm526_vm1, %v22257_v31 }
  0xcf   : > { %2884 = vrot.lane.b32.xlu0 %v22003_v14, %s21750_s29  ;;  %v22338_v3 = vpop.permute.xlu1 %20344  ;;  %v1213_v4 = vpop.permute.xlu0 %1212  ;;  %19051 = vmatprep.subr.bf16.mxu1 %v21735_v1  ;;  %v19028_v7 = vpack.c.bf16 %v1219_v40, %v1217_v63  ;;  %s21755_s29 = smov 110  }
  0xd0   : > { %v1222_v10 = vsel %vm1216_vm6, %v1213_v4, %v22147_v45  ;;  %v20347_v15 = vunpack.i.h.bf16 %v22338_v3  ;;  %v20346_v45 = vunpack.i.l.bf16 %v22338_v3 }
  0xd1   : > { %19029 = vmatpush1.bf16.msra.mxu0 %v19028_v7  ;;  %18061 = vmatmul.mubr.msk.f32.vlgmr.msra.gmra.mrb[0].mxu1 %vm522_vm2, %v22334_v0 }
  0xd2   : > { %3632 = vrot.lane.b32.xlu1 %v21968_v6, %s21754_s22  ;;  %19053 = vmatpush3.bf16.msra.mxu1 %v19052_v8  ;;  %v19059_v54 = vpack.c.bf16 %v20347_v15, %v20346_v45 }
  0xd3   : > { %20489 = vrot.lane.b32.xlu0 %v21993_v12, %s21751_s19  ;;  %16605 = vmatprep.subr.msk.mxu0 %vm526_vm1, %v1222_v10  ;;  %v20350_v16 = vpop.permute.xlu1 %20349  ;;  %v1211_v17 = vpop.permute.xlu0 %1210 }
  0xd4   : > { %v20352_v18 = vunpack.i.h.bf16 %v20350_v16  ;;  %v20351_v21 = vunpack.i.l.bf16 %v20350_v16  ;;  %v1221_v22 = vsel %vm1216_vm6, %v1211_v17, %v1213_v4  ;;  %18067 = vmatprep.subr.mxu1 %v21736_v2  ;;  %18069 = vmatprep.mubr.msk.f32.mxu1 %vm21737_vm0, %v21736_v2  ;;  %vm3634_vm6 = vcmask 908288  }
  0xd5   : > { %16606 = vmatpush1.msk.msra.mxu0 %vm526_vm1, %v1221_v22 }
  0xd6   : > { %20494 = vrot.lane.b32.xlu1 %v21962_v5, %s21755_s29  ;;  %18068 = vmatpush3.msk.msra.mxu1 %vm526_vm1, %v22315_v55  ;;  %v1404_v24 = vsel %vm1402_vm7, %v20351_v21, %v20301_v20  ;;  %v1406_v25 = vsel %vm1402_vm7, %v20352_v18, %v20302_v19 }
  0xd7   : > { %3072 = vrot.lane.b32.xlu0 %v21998_v13, %s21751_s19  ;;  %v22378_v28 = vpop.permute.xlu1 %1958  ;;  %v20355_v29 = vpop.permute.xlu0 %20354  ;;  %19058 = vmatprep.subr.bf16.mxu1 %v21735_v1  ;;  %v19033_v32 = vpack.c.bf16 %v1406_v25, %v1404_v24 }
  0xd8   : > { %v20357_v19 = vunpack.i.h.bf16 %v20355_v29  ;;  %v20356_v20 = vunpack.i.l.bf16 %v20355_v29  ;;  %16607 = vmatmul.mubr.msk.f32.vlgmr.msra.gmra.mrb[0].mxu0 %vm522_vm2, %v22247_v27 }
  0xd9   : > { %19034 = vmatprep.subr.bf16.mxu0 %v19033_v32  ;;  %18070 = vmatmul.mubr.msk.f32.vlgmr.msra.gmra.mrb[0].mxu1 %vm522_vm2, %v22374_v26  ;;  %v22497_v32 = vld [vmem:[%s27905_s1 + $0x28] sm:$0x7] }
  0xda   : > { %v1405_v33 = vsel %vm1402_vm7, %v20357_v19, %v20352_v18  ;;  %v1403_v34 = vsel %vm1402_vm7, %v20356_v20, %v20351_v21  ;;  %20499 = vrot.lane.b32.xlu1 %v21981_v9, %s21752_s21  ;;  %19060 = vmatpush3.bf16.msra.mxu1 %v19059_v54 }
  0xdb   : > { %3070 = vrot.lane.b32.xlu0 %v22003_v14, %s21751_s19  ;;  %v22395_v35 = vpop.permute.xlu1 %20359  ;;  %v1399_v36 = vpop.permute.xlu0 %1398  ;;  %18076 = vmatprep.subr.mxu1 %v21736_v2  ;;  %v19035_v27 = vpack.c.bf16 %v1405_v33, %v1403_v34  ;;  %s21792_s19 = smov 73  }
  0xdc   : > { %v20362_v23 = vunpack.i.h.bf16 %v22395_v35  ;;  %v20361_v37 = vunpack.i.l.bf16 %v22395_v35  ;;  %v1408_v39 = vsel %vm1402_vm7, %v1399_v36, %v22189_v60  ;;  %18078 = vmatprep.mubr.msk.f32.mxu1 %vm21737_vm0, %v21736_v2  ;;  %1488 = vmatprep.mubr.f32.mxu0 %v21736_v2  ;;  %v22416_v60 = vld [vmem:[%s27905_s1 + $0x20] sm:$0x7]  ;;  %v22613_v35 = vld [vmem:[%s27905_s1 + $0x30] sm:$0x7] }
  0xdd   : > { %19036 = vmatpush1.bf16.msra.mxu0 %v19035_v27 }
  0xde   : > { %v19066_v41 = vpack.c.bf16 %v20362_v23, %v20361_v37  ;;  %3818 = vrot.lane.b32.xlu1 %v21968_v6, %s21755_s29  ;;  %18077 = vmatpush3.msk.msra.mxu1 %vm526_vm1, %v22378_v28 }
  0xdf   : > { %20504 = vrot.lane.b32.xlu0 %v21993_v12, %s21752_s21  ;;  %16611 = vmatprep.subr.msk.mxu0 %vm526_vm1, %v1408_v39  ;;  %v20365_v44 = vpop.permute.xlu1 %20364  ;;  %v1397_v30 = vpop.permute.xlu0 %1396 }
  0xe0   : > { %v20367_v47 = vunpack.i.h.bf16 %v20365_v44  ;;  %v20366_v48 = vunpack.i.l.bf16 %v20365_v44  ;;  %v1407_v49 = vsel %vm1402_vm7, %v1397_v30, %v1399_v36  ;;  %19065 = vmatprep.subr.bf16.mxu1 %v21735_v1  ;;  %vm3820_vm7 = vcmask 900096  }
  0xe1   : > { %16612 = vmatpush1.msk.msra.mxu0 %vm526_vm1, %v1407_v49  ;;  %18079 = vmatmul.mubr.msk.f32.vlgmr.msra.gmra.mrb[0].mxu1 %vm522_vm2, %v22416_v60 }
  0xe2   : > { %20509 = vrot.lane.b32.xlu1 %v21962_v5, %s21756_s26  ;;  %19067 = vmatpush3.bf16.msra.mxu1 %v19066_v41  ;;  %v1590_v50 = vsel %vm1588_vm8, %v20366_v48, %v20316_v43  ;;  %v1592_v51 = vsel %vm1588_vm8, %v20367_v47, %v20317_v42  ;;  %v22453_v43 = vld [vmem:[%s27905_s1 + $0x24] sm:$0x7] }
  0xe3   : > { %3258 = vrot.lane.b32.xlu0 %v21998_v13, %s21752_s21  ;;  %v22436_v52 = vpop.permute.xlu1 %2144  ;;  %v20370_v53 = vpop.permute.xlu0 %20369  ;;  %18085 = vmatprep.subr.mxu1 %v21736_v2  ;;  %v19040_v56 = vpack.c.bf16 %v1592_v51, %v1590_v50 }
  0xe4   : > { %v20372_v57 = vunpack.i.h.bf16 %v20370_v53  ;;  %v20371_v61 = vunpack.i.l.bf16 %v20370_v53  ;;  %16613 = vmatmul.mubr.msk.f32.vlgmr.msra.gmra.mrb[0].mxu0 %vm522_vm2, %v22291_v46  ;;  %18087 = vmatprep.mubr.msk.f32.mxu1 %vm21737_vm0, %v21736_v2 }
  0xe5   : > { %19041 = vmatprep.subr.bf16.mxu0 %v19040_v56  ;;  %1674 = vmatprep.mubr.f32.mxu0 %v21736_v2 }
  0xe6   : > { %v1591_v11 = vsel %vm1588_vm8, %v20372_v57, %v20367_v47  ;;  %v1589_v42 = vsel %vm1588_vm8, %v20371_v61, %v20366_v48  ;;  %20514 = vrot.lane.b32.xlu1 %v21981_v9, %s21753_s27  ;;  %18086 = vmatpush3.msk.msra.mxu1 %vm526_vm1, %v22436_v52  ;;  %v22575_v61 = vld [vmem:[%s21952_s30 + $0x50] sm:$0x3] }
  0xe7   : > { %3256 = vrot.lane.b32.xlu0 %v22003_v14, %s21752_s21  ;;  %v22457_v46 = vpop.permute.xlu1 %20374  ;;  %v1585_v62 = vpop.permute.xlu0 %1584  ;;  %v19042_v40 = vpack.c.bf16 %v1591_v11, %v1589_v42  ;;  %19072 = vmatprep.subr.bf16.mxu1 %v21735_v1  ;;  %s21757_s21 = smov 108   ;;  %v21624_v11 = vld [vmem:[%s21952_s30 + $0x10] sm:$0xff] }
  0xe8   : > { %v20377_v63 = vunpack.i.h.bf16 %v22457_v46  ;;  %v20376_v4 = vunpack.i.l.bf16 %v22457_v46  ;;  %v1594_v7 = vsel %vm1588_vm8, %v1585_v62, %v22257_v31  ;;  %v21625_v42 = vld [vmem:[%s21952_s30 + $0x30] sm:$0xff] }
  0xe9   : > { %19043 = vmatpush1.bf16.msra.mxu0 %v19042_v40  ;;  %18088 = vmatmul.mubr.msk.f32.vlgmr.msra.gmra.mrb[0].mxu1 %vm522_vm2, %v22453_v43 }
  0xea   : > { %v19073_v8 = vpack.c.bf16 %v20377_v63, %v20376_v4  ;;  %4004 = vrot.lane.b32.xlu1 %v21968_v6, %s21756_s26  ;;  %16617 = vmatprep.subr.msk.mxu0 %vm526_vm1, %v1594_v7 }
  0xeb   : > { %20519 = vrot.lane.b32.xlu0 %v21993_v12, %s21753_s27  ;;  %v20380_v10 = vpop.permute.xlu1 %20379  ;;  %v1583_v16 = vpop.permute.xlu0 %1582  ;;  %18096 = vmatprep.mubr.msk.f32.mxu1 %vm21737_vm0, %v21736_v2 }
  0xec   : > { %v20382_v31 = vunpack.i.h.bf16 %v20380_v10  ;;  %v20381_v17 = vunpack.i.l.bf16 %v20380_v10  ;;  %v1593_v18 = vsel %vm1588_vm8, %v1583_v16, %v1585_v62  ;;  %19074 = vmatpush3.bf16.msra.mxu1 %v19073_v8  ;;  %v22582_v62 = vpack.i.bf16 %v21625_v42, %v21624_v11  ;;  %v21626_v16 = vld [vmem:[%s21952_s30 + $0x8] sm:$0xff] }
  0xed   : > { %16618 = vmatpush1.msk.msra.mxu0 %vm526_vm1, %v1593_v18  ;;  %18094 = vmatprep.subr.mxu1 %v21736_v2  ;;  %vm4006_vm8 = vcmask 891904  }
  0xee   : > { %20524 = vrot.lane.b32.xlu1 %v21962_v5, %s21757_s21  ;;  %v1776_v21 = vsel %vm1774_vm9, %v20381_v17, %v20331_v59  ;;  %v1778_v22 = vsel %vm1774_vm9, %v20382_v31, %v20332_v58  ;;  %16619 = vmatmul.mubr.msk.f32.vlgmr.msra.gmra.mrb[0].mxu0 %vm522_vm2, %v22334_v0 }
  0xef   : > { %3444 = vrot.lane.b32.xlu0 %v21998_v13, %s21753_s27  ;;  %v22492_v24 = vpop.permute.xlu1 %2330  ;;  %v20385_v25 = vpop.permute.xlu0 %20384  ;;  %v19047_v29 = vpack.c.bf16 %v1778_v22, %v1776_v21  ;;  %1860 = vmatprep.mubr.f32.mxu0 %v21736_v2  ;;  %v22604_v21 = vld [vmem:[%s21952_s30 + $0x48] sm:$0x3] }
  0xf0   : > { %v20387_v38 = vunpack.i.h.bf16 %v20385_v25  ;;  %v20386_v59 = vunpack.i.l.bf16 %v20385_v25  ;;  %18095 = vmatpush3.msk.msra.mxu1 %vm526_vm1, %v22492_v24 }
  0xf1   : > { %19048 = vmatprep.subr.bf16.mxu0 %v19047_v29  ;;  %19079 = vmatprep.subr.bf16.mxu1 %v21735_v1 }
  0xf2   : > { %v1777_v58 = vsel %vm1774_vm9, %v20387_v38, %v20382_v31  ;;  %v1775_v0 = vsel %vm1774_vm9, %v20386_v59, %v20381_v17  ;;  %20529 = vrot.lane.b32.xlu1 %v21981_v9, %s21754_s22  ;;  %18097 = vmatmul.mubr.msk.f32.vlgmr.msra.gmra.mrb[0].mxu1 %vm522_vm2, %v22497_v32  ;;  %v21627_v31 = vld [vmem:[%s21952_s30 + $0x28] sm:$0xff]  ;;  %v22626_v59 = vld [vmem:[%s21952_s30 + $0x40] sm:$0x3] }
  0xf3   : > { %3442 = vrot.lane.b32.xlu0 %v22003_v14, %s21753_s27  ;;  %v22511_v54 = vpop.permute.xlu1 %20389  ;;  %v1771_v19 = vpop.permute.xlu0 %1770  ;;  %v19049_v20 = vpack.c.bf16 %v1777_v58, %v1775_v0  ;;  %18105 = vmatprep.mubr.msk.f32.mxu1 %vm21737_vm0, %v21736_v2  ;;  %s21758_s27 = smov 107  }
  0xf4   : > { %v20392_v33 = vunpack.i.h.bf16 %v22511_v54  ;;  %v20391_v34 = vunpack.i.l.bf16 %v22511_v54  ;;  %v1780_v36 = vsel %vm1774_vm9, %v1771_v19, %v22315_v55 }
  0xf5   : > { %19050 = vmatpush1.bf16.msra.mxu0 %v19049_v20  ;;  %v21631_v20 = vld [vmem:[%s21952_s30 + $0x20] sm:$0xff] }
  0xf6   : > { %v19080_v27 = vpack.c.bf16 %v20392_v33, %v20391_v34  ;;  %4190 = vrot.lane.b32.xlu1 %v21968_v6, %s21757_s21  ;;  %16623 = vmatprep.subr.msk.mxu0 %vm526_vm1, %v1780_v36 }
  0xf7   : > { %20534 = vrot.lane.b32.xlu0 %v21993_v12, %s21754_s22  ;;  %v20395_v39 = vpop.permute.xlu1 %20394  ;;  %v1769_v41 = vpop.permute.xlu0 %1768 }
  0xf8   : > { %v20397_v44 = vunpack.i.h.bf16 %v20395_v39  ;;  %v20396_v30 = vunpack.i.l.bf16 %v20395_v39  ;;  %v1779_v55 = vsel %vm1774_vm9, %v1769_v41, %v1771_v19  ;;  %19081 = vmatpush3.bf16.msra.mxu1 %v19080_v27  ;;  %v21630_v19 = vld [vmem:[%s21952_s30] sm:$0xff]  ;;  %vm4192_vm9 = vcmask 883712  }
  0xf9   : > { %16624 = vmatpush1.msk.msra.mxu0 %vm526_vm1, %v1779_v55  ;;  %18103 = vmatprep.subr.mxu1 %v21736_v2  ;;  %v22634_v36 = vpack.i.bf16 %v21631_v20, %v21630_v19 }
  0xfa   : > { %20539 = vrot.lane.b32.xlu1 %v21962_v5, %s21758_s27  ;;  %v1962_v6 = vsel %vm1960_vm10, %v20396_v30, %v20346_v45  ;;  %v1964_v47 = vsel %vm1960_vm10, %v20397_v44, %v20347_v15  ;;  %16625 = vmatmul.mubr.msk.f32.vlgmr.msra.gmra.mrb[0].mxu0 %vm522_vm2, %v22374_v26  ;;  %v22548_v5 = vld [vmem:[%s27905_s1 + $0x2c] sm:$0x7] }
  0xfb   : > { %3630 = vrot.lane.b32.xlu0 %v21998_v13, %s21754_s22  ;;  %v22543_v48 = vpop.permute.xlu1 %2516  ;;  %v20400_v49 = vpop.permute.xlu0 %20399  ;;  %v19054_v50 = vpack.c.bf16 %v1964_v47, %v1962_v6  ;;  %2046 = vmatprep.mubr.f32.mxu0 %v21736_v2 }
  0xfc   : > { %v20402_v3 = vunpack.i.h.bf16 %v20400_v49  ;;  %v20401_v45 = vunpack.i.l.bf16 %v20400_v49  ;;  %18104 = vmatpush3.msk.msra.mxu1 %vm526_vm1, %v22543_v48 }
  0xfd   : > { %19055 = vmatprep.subr.bf16.mxu0 %v19054_v50  ;;  %19086 = vmatprep.subr.bf16.mxu1 %v21735_v1 }
  0xfe   : > { %v1963_v13 = vsel %vm1960_vm10, %v20402_v3, %v20397_v44  ;;  %v1961_v15 = vsel %vm1960_vm10, %v20401_v45, %v20396_v30  ;;  %20544 = vrot.lane.b32.xlu1 %v21981_v9, %s21755_s29  ;;  %18106 = vmatmul.mubr.msk.f32.vlgmr.msra.gmra.mrb[0].mxu1 %vm522_vm2, %v22548_v5 }
  0xff   : > { %3628 = vrot.lane.b32.xlu0 %v22003_v14, %s21754_s22  ;;  %v22562_v26 = vpop.permute.xlu1 %20404  ;;  %v1957_v51 = vpop.permute.xlu0 %1956  ;;  %v19056_v53 = vpack.c.bf16 %v1963_v13, %v1961_v15  ;;  %18114 = vmatprep.mubr.msk.f32.mxu1 %vm21737_vm0, %v21736_v2  ;;  %s21759_s22 = smov 106   ;;  %v22671_v15 = vld [vmem:[%s27905_s1 + $0x34] sm:$0x7] }
 0x100   : > { %v20407_v56 = vunpack.i.h.bf16 %v22562_v26  ;;  %v20406_v57 = vunpack.i.l.bf16 %v22562_v26  ;;  %v1966_v9 = vsel %vm1960_vm10, %v1957_v51, %v22378_v28 }
 0x101   : > { %19057 = vmatpush1.bf16.msra.mxu0 %v19056_v53 }
 0x102   : > { %v19087_v14 = vpack.c.bf16 %v20407_v56, %v20406_v57  ;;  %4376 = vrot.lane.b32.xlu1 %v22575_v61, %s21758_s27  ;;  %16629 = vmatprep.subr.msk.mxu0 %vm526_vm1, %v1966_v9 }
 0x103   : > { %20549 = vrot.lane.b32.xlu0 %v21993_v12, %s21755_s29  ;;  %v20410_v28 = vpop.permute.xlu1 %20409  ;;  %v1955_v40 = vpop.permute.xlu0 %1954  ;;  %v22593_v12 = vpack.i.bf16 %v21627_v31, %v21626_v16 }
 0x104   : > { %v20412_v7 = vunpack.i.h.bf16 %v20410_v28  ;;  %v20411_v8 = vunpack.i.l.bf16 %v20410_v28  ;;  %v1965_v10 = vsel %vm1960_vm10, %v1955_v40, %v1957_v51  ;;  %19088 = vmatpush3.bf16.msra.mxu1 %v19087_v14  ;;  %vm4378_vm10 = vcmask 875520  }
 0x105   : > { %16630 = vmatpush1.msk.msra.mxu0 %vm526_vm1, %v1965_v10  ;;  %18112 = vmatprep.subr.mxu1 %v21736_v2 }
 0x106   : > { %20554 = vrot.lane.b32.xlu1 %v22582_v62, %s21759_s22  ;;  %v2148_v17 = vsel %vm2146_vm11, %v20411_v8, %v20361_v37  ;;  %v2150_v18 = vsel %vm2146_vm11, %v20412_v7, %v20362_v23  ;;  %16631 = vmatmul.mubr.msk.f32.vlgmr.msra.gmra.mrb[0].mxu0 %vm522_vm2, %v22416_v60 }
 0x107   : > { %3816 = vrot.lane.b32.xlu0 %v22604_v21, %s21755_s29  ;;  %v22608_v22 = vpop.permute.xlu1 %2702  ;;  %v20415_v25 = vpop.permute.xlu0 %20414  ;;  %v19061_v29 = vpack.c.bf16 %v2150_v18, %v2148_v17  ;;  %2232 = vmatprep.mubr.f32.mxu0 %v21736_v2 }
 0x108   : > { %v20417_v23 = vunpack.i.h.bf16 %v20415_v25  ;;  %v20416_v37 = vunpack.i.l.bf16 %v20415_v25  ;;  %18113 = vmatpush3.msk.msra.mxu1 %vm526_vm1, %v22608_v22 }
 0x109   : > { %19062 = vmatprep.subr.bf16.mxu0 %v19061_v29  ;;  %19093 = vmatprep.subr.bf16.mxu1 %v21735_v1  ;;  %v22722_v29 = vld [vmem:[%s27905_s1 + $0x38] sm:$0x7] }
 0x10a   : > { %v2149_v60 = vsel %vm2146_vm11, %v20417_v23, %v20412_v7  ;;  %v2147_v38 = vsel %vm2146_vm11, %v20416_v37, %v20411_v8  ;;  %20559 = vrot.lane.b32.xlu1 %v22593_v12, %s21756_s26  ;;  %18115 = vmatmul.mubr.msk.f32.vlgmr.msra.gmra.mrb[0].mxu1 %vm522_vm2, %v22613_v35 }
 0x10b   : > { %3814 = vrot.lane.b32.xlu0 %v22626_v59, %s21755_s29  ;;  %v22630_v58 = vpop.permute.xlu1 %20419  ;;  %v2143_v0 = vpop.permute.xlu0 %2142  ;;  %v19063_v27 = vpack.c.bf16 %v2149_v60, %v2147_v38  ;;  %18123 = vmatprep.mubr.msk.f32.mxu1 %vm21737_vm0, %v21736_v2  ;;  %s21760_s29 = smov 105  }
 0x10c   : > { %v20422_v39 = vunpack.i.h.bf16 %v22630_v58  ;;  %v20421_v41 = vunpack.i.l.bf16 %v22630_v58  ;;  %v2152_v44 = vsel %vm2146_vm11, %v2143_v0, %v22436_v52 }
 0x10d   : > { %19064 = vmatpush1.bf16.msra.mxu0 %v19063_v27 }
 0x10e   : > { %v19094_v30 = vpack.c.bf16 %v20422_v39, %v20421_v41  ;;  %4562 = vrot.lane.b32.xlu1 %v22575_v61, %s21759_s22  ;;  %16635 = vmatprep.subr.msk.mxu0 %vm526_vm1, %v2152_v44 }
 0x10f   : > { %20564 = vrot.lane.b32.xlu0 %v22634_v36, %s21756_s26  ;;  %v20425_v55 = vpop.permute.xlu1 %20424  ;;  %v2141_v6 = vpop.permute.xlu0 %2140 }
 0x110   : > { %v20427_v47 = vunpack.i.h.bf16 %v20425_v55  ;;  %v20426_v49 = vunpack.i.l.bf16 %v20425_v55  ;;  %v2151_v52 = vsel %vm2146_vm11, %v2141_v6, %v2143_v0  ;;  %19095 = vmatpush3.bf16.msra.mxu1 %v19094_v30  ;;  %vm4564_vm11 = vcmask 867328  }
 0x111   : > { %16636 = vmatpush1.msk.msra.mxu0 %vm526_vm1, %v2151_v52  ;;  %18121 = vmatprep.subr.mxu1 %v21736_v2 }
 0x112   : > { %20569 = vrot.lane.b32.xlu1 %v22582_v62, %s21760_s29  ;;  %v2334_v50 = vsel %vm2332_vm12, %v20426_v49, %v20376_v4  ;;  %v2336_v3 = vsel %vm2332_vm12, %v20427_v47, %v20377_v63  ;;  %16637 = vmatmul.mubr.msk.f32.vlgmr.msra.gmra.mrb[0].mxu0 %vm522_vm2, %v22453_v43 }
 0x113   : > { %4002 = vrot.lane.b32.xlu0 %v22604_v21, %s21756_s26  ;;  %v22666_v45 = vpop.permute.xlu1 %2888  ;;  %v19068_v13 = vpack.c.bf16 %v2336_v3, %v2334_v50  ;;  %2418 = vmatprep.mubr.f32.mxu0 %v21736_v2 }
 0x114   : > { %v20430_v4 = vpop.permute.xlu0 %20429  ;;  %18122 = vmatpush3.msk.msra.mxu1 %vm526_vm1, %v22666_v45 }
 0x115   : > { %v20432_v46 = vunpack.i.h.bf16 %v20430_v4  ;;  %v20431_v63 = vunpack.i.l.bf16 %v20430_v4  ;;  %19069 = vmatprep.subr.bf16.mxu0 %v19068_v13  ;;  %19100 = vmatprep.subr.bf16.mxu1 %v21735_v1  ;;  %v22775_v13 = vld [vmem:[%s27905_s1 + $0x3c] sm:$0x7] }
 0x116   : > { %20574 = vrot.lane.b32.xlu1 %v22593_v12, %s21757_s21  ;;  %18124 = vmatmul.mubr.msk.f32.vlgmr.msra.gmra.mrb[0].mxu1 %vm522_vm2, %v22671_v15 }
 0x117   : > { %v2335_v43 = vsel %vm2332_vm12, %v20432_v46, %v20427_v47  ;;  %v2333_v51 = vsel %vm2332_vm12, %v20431_v63, %v20426_v49  ;;  %4000 = vrot.lane.b32.xlu0 %v22626_v59, %s21756_s26  ;;  %v22685_v53 = vpop.permute.xlu1 %20434  ;;  %18132 = vmatprep.mubr.msk.f32.mxu1 %vm21737_vm0, %v21736_v2  ;;  %s21761_s26 = smov 104  }
 0x118   : > { %v20437_v9 = vunpack.i.h.bf16 %v22685_v53  ;;  %v20436_v14 = vunpack.i.l.bf16 %v22685_v53  ;;  %v2329_v11 = vpop.permute.xlu0 %2328  ;;  %v19070_v42 = vpack.c.bf16 %v2335_v43, %v2333_v51 }
 0x119   : > { %v2338_v28 = vsel %vm2332_vm12, %v2329_v11, %v22492_v24 }
 0x11a   : > { %v19101_v40 = vpack.c.bf16 %v20437_v9, %v20436_v14  ;;  %4748 = vrot.lane.b32.xlu1 %v22575_v61, %s21760_s29  ;;  %19071 = vmatpush1.bf16.msra.mxu0 %v19070_v42 }
 0x11b   : > { %20579 = vrot.lane.b32.xlu0 %v22634_v36, %s21757_s21  ;;  %16641 = vmatprep.subr.msk.mxu0 %vm526_vm1, %v2338_v28  ;;  %v20440_v7 = vpop.permute.xlu1 %20439 }
 0x11c   : > { %v20442_v8 = vunpack.i.h.bf16 %v20440_v7  ;;  %v20441_v10 = vunpack.i.l.bf16 %v20440_v7  ;;  %v2327_v16 = vpop.permute.xlu0 %2326  ;;  %19102 = vmatpush3.bf16.msra.mxu1 %v19101_v40 }
 0x11d   : > { %v2337_v24 = vsel %vm2332_vm12, %v2327_v16, %v2329_v11  ;;  %18130 = vmatprep.subr.mxu1 %v21736_v2  ;;  %vm4750_vm12 = vcmask 859136  }
 0x11e   : > { %20584 = vrot.lane.b32.xlu1 %v22582_v62, %s21761_s26  ;;  %16642 = vmatpush1.msk.msra.mxu0 %vm526_vm1, %v2337_v24  ;;  %v2520_v31 = vsel %vm2518_vm13, %v20441_v10, %v20391_v34  ;;  %v2522_v17 = vsel %vm2518_vm13, %v20442_v8, %v20392_v33 }
 0x11f   : > { %4188 = vrot.lane.b32.xlu0 %v22604_v21, %s21757_s21  ;;  %v22715_v18 = vpop.permute.xlu1 %3074  ;;  %v19075_v25 = vpack.c.bf16 %v2522_v17, %v2520_v31  ;;  %16643 = vmatmul.mubr.msk.f32.vlgmr.msra.gmra.mrb[0].mxu0 %vm522_vm2, %v22497_v32 }
 0x120   : > { %v20445_v23 = vpop.permute.xlu0 %20444  ;;  %18131 = vmatpush3.msk.msra.mxu1 %vm526_vm1, %v22715_v18  ;;  %2604 = vmatprep.mubr.f32.mxu0 %v21736_v2 }
 0x121   : > { %v20447_v54 = vunpack.i.h.bf16 %v20445_v23  ;;  %v20446_v33 = vunpack.i.l.bf16 %v20445_v23  ;;  %19076 = vmatprep.subr.bf16.mxu0 %v19075_v25  ;;  %19107 = vmatprep.subr.bf16.mxu1 %v21735_v1  ;;  %v22826_v25 = vld [vmem:[%s27905_s1 + $0x40] sm:$0x7] }
 0x122   : > { %20589 = vrot.lane.b32.xlu1 %v22593_v12, %s21758_s27  ;;  %18133 = vmatmul.mubr.msk.f32.vlgmr.msra.gmra.mrb[0].mxu1 %vm522_vm2, %v22722_v29 }
 0x123   : > { %v2521_v32 = vsel %vm2518_vm13, %v20447_v54, %v20442_v8  ;;  %v2519_v34 = vsel %vm2518_vm13, %v20446_v33, %v20441_v10  ;;  %4186 = vrot.lane.b32.xlu0 %v22626_v59, %s21757_s21  ;;  %18141 = vmatprep.mubr.msk.f32.mxu1 %vm21737_vm0, %v21736_v2  ;;  %s21762_s21 = smov 103  }
 0x124   : > { %v22738_v37 = vpop.permute.xlu1 %20449  ;;  %v19077_v60 = vpack.c.bf16 %v2521_v32, %v2519_v34 }
 0x125   : > { %v20452_v38 = vunpack.i.h.bf16 %v22738_v37  ;;  %v20451_v0 = vunpack.i.l.bf16 %v22738_v37  ;;  %v2515_v19 = vpop.permute.xlu0 %2514 }
 0x126   : > { %4934 = vrot.lane.b32.xlu1 %v22575_v61, %s21761_s26  ;;  %19078 = vmatpush1.bf16.msra.mxu0 %v19077_v60  ;;  %v2524_v20 = vsel %vm2518_vm13, %v2515_v19, %v22543_v48 }
 0x127   : > { %v19108_v27 = vpack.c.bf16 %v20452_v38, %v20451_v0  ;;  %20594 = vrot.lane.b32.xlu0 %v22634_v36, %s21758_s27  ;;  %16647 = vmatprep.subr.msk.mxu0 %vm526_vm1, %v2524_v20 }
 0x128   : > { %v20455_v44 = vpop.permute.xlu1 %20454 }
 0x129   : > { %v20457_v30 = vunpack.i.h.bf16 %v20455_v44  ;;  %v20456_v55 = vunpack.i.l.bf16 %v20455_v44  ;;  %v2513_v6 = vpop.permute.xlu0 %2512  ;;  %19109 = vmatpush3.bf16.msra.mxu1 %v19108_v27 }
 0x12a   : > { %v2523_v47 = vsel %vm2518_vm13, %v2513_v6, %v2515_v19  ;;  %20599 = vrot.lane.b32.xlu1 %v22582_v62, %s21762_s21  ;;  %18139 = vmatprep.subr.mxu1 %v21736_v2  ;;  %vm4936_vm13 = vcmask 850944  }
 0x12b   : > { %4374 = vrot.lane.b32.xlu0 %v22604_v21, %s21758_s27  ;;  %16648 = vmatpush1.msk.msra.mxu0 %vm526_vm1, %v2523_v47  ;;  %v2706_v48 = vsel %vm2704_vm14, %v20456_v55, %v20406_v57  ;;  %v2708_v49 = vsel %vm2704_vm14, %v20457_v30, %v20407_v56 }
 0x12c   : > { %v22766_v52 = vpop.permute.xlu1 %3260  ;;  %v19082_v50 = vpack.c.bf16 %v2708_v49, %v2706_v48  ;;  %16649 = vmatmul.mubr.msk.f32.vlgmr.msra.gmra.mrb[0].mxu0 %vm522_vm2, %v22548_v5 }
 0x12d   : > { %v20460_v3 = vpop.permute.xlu0 %20459  ;;  %18140 = vmatpush3.msk.msra.mxu1 %vm526_vm1, %v22766_v52  ;;  %2790 = vmatprep.mubr.f32.mxu0 %v21736_v2 }
 0x12e   : > { %v20462_v26 = vunpack.i.h.bf16 %v20460_v3  ;;  %v20461_v57 = vunpack.i.l.bf16 %v20460_v3  ;;  %20604 = vrot.lane.b32.xlu1 %v22593_v12, %s21759_s22  ;;  %19083 = vmatprep.subr.bf16.mxu0 %v19082_v50  ;;  %v22877_v50 = vld [vmem:[%s27905_s1 + $0x44] sm:$0x7] }
 0x12f   : > { %4372 = vrot.lane.b32.xlu0 %v22626_v59, %s21758_s27  ;;  %19114 = vmatprep.subr.bf16.mxu1 %v21735_v1  ;;  %s21763_s27 = smov 102  }
 0x130   : > { %v2707_v5 = vsel %vm2704_vm14, %v20462_v26, %v20457_v30  ;;  %v2705_v56 = vsel %vm2704_vm14, %v20461_v57, %v20456_v55  ;;  %v22785_v4 = vpop.permute.xlu1 %20464  ;;  %18142 = vmatmul.mubr.msk.f32.vlgmr.msra.gmra.mrb[0].mxu1 %vm522_vm2, %v22775_v13 }
 0x131   : > { %v20467_v46 = vunpack.i.h.bf16 %v22785_v4  ;;  %v20466_v63 = vunpack.i.l.bf16 %v22785_v4  ;;  %v2701_v43 = vpop.permute.xlu0 %2700  ;;  %v19084_v51 = vpack.c.bf16 %v2707_v5, %v2705_v56  ;;  %18150 = vmatprep.mubr.msk.f32.mxu1 %vm21737_vm0, %v21736_v2 }
 0x132   : > { %5120 = vrot.lane.b32.xlu1 %v22575_v61, %s21762_s21  ;;  %v2710_v11 = vsel %vm2704_vm14, %v2701_v43, %v22608_v22 }
 0x133   : > { %v19115_v42 = vpack.c.bf16 %v20467_v46, %v20466_v63  ;;  %20609 = vrot.lane.b32.xlu0 %v22634_v36, %s21759_s22  ;;  %19085 = vmatpush1.bf16.msra.mxu0 %v19084_v51 }
 0x134   : > { %16653 = vmatprep.subr.msk.mxu0 %vm526_vm1, %v2710_v11  ;;  %v20470_v28 = vpop.permute.xlu1 %20469 }
 0x135   : > { %v20472_v40 = vunpack.i.h.bf16 %v20470_v28  ;;  %v20471_v7 = vunpack.i.l.bf16 %v20470_v28  ;;  %v2699_v8 = vpop.permute.xlu0 %2698  ;;  %19116 = vmatpush3.bf16.msra.mxu1 %v19115_v42 }
 0x136   : > { %v2709_v10 = vsel %vm2704_vm14, %v2699_v8, %v2701_v43  ;;  %20614 = vrot.lane.b32.xlu1 %v22582_v62, %s21763_s27  ;;  %18148 = vmatprep.subr.mxu1 %v21736_v2  ;;  %vm5122_vm14 = vcmask 842752  }
 0x137   : > { %4560 = vrot.lane.b32.xlu0 %v22604_v21, %s21759_s22  ;;  %16654 = vmatpush1.msk.msra.mxu0 %vm526_vm1, %v2709_v10  ;;  %v2892_v22 = vsel %vm2890_vm15, %v20471_v7, %v20421_v41  ;;  %v2894_v16 = vsel %vm2890_vm15, %v20472_v40, %v20422_v39 }
 0x138   : > { %v22817_v24 = vpop.permute.xlu1 %3446  ;;  %v19089_v31 = vpack.c.bf16 %v2894_v16, %v2892_v22  ;;  %16655 = vmatmul.mubr.msk.f32.vlgmr.msra.gmra.mrb[0].mxu0 %vm522_vm2, %v22613_v35 }
 0x139   : > { %v20475_v17 = vpop.permute.xlu0 %20474  ;;  %18149 = vmatpush3.msk.msra.mxu1 %vm526_vm1, %v22817_v24  ;;  %2976 = vmatprep.mubr.f32.mxu0 %v21736_v2 }
 0x13a   : > { %v20477_v58 = vunpack.i.h.bf16 %v20475_v17  ;;  %v20476_v41 = vunpack.i.l.bf16 %v20475_v17  ;;  %20619 = vrot.lane.b32.xlu1 %v22593_v12, %s21760_s29  ;;  %19090 = vmatprep.subr.bf16.mxu0 %v19089_v31  ;;  %v22928_v31 = vld [vmem:[%s27905_s1 + $0x48] sm:$0x7] }
 0x13b   : > { %4558 = vrot.lane.b32.xlu0 %v22626_v59, %s21759_s22  ;;  %19121 = vmatprep.subr.bf16.mxu1 %v21735_v1  ;;  %s21764_s22 = smov 101  }
 0x13c   : > { %v2893_v35 = vsel %vm2890_vm15, %v20477_v58, %v20472_v40  ;;  %v2891_v39 = vsel %vm2890_vm15, %v20476_v41, %v20471_v7  ;;  %v22836_v23 = vpop.permute.xlu1 %20479  ;;  %18151 = vmatmul.mubr.msk.f32.vlgmr.msra.gmra.mrb[0].mxu1 %vm522_vm2, %v22826_v25 }
 0x13d   : > { %v20482_v54 = vunpack.i.h.bf16 %v22836_v23  ;;  %v20481_v33 = vunpack.i.l.bf16 %v22836_v23  ;;  %v2887_v32 = vpop.permute.xlu0 %2886  ;;  %v19091_v34 = vpack.c.bf16 %v2893_v35, %v2891_v39  ;;  %18159 = vmatprep.mubr.msk.f32.mxu1 %vm21737_vm0, %v21736_v2 }
 0x13e   : > { %5306 = vrot.lane.b32.xlu1 %v22575_v61, %s21763_s27  ;;  %v2896_v60 = vsel %vm2890_vm15, %v2887_v32, %v22666_v45 }
 0x13f   : > { %v19122_v19 = vpack.c.bf16 %v20482_v54, %v20481_v33  ;;  %20624 = vrot.lane.b32.xlu0 %v22634_v36, %s21760_s29  ;;  %19092 = vmatpush1.bf16.msra.mxu0 %v19091_v34 }
 0x140   : > { %16659 = vmatprep.subr.msk.mxu0 %vm526_vm1, %v2896_v60  ;;  %v20485_v20 = vpop.permute.xlu1 %20484 }
 0x141   : > { %v20487_v27 = vunpack.i.h.bf16 %v20485_v20  ;;  %v20486_v44 = vunpack.i.l.bf16 %v20485_v20  ;;  %v2885_v30 = vpop.permute.xlu0 %2884  ;;  %19123 = vmatpush3.bf16.msra.mxu1 %v19122_v19 }
 0x142   : > { %v2895_v55 = vsel %vm2890_vm15, %v2885_v30, %v2887_v32  ;;  %20629 = vrot.lane.b32.xlu1 %v22582_v62, %s21764_s22  ;;  %18157 = vmatprep.subr.mxu1 %v21736_v2  ;;  %vm5308_vm15 = vcmask 834560  }
 0x143   : > { %4746 = vrot.lane.b32.xlu0 %v22604_v21, %s21760_s29  ;;  %16660 = vmatpush1.msk.msra.mxu0 %vm526_vm1, %v2895_v55  ;;  %v3078_v45 = vsel %vm3076_vm3, %v20486_v44, %v20436_v14  ;;  %v3080_v6 = vsel %vm3076_vm3, %v20487_v27, %v20437_v9 }
 0x144   : > { %v22868_v47 = vpop.permute.xlu1 %3632  ;;  %v19096_v48 = vpack.c.bf16 %v3080_v6, %v3078_v45  ;;  %16661 = vmatmul.mubr.msk.f32.vlgmr.msra.gmra.mrb[0].mxu0 %vm522_vm2, %v22671_v15 }
 0x145   : > { %v20490_v49 = vpop.permute.xlu0 %20489  ;;  %18158 = vmatpush3.msk.msra.mxu1 %vm526_vm1, %v22868_v47  ;;  %3162 = vmatprep.mubr.f32.mxu0 %v21736_v2 }
 0x146   : > { %v20492_v53 = vunpack.i.h.bf16 %v20490_v49  ;;  %v20491_v14 = vunpack.i.l.bf16 %v20490_v49  ;;  %20634 = vrot.lane.b32.xlu1 %v22593_v12, %s21761_s26  ;;  %19097 = vmatprep.subr.bf16.mxu0 %v19096_v48  ;;  %v22979_v48 = vld [vmem:[%s27905_s1 + $0x4c] sm:$0x7] }
 0x147   : > { %4744 = vrot.lane.b32.xlu0 %v22626_v59, %s21760_s29  ;;  %19128 = vmatprep.subr.bf16.mxu1 %v21735_v1  ;;  %s21765_s29 = smov 100  }
 0x148   : > { %v3079_v15 = vsel %vm3076_vm3, %v20492_v53, %v20487_v27  ;;  %v3077_v9 = vsel %vm3076_vm3, %v20491_v14, %v20486_v44  ;;  %v22887_v3 = vpop.permute.xlu1 %20494  ;;  %18160 = vmatmul.mubr.msk.f32.vlgmr.msra.gmra.mrb[0].mxu1 %vm522_vm2, %v22877_v50 }
 0x149   : > { %v20497_v26 = vunpack.i.h.bf16 %v22887_v3  ;;  %v20496_v57 = vunpack.i.l.bf16 %v22887_v3  ;;  %v3073_v5 = vpop.permute.xlu0 %3072  ;;  %v19098_v56 = vpack.c.bf16 %v3079_v15, %v3077_v9  ;;  %18168 = vmatprep.mubr.msk.f32.mxu1 %vm21737_vm0, %v21736_v2 }
 0x14a   : > { %5492 = vrot.lane.b32.xlu1 %v22575_v61, %s21764_s22  ;;  %v3082_v43 = vsel %vm3076_vm3, %v3073_v5, %v22715_v18 }
 0x14b   : > { %v19129_v51 = vpack.c.bf16 %v20497_v26, %v20496_v57  ;;  %20639 = vrot.lane.b32.xlu0 %v22634_v36, %s21761_s26  ;;  %19099 = vmatpush1.bf16.msra.mxu0 %v19098_v56 }
 0x14c   : > { %16665 = vmatprep.subr.msk.mxu0 %vm526_vm1, %v3082_v43  ;;  %v20500_v11 = vpop.permute.xlu1 %20499 }
 0x14d   : > { %v20502_v42 = vunpack.i.h.bf16 %v20500_v11  ;;  %v20501_v28 = vunpack.i.l.bf16 %v20500_v11  ;;  %v3071_v40 = vpop.permute.xlu0 %3070  ;;  %19130 = vmatpush3.bf16.msra.mxu1 %v19129_v51 }
 0x14e   : > { %v3081_v7 = vsel %vm3076_vm3, %v3071_v40, %v3073_v5  ;;  %20644 = vrot.lane.b32.xlu1 %v22582_v62, %s21765_s29  ;;  %18166 = vmatprep.subr.mxu1 %v21736_v2  ;;  %vm5494_vm3 = vcmask 826368  }
 0x14f   : > { %4932 = vrot.lane.b32.xlu0 %v22604_v21, %s21761_s26  ;;  %16666 = vmatpush1.msk.msra.mxu0 %vm526_vm1, %v3081_v7  ;;  %v3264_v18 = vsel %vm3262_vm4, %v20501_v28, %v20451_v0  ;;  %v3266_v8 = vsel %vm3262_vm4, %v20502_v42, %v20452_v38 }
 0x150   : > { %v22919_v10 = vpop.permute.xlu1 %3818  ;;  %v19103_v22 = vpack.c.bf16 %v3266_v8, %v3264_v18  ;;  %16667 = vmatmul.mubr.msk.f32.vlgmr.msra.gmra.mrb[0].mxu0 %vm522_vm2, %v22722_v29 }
 0x151   : > { %v20505_v16 = vpop.permute.xlu0 %20504  ;;  %18167 = vmatpush3.msk.msra.mxu1 %vm526_vm1, %v22919_v10  ;;  %3348 = vmatprep.mubr.f32.mxu0 %v21736_v2 }
 0x152   : > { %v20507_v37 = vunpack.i.h.bf16 %v20505_v16  ;;  %v20506_v0 = vunpack.i.l.bf16 %v20505_v16  ;;  %20649 = vrot.lane.b32.xlu1 %v22593_v12, %s21762_s21  ;;  %19104 = vmatprep.subr.bf16.mxu0 %v19103_v22  ;;  %v23030_v22 = vld [vmem:[%s27905_s1 + $0x50] sm:$0x7] }
 0x153   : > { %4930 = vrot.lane.b32.xlu0 %v22626_v59, %s21761_s26  ;;  %19135 = vmatprep.subr.bf16.mxu1 %v21735_v1  ;;  %s21766_s26 = smov 99  }
 0x154   : > { %v3265_v29 = vsel %vm3262_vm4, %v20507_v37, %v20502_v42  ;;  %v3263_v38 = vsel %vm3262_vm4, %v20506_v0, %v20501_v28  ;;  %v22938_v17 = vpop.permute.xlu1 %20509  ;;  %18169 = vmatmul.mubr.msk.f32.vlgmr.msra.gmra.mrb[0].mxu1 %vm522_vm2, %v22928_v31 }
 0x155   : > { %v20512_v58 = vunpack.i.h.bf16 %v22938_v17  ;;  %v20511_v41 = vunpack.i.l.bf16 %v22938_v17  ;;  %v3259_v35 = vpop.permute.xlu0 %3258  ;;  %v19105_v39 = vpack.c.bf16 %v3265_v29, %v3263_v38  ;;  %18177 = vmatprep.mubr.msk.f32.mxu1 %vm21737_vm0, %v21736_v2 }
 0x156   : > { %5678 = vrot.lane.b32.xlu1 %v22575_v61, %s21765_s29  ;;  %v3268_v32 = vsel %vm3262_vm4, %v3259_v35, %v22766_v52 }
 0x157   : > { %v19136_v34 = vpack.c.bf16 %v20512_v58, %v20511_v41  ;;  %20654 = vrot.lane.b32.xlu0 %v22634_v36, %s21762_s21  ;;  %19106 = vmatpush1.bf16.msra.mxu0 %v19105_v39 }
 0x158   : > { %16671 = vmatprep.subr.msk.mxu0 %vm526_vm1, %v3268_v32  ;;  %v20515_v60 = vpop.permute.xlu1 %20514 }
 0x159   : > { %v20517_v19 = vunpack.i.h.bf16 %v20515_v60  ;;  %v20516_v20 = vunpack.i.l.bf16 %v20515_v60  ;;  %v3257_v27 = vpop.permute.xlu0 %3256  ;;  %19137 = vmatpush3.bf16.msra.mxu1 %v19136_v34 }
 0x15a   : > { %v3267_v44 = vsel %vm3262_vm4, %v3257_v27, %v3259_v35  ;;  %20659 = vrot.lane.b32.xlu1 %v22582_v62, %s21766_s26  ;;  %18175 = vmatprep.subr.mxu1 %v21736_v2  ;;  %vm5680_vm4 = vcmask 818176  }
 0x15b   : > { %5118 = vrot.lane.b32.xlu0 %v22604_v21, %s21762_s21  ;;  %16672 = vmatpush1.msk.msra.mxu0 %vm526_vm1, %v3267_v44  ;;  %v3450_v52 = vsel %vm3448_vm5, %v20516_v20, %v20466_v63  ;;  %v3452_v30 = vsel %vm3448_vm5, %v20517_v19, %v20467_v46 }
 0x15c   : > { %v22970_v55 = vpop.permute.xlu1 %4004  ;;  %v19110_v45 = vpack.c.bf16 %v3452_v30, %v3450_v52  ;;  %16673 = vmatmul.mubr.msk.f32.vlgmr.msra.gmra.mrb[0].mxu0 %vm522_vm2, %v22775_v13 }
 0x15d   : > { %v20520_v6 = vpop.permute.xlu0 %20519  ;;  %18176 = vmatpush3.msk.msra.mxu1 %vm526_vm1, %v22970_v55  ;;  %3534 = vmatprep.mubr.f32.mxu0 %v21736_v2 }
 0x15e   : > { %v20522_v4 = vunpack.i.h.bf16 %v20520_v6  ;;  %v20521_v63 = vunpack.i.l.bf16 %v20520_v6  ;;  %20664 = vrot.lane.b32.xlu1 %v22593_v12, %s21763_s27  ;;  %19111 = vmatprep.subr.bf16.mxu0 %v19110_v45  ;;  %v23081_v45 = vld [vmem:[%s27905_s1 + $0x54] sm:$0x7] }
 0x15f   : > { %5116 = vrot.lane.b32.xlu0 %v22626_v59, %s21762_s21  ;;  %19142 = vmatprep.subr.bf16.mxu1 %v21735_v1  ;;  %s21767_s21 = smov 98  }
 0x160   : > { %v3451_v13 = vsel %vm3448_vm5, %v20522_v4, %v20517_v19  ;;  %v3449_v46 = vsel %vm3448_vm5, %v20521_v63, %v20516_v20  ;;  %v22989_v49 = vpop.permute.xlu1 %20524  ;;  %18178 = vmatmul.mubr.msk.f32.vlgmr.msra.gmra.mrb[0].mxu1 %vm522_vm2, %v22979_v48 }
 0x161   : > { %v20527_v53 = vunpack.i.h.bf16 %v22989_v49  ;;  %v20526_v14 = vunpack.i.l.bf16 %v22989_v49  ;;  %v3445_v15 = vpop.permute.xlu0 %3444  ;;  %v19112_v9 = vpack.c.bf16 %v3451_v13, %v3449_v46  ;;  %18186 = vmatprep.mubr.msk.f32.mxu1 %vm21737_vm0, %v21736_v2 }
 0x162   : > { %5864 = vrot.lane.b32.xlu1 %v22575_v61, %s21766_s26  ;;  %v3454_v5 = vsel %vm3448_vm5, %v3445_v15, %v22817_v24 }
 0x163   : > { %v19143_v56 = vpack.c.bf16 %v20527_v53, %v20526_v14  ;;  %20669 = vrot.lane.b32.xlu0 %v22634_v36, %s21763_s27  ;;  %19113 = vmatpush1.bf16.msra.mxu0 %v19112_v9 }
 0x164   : > { %16677 = vmatprep.subr.msk.mxu0 %vm526_vm1, %v3454_v5  ;;  %v20530_v43 = vpop.permute.xlu1 %20529 }
 0x165   : > { %v20532_v51 = vunpack.i.h.bf16 %v20530_v43  ;;  %v20531_v11 = vunpack.i.l.bf16 %v20530_v43  ;;  %v3443_v42 = vpop.permute.xlu0 %3442  ;;  %19144 = vmatpush3.bf16.msra.mxu1 %v19143_v56 }
 0x166   : > { %v3453_v28 = vsel %vm3448_vm5, %v3443_v42, %v3445_v15  ;;  %20674 = vrot.lane.b32.xlu1 %v22582_v62, %s21767_s21  ;;  %18184 = vmatprep.subr.mxu1 %v21736_v2  ;;  %vm5866_vm5 = vcmask 809984  }
 0x167   : > { %5304 = vrot.lane.b32.xlu0 %v22604_v21, %s21763_s27  ;;  %16678 = vmatpush1.msk.msra.mxu0 %vm526_vm1, %v3453_v28  ;;  %v3636_v24 = vsel %vm3634_vm6, %v20531_v11, %v20481_v33  ;;  %v3638_v40 = vsel %vm3634_vm6, %v20532_v51, %v20482_v54 }
 0x168   : > { %v23021_v7 = vpop.permute.xlu1 %4190  ;;  %v19117_v18 = vpack.c.bf16 %v3638_v40, %v3636_v24  ;;  %16679 = vmatmul.mubr.msk.f32.vlgmr.msra.gmra.mrb[0].mxu0 %vm522_vm2, %v22826_v25 }
 0x169   : > { %v20535_v8 = vpop.permute.xlu0 %20534  ;;  %18185 = vmatpush3.msk.msra.mxu1 %vm526_vm1, %v23021_v7  ;;  %3720 = vmatprep.mubr.f32.mxu0 %v21736_v2 }
 0x16a   : > { %v20537_v23 = vunpack.i.h.bf16 %v20535_v8  ;;  %v20536_v33 = vunpack.i.l.bf16 %v20535_v8  ;;  %20679 = vrot.lane.b32.xlu1 %v22593_v12, %s21764_s22  ;;  %19118 = vmatprep.subr.bf16.mxu0 %v19117_v18  ;;  %v23132_v18 = vld [vmem:[%s27905_s1 + $0x58] sm:$0x7] }
 0x16b   : > { %5302 = vrot.lane.b32.xlu0 %v22626_v59, %s21763_s27  ;;  %19149 = vmatprep.subr.bf16.mxu1 %v21735_v1  ;;  %s21768_s27 = smov 97  }
 0x16c   : > { %v3637_v25 = vsel %vm3634_vm6, %v20537_v23, %v20532_v51  ;;  %v3635_v54 = vsel %vm3634_vm6, %v20536_v33, %v20531_v11  ;;  %v23040_v16 = vpop.permute.xlu1 %20539  ;;  %18187 = vmatmul.mubr.msk.f32.vlgmr.msra.gmra.mrb[0].mxu1 %vm522_vm2, %v23030_v22 }
 0x16d   : > { %v20542_v37 = vunpack.i.h.bf16 %v23040_v16  ;;  %v20541_v0 = vunpack.i.l.bf16 %v23040_v16  ;;  %v3631_v29 = vpop.permute.xlu0 %3630  ;;  %v19119_v38 = vpack.c.bf16 %v3637_v25, %v3635_v54  ;;  %18195 = vmatprep.mubr.msk.f32.mxu1 %vm21737_vm0, %v21736_v2 }
 0x16e   : > { %6050 = vrot.lane.b32.xlu1 %v22575_v61, %s21767_s21  ;;  %v3640_v35 = vsel %vm3634_vm6, %v3631_v29, %v22868_v47 }
 0x16f   : > { %v19150_v39 = vpack.c.bf16 %v20542_v37, %v20541_v0  ;;  %20684 = vrot.lane.b32.xlu0 %v22634_v36, %s21764_s22  ;;  %19120 = vmatpush1.bf16.msra.mxu0 %v19119_v38 }
 0x170   : > { %16683 = vmatprep.subr.msk.mxu0 %vm526_vm1, %v3640_v35  ;;  %v20545_v32 = vpop.permute.xlu1 %20544 }
 0x171   : > { %v20547_v34 = vunpack.i.h.bf16 %v20545_v32  ;;  %v20546_v60 = vunpack.i.l.bf16 %v20545_v32  ;;  %v3629_v19 = vpop.permute.xlu0 %3628  ;;  %19151 = vmatpush3.bf16.msra.mxu1 %v19150_v39 }
 0x172   : > { %v3639_v20 = vsel %vm3634_vm6, %v3629_v19, %v3631_v29  ;;  %20689 = vrot.lane.b32.xlu1 %v22582_v62, %s21768_s27  ;;  %18193 = vmatprep.subr.mxu1 %v21736_v2  ;;  %vm6052_vm6 = vcmask 801792  }
 0x173   : > { %5490 = vrot.lane.b32.xlu0 %v22604_v21, %s21764_s22  ;;  %16684 = vmatpush1.msk.msra.mxu0 %vm526_vm1, %v3639_v20  ;;  %v3822_v47 = vsel %vm3820_vm7, %v20546_v60, %v20496_v57  ;;  %v3824_v27 = vsel %vm3820_vm7, %v20547_v34, %v20497_v26 }
 0x174   : > { %v23072_v44 = vpop.permute.xlu1 %4376  ;;  %v19124_v52 = vpack.c.bf16 %v3824_v27, %v3822_v47  ;;  %16685 = vmatmul.mubr.msk.f32.vlgmr.msra.gmra.mrb[0].mxu0 %vm522_vm2, %v22877_v50 }
 0x175   : > { %v20550_v30 = vpop.permute.xlu0 %20549  ;;  %18194 = vmatpush3.msk.msra.mxu1 %vm526_vm1, %v23072_v44  ;;  %3906 = vmatprep.mubr.f32.mxu0 %v21736_v2 }
 0x176   : > { %v20552_v3 = vunpack.i.h.bf16 %v20550_v30  ;;  %v20551_v57 = vunpack.i.l.bf16 %v20550_v30  ;;  %20694 = vrot.lane.b32.xlu1 %v22593_v12, %s21765_s29  ;;  %19125 = vmatprep.subr.bf16.mxu0 %v19124_v52 }
 0x177   : > { %5488 = vrot.lane.b32.xlu0 %v22626_v59, %s21764_s22  ;;  %19156 = vmatprep.subr.bf16.mxu1 %v21735_v1  ;;  %s21769_s22 = smov 96  }
 0x178   : > { %v3823_v50 = vsel %vm3820_vm7, %v20552_v3, %v20547_v34  ;;  %v3821_v26 = vsel %vm3820_vm7, %v20551_v57, %v20546_v60  ;;  %v23091_v6 = vpop.permute.xlu1 %20554  ;;  %18196 = vmatmul.mubr.msk.f32.vlgmr.msra.gmra.mrb[0].mxu1 %vm522_vm2, %v23081_v45  ;;  %v21633_v57 = vld [vmem:[%s21952_s30 + $0x10] sm:$0xff] }
 0x179   : > { %v20557_v4 = vunpack.i.h.bf16 %v23091_v6  ;;  %v20556_v63 = vunpack.i.l.bf16 %v23091_v6  ;;  %v3817_v13 = vpop.permute.xlu0 %3816  ;;  %v19126_v46 = vpack.c.bf16 %v3823_v50, %v3821_v26  ;;  %18204 = vmatprep.mubr.msk.f32.mxu1 %vm21737_vm0, %v21736_v2  ;;  %v21634_v50 = vld [vmem:[%s21952_s30 + $0x30] sm:$0xff] }
 0x17a   : > { %6236 = vrot.lane.b32.xlu1 %v22575_v61, %s21768_s27  ;;  %v3826_v15 = vsel %vm3820_vm7, %v3817_v13, %v22919_v10  ;;  %v23210_v26 = vpack.i.bf16 %v21634_v50, %v21633_v57 }
 0x17b   : > { %v19157_v9 = vpack.c.bf16 %v20557_v4, %v20556_v63  ;;  %20699 = vrot.lane.b32.xlu0 %v22634_v36, %s21765_s29  ;;  %19127 = vmatpush1.bf16.msra.mxu0 %v19126_v46 }
 0x17c   : > { %16689 = vmatprep.subr.msk.mxu0 %vm526_vm1, %v3826_v15  ;;  %v20560_v5 = vpop.permute.xlu1 %20559 }
 0x17d   : > { %v20562_v56 = vunpack.i.h.bf16 %v20560_v5  ;;  %v20561_v43 = vunpack.i.l.bf16 %v20560_v5  ;;  %v3815_v51 = vpop.permute.xlu0 %3814  ;;  %19158 = vmatpush3.bf16.msra.mxu1 %v19157_v9 }
 0x17e   : > { %v3825_v11 = vsel %vm3820_vm7, %v3815_v51, %v3817_v13  ;;  %20704 = vrot.lane.b32.xlu1 %v22582_v62, %s21769_s22  ;;  %18202 = vmatprep.subr.mxu1 %v21736_v2  ;;  %v23228_v51 = vld [vmem:[%s21952_s30 + $0x48] sm:$0x3]  ;;  %vm6238_vm7 = vcmask 793600  }
 0x17f   : > { %5676 = vrot.lane.b32.xlu0 %v22604_v21, %s21765_s29  ;;  %16690 = vmatpush1.msk.msra.mxu0 %vm526_vm1, %v3825_v11  ;;  %v4008_v10 = vsel %vm4006_vm8, %v20561_v43, %v20511_v41  ;;  %v4010_v42 = vsel %vm4006_vm8, %v20562_v56, %v20512_v58 }
 0x180   : > { %v23123_v28 = vpop.permute.xlu1 %4562  ;;  %v19131_v24 = vpack.c.bf16 %v4010_v42, %v4008_v10  ;;  %16691 = vmatmul.mubr.msk.f32.vlgmr.msra.gmra.mrb[0].mxu0 %vm522_vm2, %v22928_v31 }
 0x181   : > { %v20565_v40 = vpop.permute.xlu0 %20564  ;;  %18203 = vmatpush3.msk.msra.mxu1 %vm526_vm1, %v23123_v28  ;;  %4092 = vmatprep.mubr.f32.mxu0 %v21736_v2 }
 0x182   : > { %v20567_v17 = vunpack.i.h.bf16 %v20565_v40  ;;  %v20566_v41 = vunpack.i.l.bf16 %v20565_v40  ;;  %20709 = vrot.lane.b32.xlu1 %v22593_v12, %s21766_s26  ;;  %19132 = vmatprep.subr.bf16.mxu0 %v19131_v24 }
 0x183   : > { %5674 = vrot.lane.b32.xlu0 %v22626_v59, %s21765_s29  ;;  %19163 = vmatprep.subr.bf16.mxu1 %v21735_v1  ;;  %s21770_s29 = smov 95  }
 0x184   : > { %v4009_v31 = vsel %vm4006_vm8, %v20567_v17, %v20562_v56  ;;  %v4007_v58 = vsel %vm4006_vm8, %v20566_v41, %v20561_v43  ;;  %v23142_v8 = vpop.permute.xlu1 %20569  ;;  %18205 = vmatmul.mubr.msk.f32.vlgmr.msra.gmra.mrb[0].mxu1 %vm522_vm2, %v23132_v18  ;;  %v21635_v56 = vld [vmem:[%s21952_s30 + $0x8] sm:$0xff]  ;;  %v23248_v17 = vld [vmem:[%s27905_s1 + $0x60] sm:$0x7] }
 0x185   : > { %v20572_v23 = vunpack.i.h.bf16 %v23142_v8  ;;  %v20571_v33 = vunpack.i.l.bf16 %v23142_v8  ;;  %v4003_v25 = vpop.permute.xlu0 %4002  ;;  %v19133_v54 = vpack.c.bf16 %v4009_v31, %v4007_v58  ;;  %18213 = vmatprep.mubr.msk.f32.mxu1 %vm21737_vm0, %v21736_v2  ;;  %v21640_v41 = vld [vmem:[%s21952_s30 + $0x20] sm:$0xff] }
 0x186   : > { %6422 = vrot.lane.b32.xlu1 %v22575_v61, %s21769_s22  ;;  %v4012_v29 = vsel %vm4006_vm8, %v4003_v25, %v22970_v55 }
 0x187   : > { %v19164_v38 = vpack.c.bf16 %v20572_v23, %v20571_v33  ;;  %20714 = vrot.lane.b32.xlu0 %v22634_v36, %s21766_s26  ;;  %19134 = vmatpush1.bf16.msra.mxu0 %v19133_v54 }
 0x188   : > { %16695 = vmatprep.subr.msk.mxu0 %vm526_vm1, %v4012_v29  ;;  %v20575_v35 = vpop.permute.xlu1 %20574 }
 0x189   : > { %v20577_v39 = vunpack.i.h.bf16 %v20575_v35  ;;  %v20576_v32 = vunpack.i.l.bf16 %v20575_v35  ;;  %v4001_v34 = vpop.permute.xlu0 %4000  ;;  %19165 = vmatpush3.bf16.msra.mxu1 %v19164_v38 }
 0x18a   : > { %v4011_v61 = vsel %vm4006_vm8, %v4001_v34, %v4003_v25  ;;  %20719 = vrot.lane.b32.xlu1 %v22582_v62, %s21770_s29  ;;  %18211 = vmatprep.subr.mxu1 %v21736_v2  ;;  %vm6424_vm8 = vcmask 785408  }
 0x18b   : > { %5862 = vrot.lane.b32.xlu0 %v22604_v21, %s21766_s26  ;;  %16696 = vmatpush1.msk.msra.mxu0 %vm526_vm1, %v4011_v61  ;;  %v4194_v55 = vsel %vm4192_vm9, %v20576_v32, %v20526_v14  ;;  %v4196_v60 = vsel %vm4192_vm9, %v20577_v39, %v20527_v53  ;;  %v23183_v21 = vld [vmem:[%s27905_s1 + $0x5c] sm:$0x7] }
 0x18c   : > { %v23174_v19 = vpop.permute.xlu1 %4748  ;;  %v19138_v20 = vpack.c.bf16 %v4196_v60, %v4194_v55  ;;  %16697 = vmatmul.mubr.msk.f32.vlgmr.msra.gmra.mrb[0].mxu0 %vm522_vm2, %v22979_v48 }
 0x18d   : > { %v20580_v62 = vpop.permute.xlu0 %20579  ;;  %18212 = vmatpush3.msk.msra.mxu1 %vm526_vm1, %v23174_v19  ;;  %4278 = vmatprep.mubr.f32.mxu0 %v21736_v2 }
 0x18e   : > { %v20582_v49 = vunpack.i.h.bf16 %v20580_v62  ;;  %v20581_v53 = vunpack.i.l.bf16 %v20580_v62  ;;  %20724 = vrot.lane.b32.xlu1 %v22593_v12, %s21767_s21  ;;  %19139 = vmatprep.subr.bf16.mxu0 %v19138_v20 }
 0x18f   : > { %5860 = vrot.lane.b32.xlu0 %v22626_v59, %s21766_s26  ;;  %19170 = vmatprep.subr.bf16.mxu1 %v21735_v1  ;;  %v23202_v59 = vld [vmem:[%s21952_s30 + $0x50] sm:$0x3]  ;;  %s21771_s26 = smov 94  }
 0x190   : > { %v4195_v48 = vsel %vm4192_vm9, %v20582_v49, %v20577_v39  ;;  %v4193_v14 = vsel %vm4192_vm9, %v20581_v53, %v20576_v32  ;;  %v23193_v47 = vpop.permute.xlu1 %20584  ;;  %18214 = vmatmul.mubr.msk.f32.vlgmr.msra.gmra.mrb[0].mxu1 %vm522_vm2, %v23183_v21 }
 0x191   : > { %v20587_v27 = vunpack.i.h.bf16 %v23193_v47  ;;  %v20586_v12 = vunpack.i.l.bf16 %v23193_v47  ;;  %v4189_v52 = vpop.permute.xlu0 %4188  ;;  %v19140_v30 = vpack.c.bf16 %v4195_v48, %v4193_v14  ;;  %18222 = vmatprep.mubr.msk.f32.mxu1 %vm21737_vm0, %v21736_v2 }
 0x192   : > { %6608 = vrot.lane.b32.xlu1 %v23202_v59, %s21770_s29  ;;  %v4198_v3 = vsel %vm4192_vm9, %v4189_v52, %v23021_v7 }
 0x193   : > { %v19171_v13 = vpack.c.bf16 %v20587_v27, %v20586_v12  ;;  %20729 = vrot.lane.b32.xlu0 %v22634_v36, %s21767_s21  ;;  %19141 = vmatpush1.bf16.msra.mxu0 %v19140_v30  ;;  %v21636_v36 = vld [vmem:[%s21952_s30 + $0x28] sm:$0xff] }
 0x194   : > { %16701 = vmatprep.subr.msk.mxu0 %vm526_vm1, %v4198_v3  ;;  %v20590_v46 = vpop.permute.xlu1 %20589  ;;  %v23225_v43 = vpack.i.bf16 %v21636_v36, %v21635_v56 }
 0x195   : > { %v20592_v7 = vunpack.i.h.bf16 %v20590_v46  ;;  %v20591_v15 = vunpack.i.l.bf16 %v20590_v46  ;;  %v4187_v9 = vpop.permute.xlu0 %4186  ;;  %19172 = vmatpush3.bf16.msra.mxu1 %v19171_v13 }
 0x196   : > { %v4197_v5 = vsel %vm4192_vm9, %v4187_v9, %v4189_v52  ;;  %20734 = vrot.lane.b32.xlu1 %v23210_v26, %s21771_s26  ;;  %18220 = vmatprep.subr.mxu1 %v21736_v2  ;;  %v23306_v52 = vld [vmem:[%s27905_s1 + $0x64] sm:$0x7]  ;;  %vm6610_vm9 = vcmask 777216  }
 0x197   : > { %6048 = vrot.lane.b32.xlu0 %v23228_v51, %s21767_s21  ;;  %16702 = vmatpush1.msk.msra.mxu0 %vm526_vm1, %v4197_v5  ;;  %v4380_v11 = vsel %vm4378_vm10, %v20591_v15, %v20541_v0  ;;  %v4382_v10 = vsel %vm4378_vm10, %v20592_v7, %v20542_v37  ;;  %v23254_v37 = vld [vmem:[%s21952_s30 + $0x40] sm:$0x3] }
 0x198   : > { %v23239_v42 = vpop.permute.xlu1 %4934  ;;  %v19145_v24 = vpack.c.bf16 %v4382_v10, %v4380_v11  ;;  %16703 = vmatmul.mubr.msk.f32.vlgmr.msra.gmra.mrb[0].mxu0 %vm522_vm2, %v23030_v22  ;;  %v21639_v22 = vld [vmem:[%s21952_s30] sm:$0xff] }
 0x199   : > { %v20595_v40 = vpop.permute.xlu0 %20594  ;;  %18221 = vmatpush3.msk.msra.mxu1 %vm526_vm1, %v23239_v42  ;;  %4464 = vmatprep.mubr.f32.mxu0 %v21736_v2  ;;  %v23260_v31 = vpack.i.bf16 %v21640_v41, %v21639_v22 }
 0x19a   : > { %v20597_v16 = vunpack.i.h.bf16 %v20595_v40  ;;  %v20596_v0 = vunpack.i.l.bf16 %v20595_v40  ;;  %20739 = vrot.lane.b32.xlu1 %v23225_v43, %s21768_s27  ;;  %19146 = vmatprep.subr.bf16.mxu0 %v19145_v24 }
 0x19b   : > { %6046 = vrot.lane.b32.xlu0 %v23254_v37, %s21767_s21  ;;  %19177 = vmatprep.subr.bf16.mxu1 %v21735_v1  ;;  %s21772_s21 = smov 93  }
 0x19c   : > { %v4381_v58 = vsel %vm4378_vm10, %v20597_v16, %v20592_v7  ;;  %v4379_v25 = vsel %vm4378_vm10, %v20596_v0, %v20591_v15  ;;  %v23265_v54 = vpop.permute.xlu1 %20599  ;;  %18223 = vmatmul.mubr.msk.f32.vlgmr.msra.gmra.mrb[0].mxu1 %vm522_vm2, %v23248_v17  ;;  %v23357_v16 = vld [vmem:[%s27905_s1 + $0x68] sm:$0x7] }
 0x19d   : > { %v20602_v29 = vunpack.i.h.bf16 %v23265_v54  ;;  %v20601_v38 = vunpack.i.l.bf16 %v23265_v54  ;;  %v4375_v35 = vpop.permute.xlu0 %4374  ;;  %v19147_v39 = vpack.c.bf16 %v4381_v58, %v4379_v25  ;;  %18231 = vmatprep.mubr.msk.f32.mxu1 %vm21737_vm0, %v21736_v2 }
 0x19e   : > { %6794 = vrot.lane.b32.xlu1 %v23202_v59, %s21771_s26  ;;  %v4384_v32 = vsel %vm4378_vm10, %v4375_v35, %v23072_v44 }
 0x19f   : > { %v19178_v34 = vpack.c.bf16 %v20602_v29, %v20601_v38  ;;  %20744 = vrot.lane.b32.xlu0 %v23260_v31, %s21768_s27  ;;  %19148 = vmatpush1.bf16.msra.mxu0 %v19147_v39 }
 0x1a0   : > { %16707 = vmatprep.subr.msk.mxu0 %vm526_vm1, %v4384_v32  ;;  %v20605_v61 = vpop.permute.xlu1 %20604 }
 0x1a1   : > { %v20607_v55 = vunpack.i.h.bf16 %v20605_v61  ;;  %v20606_v60 = vunpack.i.l.bf16 %v20605_v61  ;;  %v4373_v20 = vpop.permute.xlu0 %4372  ;;  %19179 = vmatpush3.bf16.msra.mxu1 %v19178_v34 }
 0x1a2   : > { %v4383_v62 = vsel %vm4378_vm10, %v4373_v20, %v4375_v35  ;;  %20749 = vrot.lane.b32.xlu1 %v23210_v26, %s21772_s21  ;;  %18229 = vmatprep.subr.mxu1 %v21736_v2  ;;  %vm6796_vm10 = vcmask 769024  }
 0x1a3   : > { %6234 = vrot.lane.b32.xlu0 %v23228_v51, %s21768_s27  ;;  %16708 = vmatpush1.msk.msra.mxu0 %vm526_vm1, %v4383_v62  ;;  %v4566_v44 = vsel %vm4564_vm11, %v20606_v60, %v20556_v63  ;;  %v4568_v49 = vsel %vm4564_vm11, %v20607_v55, %v20557_v4 }
 0x1a4   : > { %v23297_v53 = vpop.permute.xlu1 %5120  ;;  %v19152_v48 = vpack.c.bf16 %v4568_v49, %v4566_v44  ;;  %16709 = vmatmul.mubr.msk.f32.vlgmr.msra.gmra.mrb[0].mxu0 %vm522_vm2, %v23081_v45 }
 0x1a5   : > { %v20610_v14 = vpop.permute.xlu0 %20609  ;;  %18230 = vmatpush3.msk.msra.mxu1 %vm526_vm1, %v23297_v53  ;;  %4650 = vmatprep.mubr.f32.mxu0 %v21736_v2 }
 0x1a6   : > { %v20612_v6 = vunpack.i.h.bf16 %v20610_v14  ;;  %v20611_v63 = vunpack.i.l.bf16 %v20610_v14  ;;  %20754 = vrot.lane.b32.xlu1 %v23225_v43, %s21769_s22  ;;  %19153 = vmatprep.subr.bf16.mxu0 %v19152_v48  ;;  %v23408_v48 = vld [vmem:[%s27905_s1 + $0x6c] sm:$0x7] }
 0x1a7   : > { %6232 = vrot.lane.b32.xlu0 %v23254_v37, %s21768_s27  ;;  %19184 = vmatprep.subr.bf16.mxu1 %v21735_v1  ;;  %s21773_s27 = smov 92  }
 0x1a8   : > { %v4567_v45 = vsel %vm4564_vm11, %v20612_v6, %v20607_v55  ;;  %v4565_v4 = vsel %vm4564_vm11, %v20611_v63, %v20606_v60  ;;  %v23316_v30 = vpop.permute.xlu1 %20614  ;;  %18232 = vmatmul.mubr.msk.f32.vlgmr.msra.gmra.mrb[0].mxu1 %vm522_vm2, %v23306_v52 }
 0x1a9   : > { %v20617_v3 = vunpack.i.h.bf16 %v23316_v30  ;;  %v20616_v57 = vunpack.i.l.bf16 %v23316_v30  ;;  %v4561_v50 = vpop.permute.xlu0 %4560  ;;  %v19154_v13 = vpack.c.bf16 %v4567_v45, %v4565_v4  ;;  %18240 = vmatprep.mubr.msk.f32.mxu1 %vm21737_vm0, %v21736_v2 }
 0x1aa   : > { %6980 = vrot.lane.b32.xlu1 %v23202_v59, %s21772_s21  ;;  %v4570_v46 = vsel %vm4564_vm11, %v4561_v50, %v23123_v28 }
 0x1ab   : > { %v19185_v7 = vpack.c.bf16 %v20617_v3, %v20616_v57  ;;  %20759 = vrot.lane.b32.xlu0 %v23260_v31, %s21769_s22  ;;  %19155 = vmatpush1.bf16.msra.mxu0 %v19154_v13 }
 0x1ac   : > { %16713 = vmatprep.subr.msk.mxu0 %vm526_vm1, %v4570_v46  ;;  %v20620_v15 = vpop.permute.xlu1 %20619 }
 0x1ad   : > { %v20622_v9 = vunpack.i.h.bf16 %v20620_v15  ;;  %v20621_v5 = vunpack.i.l.bf16 %v20620_v15  ;;  %v4559_v56 = vpop.permute.xlu0 %4558  ;;  %19186 = vmatpush3.bf16.msra.mxu1 %v19185_v7 }
 0x1ae   : > { %v4569_v36 = vsel %vm4564_vm11, %v4559_v56, %v4561_v50  ;;  %20764 = vrot.lane.b32.xlu1 %v23210_v26, %s21773_s27  ;;  %18238 = vmatprep.subr.mxu1 %v21736_v2  ;;  %vm6982_vm11 = vcmask 760832  }
 0x1af   : > { %6420 = vrot.lane.b32.xlu0 %v23228_v51, %s21769_s22  ;;  %16714 = vmatpush1.msk.msra.mxu0 %vm526_vm1, %v4569_v36  ;;  %v4752_v28 = vsel %vm4750_vm12, %v20621_v5, %v20571_v33  ;;  %v4754_v11 = vsel %vm4750_vm12, %v20622_v9, %v20572_v23 }
 0x1b0   : > { %v23348_v10 = vpop.permute.xlu1 %5306  ;;  %v19159_v24 = vpack.c.bf16 %v4754_v11, %v4752_v28  ;;  %16715 = vmatmul.mubr.msk.f32.vlgmr.msra.gmra.mrb[0].mxu0 %vm522_vm2, %v23132_v18 }
 0x1b1   : > { %v20625_v40 = vpop.permute.xlu0 %20624  ;;  %18239 = vmatpush3.msk.msra.mxu1 %vm526_vm1, %v23348_v10  ;;  %4836 = vmatprep.mubr.f32.mxu0 %v21736_v2 }
 0x1b2   : > { %v20627_v8 = vunpack.i.h.bf16 %v20625_v40  ;;  %v20626_v33 = vunpack.i.l.bf16 %v20625_v40  ;;  %20769 = vrot.lane.b32.xlu1 %v23225_v43, %s21770_s29  ;;  %19160 = vmatprep.subr.bf16.mxu0 %v19159_v24  ;;  %v23459_v24 = vld [vmem:[%s27905_s1 + $0x70] sm:$0x7] }
 0x1b3   : > { %6418 = vrot.lane.b32.xlu0 %v23254_v37, %s21769_s22  ;;  %19191 = vmatprep.subr.bf16.mxu1 %v21735_v1  ;;  %s21774_s22 = smov 91  }
 0x1b4   : > { %v4753_v18 = vsel %vm4750_vm12, %v20627_v8, %v20622_v9  ;;  %v4751_v23 = vsel %vm4750_vm12, %v20626_v33, %v20621_v5  ;;  %v23367_v0 = vpop.permute.xlu1 %20629  ;;  %18241 = vmatmul.mubr.msk.f32.vlgmr.msra.gmra.mrb[0].mxu1 %vm522_vm2, %v23357_v16 }
 0x1b5   : > { %v20632_v22 = vunpack.i.h.bf16 %v23367_v0  ;;  %v20631_v41 = vunpack.i.l.bf16 %v23367_v0  ;;  %v4747_v58 = vpop.permute.xlu0 %4746  ;;  %v19161_v25 = vpack.c.bf16 %v4753_v18, %v4751_v23  ;;  %18249 = vmatprep.mubr.msk.f32.mxu1 %vm21737_vm0, %v21736_v2 }
 0x1b6   : > { %7166 = vrot.lane.b32.xlu1 %v23202_v59, %s21773_s27  ;;  %v4756_v35 = vsel %vm4750_vm12, %v4747_v58, %v23174_v19 }
 0x1b7   : > { %v19192_v39 = vpack.c.bf16 %v20632_v22, %v20631_v41  ;;  %20774 = vrot.lane.b32.xlu0 %v23260_v31, %s21770_s29  ;;  %19162 = vmatpush1.bf16.msra.mxu0 %v19161_v25 }
 0x1b8   : > { %16719 = vmatprep.subr.msk.mxu0 %vm526_vm1, %v4756_v35  ;;  %v20635_v32 = vpop.permute.xlu1 %20634 }
 0x1b9   : > { %v20637_v34 = vunpack.i.h.bf16 %v20635_v32  ;;  %v20636_v61 = vunpack.i.l.bf16 %v20635_v32  ;;  %v4745_v55 = vpop.permute.xlu0 %4744  ;;  %19193 = vmatpush3.bf16.msra.mxu1 %v19192_v39 }
 0x1ba   : > { %v4755_v60 = vsel %vm4750_vm12, %v4745_v55, %v4747_v58  ;;  %20779 = vrot.lane.b32.xlu1 %v23210_v26, %s21774_s22  ;;  %18247 = vmatprep.subr.mxu1 %v21736_v2  ;;  %vm7168_vm12 = vcmask 752640  }
 0x1bb   : > { %6606 = vrot.lane.b32.xlu0 %v23228_v51, %s21770_s29  ;;  %16720 = vmatpush1.msk.msra.mxu0 %vm526_vm1, %v4755_v60  ;;  %v4938_v19 = vsel %vm4936_vm13, %v20636_v61, %v20586_v12  ;;  %v4940_v20 = vsel %vm4936_vm13, %v20637_v34, %v20587_v27 }
 0x1bc   : > { %v23399_v62 = vpop.permute.xlu1 %5492  ;;  %v19166_v44 = vpack.c.bf16 %v4940_v20, %v4938_v19  ;;  %16721 = vmatmul.mubr.msk.f32.vlgmr.msra.gmra.mrb[0].mxu0 %vm522_vm2, %v23183_v21 }
 0x1bd   : > { %v20640_v49 = vpop.permute.xlu0 %20639  ;;  %18248 = vmatpush3.msk.msra.mxu1 %vm526_vm1, %v23399_v62  ;;  %5022 = vmatprep.mubr.f32.mxu0 %v21736_v2 }
 0x1be   : > { %v20642_v47 = vunpack.i.h.bf16 %v20640_v49  ;;  %v20641_v12 = vunpack.i.l.bf16 %v20640_v49  ;;  %20784 = vrot.lane.b32.xlu1 %v23225_v43, %s21771_s26  ;;  %19167 = vmatprep.subr.bf16.mxu0 %v19166_v44  ;;  %v23510_v44 = vld [vmem:[%s27905_s1 + $0x74] sm:$0x7] }
 0x1bf   : > { %6604 = vrot.lane.b32.xlu0 %v23254_v37, %s21770_s29  ;;  %19198 = vmatprep.subr.bf16.mxu1 %v21735_v1  ;;  %s21775_s29 = smov 90  }
 0x1c0   : > { %v4939_v21 = vsel %vm4936_vm13, %v20642_v47, %v20637_v34  ;;  %v4937_v27 = vsel %vm4936_vm13, %v20641_v12, %v20636_v61  ;;  %v23418_v14 = vpop.permute.xlu1 %20644  ;;  %18250 = vmatmul.mubr.msk.f32.vlgmr.msra.gmra.mrb[0].mxu1 %vm522_vm2, %v23408_v48 }
 0x1c1   : > { %v20647_v6 = vunpack.i.h.bf16 %v23418_v14  ;;  %v20646_v63 = vunpack.i.l.bf16 %v23418_v14  ;;  %v4933_v45 = vpop.permute.xlu0 %4932  ;;  %v19168_v4 = vpack.c.bf16 %v4939_v21, %v4937_v27  ;;  %18258 = vmatprep.mubr.msk.f32.mxu1 %vm21737_vm0, %v21736_v2 }
 0x1c2   : > { %7352 = vrot.lane.b32.xlu1 %v23202_v59, %s21774_s22  ;;  %v4942_v50 = vsel %vm4936_vm13, %v4933_v45, %v23239_v42 }
 0x1c3   : > { %v19199_v13 = vpack.c.bf16 %v20647_v6, %v20646_v63  ;;  %20789 = vrot.lane.b32.xlu0 %v23260_v31, %s21771_s26  ;;  %19169 = vmatpush1.bf16.msra.mxu0 %v19168_v4 }
 0x1c4   : > { %16725 = vmatprep.subr.msk.mxu0 %vm526_vm1, %v4942_v50  ;;  %v20650_v46 = vpop.permute.xlu1 %20649 }
 0x1c5   : > { %v20652_v7 = vunpack.i.h.bf16 %v20650_v46  ;;  %v20651_v15 = vunpack.i.l.bf16 %v20650_v46  ;;  %v4931_v9 = vpop.permute.xlu0 %4930  ;;  %19200 = vmatpush3.bf16.msra.mxu1 %v19199_v13 }
 0x1c6   : > { %v4941_v5 = vsel %vm4936_vm13, %v4931_v9, %v4933_v45  ;;  %20794 = vrot.lane.b32.xlu1 %v23210_v26, %s21775_s29  ;;  %18256 = vmatprep.subr.mxu1 %v21736_v2  ;;  %vm7354_vm13 = vcmask 744448  }
 0x1c7   : > { %6792 = vrot.lane.b32.xlu0 %v23228_v51, %s21771_s26  ;;  %16726 = vmatpush1.msk.msra.mxu0 %vm526_vm1, %v4941_v5  ;;  %v5124_v42 = vsel %vm5122_vm14, %v20651_v15, %v20601_v38  ;;  %v5126_v56 = vsel %vm5122_vm14, %v20652_v7, %v20602_v29 }
 0x1c8   : > { %v23450_v36 = vpop.permute.xlu1 %5678  ;;  %v19173_v28 = vpack.c.bf16 %v5126_v56, %v5124_v42  ;;  %16727 = vmatmul.mubr.msk.f32.vlgmr.msra.gmra.mrb[0].mxu0 %vm522_vm2, %v23248_v17 }
 0x1c9   : > { %v20655_v11 = vpop.permute.xlu0 %20654  ;;  %18257 = vmatpush3.msk.msra.mxu1 %vm526_vm1, %v23450_v36  ;;  %5208 = vmatprep.mubr.f32.mxu0 %v21736_v2 }
 0x1ca   : > { %v20657_v54 = vunpack.i.h.bf16 %v20655_v11  ;;  %v20656_v38 = vunpack.i.l.bf16 %v20655_v11  ;;  %20799 = vrot.lane.b32.xlu1 %v23225_v43, %s21772_s21  ;;  %19174 = vmatprep.subr.bf16.mxu0 %v19173_v28  ;;  %v23561_v28 = vld [vmem:[%s27905_s1 + $0x78] sm:$0x7] }
 0x1cb   : > { %6790 = vrot.lane.b32.xlu0 %v23254_v37, %s21771_s26  ;;  %19205 = vmatprep.subr.bf16.mxu1 %v21735_v1  ;;  %s21776_s26 = smov 89  }
 0x1cc   : > { %v5125_v17 = vsel %vm5122_vm14, %v20657_v54, %v20652_v7  ;;  %v5123_v29 = vsel %vm5122_vm14, %v20656_v38, %v20651_v15  ;;  %v23469_v40 = vpop.permute.xlu1 %20659  ;;  %18259 = vmatmul.mubr.msk.f32.vlgmr.msra.gmra.mrb[0].mxu1 %vm522_vm2, %v23459_v24 }
 0x1cd   : > { %v20662_v8 = vunpack.i.h.bf16 %v23469_v40  ;;  %v20661_v33 = vunpack.i.l.bf16 %v23469_v40  ;;  %v5119_v18 = vpop.permute.xlu0 %5118  ;;  %v19175_v23 = vpack.c.bf16 %v5125_v17, %v5123_v29  ;;  %18267 = vmatprep.mubr.msk.f32.mxu1 %vm21737_vm0, %v21736_v2 }
 0x1ce   : > { %7538 = vrot.lane.b32.xlu1 %v23202_v59, %s21775_s29  ;;  %v5128_v58 = vsel %vm5122_vm14, %v5119_v18, %v23297_v53 }
 0x1cf   : > { %v19206_v25 = vpack.c.bf16 %v20662_v8, %v20661_v33  ;;  %20804 = vrot.lane.b32.xlu0 %v23260_v31, %s21772_s21  ;;  %19176 = vmatpush1.bf16.msra.mxu0 %v19175_v23 }
 0x1d0   : > { %16731 = vmatprep.subr.msk.mxu0 %vm526_vm1, %v5128_v58  ;;  %v20665_v35 = vpop.permute.xlu1 %20664 }
 0x1d1   : > { %v20667_v39 = vunpack.i.h.bf16 %v20665_v35  ;;  %v20666_v32 = vunpack.i.l.bf16 %v20665_v35  ;;  %v5117_v34 = vpop.permute.xlu0 %5116  ;;  %19207 = vmatpush3.bf16.msra.mxu1 %v19206_v25 }
 0x1d2   : > { %v5127_v61 = vsel %vm5122_vm14, %v5117_v34, %v5119_v18  ;;  %20809 = vrot.lane.b32.xlu1 %v23210_v26, %s21776_s26  ;;  %18265 = vmatprep.subr.mxu1 %v21736_v2  ;;  %vm7540_vm14 = vcmask 736256  }
 0x1d3   : > { %6978 = vrot.lane.b32.xlu0 %v23228_v51, %s21772_s21  ;;  %16732 = vmatpush1.msk.msra.mxu0 %vm526_vm1, %v5127_v61  ;;  %v5310_v53 = vsel %vm5308_vm15, %v20666_v32, %v20616_v57  ;;  %v5312_v55 = vsel %vm5308_vm15, %v20667_v39, %v20617_v3 }
 0x1d4   : > { %v23501_v60 = vpop.permute.xlu1 %5864  ;;  %v19180_v19 = vpack.c.bf16 %v5312_v55, %v5310_v53  ;;  %16733 = vmatmul.mubr.msk.f32.vlgmr.msra.gmra.mrb[0].mxu0 %vm522_vm2, %v23306_v52 }
 0x1d5   : > { %v20670_v20 = vpop.permute.xlu0 %20669  ;;  %18266 = vmatpush3.msk.msra.mxu1 %vm526_vm1, %v23501_v60  ;;  %5394 = vmatprep.mubr.f32.mxu0 %v21736_v2 }
 0x1d6   : > { %v20672_v30 = vunpack.i.h.bf16 %v20670_v20  ;;  %v20671_v57 = vunpack.i.l.bf16 %v20670_v20  ;;  %20814 = vrot.lane.b32.xlu1 %v23225_v43, %s21773_s27  ;;  %19181 = vmatprep.subr.bf16.mxu0 %v19180_v19  ;;  %v23612_v19 = vld [vmem:[%s27905_s1 + $0x7c] sm:$0x7] }
 0x1d7   : > { %6976 = vrot.lane.b32.xlu0 %v23254_v37, %s21772_s21  ;;  %19212 = vmatprep.subr.bf16.mxu1 %v21735_v1  ;;  %s21777_s21 = smov 88  }
 0x1d8   : > { %v5311_v52 = vsel %vm5308_vm15, %v20672_v30, %v20667_v39  ;;  %v5309_v3 = vsel %vm5308_vm15, %v20671_v57, %v20666_v32  ;;  %v23520_v49 = vpop.permute.xlu1 %20674  ;;  %18268 = vmatmul.mubr.msk.f32.vlgmr.msra.gmra.mrb[0].mxu1 %vm522_vm2, %v23510_v44 }
 0x1d9   : > { %v20677_v47 = vunpack.i.h.bf16 %v23520_v49  ;;  %v20676_v12 = vunpack.i.l.bf16 %v23520_v49  ;;  %v5305_v21 = vpop.permute.xlu0 %5304  ;;  %v19182_v27 = vpack.c.bf16 %v5311_v52, %v5309_v3  ;;  %18276 = vmatprep.mubr.msk.f32.mxu1 %vm21737_vm0, %v21736_v2 }
 0x1da   : > { %7724 = vrot.lane.b32.xlu1 %v23202_v59, %s21776_s26  ;;  %v5314_v45 = vsel %vm5308_vm15, %v5305_v21, %v23348_v10 }
 0x1db   : > { %v19213_v4 = vpack.c.bf16 %v20677_v47, %v20676_v12  ;;  %20819 = vrot.lane.b32.xlu0 %v23260_v31, %s21773_s27  ;;  %19183 = vmatpush1.bf16.msra.mxu0 %v19182_v27 }
 0x1dc   : > { %16737 = vmatprep.subr.msk.mxu0 %vm526_vm1, %v5314_v45  ;;  %v20680_v50 = vpop.permute.xlu1 %20679 }
 0x1dd   : > { %v20682_v13 = vunpack.i.h.bf16 %v20680_v50  ;;  %v20681_v46 = vunpack.i.l.bf16 %v20680_v50  ;;  %v5303_v7 = vpop.permute.xlu0 %5302  ;;  %19214 = vmatpush3.bf16.msra.mxu1 %v19213_v4 }
 0x1de   : > { %v5313_v15 = vsel %vm5308_vm15, %v5303_v7, %v5305_v21  ;;  %20824 = vrot.lane.b32.xlu1 %v23210_v26, %s21777_s21  ;;  %18274 = vmatprep.subr.mxu1 %v21736_v2  ;;  %vm7726_vm15 = vcmask 728064  }
 0x1df   : > { %7164 = vrot.lane.b32.xlu0 %v23228_v51, %s21773_s27  ;;  %16738 = vmatpush1.msk.msra.mxu0 %vm526_vm1, %v5313_v15  ;;  %v5496_v10 = vsel %vm5494_vm3, %v20681_v46, %v20631_v41  ;;  %v5498_v9 = vsel %vm5494_vm3, %v20682_v13, %v20632_v22 }
 0x1e0   : > { %v23552_v5 = vpop.permute.xlu1 %6050  ;;  %v19187_v42 = vpack.c.bf16 %v5498_v9, %v5496_v10  ;;  %16739 = vmatmul.mubr.msk.f32.vlgmr.msra.gmra.mrb[0].mxu0 %vm522_vm2, %v23357_v16 }
 0x1e1   : > { %v20685_v56 = vpop.permute.xlu0 %20684  ;;  %18275 = vmatpush3.msk.msra.mxu1 %vm526_vm1, %v23552_v5  ;;  %5580 = vmatprep.mubr.f32.mxu0 %v21736_v2 }
 0x1e2   : > { %v20687_v0 = vunpack.i.h.bf16 %v20685_v56  ;;  %v20686_v41 = vunpack.i.l.bf16 %v20685_v56  ;;  %20829 = vrot.lane.b32.xlu1 %v23225_v43, %s21774_s22  ;;  %19188 = vmatprep.subr.bf16.mxu0 %v19187_v42  ;;  %v23663_v42 = vld [vmem:[%s27905_s1 + $0x80] sm:$0x7] }
 0x1e3   : > { %7162 = vrot.lane.b32.xlu0 %v23254_v37, %s21773_s27  ;;  %19219 = vmatprep.subr.bf16.mxu1 %v21735_v1  ;;  %s21778_s27 = smov 87  }
 0x1e4   : > { %v5497_v16 = vsel %vm5494_vm3, %v20687_v0, %v20682_v13  ;;  %v5495_v22 = vsel %vm5494_vm3, %v20686_v41, %v20681_v46  ;;  %v23571_v11 = vpop.permute.xlu1 %20689  ;;  %18277 = vmatmul.mubr.msk.f32.vlgmr.msra.gmra.mrb[0].mxu1 %vm522_vm2, %v23561_v28 }
 0x1e5   : > { %v20692_v54 = vunpack.i.h.bf16 %v23571_v11  ;;  %v20691_v38 = vunpack.i.l.bf16 %v23571_v11  ;;  %v5491_v17 = vpop.permute.xlu0 %5490  ;;  %v19189_v29 = vpack.c.bf16 %v5497_v16, %v5495_v22  ;;  %18285 = vmatprep.mubr.msk.f32.mxu1 %vm21737_vm0, %v21736_v2 }
 0x1e6   : > { %7910 = vrot.lane.b32.xlu1 %v23202_v59, %s21777_s21  ;;  %v5500_v18 = vsel %vm5494_vm3, %v5491_v17, %v23399_v62 }
 0x1e7   : > { %v19220_v23 = vpack.c.bf16 %v20692_v54, %v20691_v38  ;;  %20834 = vrot.lane.b32.xlu0 %v23260_v31, %s21774_s22  ;;  %19190 = vmatpush1.bf16.msra.mxu0 %v19189_v29 }
 0x1e8   : > { %16743 = vmatprep.subr.msk.mxu0 %vm526_vm1, %v5500_v18  ;;  %v20695_v58 = vpop.permute.xlu1 %20694 }
 0x1e9   : > { %v20697_v25 = vunpack.i.h.bf16 %v20695_v58  ;;  %v20696_v35 = vunpack.i.l.bf16 %v20695_v58  ;;  %v5489_v39 = vpop.permute.xlu0 %5488  ;;  %19221 = vmatpush3.bf16.msra.mxu1 %v19220_v23 }
 0x1ea   : > { %v5499_v32 = vsel %vm5494_vm3, %v5489_v39, %v5491_v17  ;;  %20839 = vrot.lane.b32.xlu1 %v23210_v26, %s21778_s27  ;;  %18283 = vmatprep.subr.mxu1 %v21736_v2  ;;  %vm7912_vm3 = vcmask 719872  }
 0x1eb   : > { %7350 = vrot.lane.b32.xlu0 %v23228_v51, %s21774_s22  ;;  %16744 = vmatpush1.msk.msra.mxu0 %vm526_vm1, %v5499_v32  ;;  %v5682_v62 = vsel %vm5680_vm4, %v20696_v35, %v20646_v63  ;;  %v5684_v34 = vsel %vm5680_vm4, %v20697_v25, %v20647_v6 }
 0x1ec   : > { %v23603_v61 = vpop.permute.xlu1 %6236  ;;  %v19194_v53 = vpack.c.bf16 %v5684_v34, %v5682_v62  ;;  %16745 = vmatmul.mubr.msk.f32.vlgmr.msra.gmra.mrb[0].mxu0 %vm522_vm2, %v23408_v48 }
 0x1ed   : > { %v20700_v55 = vpop.permute.xlu0 %20699  ;;  %18284 = vmatpush3.msk.msra.mxu1 %vm526_vm1, %v23603_v61  ;;  %5766 = vmatprep.mubr.f32.mxu0 %v21736_v2 }
 0x1ee   : > { %v20702_v14 = vunpack.i.h.bf16 %v20700_v55  ;;  %v20701_v63 = vunpack.i.l.bf16 %v20700_v55  ;;  %20844 = vrot.lane.b32.xlu1 %v23225_v43, %s21775_s29  ;;  %19195 = vmatprep.subr.bf16.mxu0 %v19194_v53  ;;  %v23714_v53 = vld [vmem:[%s27905_s1 + $0x84] sm:$0x7] }
 0x1ef   : > { %7348 = vrot.lane.b32.xlu0 %v23254_v37, %s21774_s22  ;;  %19226 = vmatprep.subr.bf16.mxu1 %v21735_v1  ;;  %s21779_s22 = smov 86  }
 0x1f0   : > { %v5683_v48 = vsel %vm5680_vm4, %v20702_v14, %v20697_v25  ;;  %v5681_v6 = vsel %vm5680_vm4, %v20701_v63, %v20696_v35  ;;  %v23622_v20 = vpop.permute.xlu1 %20704  ;;  %18286 = vmatmul.mubr.msk.f32.vlgmr.msra.gmra.mrb[0].mxu1 %vm522_vm2, %v23612_v19 }
 0x1f1   : > { %v20707_v30 = vunpack.i.h.bf16 %v23622_v20  ;;  %v20706_v57 = vunpack.i.l.bf16 %v23622_v20  ;;  %v5677_v52 = vpop.permute.xlu0 %5676  ;;  %v19196_v3 = vpack.c.bf16 %v5683_v48, %v5681_v6  ;;  %18294 = vmatprep.mubr.msk.f32.mxu1 %vm21737_vm0, %v21736_v2 }
 0x1f2   : > { %8096 = vrot.lane.b32.xlu1 %v23202_v59, %s21778_s27  ;;  %v5686_v21 = vsel %vm5680_vm4, %v5677_v52, %v23450_v36 }
 0x1f3   : > { %v19227_v27 = vpack.c.bf16 %v20707_v30, %v20706_v57  ;;  %20849 = vrot.lane.b32.xlu0 %v23260_v31, %s21775_s29  ;;  %19197 = vmatpush1.bf16.msra.mxu0 %v19196_v3 }
 0x1f4   : > { %16749 = vmatprep.subr.msk.mxu0 %vm526_vm1, %v5686_v21  ;;  %v20710_v45 = vpop.permute.xlu1 %20709 }
 0x1f5   : > { %v20712_v4 = vunpack.i.h.bf16 %v20710_v45  ;;  %v20711_v50 = vunpack.i.l.bf16 %v20710_v45  ;;  %v5675_v13 = vpop.permute.xlu0 %5674  ;;  %19228 = vmatpush3.bf16.msra.mxu1 %v19227_v27 }
 0x1f6   : > { %v5685_v46 = vsel %vm5680_vm4, %v5675_v13, %v5677_v52  ;;  %20854 = vrot.lane.b32.xlu1 %v23210_v26, %s21779_s22  ;;  %18292 = vmatprep.subr.mxu1 %v21736_v2  ;;  %vm8098_vm4 = vcmask 711680  }
 0x1f7   : > { %7536 = vrot.lane.b32.xlu0 %v23228_v51, %s21775_s29  ;;  %16750 = vmatpush1.msk.msra.mxu0 %vm526_vm1, %v5685_v46  ;;  %v5868_v36 = vsel %vm5866_vm5, %v20711_v50, %v20661_v33  ;;  %v5870_v7 = vsel %vm5866_vm5, %v20712_v4, %v20662_v8 }
 0x1f8   : > { %v23654_v15 = vpop.permute.xlu1 %6422  ;;  %v19201_v10 = vpack.c.bf16 %v5870_v7, %v5868_v36  ;;  %16751 = vmatmul.mubr.msk.f32.vlgmr.msra.gmra.mrb[0].mxu0 %vm522_vm2, %v23459_v24 }
 0x1f9   : > { %v20715_v9 = vpop.permute.xlu0 %20714  ;;  %18293 = vmatpush3.msk.msra.mxu1 %vm526_vm1, %v23654_v15  ;;  %5952 = vmatprep.mubr.f32.mxu0 %v21736_v2 }
 0x1fa   : > { %v20717_v40 = vunpack.i.h.bf16 %v20715_v9  ;;  %v20716_v33 = vunpack.i.l.bf16 %v20715_v9  ;;  %20859 = vrot.lane.b32.xlu1 %v23225_v43, %s21776_s26  ;;  %19202 = vmatprep.subr.bf16.mxu0 %v19201_v10  ;;  %v23765_v10 = vld [vmem:[%s27905_s1 + $0x88] sm:$0x7] }
 0x1fb   : > { %7534 = vrot.lane.b32.xlu0 %v23254_v37, %s21775_s29  ;;  %19233 = vmatprep.subr.bf16.mxu1 %v21735_v1  ;;  %s21780_s29 = smov 85  }
 0x1fc   : > { %v5869_v24 = vsel %vm5866_vm5, %v20717_v40, %v20712_v4  ;;  %v5867_v8 = vsel %vm5866_vm5, %v20716_v33, %v20711_v50  ;;  %v23673_v56 = vpop.permute.xlu1 %20719  ;;  %18295 = vmatmul.mubr.msk.f32.vlgmr.msra.gmra.mrb[0].mxu1 %vm522_vm2, %v23663_v42 }
 0x1fd   : > { %v20722_v0 = vunpack.i.h.bf16 %v23673_v56  ;;  %v20721_v41 = vunpack.i.l.bf16 %v23673_v56  ;;  %v5863_v16 = vpop.permute.xlu0 %5862  ;;  %v19203_v22 = vpack.c.bf16 %v5869_v24, %v5867_v8  ;;  %18303 = vmatprep.mubr.msk.f32.mxu1 %vm21737_vm0, %v21736_v2 }
 0x1fe   : > { %8282 = vrot.lane.b32.xlu1 %v23202_v59, %s21779_s22  ;;  %v5872_v17 = vsel %vm5866_vm5, %v5863_v16, %v23501_v60 }
 0x1ff   : > { %v19234_v29 = vpack.c.bf16 %v20722_v0, %v20721_v41  ;;  %20864 = vrot.lane.b32.xlu0 %v23260_v31, %s21776_s26  ;;  %19204 = vmatpush1.bf16.msra.mxu0 %v19203_v22 }
 0x200   : > { %16755 = vmatprep.subr.msk.mxu0 %vm526_vm1, %v5872_v17  ;;  %v20725_v18 = vpop.permute.xlu1 %20724 }
 0x201   : > { %v20727_v23 = vunpack.i.h.bf16 %v20725_v18  ;;  %v20726_v58 = vunpack.i.l.bf16 %v20725_v18  ;;  %v5861_v25 = vpop.permute.xlu0 %5860  ;;  %19235 = vmatpush3.bf16.msra.mxu1 %v19234_v29 }
 0x202   : > { %v5871_v35 = vsel %vm5866_vm5, %v5861_v25, %v5863_v16  ;;  %20869 = vrot.lane.b32.xlu1 %v23210_v26, %s21780_s29  ;;  %18301 = vmatprep.subr.mxu1 %v21736_v2  ;;  %vm8284_vm5 = vcmask 703488  }
 0x203   : > { %7722 = vrot.lane.b32.xlu0 %v23228_v51, %s21776_s26  ;;  %16756 = vmatpush1.msk.msra.mxu0 %vm526_vm1, %v5871_v35  ;;  %v6054_v60 = vsel %vm6052_vm6, %v20726_v58, %v20676_v12  ;;  %v6056_v39 = vsel %vm6052_vm6, %v20727_v23, %v20677_v47 }
 0x204   : > { %v23705_v32 = vpop.permute.xlu1 %6608  ;;  %v19208_v62 = vpack.c.bf16 %v6056_v39, %v6054_v60  ;;  %16757 = vmatmul.mubr.msk.f32.vlgmr.msra.gmra.mrb[0].mxu0 %vm522_vm2, %v23510_v44 }
 0x205   : > { %v20730_v34 = vpop.permute.xlu0 %20729  ;;  %18302 = vmatpush3.msk.msra.mxu1 %vm526_vm1, %v23705_v32  ;;  %6138 = vmatprep.mubr.f32.mxu0 %v21736_v2 }
 0x206   : > { %v20732_v49 = vunpack.i.h.bf16 %v20730_v34  ;;  %v20731_v12 = vunpack.i.l.bf16 %v20730_v34  ;;  %20874 = vrot.lane.b32.xlu1 %v23225_v43, %s21777_s21  ;;  %19209 = vmatprep.subr.bf16.mxu0 %v19208_v62 }
 0x207   : > { %7720 = vrot.lane.b32.xlu0 %v23254_v37, %s21776_s26  ;;  %19240 = vmatprep.subr.bf16.mxu1 %v21735_v1  ;;  %s21781_s26 = smov 84  }
 0x208   : > { %v6055_v44 = vsel %vm6052_vm6, %v20732_v49, %v20727_v23  ;;  %v6053_v47 = vsel %vm6052_vm6, %v20731_v12, %v20726_v58  ;;  %v23724_v55 = vpop.permute.xlu1 %20734  ;;  %18304 = vmatmul.mubr.msk.f32.vlgmr.msra.gmra.mrb[0].mxu1 %vm522_vm2, %v23714_v53  ;;  %v23842_v12 = vld [vmem:[%s21952_s30 + $0x10] sm:$0xff] }
 0x209   : > { %v20737_v14 = vunpack.i.h.bf16 %v23724_v55  ;;  %v20736_v63 = vunpack.i.l.bf16 %v23724_v55  ;;  %v6049_v48 = vpop.permute.xlu0 %6048  ;;  %v19210_v6 = vpack.c.bf16 %v6055_v44, %v6053_v47  ;;  %18312 = vmatprep.mubr.msk.f32.mxu1 %vm21737_vm0, %v21736_v2  ;;  %v23845_v44 = vld [vmem:[%s21952_s30 + $0x30] sm:$0xff] }
 0x20a   : > { %8468 = vrot.lane.b32.xlu1 %v23202_v59, %s21780_s29  ;;  %v6058_v52 = vsel %vm6052_vm6, %v6049_v48, %v23552_v5  ;;  %v23849_v47 = vpack.i.bf16 %v23845_v44, %v23842_v12 }
 0x20b   : > { %v19241_v3 = vpack.c.bf16 %v20737_v14, %v20736_v63  ;;  %20879 = vrot.lane.b32.xlu0 %v23260_v31, %s21777_s21  ;;  %19211 = vmatpush1.bf16.msra.mxu0 %v19210_v6 }
 0x20c   : > { %16761 = vmatprep.subr.msk.mxu0 %vm526_vm1, %v6058_v52  ;;  %v20740_v21 = vpop.permute.xlu1 %20739 }
 0x20d   : > { %v20742_v27 = vunpack.i.h.bf16 %v20740_v21  ;;  %v20741_v45 = vunpack.i.l.bf16 %v20740_v21  ;;  %v6047_v4 = vpop.permute.xlu0 %6046  ;;  %19242 = vmatpush3.bf16.msra.mxu1 %v19241_v3 }
 0x20e   : > { %v6057_v50 = vsel %vm6052_vm6, %v6047_v4, %v6049_v48  ;;  %20884 = vrot.lane.b32.xlu1 %v23210_v26, %s21781_s26  ;;  %18310 = vmatprep.subr.mxu1 %v21736_v2  ;;  %v23867_v4 = vld [vmem:[%s21952_s30 + $0x48] sm:$0x3]  ;;  %vm8470_vm6 = vcmask 695296  }
 0x20f   : > { %7908 = vrot.lane.b32.xlu0 %v23228_v51, %s21777_s21  ;;  %16762 = vmatpush1.msk.msra.mxu0 %vm526_vm1, %v6057_v50  ;;  %v6240_v5 = vsel %vm6238_vm7, %v20741_v45, %v20691_v38  ;;  %v6242_v13 = vsel %vm6238_vm7, %v20742_v27, %v20692_v54 }
 0x210   : > { %v23756_v46 = vpop.permute.xlu1 %6794  ;;  %v19215_v36 = vpack.c.bf16 %v6242_v13, %v6240_v5  ;;  %16763 = vmatmul.mubr.msk.f32.vlgmr.msra.gmra.mrb[0].mxu0 %vm522_vm2, %v23561_v28 }
 0x211   : > { %v20745_v7 = vpop.permute.xlu0 %20744  ;;  %18311 = vmatpush3.msk.msra.mxu1 %vm526_vm1, %v23756_v46  ;;  %6324 = vmatprep.mubr.f32.mxu0 %v21736_v2 }
 0x212   : > { %v20747_v11 = vunpack.i.h.bf16 %v20745_v7  ;;  %v20746_v38 = vunpack.i.l.bf16 %v20745_v7  ;;  %20889 = vrot.lane.b32.xlu1 %v23225_v43, %s21778_s27  ;;  %19216 = vmatprep.subr.bf16.mxu0 %v19215_v36 }
 0x213   : > { %7906 = vrot.lane.b32.xlu0 %v23254_v37, %s21777_s21  ;;  %19247 = vmatprep.subr.bf16.mxu1 %v21735_v1  ;;  %s21782_s21 = smov 83  }
 0x214   : > { %v6241_v28 = vsel %vm6238_vm7, %v20747_v11, %v20742_v27  ;;  %v6239_v54 = vsel %vm6238_vm7, %v20746_v38, %v20741_v45  ;;  %v23775_v9 = vpop.permute.xlu1 %20749  ;;  %18313 = vmatmul.mubr.msk.f32.vlgmr.msra.gmra.mrb[0].mxu1 %vm522_vm2, %v23765_v10  ;;  %v21644_v27 = vld [vmem:[%s21952_s30 + $0x8] sm:$0xff]  ;;  %v23887_v11 = vld [vmem:[%s27905_s1 + $0x90] sm:$0x7]  ;;  %v21649_v38 = vld [vmem:[%s21952_s30 + $0x20] sm:$0xff] }
 0x215   : > { %v20752_v40 = vunpack.i.h.bf16 %v23775_v9  ;;  %v20751_v33 = vunpack.i.l.bf16 %v23775_v9  ;;  %v6235_v24 = vpop.permute.xlu0 %6234  ;;  %v19217_v8 = vpack.c.bf16 %v6241_v28, %v6239_v54  ;;  %18321 = vmatprep.mubr.msk.f32.mxu1 %vm21737_vm0, %v21736_v2 }
 0x216   : > { %8654 = vrot.lane.b32.xlu1 %v23202_v59, %s21781_s26  ;;  %v6244_v16 = vsel %vm6238_vm7, %v6235_v24, %v23603_v61 }
 0x217   : > { %v19248_v22 = vpack.c.bf16 %v20752_v40, %v20751_v33  ;;  %20894 = vrot.lane.b32.xlu0 %v23260_v31, %s21778_s27  ;;  %19218 = vmatpush1.bf16.msra.mxu0 %v19217_v8 }
 0x218   : > { %16767 = vmatprep.subr.msk.mxu0 %vm526_vm1, %v6244_v16  ;;  %v20755_v17 = vpop.permute.xlu1 %20754 }
 0x219   : > { %v20757_v29 = vunpack.i.h.bf16 %v20755_v17  ;;  %v20756_v18 = vunpack.i.l.bf16 %v20755_v17  ;;  %v6233_v23 = vpop.permute.xlu0 %6232  ;;  %19249 = vmatpush3.bf16.msra.mxu1 %v19248_v22 }
 0x21a   : > { %v6243_v59 = vsel %vm6238_vm7, %v6233_v23, %v6235_v24  ;;  %20899 = vrot.lane.b32.xlu1 %v23210_v26, %s21782_s21  ;;  %18319 = vmatprep.subr.mxu1 %v21736_v2  ;;  %vm8656_vm7 = vcmask 687104  }
 0x21b   : > { %8094 = vrot.lane.b32.xlu0 %v23228_v51, %s21778_s27  ;;  %16768 = vmatpush1.msk.msra.mxu0 %vm526_vm1, %v6243_v59  ;;  %v6426_v61 = vsel %vm6424_vm8, %v20756_v18, %v20706_v57  ;;  %v6428_v58 = vsel %vm6424_vm8, %v20757_v29, %v20707_v30  ;;  %v23816_v51 = vld [vmem:[%s27905_s1 + $0x8c] sm:$0x7] }
 0x21c   : > { %v23807_v25 = vpop.permute.xlu1 %6980  ;;  %v19222_v35 = vpack.c.bf16 %v6428_v58, %v6426_v61  ;;  %16769 = vmatmul.mubr.msk.f32.vlgmr.msra.gmra.mrb[0].mxu0 %vm522_vm2, %v23612_v19 }
 0x21d   : > { %v20760_v26 = vpop.permute.xlu0 %20759  ;;  %18320 = vmatpush3.msk.msra.mxu1 %vm526_vm1, %v23807_v25  ;;  %6510 = vmatprep.mubr.f32.mxu0 %v21736_v2 }
 0x21e   : > { %v20762_v20 = vunpack.i.h.bf16 %v20760_v26  ;;  %v20761_v30 = vunpack.i.l.bf16 %v20760_v26  ;;  %20904 = vrot.lane.b32.xlu1 %v23225_v43, %s21779_s22  ;;  %19223 = vmatprep.subr.bf16.mxu0 %v19222_v35 }
 0x21f   : > { %8092 = vrot.lane.b32.xlu0 %v23254_v37, %s21778_s27  ;;  %19254 = vmatprep.subr.bf16.mxu1 %v21735_v1  ;;  %v23835_v37 = vld [vmem:[%s21952_s30 + $0x50] sm:$0x3]  ;;  %s21783_s27 = smov 82  }
 0x220   : > { %v6427_v19 = vsel %vm6424_vm8, %v20762_v20, %v20757_v29  ;;  %v6425_v57 = vsel %vm6424_vm8, %v20761_v30, %v20756_v18  ;;  %v23826_v60 = vpop.permute.xlu1 %20764  ;;  %18322 = vmatmul.mubr.msk.f32.vlgmr.msra.gmra.mrb[0].mxu1 %vm522_vm2, %v23816_v51 }
 0x221   : > { %v20767_v39 = vunpack.i.h.bf16 %v23826_v60  ;;  %v20766_v43 = vunpack.i.l.bf16 %v23826_v60  ;;  %v6421_v62 = vpop.permute.xlu0 %6420  ;;  %v19224_v34 = vpack.c.bf16 %v6427_v19, %v6425_v57  ;;  %18330 = vmatprep.mubr.msk.f32.mxu1 %vm21737_vm0, %v21736_v2 }
 0x222   : > { %8840 = vrot.lane.b32.xlu1 %v23835_v37, %s21782_s21  ;;  %v6430_v49 = vsel %vm6424_vm8, %v6421_v62, %v23654_v15 }
 0x223   : > { %v19255_v48 = vpack.c.bf16 %v20767_v39, %v20766_v43  ;;  %20909 = vrot.lane.b32.xlu0 %v23260_v31, %s21779_s22  ;;  %19225 = vmatpush1.bf16.msra.mxu0 %v19224_v34  ;;  %v21645_v31 = vld [vmem:[%s21952_s30 + $0x28] sm:$0xff] }
 0x224   : > { %16773 = vmatprep.subr.msk.mxu0 %vm526_vm1, %v6430_v49  ;;  %v20770_v15 = vpop.permute.xlu1 %20769  ;;  %v23864_v45 = vpack.i.bf16 %v21645_v31, %v21644_v27 }
 0x225   : > { %v20772_v6 = vunpack.i.h.bf16 %v20770_v15  ;;  %v20771_v52 = vunpack.i.l.bf16 %v20770_v15  ;;  %v6419_v3 = vpop.permute.xlu0 %6418  ;;  %19256 = vmatpush3.bf16.msra.mxu1 %v19255_v48 }
 0x226   : > { %v6429_v21 = vsel %vm6424_vm8, %v6419_v3, %v6421_v62  ;;  %20914 = vrot.lane.b32.xlu1 %v23849_v47, %s21783_s27  ;;  %18328 = vmatprep.subr.mxu1 %v21736_v2  ;;  %v23945_v62 = vld [vmem:[%s27905_s1 + $0x94] sm:$0x7]  ;;  %vm8842_vm8 = vcmask 678912  }
 0x227   : > { %8280 = vrot.lane.b32.xlu0 %v23867_v4, %s21779_s22  ;;  %16774 = vmatpush1.msk.msra.mxu0 %vm526_vm1, %v6429_v21  ;;  %v6612_v50 = vsel %vm6610_vm9, %v20771_v52, %v20721_v41  ;;  %v6614_v5 = vsel %vm6610_vm9, %v20772_v6, %v20722_v0  ;;  %v23893_v0 = vld [vmem:[%s21952_s30 + $0x40] sm:$0x3] }
 0x228   : > { %v23878_v13 = vpop.permute.xlu1 %7166  ;;  %v19229_v36 = vpack.c.bf16 %v6614_v5, %v6612_v50  ;;  %16775 = vmatmul.mubr.msk.f32.vlgmr.msra.gmra.mrb[0].mxu0 %vm522_vm2, %v23663_v42  ;;  %v21648_v42 = vld [vmem:[%s21952_s30] sm:$0xff] }
 0x229   : > { %v20775_v7 = vpop.permute.xlu0 %20774  ;;  %18329 = vmatpush3.msk.msra.mxu1 %vm526_vm1, %v23878_v13  ;;  %6696 = vmatprep.mubr.f32.mxu0 %v21736_v2  ;;  %v23899_v28 = vpack.i.bf16 %v21649_v38, %v21648_v42  ;;  %v23996_v42 = vld [vmem:[%s27905_s1 + $0x98] sm:$0x7] }
 0x22a   : > { %v20777_v56 = vunpack.i.h.bf16 %v20775_v7  ;;  %v20776_v41 = vunpack.i.l.bf16 %v20775_v7  ;;  %20919 = vrot.lane.b32.xlu1 %v23864_v45, %s21780_s29  ;;  %19230 = vmatprep.subr.bf16.mxu0 %v19229_v36 }
 0x22b   : > { %8278 = vrot.lane.b32.xlu0 %v23893_v0, %s21779_s22  ;;  %19261 = vmatprep.subr.bf16.mxu1 %v21735_v1  ;;  %s21784_s22 = smov 81  }
 0x22c   : > { %v6613_v54 = vsel %vm6610_vm9, %v20777_v56, %v20772_v6  ;;  %v6611_v24 = vsel %vm6610_vm9, %v20776_v41, %v20771_v52  ;;  %v23904_v8 = vpop.permute.xlu1 %20779  ;;  %18331 = vmatmul.mubr.msk.f32.vlgmr.msra.gmra.mrb[0].mxu1 %vm522_vm2, %v23887_v11 }
 0x22d   : > { %v20782_v16 = vunpack.i.h.bf16 %v23904_v8  ;;  %v20781_v22 = vunpack.i.l.bf16 %v23904_v8  ;;  %v6607_v17 = vpop.permute.xlu0 %6606  ;;  %v19231_v29 = vpack.c.bf16 %v6613_v54, %v6611_v24  ;;  %18339 = vmatprep.mubr.msk.f32.mxu1 %vm21737_vm0, %v21736_v2 }
 0x22e   : > { %9026 = vrot.lane.b32.xlu1 %v23835_v37, %s21783_s27  ;;  %v6616_v18 = vsel %vm6610_vm9, %v6607_v17, %v23705_v32 }
 0x22f   : > { %v19262_v23 = vpack.c.bf16 %v20782_v16, %v20781_v22  ;;  %20924 = vrot.lane.b32.xlu0 %v23899_v28, %s21780_s29  ;;  %19232 = vmatpush1.bf16.msra.mxu0 %v19231_v29 }
 0x230   : > { %16779 = vmatprep.subr.msk.mxu0 %vm526_vm1, %v6616_v18  ;;  %v20785_v59 = vpop.permute.xlu1 %20784 }
 0x231   : > { %v20787_v61 = vunpack.i.h.bf16 %v20785_v59  ;;  %v20786_v58 = vunpack.i.l.bf16 %v20785_v59  ;;  %v6605_v35 = vpop.permute.xlu0 %6604  ;;  %19263 = vmatpush3.bf16.msra.mxu1 %v19262_v23 }
 0x232   : > { %v6615_v26 = vsel %vm6610_vm9, %v6605_v35, %v6607_v17  ;;  %20929 = vrot.lane.b32.xlu1 %v23849_v47, %s21784_s22  ;;  %18337 = vmatprep.subr.mxu1 %v21736_v2  ;;  %vm9028_vm9 = vcmask 670720  }
 0x233   : > { %8466 = vrot.lane.b32.xlu0 %v23867_v4, %s21780_s29  ;;  %16780 = vmatpush1.msk.msra.mxu0 %vm526_vm1, %v6615_v26  ;;  %v6798_v32 = vsel %vm6796_vm10, %v20786_v58, %v20736_v63  ;;  %v6800_v20 = vsel %vm6796_vm10, %v20787_v61, %v20737_v14 }
 0x234   : > { %v23936_v30 = vpop.permute.xlu1 %7352  ;;  %v19236_v19 = vpack.c.bf16 %v6800_v20, %v6798_v32  ;;  %16781 = vmatmul.mubr.msk.f32.vlgmr.msra.gmra.mrb[0].mxu0 %vm522_vm2, %v23714_v53 }
 0x235   : > { %v20790_v57 = vpop.permute.xlu0 %20789  ;;  %18338 = vmatpush3.msk.msra.mxu1 %vm526_vm1, %v23936_v30  ;;  %6882 = vmatprep.mubr.f32.mxu0 %v21736_v2 }
 0x236   : > { %v20792_v55 = vunpack.i.h.bf16 %v20790_v57  ;;  %v20791_v63 = vunpack.i.l.bf16 %v20790_v57  ;;  %20934 = vrot.lane.b32.xlu1 %v23864_v45, %s21781_s26  ;;  %19237 = vmatprep.subr.bf16.mxu0 %v19236_v19 }
 0x237   : > { %8464 = vrot.lane.b32.xlu0 %v23893_v0, %s21780_s29  ;;  %19268 = vmatprep.subr.bf16.mxu1 %v21735_v1  ;;  %s21785_s29 = smov 80  }
 0x238   : > { %v6799_v53 = vsel %vm6796_vm10, %v20792_v55, %v20787_v61  ;;  %v6797_v14 = vsel %vm6796_vm10, %v20791_v63, %v20786_v58  ;;  %v23955_v34 = vpop.permute.xlu1 %20794  ;;  %18340 = vmatmul.mubr.msk.f32.vlgmr.msra.gmra.mrb[0].mxu1 %vm522_vm2, %v23945_v62  ;;  %v24047_v55 = vld [vmem:[%s27905_s1 + $0x9c] sm:$0x7] }
 0x239   : > { %v20797_v49 = vunpack.i.h.bf16 %v23955_v34  ;;  %v20796_v48 = vunpack.i.l.bf16 %v23955_v34  ;;  %v6793_v15 = vpop.permute.xlu0 %6792  ;;  %v19238_v6 = vpack.c.bf16 %v6799_v53, %v6797_v14  ;;  %18348 = vmatprep.mubr.msk.f32.mxu1 %vm21737_vm0, %v21736_v2 }
 0x23a   : > { %9212 = vrot.lane.b32.xlu1 %v23835_v37, %s21784_s22  ;;  %v6802_v52 = vsel %vm6796_vm10, %v6793_v15, %v23756_v46 }
 0x23b   : > { %v19269_v3 = vpack.c.bf16 %v20797_v49, %v20796_v48  ;;  %20939 = vrot.lane.b32.xlu0 %v23899_v28, %s21781_s26  ;;  %19239 = vmatpush1.bf16.msra.mxu0 %v19238_v6 }
 0x23c   : > { %16785 = vmatprep.subr.msk.mxu0 %vm526_vm1, %v6802_v52  ;;  %v20800_v21 = vpop.permute.xlu1 %20799 }
 0x23d   : > { %v20802_v27 = vunpack.i.h.bf16 %v20800_v21  ;;  %v20801_v31 = vunpack.i.l.bf16 %v20800_v21  ;;  %v6791_v50 = vpop.permute.xlu0 %6790  ;;  %19270 = vmatpush3.bf16.msra.mxu1 %v19269_v3 }
 0x23e   : > { %v6801_v5 = vsel %vm6796_vm10, %v6791_v50, %v6793_v15  ;;  %20944 = vrot.lane.b32.xlu1 %v23849_v47, %s21785_s29  ;;  %18346 = vmatprep.subr.mxu1 %v21736_v2  ;;  %vm9214_vm10 = vcmask 662528  }
 0x23f   : > { %8652 = vrot.lane.b32.xlu0 %v23867_v4, %s21781_s26  ;;  %16786 = vmatpush1.msk.msra.mxu0 %vm526_vm1, %v6801_v5  ;;  %v6984_v46 = vsel %vm6982_vm11, %v20801_v31, %v20751_v33  ;;  %v6986_v36 = vsel %vm6982_vm11, %v20802_v27, %v20752_v40 }
 0x240   : > { %v23987_v7 = vpop.permute.xlu1 %7538  ;;  %v19243_v56 = vpack.c.bf16 %v6986_v36, %v6984_v46  ;;  %16787 = vmatmul.mubr.msk.f32.vlgmr.msra.gmra.mrb[0].mxu0 %vm522_vm2, %v23765_v10 }
 0x241   : > { %v20805_v41 = vpop.permute.xlu0 %20804  ;;  %18347 = vmatpush3.msk.msra.mxu1 %vm526_vm1, %v23987_v7  ;;  %7068 = vmatprep.mubr.f32.mxu0 %v21736_v2 }
 0x242   : > { %v20807_v9 = vunpack.i.h.bf16 %v20805_v41  ;;  %v20806_v33 = vunpack.i.l.bf16 %v20805_v41  ;;  %20949 = vrot.lane.b32.xlu1 %v23864_v45, %s21782_s21  ;;  %19244 = vmatprep.subr.bf16.mxu0 %v19243_v56 }
 0x243   : > { %8650 = vrot.lane.b32.xlu0 %v23893_v0, %s21781_s26  ;;  %19275 = vmatprep.subr.bf16.mxu1 %v21735_v1  ;;  %s21786_s26 = smov 79  }
 0x244   : > { %v6985_v10 = vsel %vm6982_vm11, %v20807_v9, %v20802_v27  ;;  %v6983_v40 = vsel %vm6982_vm11, %v20806_v33, %v20801_v31  ;;  %v24006_v38 = vpop.permute.xlu1 %20809  ;;  %18349 = vmatmul.mubr.msk.f32.vlgmr.msra.gmra.mrb[0].mxu1 %vm522_vm2, %v23996_v42  ;;  %v24098_v9 = vld [vmem:[%s27905_s1 + $0xa0] sm:$0x7] }
 0x245   : > { %v20812_v54 = vunpack.i.h.bf16 %v24006_v38  ;;  %v20811_v24 = vunpack.i.l.bf16 %v24006_v38  ;;  %v6979_v17 = vpop.permute.xlu0 %6978  ;;  %v19245_v29 = vpack.c.bf16 %v6985_v10, %v6983_v40  ;;  %18357 = vmatprep.mubr.msk.f32.mxu1 %vm21737_vm0, %v21736_v2 }
 0x246   : > { %9398 = vrot.lane.b32.xlu1 %v23835_v37, %s21785_s29  ;;  %v6988_v18 = vsel %vm6982_vm11, %v6979_v17, %v23807_v25 }
 0x247   : > { %v19276_v23 = vpack.c.bf16 %v20812_v54, %v20811_v24  ;;  %20954 = vrot.lane.b32.xlu0 %v23899_v28, %s21782_s21  ;;  %19246 = vmatpush1.bf16.msra.mxu0 %v19245_v29 }
 0x248   : > { %16791 = vmatprep.subr.msk.mxu0 %vm526_vm1, %v6988_v18  ;;  %v20815_v59 = vpop.permute.xlu1 %20814 }
 0x249   : > { %v20817_v61 = vunpack.i.h.bf16 %v20815_v59  ;;  %v20816_v58 = vunpack.i.l.bf16 %v20815_v59  ;;  %v6977_v35 = vpop.permute.xlu0 %6976  ;;  %19277 = vmatpush3.bf16.msra.mxu1 %v19276_v23 }
 0x24a   : > { %v6987_v26 = vsel %vm6982_vm11, %v6977_v35, %v6979_v17  ;;  %20959 = vrot.lane.b32.xlu1 %v23849_v47, %s21786_s26  ;;  %18355 = vmatprep.subr.mxu1 %v21736_v2  ;;  %vm9400_vm11 = vcmask 654336  }
 0x24b   : > { %8838 = vrot.lane.b32.xlu0 %v23867_v4, %s21782_s21  ;;  %16792 = vmatpush1.msk.msra.mxu0 %vm526_vm1, %v6987_v26  ;;  %v7170_v25 = vsel %vm7168_vm12, %v20816_v58, %v20766_v43  ;;  %v7172_v32 = vsel %vm7168_vm12, %v20817_v61, %v20767_v39 }
 0x24c   : > { %v24038_v20 = vpop.permute.xlu1 %7724  ;;  %v19250_v19 = vpack.c.bf16 %v7172_v32, %v7170_v25  ;;  %16793 = vmatmul.mubr.msk.f32.vlgmr.msra.gmra.mrb[0].mxu0 %vm522_vm2, %v23816_v51 }
 0x24d   : > { %v20820_v57 = vpop.permute.xlu0 %20819  ;;  %18356 = vmatpush3.msk.msra.mxu1 %vm526_vm1, %v24038_v20  ;;  %7254 = vmatprep.mubr.f32.mxu0 %v21736_v2 }
 0x24e   : > { %v20822_v60 = vunpack.i.h.bf16 %v20820_v57  ;;  %v20821_v43 = vunpack.i.l.bf16 %v20820_v57  ;;  %20964 = vrot.lane.b32.xlu1 %v23864_v45, %s21783_s27  ;;  %19251 = vmatprep.subr.bf16.mxu0 %v19250_v19 }
 0x24f   : > { %8836 = vrot.lane.b32.xlu0 %v23893_v0, %s21782_s21  ;;  %19282 = vmatprep.subr.bf16.mxu1 %v21735_v1  ;;  %s21787_s21 = smov 78  }
 0x250   : > { %v7171_v51 = vsel %vm7168_vm12, %v20822_v60, %v20817_v61  ;;  %v7169_v39 = vsel %vm7168_vm12, %v20821_v43, %v20816_v58  ;;  %v24057_v63 = vpop.permute.xlu1 %20824  ;;  %18358 = vmatmul.mubr.msk.f32.vlgmr.msra.gmra.mrb[0].mxu1 %vm522_vm2, %v24047_v55  ;;  %v24149_v60 = vld [vmem:[%s27905_s1 + $0xa4] sm:$0x7] }
 0x251   : > { %v20827_v53 = vunpack.i.h.bf16 %v24057_v63  ;;  %v20826_v14 = vunpack.i.l.bf16 %v24057_v63  ;;  %v7165_v15 = vpop.permute.xlu0 %7164  ;;  %v19252_v6 = vpack.c.bf16 %v7171_v51, %v7169_v39  ;;  %18366 = vmatprep.mubr.msk.f32.mxu1 %vm21737_vm0, %v21736_v2 }
 0x252   : > { %9584 = vrot.lane.b32.xlu1 %v23835_v37, %s21786_s26  ;;  %v7174_v52 = vsel %vm7168_vm12, %v7165_v15, %v23878_v13 }
 0x253   : > { %v19283_v3 = vpack.c.bf16 %v20827_v53, %v20826_v14  ;;  %20969 = vrot.lane.b32.xlu0 %v23899_v28, %s21783_s27  ;;  %19253 = vmatpush1.bf16.msra.mxu0 %v19252_v6 }
 0x254   : > { %16797 = vmatprep.subr.msk.mxu0 %vm526_vm1, %v7174_v52  ;;  %v20830_v21 = vpop.permute.xlu1 %20829 }
 0x255   : > { %v20832_v27 = vunpack.i.h.bf16 %v20830_v21  ;;  %v20831_v31 = vunpack.i.l.bf16 %v20830_v21  ;;  %v7163_v50 = vpop.permute.xlu0 %7162  ;;  %19284 = vmatpush3.bf16.msra.mxu1 %v19283_v3 }
 0x256   : > { %v7173_v5 = vsel %vm7168_vm12, %v7163_v50, %v7165_v15  ;;  %20974 = vrot.lane.b32.xlu1 %v23849_v47, %s21787_s21  ;;  %18364 = vmatprep.subr.mxu1 %v21736_v2  ;;  %vm9586_vm12 = vcmask 646144  }
 0x257   : > { %9024 = vrot.lane.b32.xlu0 %v23867_v4, %s21783_s27  ;;  %16798 = vmatpush1.msk.msra.mxu0 %vm526_vm1, %v7173_v5  ;;  %v7356_v13 = vsel %vm7354_vm13, %v20831_v31, %v20781_v22  ;;  %v7358_v46 = vsel %vm7354_vm13, %v20832_v27, %v20782_v16 }
 0x258   : > { %v24089_v36 = vpop.permute.xlu1 %7910  ;;  %v19257_v56 = vpack.c.bf16 %v7358_v46, %v7356_v13  ;;  %16799 = vmatmul.mubr.msk.f32.vlgmr.msra.gmra.mrb[0].mxu0 %vm522_vm2, %v23887_v11 }
 0x259   : > { %v20835_v41 = vpop.permute.xlu0 %20834  ;;  %18365 = vmatpush3.msk.msra.mxu1 %vm526_vm1, %v24089_v36  ;;  %7440 = vmatprep.mubr.f32.mxu0 %v21736_v2 }
 0x25a   : > { %v20837_v8 = vunpack.i.h.bf16 %v20835_v41  ;;  %v20836_v22 = vunpack.i.l.bf16 %v20835_v41  ;;  %20979 = vrot.lane.b32.xlu1 %v23864_v45, %s21784_s22  ;;  %19258 = vmatprep.subr.bf16.mxu0 %v19257_v56  ;;  %v24200_v41 = vld [vmem:[%s27905_s1 + $0xa8] sm:$0x7] }
 0x25b   : > { %9022 = vrot.lane.b32.xlu0 %v23893_v0, %s21783_s27  ;;  %19289 = vmatprep.subr.bf16.mxu1 %v21735_v1  ;;  %s21788_s27 = smov 77  }
 0x25c   : > { %v7357_v11 = vsel %vm7354_vm13, %v20837_v8, %v20832_v27  ;;  %v7355_v16 = vsel %vm7354_vm13, %v20836_v22, %v20831_v31  ;;  %v24108_v33 = vpop.permute.xlu1 %20839  ;;  %18367 = vmatmul.mubr.msk.f32.vlgmr.msra.gmra.mrb[0].mxu1 %vm522_vm2, %v24098_v9 }
 0x25d   : > { %v20842_v10 = vunpack.i.h.bf16 %v24108_v33  ;;  %v20841_v40 = vunpack.i.l.bf16 %v24108_v33  ;;  %v7351_v17 = vpop.permute.xlu0 %7350  ;;  %v19259_v29 = vpack.c.bf16 %v7357_v11, %v7355_v16  ;;  %18375 = vmatprep.mubr.msk.f32.mxu1 %vm21737_vm0, %v21736_v2  ;;  %v24216_v11 = vld [vmem:[%s21952_s30 + $0x18] sm:$0xff] }
 0x25e   : > { %9770 = vrot.lane.b32.xlu1 %v23835_v37, %s21787_s21  ;;  %v7360_v18 = vsel %vm7354_vm13, %v7351_v17, %v23936_v30 }
 0x25f   : > { %v19290_v23 = vpack.c.bf16 %v20842_v10, %v20841_v40  ;;  %20984 = vrot.lane.b32.xlu0 %v23899_v28, %s21784_s22  ;;  %19260 = vmatpush1.bf16.msra.mxu0 %v19259_v29 }
 0x260   : > { %16803 = vmatprep.subr.msk.mxu0 %vm526_vm1, %v7360_v18  ;;  %v20845_v59 = vpop.permute.xlu1 %20844 }
 0x261   : > { %v20847_v61 = vunpack.i.h.bf16 %v20845_v59  ;;  %v20846_v58 = vunpack.i.l.bf16 %v20845_v59  ;;  %v7349_v35 = vpop.permute.xlu0 %7348  ;;  %19291 = vmatpush3.bf16.msra.mxu1 %v19290_v23 }
 0x262   : > { %v7359_v26 = vsel %vm7354_vm13, %v7349_v35, %v7351_v17  ;;  %20989 = vrot.lane.b32.xlu1 %v23849_v47, %s21788_s27  ;;  %18373 = vmatprep.subr.mxu1 %v21736_v2  ;;  %vm10339_vm13 = vcmask 613376  }
 0x263   : > { %9210 = vrot.lane.b32.xlu0 %v23867_v4, %s21784_s22  ;;  %16804 = vmatpush1.msk.msra.mxu0 %vm526_vm1, %v7359_v26  ;;  %v7542_v30 = vsel %vm7540_vm14, %v20846_v58, %v20796_v48  ;;  %v7544_v25 = vsel %vm7540_vm14, %v20847_v61, %v20797_v49 }
 0x264   : > { %v24140_v32 = vpop.permute.xlu1 %8096  ;;  %v19264_v19 = vpack.c.bf16 %v7544_v25, %v7542_v30  ;;  %16805 = vmatmul.mubr.msk.f32.vlgmr.msra.gmra.mrb[0].mxu0 %vm522_vm2, %v23945_v62 }
 0x265   : > { %v20850_v57 = vpop.permute.xlu0 %20849  ;;  %18374 = vmatpush3.msk.msra.mxu1 %vm526_vm1, %v24140_v32  ;;  %7626 = vmatprep.mubr.f32.mxu0 %v21736_v2 }
 0x266   : > { %v20852_v34 = vunpack.i.h.bf16 %v20850_v57  ;;  %v20851_v48 = vunpack.i.l.bf16 %v20850_v57  ;;  %20994 = vrot.lane.b32.xlu1 %v23864_v45, %s21785_s29  ;;  %19265 = vmatprep.subr.bf16.mxu0 %v19264_v19 }
 0x267   : > { %9208 = vrot.lane.b32.xlu0 %v23893_v0, %s21784_s22  ;;  %19296 = vmatprep.subr.bf16.mxu1 %v21735_v1  ;;  %s21789_s22 = smov 76  }
 0x268   : > { %v7543_v62 = vsel %vm7540_vm14, %v20852_v34, %v20847_v61  ;;  %v7541_v49 = vsel %vm7540_vm14, %v20851_v48, %v20846_v58  ;;  %v24159_v43 = vpop.permute.xlu1 %20854  ;;  %18376 = vmatmul.mubr.msk.f32.vlgmr.msra.gmra.mrb[0].mxu1 %vm522_vm2, %v24149_v60  ;;  %v24240_v58 = vpack.i.bf16 %v24216_v11, %v23842_v12  ;;  %v24265_v48 = vld [vmem:[%s27905_s1 + $0xac] sm:$0x7] }
 0x269   : > { %v20857_v51 = vunpack.i.h.bf16 %v24159_v43  ;;  %v20856_v39 = vunpack.i.l.bf16 %v24159_v43  ;;  %v7537_v15 = vpop.permute.xlu0 %7536  ;;  %v19266_v6 = vpack.c.bf16 %v7543_v62, %v7541_v49  ;;  %18384 = vmatprep.mubr.msk.f32.mxu1 %vm21737_vm0, %v21736_v2 }
 0x26a   : > { %9956 = vrot.lane.b32.xlu1 %v23835_v37, %s21788_s27  ;;  %v7546_v52 = vsel %vm7540_vm14, %v7537_v15, %v23987_v7 }
 0x26b   : > { %v19297_v3 = vpack.c.bf16 %v20857_v51, %v20856_v39  ;;  %20999 = vrot.lane.b32.xlu0 %v23899_v28, %s21785_s29  ;;  %19267 = vmatpush1.bf16.msra.mxu0 %v19266_v6 }
 0x26c   : > { %16809 = vmatprep.subr.msk.mxu0 %vm526_vm1, %v7546_v52  ;;  %v20860_v21 = vpop.permute.xlu1 %20859 }
 0x26d   : > { %v20862_v27 = vunpack.i.h.bf16 %v20860_v21  ;;  %v20861_v31 = vunpack.i.l.bf16 %v20860_v21  ;;  %v7535_v50 = vpop.permute.xlu0 %7534  ;;  %19298 = vmatpush3.bf16.msra.mxu1 %v19297_v3 }
 0x26e   : > { %v7545_v5 = vsel %vm7540_vm14, %v7535_v50, %v7537_v15  ;;  %21004 = vrot.lane.b32.xlu1 %v23849_v47, %s21789_s22  ;;  %18382 = vmatprep.subr.mxu1 %v21736_v2  ;;  %vm9772_vm14 = vcmask 637952  }
 0x26f   : > { %9396 = vrot.lane.b32.xlu0 %v23867_v4, %s21785_s29  ;;  %16810 = vmatpush1.msk.msra.mxu0 %vm526_vm1, %v7545_v5  ;;  %v7728_v7 = vsel %vm7726_vm15, %v20861_v31, %v20811_v24  ;;  %v7730_v13 = vsel %vm7726_vm15, %v20862_v27, %v20812_v54 }
 0x270   : > { %v24191_v46 = vpop.permute.xlu1 %8282  ;;  %v19271_v56 = vpack.c.bf16 %v7730_v13, %v7728_v7  ;;  %16811 = vmatmul.mubr.msk.f32.vlgmr.msra.gmra.mrb[0].mxu0 %vm522_vm2, %v23996_v42  ;;  %v24209_v42 = vld [vmem:[%s21952_s30 + $0x38] sm:$0xff] }
 0x271   : > { %v20865_v47 = vpop.permute.xlu0 %20864  ;;  %18383 = vmatpush3.msk.msra.mxu1 %vm526_vm1, %v24191_v46  ;;  %7812 = vmatprep.mubr.f32.mxu0 %v21736_v2  ;;  %v24230_v59 = vpack.i.bf16 %v24209_v42, %v23845_v44 }
 0x272   : > { %v20867_v38 = vunpack.i.h.bf16 %v20865_v47  ;;  %v20866_v54 = vunpack.i.l.bf16 %v20865_v47  ;;  %21009 = vrot.lane.b32.xlu1 %v23864_v45, %s21786_s26  ;;  %19272 = vmatprep.subr.bf16.mxu0 %v19271_v56 }
 0x273   : > { %9394 = vrot.lane.b32.xlu0 %v23893_v0, %s21785_s29  ;;  %19303 = vmatprep.subr.bf16.mxu1 %v21735_v1  ;;  %s21790_s29 = smov 75  }
 0x274   : > { %v7729_v24 = vsel %vm7726_vm15, %v20867_v38, %v20862_v27  ;;  %v7727_v8 = vsel %vm7726_vm15, %v20866_v54, %v20861_v31  ;;  %v24213_v22 = vpop.permute.xlu1 %20869  ;;  %18385 = vmatmul.mubr.msk.f32.vlgmr.msra.gmra.mrb[0].mxu1 %vm522_vm2, %v24200_v41  ;;  %v24294_v27 = vld [vmem:[%s21952_s30 + $0x58] sm:$0x3] }
 0x275   : > { %v20872_v16 = vunpack.i.h.bf16 %v24213_v22  ;;  %v20871_v17 = vunpack.i.l.bf16 %v24213_v22  ;;  %v7723_v29 = vpop.permute.xlu0 %7722  ;;  %v19273_v18 = vpack.c.bf16 %v7729_v24, %v7727_v8  ;;  %18393 = vmatprep.mubr.msk.f32.mxu1 %vm21737_vm0, %v21736_v2  ;;  %v24319_v24 = vld [vmem:[%s27905_s1 + $0xb0] sm:$0x7] }
 0x276   : > { %10142 = vrot.lane.b32.xlu1 %v23835_v37, %s21789_s22  ;;  %v7732_v23 = vsel %vm7726_vm15, %v7723_v29, %v24038_v20 }
 0x277   : > { %v19304_v61 = vpack.c.bf16 %v20872_v16, %v20871_v17  ;;  %21014 = vrot.lane.b32.xlu0 %v23899_v28, %s21786_s26  ;;  %19274 = vmatpush1.bf16.msra.mxu0 %v19273_v18 }
 0x278   : > { %16815 = vmatprep.subr.msk.mxu0 %vm526_vm1, %v7732_v23  ;;  %v20875_v20 = vpop.permute.xlu1 %20874 }
 0x279   : > { %v20877_v35 = vunpack.i.h.bf16 %v20875_v20  ;;  %v20876_v44 = vunpack.i.l.bf16 %v20875_v20  ;;  %v7721_v26 = vpop.permute.xlu0 %7720  ;;  %19305 = vmatpush3.bf16.msra.mxu1 %v19304_v61 }
 0x27a   : > { %v7731_v30 = vsel %vm7726_vm15, %v7721_v26, %v7723_v29  ;;  %21024 = vrot.lane.b32.xlu1 %v24230_v59, %s21790_s29  ;;  %18391 = vmatprep.subr.mxu1 %v21736_v2  ;;  %vm10534_vm15 = vcmask 605184  }
 0x27b   : > { %21019 = vrot.lane.b32.xlu0 %v24240_v58, %s21790_s29  ;;  %16816 = vmatpush1.msk.msra.mxu0 %vm526_vm1, %v7731_v30  ;;  %v7914_v12 = vsel %vm7912_vm3, %v20876_v44, %v20826_v14  ;;  %v7916_v25 = vsel %vm7912_vm3, %v20877_v35, %v20827_v53 }
 0x27c   : > { %v24256_v19 = vpop.permute.xlu1 %8468  ;;  %v19278_v57 = vpack.c.bf16 %v7916_v25, %v7914_v12  ;;  %16817 = vmatmul.mubr.msk.f32.vlgmr.msra.gmra.mrb[0].mxu0 %vm522_vm2, %v24047_v55 }
 0x27d   : > { %v20880_v34 = vpop.permute.xlu0 %20879  ;;  %18392 = vmatpush3.msk.msra.mxu1 %vm526_vm1, %v24256_v19  ;;  %7998 = vmatprep.mubr.f32.mxu0 %v21736_v2 }
 0x27e   : > { %v20882_v63 = vunpack.i.h.bf16 %v20880_v34  ;;  %v20881_v14 = vunpack.i.l.bf16 %v20880_v34  ;;  %9580 = vrot.lane.b32.xlu1 %v23893_v0, %s21786_s26  ;;  %19279 = vmatprep.subr.bf16.mxu0 %v19278_v57 }
 0x27f   : > { %9582 = vrot.lane.b32.xlu0 %v23867_v4, %s21786_s26  ;;  %19310 = vmatprep.subr.bf16.mxu1 %v21735_v1  ;;  %s21793_s26 = smov 72  }
 0x280   : > { %v7915_v55 = vsel %vm7912_vm3, %v20882_v63, %v20877_v35  ;;  %v7913_v53 = vsel %vm7912_vm3, %v20881_v14, %v20876_v44  ;;  %v24275_v62 = vpop.permute.xlu1 %20884  ;;  %18394 = vmatmul.mubr.msk.f32.vlgmr.msra.gmra.mrb[0].mxu1 %vm522_vm2, %v24265_v48 }
 0x281   : > { %v20887_v49 = vunpack.i.h.bf16 %v24275_v62  ;;  %v20886_v15 = vunpack.i.l.bf16 %v24275_v62  ;;  %v7909_v6 = vpop.permute.xlu0 %7908  ;;  %v19280_v52 = vpack.c.bf16 %v7915_v55, %v7913_v53  ;;  %18402 = vmatprep.mubr.msk.f32.mxu1 %vm21737_vm0, %v21736_v2  ;;  %v24370_v55 = vld [vmem:[%s27905_s1 + $0xb4] sm:$0x7] }
 0x282   : > { %21034 = vrot.lane.b32.xlu1 %v23899_v28, %s21787_s21  ;;  %v7918_v3 = vsel %vm7912_vm3, %v7909_v6, %v24089_v36 }
 0x283   : > { %v19311_v21 = vpack.c.bf16 %v20887_v49, %v20886_v15  ;;  %21029 = vrot.lane.b32.xlu0 %v23864_v45, %s21787_s21  ;;  %19281 = vmatpush1.bf16.msra.mxu0 %v19280_v52 }
 0x284   : > { %16821 = vmatprep.subr.msk.mxu0 %vm526_vm1, %v7918_v3  ;;  %v20890_v31 = vpop.permute.xlu1 %20889 }
 0x285   : > { %v20892_v50 = vunpack.i.h.bf16 %v20890_v31  ;;  %v20891_v5 = vunpack.i.l.bf16 %v20890_v31  ;;  %v7907_v7 = vpop.permute.xlu0 %7906  ;;  %19312 = vmatpush3.bf16.msra.mxu1 %v19311_v21 }
 0x286   : > { %v7917_v36 = vsel %vm7912_vm3, %v7907_v7, %v7909_v6  ;;  %10337 = vrot.lane.b32.xlu1 %v24294_v27, %s21790_s29  ;;  %18400 = vmatprep.subr.mxu1 %v21736_v2  ;;  %vm9958_vm3 = vcmask 629760  }
 0x287   : > { %10335 = vrot.lane.b32.xlu0 %v23835_v37, %s21790_s29  ;;  %16822 = vmatpush1.msk.msra.mxu0 %vm526_vm1, %v7917_v36  ;;  %v8100_v13 = vsel %vm8098_vm4, %v20891_v5, %v20841_v40  ;;  %v8102_v56 = vsel %vm8098_vm4, %v20892_v50, %v20842_v10 }
 0x288   : > { %v24310_v47 = vpop.permute.xlu1 %8654  ;;  %v19285_v38 = vpack.c.bf16 %v8102_v56, %v8100_v13  ;;  %16823 = vmatmul.mubr.msk.f32.vlgmr.msra.gmra.mrb[0].mxu0 %vm522_vm2, %v24098_v9 }
 0x289   : > { %v20895_v54 = vpop.permute.xlu0 %20894  ;;  %18401 = vmatpush3.msk.msra.mxu1 %vm526_vm1, %v24310_v47  ;;  %8184 = vmatprep.mubr.f32.mxu0 %v21736_v2 }
 0x28a   : > { %v20897_v33 = vunpack.i.h.bf16 %v20895_v54  ;;  %v20896_v40 = vunpack.i.l.bf16 %v20895_v54  ;;  %21044 = vrot.lane.b32.xlu1 %v24230_v59, %s21791_s28  ;;  %19286 = vmatprep.subr.bf16.mxu0 %v19285_v38 }
 0x28b   : > { %21039 = vrot.lane.b32.xlu0 %v24240_v58, %s21791_s28  ;;  %19317 = vmatprep.subr.bf16.mxu1 %v21735_v1 }
 0x28c   : > { %v8101_v9 = vsel %vm8098_vm4, %v20897_v33, %v20892_v50  ;;  %v8099_v10 = vsel %vm8098_vm4, %v20896_v40, %v20891_v5  ;;  %v24329_v8 = vpop.permute.xlu1 %20899  ;;  %18403 = vmatmul.mubr.msk.f32.vlgmr.msra.gmra.mrb[0].mxu1 %vm522_vm2, %v24319_v24 }
 0x28d   : > { %v20902_v29 = vunpack.i.h.bf16 %v24329_v8  ;;  %v20901_v18 = vunpack.i.l.bf16 %v24329_v8  ;;  %v8095_v23 = vpop.permute.xlu0 %8094  ;;  %v19287_v61 = vpack.c.bf16 %v8101_v9, %v8099_v10  ;;  %18411 = vmatprep.mubr.msk.f32.mxu1 %vm21737_vm0, %v21736_v2 }
 0x28e   : > { %9766 = vrot.lane.b32.xlu1 %v23893_v0, %s21787_s21  ;;  %v8104_v20 = vsel %vm8098_vm4, %v8095_v23, %v24140_v32 }
 0x28f   : > { %v19318_v35 = vpack.c.bf16 %v20902_v29, %v20901_v18  ;;  %9768 = vrot.lane.b32.xlu0 %v23867_v4, %s21787_s21  ;;  %19288 = vmatpush1.bf16.msra.mxu0 %v19287_v61  ;;  %s21794_s21 = smov 71  }
 0x290   : > { %16827 = vmatprep.subr.msk.mxu0 %vm526_vm1, %v8104_v20  ;;  %v20905_v44 = vpop.permute.xlu1 %20904 }
 0x291   : > { %v20907_v26 = vunpack.i.h.bf16 %v20905_v44  ;;  %v20906_v30 = vunpack.i.l.bf16 %v20905_v44  ;;  %v8093_v12 = vpop.permute.xlu0 %8092  ;;  %19319 = vmatpush3.bf16.msra.mxu1 %v19318_v35 }
 0x292   : > { %v8103_v25 = vsel %vm8098_vm4, %v8093_v12, %v8095_v23  ;;  %21054 = vrot.lane.b32.xlu1 %v23899_v28, %s21788_s27  ;;  %18409 = vmatprep.subr.mxu1 %v21736_v2  ;;  %vm10729_vm4 = vcmask 596992  }
 0x293   : > { %21049 = vrot.lane.b32.xlu0 %v23864_v45, %s21788_s27  ;;  %16828 = vmatpush1.msk.msra.mxu0 %vm526_vm1, %v8103_v25  ;;  %v8286_v32 = vsel %vm8284_vm5, %v20906_v30, %v20856_v39  ;;  %v8288_v57 = vsel %vm8284_vm5, %v20907_v26, %v20857_v51 }
 0x294   : > { %v24361_v34 = vpop.permute.xlu1 %8840  ;;  %v19292_v63 = vpack.c.bf16 %v8288_v57, %v8286_v32  ;;  %16829 = vmatmul.mubr.msk.f32.vlgmr.msra.gmra.mrb[0].mxu0 %vm522_vm2, %v24149_v60 }
 0x295   : > { %v20910_v14 = vpop.permute.xlu0 %20909  ;;  %18410 = vmatpush3.msk.msra.mxu1 %vm526_vm1, %v24361_v34  ;;  %8370 = vmatprep.mubr.f32.mxu0 %v21736_v2 }
 0x296   : > { %v20912_v43 = vunpack.i.h.bf16 %v20910_v14  ;;  %v20911_v39 = vunpack.i.l.bf16 %v20910_v14  ;;  %10532 = vrot.lane.b32.xlu1 %v24294_v27, %s21791_s28  ;;  %19293 = vmatprep.subr.bf16.mxu0 %v19292_v63  ;;  %v21652_v63 = vld [vmem:[%s21952_s30 + $0x28] sm:$0xff] }
 0x297   : > { %10530 = vrot.lane.b32.xlu0 %v23835_v37, %s21791_s28  ;;  %19324 = vmatprep.subr.bf16.mxu1 %v21735_v1 }
 0x298   : > { %v8287_v60 = vsel %vm8284_vm5, %v20912_v43, %v20907_v26  ;;  %v8285_v51 = vsel %vm8284_vm5, %v20911_v39, %v20906_v30  ;;  %v24380_v53 = vpop.permute.xlu1 %20914  ;;  %18412 = vmatmul.mubr.msk.f32.vlgmr.msra.gmra.mrb[0].mxu1 %vm522_vm2, %v24370_v55 }
 0x299   : > { %v20917_v6 = vunpack.i.h.bf16 %v24380_v53  ;;  %v20916_v52 = vunpack.i.l.bf16 %v24380_v53  ;;  %v8281_v3 = vpop.permute.xlu0 %8280  ;;  %v19294_v21 = vpack.c.bf16 %v8287_v60, %v8285_v51  ;;  %18420 = vmatprep.mubr.msk.f32.mxu1 %vm21737_vm0, %v21736_v2 }
 0x29a   : > { %21064 = vrot.lane.b32.xlu1 %v24230_v59, %s21792_s19  ;;  %v8290_v31 = vsel %vm8284_vm5, %v8281_v3, %v24191_v46 }
 0x29b   : > { %v19325_v50 = vpack.c.bf16 %v20917_v6, %v20916_v52  ;;  %21059 = vrot.lane.b32.xlu0 %v24240_v58, %s21792_s19  ;;  %19295 = vmatpush1.bf16.msra.mxu0 %v19294_v21 }
 0x29c   : > { %16833 = vmatprep.subr.msk.mxu0 %vm526_vm1, %v8290_v31  ;;  %v20920_v5 = vpop.permute.xlu1 %20919 }
 0x29d   : > { %v20922_v7 = vunpack.i.h.bf16 %v20920_v5  ;;  %v20921_v36 = vunpack.i.l.bf16 %v20920_v5  ;;  %v8279_v13 = vpop.permute.xlu0 %8278  ;;  %19326 = vmatpush3.bf16.msra.mxu1 %v19325_v50 }
 0x29e   : > { %v8289_v56 = vsel %vm8284_vm5, %v8279_v13, %v8281_v3  ;;  %9952 = vrot.lane.b32.xlu1 %v23893_v0, %s21788_s27  ;;  %18418 = vmatprep.subr.mxu1 %v21736_v2  ;;  %v24513_v13 = vld [vmem:[%s21952_s30 + $0x30] sm:$0xff]  ;;  %vm10144_vm5 = vcmask 621568  }
 0x29f   : > { %9954 = vrot.lane.b32.xlu0 %v23867_v4, %s21788_s27  ;;  %16834 = vmatpush1.msk.msra.mxu0 %vm526_vm1, %v8289_v56  ;;  %v8472_v46 = vsel %vm8470_vm6, %v20921_v36, %v20871_v17  ;;  %v8474_v38 = vsel %vm8470_vm6, %v20922_v7, %v20872_v16  ;;  %v24421_v4 = vld [vmem:[%s27905_s1 + $0xb8] sm:$0x7]  ;;  %v24517_v56 = vpack.i.bf16 %v24209_v42, %v24513_v13  ;;  %s21795_s27 = smov 70  }
 0x2a0   : > { %v24412_v54 = vpop.permute.xlu1 %9026  ;;  %v19299_v33 = vpack.c.bf16 %v8474_v38, %v8472_v46  ;;  %16835 = vmatmul.mubr.msk.f32.vlgmr.msra.gmra.mrb[0].mxu0 %vm522_vm2, %v24200_v41  ;;  %v24520_v46 = vld [vmem:[%s21952_s30 + $0x50] sm:$0x3] }
 0x2a1   : > { %v20925_v40 = vpop.permute.xlu0 %20924  ;;  %18419 = vmatpush3.msk.msra.mxu1 %vm526_vm1, %v24412_v54  ;;  %8556 = vmatprep.mubr.f32.mxu0 %v21736_v2  ;;  %v24526_v38 = vld [vmem:[%s21952_s30 + $0x10] sm:$0xff] }
 0x2a2   : > { %v20927_v22 = vunpack.i.h.bf16 %v20925_v40  ;;  %v20926_v17 = vunpack.i.l.bf16 %v20925_v40  ;;  %21074 = vrot.lane.b32.xlu1 %v23899_v28, %s21789_s22  ;;  %19300 = vmatprep.subr.bf16.mxu0 %v19299_v33  ;;  %v24530_v33 = vpack.i.bf16 %v24216_v11, %v24526_v38  ;;  %v24547_v11 = vld [vmem:[%s27905_s1 + $0xc0] sm:$0x7] }
 0x2a3   : > { %21069 = vrot.lane.b32.xlu0 %v23864_v45, %s21789_s22  ;;  %19331 = vmatprep.subr.bf16.mxu1 %v21735_v1 }
 0x2a4   : > { %v8473_v41 = vsel %vm8470_vm6, %v20927_v22, %v20922_v7  ;;  %v8471_v16 = vsel %vm8470_vm6, %v20926_v17, %v20921_v36  ;;  %v24431_v9 = vpop.permute.xlu1 %20929  ;;  %18421 = vmatmul.mubr.msk.f32.vlgmr.msra.gmra.mrb[0].mxu1 %vm522_vm2, %v24421_v4 }
 0x2a5   : > { %v20932_v10 = vunpack.i.h.bf16 %v24431_v9  ;;  %v20931_v23 = vunpack.i.l.bf16 %v24431_v9  ;;  %v8467_v61 = vpop.permute.xlu0 %8466  ;;  %v19301_v20 = vpack.c.bf16 %v8473_v41, %v8471_v16  ;;  %18429 = vmatprep.mubr.msk.f32.mxu1 %vm21737_vm0, %v21736_v2 }
 0x2a6   : > { %10727 = vrot.lane.b32.xlu1 %v24294_v27, %s21792_s19  ;;  %v8476_v45 = vsel %vm8470_vm6, %v8467_v61, %v24256_v19 }
 0x2a7   : > { %v19332_v35 = vpack.c.bf16 %v20932_v10, %v20931_v23  ;;  %10725 = vrot.lane.b32.xlu0 %v23835_v37, %s21792_s19  ;;  %19302 = vmatpush1.bf16.msra.mxu0 %v19301_v20 }
 0x2a8   : > { %16839 = vmatprep.subr.msk.mxu0 %vm526_vm1, %v8476_v45  ;;  %v20935_v44 = vpop.permute.xlu1 %20934 }
 0x2a9   : > { %v20937_v26 = vunpack.i.h.bf16 %v20935_v44  ;;  %v20936_v30 = vunpack.i.l.bf16 %v20935_v44  ;;  %v8465_v12 = vpop.permute.xlu0 %8464  ;;  %19333 = vmatpush3.bf16.msra.mxu1 %v19332_v35  ;;  %v24566_v44 = vld [vmem:[%s21952_s30 + $0x40] sm:$0x3] }
 0x2aa   : > { %v8475_v25 = vsel %vm8470_vm6, %v8465_v12, %v8467_v61  ;;  %21084 = vrot.lane.b32.xlu1 %v24230_v59, %s21793_s26  ;;  %18427 = vmatprep.subr.mxu1 %v21736_v2  ;;  %v21658_v12 = vld [vmem:[%s21952_s30 + $0x20] sm:$0xff]  ;;  %vm10924_vm6 = vcmask 588800  }
 0x2ab   : > { %21079 = vrot.lane.b32.xlu0 %v24240_v58, %s21793_s26  ;;  %16840 = vmatpush1.msk.msra.mxu0 %vm526_vm1, %v8475_v25  ;;  %v8658_v37 = vsel %vm8656_vm7, %v20936_v30, %v20886_v15  ;;  %v8660_v19 = vsel %vm8656_vm7, %v20937_v26, %v20887_v49  ;;  %v24472_v58 = vld [vmem:[%s27905_s1 + $0xbc] sm:$0x7]  ;;  %v24478_v49 = vld [vmem:[%s21952_s30 + $0x48] sm:$0x3] }
 0x2ac   : > { %v24463_v32 = vpop.permute.xlu1 %9212  ;;  %v19306_v59 = vpack.c.bf16 %v8660_v19, %v8658_v37  ;;  %16841 = vmatmul.mubr.msk.f32.vlgmr.msra.gmra.mrb[0].mxu0 %vm522_vm2, %v24265_v48  ;;  %v21651_v48 = vld [vmem:[%s21952_s30 + $0x8] sm:$0xff] }
 0x2ad   : > { %v20940_v57 = vpop.permute.xlu0 %20939  ;;  %18428 = vmatpush3.msk.msra.mxu1 %vm526_vm1, %v24463_v32  ;;  %8742 = vmatprep.mubr.f32.mxu0 %v21736_v2  ;;  %v24484_v14 = vpack.i.bf16 %v21652_v63, %v21651_v48 }
 0x2ae   : > { %v20942_v62 = vunpack.i.h.bf16 %v20940_v57  ;;  %v20941_v15 = vunpack.i.l.bf16 %v20940_v57  ;;  %10138 = vrot.lane.b32.xlu1 %v23893_v0, %s21789_s22  ;;  %19307 = vmatprep.subr.bf16.mxu0 %v19306_v59 }
 0x2af   : > { %10140 = vrot.lane.b32.xlu0 %v24478_v49, %s21789_s22  ;;  %19338 = vmatprep.subr.bf16.mxu1 %v21735_v1  ;;  %s21796_s22 = smov 69  }
 0x2b0   : > { %v8659_v43 = vsel %vm8656_vm7, %v20942_v62, %v20937_v26  ;;  %v8657_v39 = vsel %vm8656_vm7, %v20941_v15, %v20936_v30  ;;  %v24489_v60 = vpop.permute.xlu1 %20944  ;;  %18430 = vmatmul.mubr.msk.f32.vlgmr.msra.gmra.mrb[0].mxu1 %vm522_vm2, %v24472_v58  ;;  %v21657_v30 = vld [vmem:[%s21952_s30] sm:$0xff] }
 0x2b1   : > { %v20947_v0 = vunpack.i.h.bf16 %v24489_v60  ;;  %v20946_v51 = vunpack.i.l.bf16 %v24489_v60  ;;  %v8653_v3 = vpop.permute.xlu0 %8652  ;;  %v19308_v21 = vpack.c.bf16 %v8659_v43, %v8657_v39  ;;  %18438 = vmatprep.mubr.msk.f32.mxu1 %vm21737_vm0, %v21736_v2  ;;  %v24574_v25 = vpack.i.bf16 %v21658_v12, %v21657_v30 }
 0x2b2   : > { %21094 = vrot.lane.b32.xlu1 %v23899_v28, %s21790_s29  ;;  %v8662_v31 = vsel %vm8656_vm7, %v8653_v3, %v24310_v47 }
 0x2b3   : > { %v19339_v50 = vpack.c.bf16 %v20947_v0, %v20946_v51  ;;  %21089 = vrot.lane.b32.xlu0 %v24484_v14, %s21790_s29  ;;  %19309 = vmatpush1.bf16.msra.mxu0 %v19308_v21 }
 0x2b4   : > { %16845 = vmatprep.subr.msk.mxu0 %vm526_vm1, %v8662_v31  ;;  %v20950_v5 = vpop.permute.xlu1 %20949 }
 0x2b5   : > { %v20952_v7 = vunpack.i.h.bf16 %v20950_v5  ;;  %v20951_v28 = vunpack.i.l.bf16 %v20950_v5  ;;  %v8651_v36 = vpop.permute.xlu0 %8650  ;;  %19340 = vmatpush3.bf16.msra.mxu1 %v19339_v50 }
 0x2b6   : > { %v8661_v47 = vsel %vm8656_vm7, %v8651_v36, %v8653_v3  ;;  %10922 = vrot.lane.b32.xlu1 %v24294_v27, %s21793_s26  ;;  %18436 = vmatprep.subr.mxu1 %v21736_v2  ;;  %v24605_v3 = vld [vmem:[%s27905_s1 + $0xc4] sm:$0x7]  ;;  %vm11119_vm7 = vcmask 580608  }
 0x2b7   : > { %10920 = vrot.lane.b32.xlu0 %v24520_v46, %s21793_s26  ;;  %16846 = vmatpush1.msk.msra.mxu0 %vm526_vm1, %v8661_v47  ;;  %v8844_v40 = vsel %vm8842_vm8, %v20951_v28, %v20901_v18  ;;  %v8846_v42 = vsel %vm8842_vm8, %v20952_v7, %v20902_v29 }
 0x2b8   : > { %v24538_v22 = vpop.permute.xlu1 %9398  ;;  %v19313_v17 = vpack.c.bf16 %v8846_v42, %v8844_v40  ;;  %16847 = vmatmul.mubr.msk.f32.vlgmr.msra.gmra.mrb[0].mxu0 %vm522_vm2, %v24319_v24 }
 0x2b9   : > { %v20955_v41 = vpop.permute.xlu0 %20954  ;;  %18437 = vmatpush3.msk.msra.mxu1 %vm526_vm1, %v24538_v22  ;;  %8928 = vmatprep.mubr.f32.mxu0 %v21736_v2 }
 0x2ba   : > { %v20957_v8 = vunpack.i.h.bf16 %v20955_v41  ;;  %v20956_v29 = vunpack.i.l.bf16 %v20955_v41  ;;  %21104 = vrot.lane.b32.xlu1 %v24517_v56, %s21794_s21  ;;  %19314 = vmatprep.subr.bf16.mxu0 %v19313_v17 }
 0x2bb   : > { %21099 = vrot.lane.b32.xlu0 %v24530_v33, %s21794_s21  ;;  %19345 = vmatprep.subr.bf16.mxu1 %v21735_v1 }
 0x2bc   : > { %v8845_v24 = vsel %vm8842_vm8, %v20957_v8, %v20952_v7  ;;  %v8843_v18 = vsel %vm8842_vm8, %v20956_v29, %v20951_v28  ;;  %v24557_v16 = vpop.permute.xlu1 %20959  ;;  %18439 = vmatmul.mubr.msk.f32.vlgmr.msra.gmra.mrb[0].mxu1 %vm522_vm2, %v24547_v11 }
 0x2bd   : > { %v20962_v61 = vunpack.i.h.bf16 %v24557_v16  ;;  %v20961_v20 = vunpack.i.l.bf16 %v24557_v16  ;;  %v8839_v45 = vpop.permute.xlu0 %8838  ;;  %v19315_v35 = vpack.c.bf16 %v8845_v24, %v8843_v18  ;;  %18447 = vmatprep.mubr.msk.f32.mxu1 %vm21737_vm0, %v21736_v2 }
 0x2be   : > { %10331 = vrot.lane.b32.xlu1 %v24566_v44, %s21790_s29  ;;  %v8848_v26 = vsel %vm8842_vm8, %v8839_v45, %v24361_v34 }
 0x2bf   : > { %v19346_v37 = vpack.c.bf16 %v20962_v61, %v20961_v20  ;;  %10333 = vrot.lane.b32.xlu0 %v24478_v49, %s21790_s29  ;;  %19316 = vmatpush1.bf16.msra.mxu0 %v19315_v35  ;;  %s21797_s29 = smov 68  }
 0x2c0   : > { %16851 = vmatprep.subr.msk.mxu0 %vm526_vm1, %v8848_v26  ;;  %v20965_v19 = vpop.permute.xlu1 %20964 }
 0x2c1   : > { %v20967_v59 = vunpack.i.h.bf16 %v20965_v19  ;;  %v20966_v57 = vunpack.i.l.bf16 %v20965_v19  ;;  %v8837_v34 = vpop.permute.xlu0 %8836  ;;  %19347 = vmatpush3.bf16.msra.mxu1 %v19346_v37 }
 0x2c2   : > { %v8847_v62 = vsel %vm8842_vm8, %v8837_v34, %v8839_v45  ;;  %21114 = vrot.lane.b32.xlu1 %v24574_v25, %s21791_s28  ;;  %18445 = vmatprep.subr.mxu1 %v21736_v2  ;;  %v24656_v45 = vld [vmem:[%s27905_s1 + $0xc8] sm:$0x7]  ;;  %vm11314_vm8 = vcmask 572416  }
 0x2c3   : > { %21109 = vrot.lane.b32.xlu0 %v24484_v14, %s21791_s28  ;;  %16852 = vmatpush1.msk.msra.mxu0 %vm526_vm1, %v8847_v62  ;;  %v9030_v15 = vsel %vm9028_vm9, %v20966_v57, %v20916_v52  ;;  %v9032_v48 = vsel %vm9028_vm9, %v20967_v59, %v20917_v6 }
 0x2c4   : > { %v24596_v63 = vpop.permute.xlu1 %9584  ;;  %v19320_v43 = vpack.c.bf16 %v9032_v48, %v9030_v15  ;;  %16853 = vmatmul.mubr.msk.f32.vlgmr.msra.gmra.mrb[0].mxu0 %vm522_vm2, %v24370_v55 }
 0x2c5   : > { %v20970_v39 = vpop.permute.xlu0 %20969  ;;  %18446 = vmatpush3.msk.msra.mxu1 %vm526_vm1, %v24596_v63  ;;  %9114 = vmatprep.mubr.f32.mxu0 %v21736_v2 }
 0x2c6   : > { %v20972_v53 = vunpack.i.h.bf16 %v20970_v39  ;;  %v20971_v52 = vunpack.i.l.bf16 %v20970_v39  ;;  %11117 = vrot.lane.b32.xlu1 %v24294_v27, %s21794_s21  ;;  %19321 = vmatprep.subr.bf16.mxu0 %v19320_v43 }
 0x2c7   : > { %11115 = vrot.lane.b32.xlu0 %v24520_v46, %s21794_s21  ;;  %19352 = vmatprep.subr.bf16.mxu1 %v21735_v1 }
 0x2c8   : > { %v9031_v55 = vsel %vm9028_vm9, %v20972_v53, %v20967_v59  ;;  %v9029_v6 = vsel %vm9028_vm9, %v20971_v52, %v20966_v57  ;;  %v24615_v21 = vpop.permute.xlu1 %20974  ;;  %18448 = vmatmul.mubr.msk.f32.vlgmr.msra.gmra.mrb[0].mxu1 %vm522_vm2, %v24605_v3 }
 0x2c9   : > { %v20977_v31 = vunpack.i.h.bf16 %v24615_v21  ;;  %v20976_v50 = vunpack.i.l.bf16 %v24615_v21  ;;  %v9025_v5 = vpop.permute.xlu0 %9024  ;;  %v19322_v7 = vpack.c.bf16 %v9031_v55, %v9029_v6  ;;  %18456 = vmatprep.mubr.msk.f32.mxu1 %vm21737_vm0, %v21736_v2  ;;  %v24707_v55 = vld [vmem:[%s27905_s1 + $0xcc] sm:$0x7] }
 0x2ca   : > { %21124 = vrot.lane.b32.xlu1 %v24517_v56, %s21795_s27  ;;  %v9034_v28 = vsel %vm9028_vm9, %v9025_v5, %v24412_v54 }
 0x2cb   : > { %v19353_v36 = vpack.c.bf16 %v20977_v31, %v20976_v50  ;;  %21119 = vrot.lane.b32.xlu0 %v24530_v33, %s21795_s27  ;;  %19323 = vmatpush1.bf16.msra.mxu0 %v19322_v7 }
 0x2cc   : > { %16857 = vmatprep.subr.msk.mxu0 %vm526_vm1, %v9034_v28  ;;  %v20980_v47 = vpop.permute.xlu1 %20979 }
 0x2cd   : > { %v20982_v40 = vunpack.i.h.bf16 %v20980_v47  ;;  %v20981_v42 = vunpack.i.l.bf16 %v20980_v47  ;;  %v9023_v17 = vpop.permute.xlu0 %9022  ;;  %19354 = vmatpush3.bf16.msra.mxu1 %v19353_v36 }
 0x2ce   : > { %v9033_v41 = vsel %vm9028_vm9, %v9023_v17, %v9025_v5  ;;  %10526 = vrot.lane.b32.xlu1 %v24566_v44, %s21791_s28  ;;  %18454 = vmatprep.subr.mxu1 %v21736_v2  ;;  %vm11509_vm9 = vcmask 564224  }
 0x2cf   : > { %10528 = vrot.lane.b32.xlu0 %v24478_v49, %s21791_s28  ;;  %16858 = vmatpush1.msk.msra.mxu0 %vm526_vm1, %v9033_v41  ;;  %v9216_v54 = vsel %vm9214_vm10, %v20981_v42, %v20931_v23  ;;  %v9218_v8 = vsel %vm9214_vm10, %v20982_v40, %v20932_v10 }
 0x2d0   : > { %v24647_v29 = vpop.permute.xlu1 %9770  ;;  %v19327_v24 = vpack.c.bf16 %v9218_v8, %v9216_v54  ;;  %16859 = vmatmul.mubr.msk.f32.vlgmr.msra.gmra.mrb[0].mxu0 %vm522_vm2, %v24421_v4 }
 0x2d1   : > { %v20985_v18 = vpop.permute.xlu0 %20984  ;;  %18455 = vmatpush3.msk.msra.mxu1 %vm526_vm1, %v24647_v29  ;;  %9300 = vmatprep.mubr.f32.mxu0 %v21736_v2 }
 0x2d2   : > { %v20987_v9 = vunpack.i.h.bf16 %v20985_v18  ;;  %v20986_v23 = vunpack.i.l.bf16 %v20985_v18  ;;  %21134 = vrot.lane.b32.xlu1 %v24574_v25, %s21792_s19  ;;  %19328 = vmatprep.subr.bf16.mxu0 %v19327_v24 }
 0x2d3   : > { %21129 = vrot.lane.b32.xlu0 %v24484_v14, %s21792_s19  ;;  %19359 = vmatprep.subr.bf16.mxu1 %v21735_v1 }
 0x2d4   : > { %v9217_v4 = vsel %vm9214_vm10, %v20987_v9, %v20982_v40  ;;  %v9215_v10 = vsel %vm9214_vm10, %v20986_v23, %v20981_v42  ;;  %v24666_v35 = vpop.permute.xlu1 %20989  ;;  %18457 = vmatmul.mubr.msk.f32.vlgmr.msra.gmra.mrb[0].mxu1 %vm522_vm2, %v24656_v45 }
 0x2d5   : > { %v20992_v26 = vunpack.i.h.bf16 %v24666_v35  ;;  %v20991_v30 = vunpack.i.l.bf16 %v24666_v35  ;;  %v9211_v12 = vpop.permute.xlu0 %9210  ;;  %v19329_v37 = vpack.c.bf16 %v9217_v4, %v9215_v10  ;;  %18465 = vmatprep.mubr.msk.f32.mxu1 %vm21737_vm0, %v21736_v2  ;;  %v24758_v4 = vld [vmem:[%s27905_s1 + $0xd0] sm:$0x7] }
 0x2d6   : > { %11312 = vrot.lane.b32.xlu1 %v24294_v27, %s21795_s27  ;;  %v9220_v19 = vsel %vm9214_vm10, %v9211_v12, %v24463_v32 }
 0x2d7   : > { %v19360_v59 = vpack.c.bf16 %v20992_v26, %v20991_v30  ;;  %11310 = vrot.lane.b32.xlu0 %v24520_v46, %s21795_s27  ;;  %19330 = vmatpush1.bf16.msra.mxu0 %v19329_v37 }
 0x2d8   : > { %16863 = vmatprep.subr.msk.mxu0 %vm526_vm1, %v9220_v19  ;;  %v20995_v57 = vpop.permute.xlu1 %20994 }
 0x2d9   : > { %v20997_v34 = vunpack.i.h.bf16 %v20995_v57  ;;  %v20996_v62 = vunpack.i.l.bf16 %v20995_v57  ;;  %v9209_v15 = vpop.permute.xlu0 %9208  ;;  %19361 = vmatpush3.bf16.msra.mxu1 %v19360_v59 }
 0x2da   : > { %v9219_v48 = vsel %vm9214_vm10, %v9209_v15, %v9211_v12  ;;  %21144 = vrot.lane.b32.xlu1 %v24517_v56, %s21796_s22  ;;  %18463 = vmatprep.subr.mxu1 %v21736_v2  ;;  %vm11704_vm10 = vcmask 556032  }
 0x2db   : > { %21139 = vrot.lane.b32.xlu0 %v24530_v33, %s21796_s22  ;;  %16864 = vmatpush1.msk.msra.mxu0 %vm526_vm1, %v9219_v48  ;;  %v9402_v32 = vsel %vm9400_vm11, %v20996_v62, %v20946_v51  ;;  %v9404_v43 = vsel %vm9400_vm11, %v20997_v34, %v20947_v0 }
 0x2dc   : > { %v24698_v39 = vpop.permute.xlu1 %9956  ;;  %v19334_v53 = vpack.c.bf16 %v9404_v43, %v9402_v32  ;;  %16865 = vmatmul.mubr.msk.f32.vlgmr.msra.gmra.mrb[0].mxu0 %vm522_vm2, %v24472_v58 }
 0x2dd   : > { %v21000_v52 = vpop.permute.xlu0 %20999  ;;  %18464 = vmatpush3.msk.msra.mxu1 %vm526_vm1, %v24698_v39  ;;  %9486 = vmatprep.mubr.f32.mxu0 %v21736_v2 }
 0x2de   : > { %v21002_v60 = vunpack.i.h.bf16 %v21000_v52  ;;  %v21001_v51 = vunpack.i.l.bf16 %v21000_v52  ;;  %10721 = vrot.lane.b32.xlu1 %v24566_v44, %s21792_s19  ;;  %19335 = vmatprep.subr.bf16.mxu0 %v19334_v53 }
 0x2df   : > { %10723 = vrot.lane.b32.xlu0 %v24478_v49, %s21792_s19  ;;  %19366 = vmatprep.subr.bf16.mxu1 %v21735_v1 }
 0x2e0   : > { %v9403_v58 = vsel %vm9400_vm11, %v21002_v60, %v20997_v34  ;;  %v9401_v0 = vsel %vm9400_vm11, %v21001_v51, %v20996_v62  ;;  %v24717_v6 = vpop.permute.xlu1 %21004  ;;  %18466 = vmatmul.mubr.msk.f32.vlgmr.msra.gmra.mrb[0].mxu1 %vm522_vm2, %v24707_v55 }
 0x2e1   : > { %v21007_v5 = vunpack.i.h.bf16 %v24717_v6  ;;  %v21006_v7 = vunpack.i.l.bf16 %v24717_v6  ;;  %v9397_v28 = vpop.permute.xlu0 %9396  ;;  %v19336_v36 = vpack.c.bf16 %v9403_v58, %v9401_v0  ;;  %18474 = vmatprep.mubr.msk.f32.mxu1 %vm21737_vm0, %v21736_v2 }
 0x2e2   : > { %21154 = vrot.lane.b32.xlu1 %v24574_v25, %s21793_s26  ;;  %v9406_v47 = vsel %vm9400_vm11, %v9397_v28, %v24538_v22 }
 0x2e3   : > { %v19367_v40 = vpack.c.bf16 %v21007_v5, %v21006_v7  ;;  %21149 = vrot.lane.b32.xlu0 %v24484_v14, %s21793_s26  ;;  %19337 = vmatpush1.bf16.msra.mxu0 %v19336_v36 }
 0x2e4   : > { %16869 = vmatprep.subr.msk.mxu0 %vm526_vm1, %v9406_v47  ;;  %v21010_v42 = vpop.permute.xlu1 %21009 }
 0x2e5   : > { %v21012_v17 = vunpack.i.h.bf16 %v21010_v42  ;;  %v21011_v41 = vunpack.i.l.bf16 %v21010_v42  ;;  %v9395_v54 = vpop.permute.xlu0 %9394  ;;  %19368 = vmatpush3.bf16.msra.mxu1 %v19367_v40 }
 0x2e6   : > { %v9405_v8 = vsel %vm9400_vm11, %v9395_v54, %v9397_v28  ;;  %11507 = vrot.lane.b32.xlu1 %v24294_v27, %s21796_s22  ;;  %18472 = vmatprep.subr.mxu1 %v21736_v2  ;;  %vm11899_vm11 = vcmask 547840  }
 0x2e7   : > { %11505 = vrot.lane.b32.xlu0 %v24520_v46, %s21796_s22  ;;  %16870 = vmatpush1.msk.msra.mxu0 %vm526_vm1, %v9405_v8  ;;  %v9588_v22 = vsel %vm9586_vm12, %v21011_v41, %v20961_v20  ;;  %v9590_v24 = vsel %vm9586_vm12, %v21012_v17, %v20962_v61 }
 0x2e8   : > { %v24749_v18 = vpop.permute.xlu1 %10142  ;;  %v19341_v9 = vpack.c.bf16 %v9590_v24, %v9588_v22  ;;  %16871 = vmatmul.mubr.msk.f32.vlgmr.msra.gmra.mrb[0].mxu0 %vm522_vm2, %v24547_v11  ;;  %v24824_v22 = vld [vmem:[%s27905_s1 + $0xd4] sm:$0x7] }
 0x2e9   : > { %v21015_v23 = vpop.permute.xlu0 %21014  ;;  %18473 = vmatpush3.msk.msra.mxu1 %vm526_vm1, %v24749_v18  ;;  %9672 = vmatprep.mubr.f32.mxu0 %v21736_v2 }
 0x2ea   : > { %v21017_v16 = vunpack.i.h.bf16 %v21015_v23  ;;  %v21016_v20 = vunpack.i.l.bf16 %v21015_v23  ;;  %21164 = vrot.lane.b32.xlu1 %v24517_v56, %s21797_s29  ;;  %19342 = vmatprep.subr.bf16.mxu0 %v19341_v9 }
 0x2eb   : > { %21159 = vrot.lane.b32.xlu0 %v24530_v33, %s21797_s29  ;;  %19373 = vmatprep.subr.bf16.mxu1 %v21735_v1 }
 0x2ec   : > { %v9589_v11 = vsel %vm9586_vm12, %v21017_v16, %v21012_v17  ;;  %v9587_v61 = vsel %vm9586_vm12, %v21016_v20, %v21011_v41  ;;  %v24768_v10 = vpop.permute.xlu1 %21024  ;;  %18475 = vmatmul.mubr.msk.f32.vlgmr.msra.gmra.mrb[0].mxu1 %vm522_vm2, %v24758_v4 }
 0x2ed   : > { %v21027_v12 = vunpack.i.h.bf16 %v24768_v10  ;;  %v21026_v37 = vunpack.i.l.bf16 %v24768_v10  ;;  %v24774_v19 = vpop.permute.xlu0 %21019  ;;  %v19343_v59 = vpack.c.bf16 %v9589_v11, %v9587_v61  ;;  %18483 = vmatprep.mubr.msk.f32.mxu1 %vm21737_vm0, %v21736_v2 }
 0x2ee   : > { %v21022_v57 = vunpack.i.h.bf16 %v24774_v19  ;;  %v21021_v34 = vunpack.i.l.bf16 %v24774_v19  ;;  %10916 = vrot.lane.b32.xlu1 %v24566_v44, %s21793_s26  ;;  %v25027_v19 = vld [vmem:[%s27905_s1 + $0xe0] sm:$0x7] }
 0x2ef   : > { %v10345_v62 = vsel %vm10339_vm13, %v21026_v37, %v21027_v12  ;;  %10918 = vrot.lane.b32.xlu0 %v24478_v49, %s21793_s26  ;;  %19344 = vmatpush1.bf16.msra.mxu0 %v19343_v59  ;;  %s21798_s26 = smov 67  }
 0x2f0   : > { %v10342_v15 = vsel %vm10339_vm13, %v21021_v34, %v21022_v57  ;;  %v9581_v48 = vpop.permute.xlu1 %9580 }
 0x2f1   : > { %v9583_v32 = vpop.permute.xlu0 %9582  ;;  %v19374_v43 = vpack.c.bf16 %v10345_v62, %v10342_v15 }
 0x2f2   : > { %v9591_v53 = vsel %vm9586_vm12, %v9581_v48, %v9583_v32  ;;  %21174 = vrot.lane.b32.xlu1 %v24574_v25, %s21794_s21  ;;  %v9592_v52 = vsel %vm9586_vm12, %v9583_v32, %v24596_v63  ;;  %v24867_v32 = vld [vmem:[%s21952_s30 + $0x38] sm:$0xff]  ;;  %vm12094_vm12 = vcmask 539648  }
 0x2f3   : > { %21169 = vrot.lane.b32.xlu0 %v24484_v14, %s21794_s21  ;;  %16875 = vmatprep.subr.msk.mxu0 %vm526_vm1, %v9592_v52 }
 0x2f4   : > { %19375 = vmatpush3.bf16.msra.mxu1 %v19374_v43  ;;  %16876 = vmatpush1.msk.msra.mxu0 %vm526_vm1, %v9591_v53  ;;  %v21035_v60 = vpop.permute.xlu1 %21034  ;;  %v24871_v43 = vpack.i.bf16 %v24867_v32, %v24513_v13  ;;  %v24877_v53 = vld [vmem:[%s21952_s30 + $0x18] sm:$0xff] }
 0x2f5   : > { %v21037_v51 = vunpack.i.h.bf16 %v21035_v60  ;;  %v21036_v58 = vunpack.i.l.bf16 %v21035_v60  ;;  %v21030_v0 = vpop.permute.xlu0 %21029  ;;  %18481 = vmatprep.subr.mxu1 %v21736_v2  ;;  %16877 = vmatmul.mubr.msk.f32.vlgmr.msra.gmra.mrb[0].mxu0 %vm522_vm2, %v24605_v3 }
 0x2f6   : > { %v21032_v28 = vunpack.i.h.bf16 %v21030_v0  ;;  %v21031_v63 = vunpack.i.l.bf16 %v21030_v0  ;;  %11702 = vrot.lane.b32.xlu1 %v24294_v27, %s21797_s29  ;;  %9858 = vmatprep.mubr.f32.mxu0 %v21736_v2 }
 0x2f7   : > { %11700 = vrot.lane.b32.xlu0 %v24520_v46, %s21797_s29 }
 0x2f8   : > { %v9775_v36 = vsel %vm9772_vm14, %v21037_v51, %v21032_v28  ;;  %v9773_v47 = vsel %vm9772_vm14, %v21036_v58, %v21031_v63  ;;  %v10338_v40 = vpop.permute.xlu1 %10337  ;;  %v9774_v42 = vsel %vm9772_vm14, %v21031_v63, %v20976_v50  ;;  %v9776_v3 = vsel %vm9772_vm14, %v21032_v28, %v20977_v31  ;;  %v24900_v63 = vld [vmem:[%s27905_s1 + $0xd8] sm:$0x7] }
 0x2f9   : > { %v24815_v17 = vpop.permute.xlu0 %10335  ;;  %v19348_v41 = vpack.c.bf16 %v9776_v3, %v9774_v42  ;;  %v19350_v54 = vpack.c.bf16 %v9775_v36, %v9773_v47 }
 0x2fa   : > { %v10348_v8 = vsel %vm10339_vm13, %v24815_v17, %v10338_v40  ;;  %21184 = vrot.lane.b32.xlu1 %v24517_v56, %s21798_s26 }
 0x2fb   : > { %21179 = vrot.lane.b32.xlu0 %v24530_v33, %s21798_s26  ;;  %19349 = vmatprep.subr.bf16.mxu0 %v19348_v41 }
 0x2fc   : > { %18482 = vmatpush3.msk.msra.mxu1 %vm526_vm1, %v10348_v8  ;;  %19351 = vmatpush1.bf16.msra.mxu0 %v19350_v54  ;;  %v24829_v21 = vpop.permute.xlu1 %21044 }
 0x2fd   : > { %v21047_v31 = vunpack.i.h.bf16 %v24829_v21  ;;  %v21046_v50 = vunpack.i.l.bf16 %v24829_v21  ;;  %v24833_v56 = vpop.permute.xlu0 %21039  ;;  %19380 = vmatprep.subr.bf16.mxu1 %v21735_v1  ;;  %18484 = vmatmul.mubr.msk.f32.vlgmr.msra.gmra.mrb[0].mxu1 %vm522_vm2, %v24824_v22 }
 0x2fe   : > { %v21042_v33 = vunpack.i.h.bf16 %v24833_v56  ;;  %v21041_v24 = vunpack.i.l.bf16 %v24833_v56  ;;  %11111 = vrot.lane.b32.xlu1 %v24566_v44, %s21794_s21  ;;  %18492 = vmatprep.mubr.msk.f32.mxu1 %vm21737_vm0, %v21736_v2  ;;  %v25089_v56 = vld [vmem:[%s27905_s1 + $0xe4] sm:$0x7] }
 0x2ff   : > { %v10540_v9 = vsel %vm10534_vm15, %v21046_v50, %v21047_v31  ;;  %11113 = vrot.lane.b32.xlu0 %v24478_v49, %s21794_s21  ;;  %s21799_s21 = smov 66  }
 0x300   : > { %v10537_v23 = vsel %vm10534_vm15, %v21041_v24, %v21042_v33  ;;  %v9767_v16 = vpop.permute.xlu1 %9766 }
 0x301   : > { %v9769_v20 = vpop.permute.xlu0 %9768  ;;  %v19381_v11 = vpack.c.bf16 %v10540_v9, %v10537_v23 }
 0x302   : > { %v9777_v61 = vsel %vm9772_vm14, %v9767_v16, %v9769_v20  ;;  %21194 = vrot.lane.b32.xlu1 %v24574_v25, %s21795_s27  ;;  %v9778_v12 = vsel %vm9772_vm14, %v9769_v20, %v24647_v29  ;;  %vm12484_vm14 = vcmask 523264  }
 0x303   : > { %21189 = vrot.lane.b32.xlu0 %v24484_v14, %s21795_s27  ;;  %16881 = vmatprep.subr.msk.mxu0 %vm526_vm1, %v9778_v12 }
 0x304   : > { %19382 = vmatpush3.bf16.msra.mxu1 %v19381_v11  ;;  %16882 = vmatpush1.msk.msra.mxu0 %vm526_vm1, %v9777_v61  ;;  %v21055_v59 = vpop.permute.xlu1 %21054  ;;  %v24941_v61 = vld [vmem:[%s21952_s30 + $0x58] sm:$0x3] }
 0x305   : > { %v21057_v57 = vunpack.i.h.bf16 %v21055_v59  ;;  %v21056_v62 = vunpack.i.l.bf16 %v21055_v59  ;;  %v21050_v15 = vpop.permute.xlu0 %21049  ;;  %18490 = vmatprep.subr.mxu1 %v21736_v2  ;;  %16883 = vmatmul.mubr.msk.f32.vlgmr.msra.gmra.mrb[0].mxu0 %vm522_vm2, %v24656_v45  ;;  %v24881_v45 = vpack.i.bf16 %v24877_v53, %v24526_v38 }
 0x306   : > { %v21052_v29 = vunpack.i.h.bf16 %v21050_v15  ;;  %v21051_v48 = vunpack.i.l.bf16 %v21050_v15  ;;  %11897 = vrot.lane.b32.xlu1 %v24294_v27, %s21798_s26  ;;  %10044 = vmatprep.mubr.f32.mxu0 %v21736_v2 }
 0x307   : > { %11895 = vrot.lane.b32.xlu0 %v24520_v46, %s21798_s26 }
 0x308   : > { %v9961_v52 = vsel %vm9958_vm3, %v21057_v57, %v21052_v29  ;;  %v9959_v27 = vsel %vm9958_vm3, %v21056_v62, %v21051_v48  ;;  %v10533_v60 = vpop.permute.xlu1 %10532  ;;  %v9960_v13 = vsel %vm9958_vm3, %v21051_v48, %v20991_v30  ;;  %v9962_v51 = vsel %vm9958_vm3, %v21052_v29, %v20992_v26 }
 0x309   : > { %v24891_v58 = vpop.permute.xlu0 %10530  ;;  %v19355_v0 = vpack.c.bf16 %v9962_v51, %v9960_v13  ;;  %v19357_v28 = vpack.c.bf16 %v9961_v52, %v9959_v27  ;;  %v24965_v27 = vld [vmem:[%s27905_s1 + $0xdc] sm:$0x7] }
 0x30a   : > { %v10543_v38 = vsel %vm10534_vm15, %v24891_v58, %v10533_v60  ;;  %21204 = vrot.lane.b32.xlu1 %v24871_v43, %s21799_s21 }
 0x30b   : > { %21199 = vrot.lane.b32.xlu0 %v24881_v45, %s21799_s21  ;;  %19356 = vmatprep.subr.bf16.mxu0 %v19355_v0 }
 0x30c   : > { %18491 = vmatpush3.msk.msra.mxu1 %vm526_vm1, %v10543_v38  ;;  %19358 = vmatpush1.bf16.msra.mxu0 %v19357_v28  ;;  %v24905_v35 = vpop.permute.xlu1 %21064 }
 0x30d   : > { %v21067_v26 = vunpack.i.h.bf16 %v24905_v35  ;;  %v21066_v30 = vunpack.i.l.bf16 %v24905_v35  ;;  %v24909_v36 = vpop.permute.xlu0 %21059  ;;  %19387 = vmatprep.subr.bf16.mxu1 %v21735_v1  ;;  %18493 = vmatmul.mubr.msk.f32.vlgmr.msra.gmra.mrb[0].mxu1 %vm522_vm2, %v24900_v63 }
 0x30e   : > { %v21062_v47 = vunpack.i.h.bf16 %v24909_v36  ;;  %v21061_v40 = vunpack.i.l.bf16 %v24909_v36  ;;  %11306 = vrot.lane.b32.xlu1 %v24566_v44, %s21795_s27  ;;  %18501 = vmatprep.mubr.msk.f32.mxu1 %vm21737_vm0, %v21736_v2  ;;  %v25169_v36 = vld [vmem:[%s27905_s1 + $0xe8] sm:$0x7] }
 0x30f   : > { %v10735_v42 = vsel %vm10729_vm4, %v21066_v30, %v21067_v26  ;;  %11308 = vrot.lane.b32.xlu0 %v24478_v49, %s21795_s27  ;;  %s21800_s27 = smov 65  }
 0x310   : > { %v10732_v3 = vsel %vm10729_vm4, %v21061_v40, %v21062_v47  ;;  %v9953_v41 = vpop.permute.xlu1 %9952 }
 0x311   : > { %v9955_v54 = vpop.permute.xlu0 %9954  ;;  %v19388_v8 = vpack.c.bf16 %v10735_v42, %v10732_v3 }
 0x312   : > { %v9963_v31 = vsel %vm9958_vm3, %v9953_v41, %v9955_v54  ;;  %21214 = vrot.lane.b32.xlu1 %v24574_v25, %s21796_s22  ;;  %v9964_v33 = vsel %vm9958_vm3, %v9955_v54, %v24698_v39  ;;  %vm12874_vm3 = vcmask 506880  }
 0x313   : > { %21209 = vrot.lane.b32.xlu0 %v24484_v14, %s21796_s22  ;;  %16887 = vmatprep.subr.msk.mxu0 %vm526_vm1, %v9964_v33 }
 0x314   : > { %19389 = vmatpush3.bf16.msra.mxu1 %v19388_v8  ;;  %16888 = vmatpush1.msk.msra.mxu0 %vm526_vm1, %v9963_v31  ;;  %v21075_v9 = vpop.permute.xlu1 %21074 }
 0x315   : > { %v21077_v23 = vunpack.i.h.bf16 %v21075_v9  ;;  %v21076_v16 = vunpack.i.l.bf16 %v21075_v9  ;;  %v21070_v20 = vpop.permute.xlu0 %21069  ;;  %18499 = vmatprep.subr.mxu1 %v21736_v2  ;;  %16889 = vmatmul.mubr.msk.f32.vlgmr.msra.gmra.mrb[0].mxu0 %vm522_vm2, %v24707_v55 }
 0x316   : > { %v21072_v11 = vunpack.i.h.bf16 %v21070_v20  ;;  %v21071_v39 = vunpack.i.l.bf16 %v21070_v20  ;;  %12092 = vrot.lane.b32.xlu1 %v24941_v61, %s21799_s21  ;;  %10230 = vmatprep.mubr.f32.mxu0 %v21736_v2 }
 0x317   : > { %12090 = vrot.lane.b32.xlu0 %v24520_v46, %s21799_s21 }
 0x318   : > { %v10147_v12 = vsel %vm10144_vm5, %v21077_v23, %v21072_v11  ;;  %v10145_v59 = vsel %vm10144_vm5, %v21076_v16, %v21071_v39  ;;  %v10728_v57 = vpop.permute.xlu1 %10727  ;;  %v10146_v55 = vsel %vm10144_vm5, %v21071_v39, %v21006_v7  ;;  %v10148_v62 = vsel %vm10144_vm5, %v21072_v11, %v21007_v5 }
 0x319   : > { %v24956_v15 = vpop.permute.xlu0 %10725  ;;  %v19362_v29 = vpack.c.bf16 %v10148_v62, %v10146_v55  ;;  %v19364_v48 = vpack.c.bf16 %v10147_v12, %v10145_v59 }
 0x31a   : > { %v10738_v52 = vsel %vm10729_vm4, %v24956_v15, %v10728_v57  ;;  %21224 = vrot.lane.b32.xlu1 %v24871_v43, %s21800_s27 }
 0x31b   : > { %21219 = vrot.lane.b32.xlu0 %v24881_v45, %s21800_s27  ;;  %19363 = vmatprep.subr.bf16.mxu0 %v19362_v29 }
 0x31c   : > { %18500 = vmatpush3.msk.msra.mxu1 %vm526_vm1, %v10738_v52  ;;  %19365 = vmatpush1.bf16.msra.mxu0 %v19364_v48  ;;  %v24970_v6 = vpop.permute.xlu1 %21084 }
 0x31d   : > { %v21087_v5 = vunpack.i.h.bf16 %v24970_v6  ;;  %v21086_v7 = vunpack.i.l.bf16 %v24970_v6  ;;  %v24974_v60 = vpop.permute.xlu0 %21079  ;;  %19394 = vmatprep.subr.bf16.mxu1 %v21735_v1  ;;  %18502 = vmatmul.mubr.msk.f32.vlgmr.msra.gmra.mrb[0].mxu1 %vm522_vm2, %v24965_v27 }
 0x31e   : > { %v21082_v13 = vunpack.i.h.bf16 %v24974_v60  ;;  %v21081_v51 = vunpack.i.l.bf16 %v24974_v60  ;;  %11501 = vrot.lane.b32.xlu1 %v24566_v44, %s21796_s22  ;;  %18510 = vmatprep.mubr.msk.f32.mxu1 %vm21737_vm0, %v21736_v2  ;;  %v25238_v60 = vld [vmem:[%s27905_s1 + $0xec] sm:$0x7] }
 0x31f   : > { %v10930_v0 = vsel %vm10924_vm6, %v21086_v7, %v21087_v5  ;;  %11503 = vrot.lane.b32.xlu0 %v24478_v49, %s21796_s22  ;;  %s21801_s22 = smov 64  }
 0x320   : > { %v10927_v28 = vsel %vm10924_vm6, %v21081_v51, %v21082_v13  ;;  %v10139_v38 = vpop.permute.xlu1 %10138 }
 0x321   : > { %v10141_v26 = vpop.permute.xlu0 %10140  ;;  %v19395_v47 = vpack.c.bf16 %v10930_v0, %v10927_v28 }
 0x322   : > { %v10149_v42 = vsel %vm10144_vm5, %v10139_v38, %v10141_v26  ;;  %21234 = vrot.lane.b32.xlu1 %v24574_v25, %s21797_s29  ;;  %v10150_v3 = vsel %vm10144_vm5, %v10141_v26, %v24749_v18 }
 0x323   : > { %21229 = vrot.lane.b32.xlu0 %v24484_v14, %s21797_s29  ;;  %16893 = vmatprep.subr.msk.mxu0 %vm526_vm1, %v10150_v3 }
 0x324   : > { %19396 = vmatpush3.bf16.msra.mxu1 %v19395_v47  ;;  %16894 = vmatpush1.msk.msra.mxu0 %vm526_vm1, %v10149_v42  ;;  %v21095_v41 = vpop.permute.xlu1 %21094 }
 0x325   : > { %v21097_v54 = vunpack.i.h.bf16 %v21095_v41  ;;  %v21096_v8 = vunpack.i.l.bf16 %v21095_v41  ;;  %v21090_v31 = vpop.permute.xlu0 %21089  ;;  %18508 = vmatprep.subr.mxu1 %v21736_v2  ;;  %16895 = vmatmul.mubr.msk.f32.vlgmr.msra.gmra.mrb[0].mxu0 %vm522_vm2, %v24758_v4 }
 0x326   : > { %v21092_v33 = vunpack.i.h.bf16 %v21090_v31  ;;  %v21091_v9 = vunpack.i.l.bf16 %v21090_v31  ;;  %12287 = vrot.lane.b32.xlu1 %v24941_v61, %s21800_s27  ;;  %10428 = vmatprep.mubr.f32.mxu0 %v21736_v2 }
 0x327   : > { %12285 = vrot.lane.b32.xlu0 %v24520_v46, %s21800_s27 }
 0x328   : > { %v10343_v18 = vsel %vm10339_vm13, %v21097_v54, %v21092_v33  ;;  %v10340_v23 = vsel %vm10339_vm13, %v21096_v8, %v21091_v9  ;;  %v10923_v16 = vpop.permute.xlu1 %10922  ;;  %v10341_v20 = vsel %vm10339_vm13, %v21091_v9, %v21021_v34  ;;  %v10344_v4 = vsel %vm10339_vm13, %v21092_v33, %v21026_v37 }
 0x329   : > { %v25018_v11 = vpop.permute.xlu0 %10920  ;;  %v19369_v39 = vpack.c.bf16 %v10344_v4, %v10341_v20  ;;  %v19371_v12 = vpack.c.bf16 %v10343_v18, %v10340_v23  ;;  %v25113_v23 = vld [vmem:[%s21952_s30 + $0x48] sm:$0x3] }
 0x32a   : > { %v10933_v59 = vsel %vm10924_vm6, %v25018_v11, %v10923_v16  ;;  %21244 = vrot.lane.b32.xlu1 %v24871_v43, %s21801_s22  ;;  %v21663_v16 = vld [vmem:[%s21952_s30 + $0x8] sm:$0xff] }
 0x32b   : > { %21239 = vrot.lane.b32.xlu0 %v24881_v45, %s21801_s22  ;;  %19370 = vmatprep.subr.bf16.mxu0 %v19369_v39  ;;  %v21664_v20 = vld [vmem:[%s21952_s30 + $0x28] sm:$0xff] }
 0x32c   : > { %18509 = vmatpush3.msk.msra.mxu1 %vm526_vm1, %v10933_v59  ;;  %19372 = vmatpush1.bf16.msra.mxu0 %v19371_v12  ;;  %v25032_v10 = vpop.permute.xlu1 %21104  ;;  %v25119_v4 = vpack.i.bf16 %v21664_v20, %v21663_v16 }
 0x32d   : > { %v21107_v37 = vunpack.i.h.bf16 %v25032_v10  ;;  %v21106_v34 = vunpack.i.l.bf16 %v25032_v10  ;;  %v25036_v57 = vpop.permute.xlu0 %21099  ;;  %19401 = vmatprep.subr.bf16.mxu1 %v21735_v1  ;;  %18511 = vmatmul.mubr.msk.f32.vlgmr.msra.gmra.mrb[0].mxu1 %vm522_vm2, %v25027_v19 }
 0x32e   : > { %v21102_v55 = vunpack.i.h.bf16 %v25036_v57  ;;  %v21101_v62 = vunpack.i.l.bf16 %v25036_v57  ;;  %11696 = vrot.lane.b32.xlu1 %v24566_v44, %s21797_s29  ;;  %18519 = vmatprep.mubr.msk.f32.mxu1 %vm21737_vm0, %v21736_v2  ;;  %v25300_v57 = vld [vmem:[%s27905_s1 + $0xf0] sm:$0x7] }
 0x32f   : > { %v11125_v29 = vsel %vm11119_vm7, %v21106_v34, %v21107_v37  ;;  %11698 = vrot.lane.b32.xlu0 %v24478_v49, %s21797_s29  ;;  %s21802_s29 = smov 63  }
 0x330   : > { %v11122_v48 = vsel %vm11119_vm7, %v21101_v62, %v21102_v55  ;;  %v10332_v52 = vpop.permute.xlu1 %10331 }
 0x331   : > { %v10334_v5 = vpop.permute.xlu0 %10333  ;;  %v19402_v13 = vpack.c.bf16 %v11125_v29, %v11122_v48 }
 0x332   : > { %v10346_v0 = vsel %vm10339_vm13, %v10332_v52, %v10334_v5  ;;  %21254 = vrot.lane.b32.xlu1 %v24574_v25, %s21798_s26  ;;  %v10347_v28 = vsel %vm10339_vm13, %v10334_v5, %v24815_v17  ;;  %vm12289_vm13 = vcmask 531456  }
 0x333   : > { %21249 = vrot.lane.b32.xlu0 %v24484_v14, %s21798_s26  ;;  %16899 = vmatprep.subr.msk.mxu0 %vm526_vm1, %v10347_v28  ;;  %v25144_v28 = vld [vmem:[%s21952_s30 + $0x50] sm:$0x3] }
 0x334   : > { %19403 = vmatpush3.bf16.msra.mxu1 %v19402_v13  ;;  %16900 = vmatpush1.msk.msra.mxu0 %vm526_vm1, %v10346_v0  ;;  %v21115_v49 = vpop.permute.xlu1 %21114  ;;  %v21665_v13 = vld [vmem:[%s21952_s30 + $0x30] sm:$0xff] }
 0x335   : > { %v21117_v38 = vunpack.i.h.bf16 %v21115_v49  ;;  %v21116_v26 = vunpack.i.l.bf16 %v21115_v49  ;;  %v21110_v47 = vpop.permute.xlu0 %21109  ;;  %18517 = vmatprep.subr.mxu1 %v21736_v2  ;;  %16901 = vmatmul.mubr.msk.f32.vlgmr.msra.gmra.mrb[0].mxu0 %vm522_vm2, %v24824_v22  ;;  %v25140_v0 = vpack.i.bf16 %v24867_v32, %v21665_v13  ;;  %v21667_v49 = vld [vmem:[%s21952_s30 + $0x10] sm:$0xff] }
 0x336   : > { %v21112_v42 = vunpack.i.h.bf16 %v21110_v47  ;;  %v21111_v3 = vunpack.i.l.bf16 %v21110_v47  ;;  %12482 = vrot.lane.b32.xlu1 %v24941_v61, %s21801_s22  ;;  %10623 = vmatprep.mubr.f32.mxu0 %v21736_v2 }
 0x337   : > { %12480 = vrot.lane.b32.xlu0 %v24520_v46, %s21801_s22 }
 0x338   : > { %v10538_v14 = vsel %vm10534_vm15, %v21117_v38, %v21112_v42  ;;  %v10535_v17 = vsel %vm10534_vm15, %v21116_v26, %v21111_v3  ;;  %v11118_v41 = vpop.permute.xlu1 %11117  ;;  %v10536_v54 = vsel %vm10534_vm15, %v21111_v3, %v21041_v24  ;;  %v10539_v22 = vsel %vm10534_vm15, %v21112_v42, %v21046_v50 }
 0x339   : > { %v25080_v8 = vpop.permute.xlu0 %11115  ;;  %v19376_v31 = vpack.c.bf16 %v10539_v22, %v10536_v54  ;;  %v19378_v33 = vpack.c.bf16 %v10538_v14, %v10535_v17  ;;  %v25150_v38 = vpack.i.bf16 %v24877_v53, %v21667_v49 }
 0x33a   : > { %v11128_v46 = vsel %vm11119_vm7, %v25080_v8, %v11118_v41  ;;  %21264 = vrot.lane.b32.xlu1 %v24871_v43, %s21802_s29 }
 0x33b   : > { %21259 = vrot.lane.b32.xlu0 %v24881_v45, %s21802_s29  ;;  %19377 = vmatprep.subr.bf16.mxu0 %v19376_v31  ;;  %v25186_v31 = vld [vmem:[%s21952_s30 + $0x40] sm:$0x3] }
 0x33c   : > { %18518 = vmatpush3.msk.msra.mxu1 %vm526_vm1, %v11128_v46  ;;  %19379 = vmatpush1.bf16.msra.mxu0 %v19378_v33  ;;  %v25094_v21 = vpop.permute.xlu1 %21124  ;;  %v21669_v33 = vld [vmem:[%s21952_s30] sm:$0xff] }
 0x33d   : > { %v21127_v50 = vunpack.i.h.bf16 %v25094_v21  ;;  %v21126_v24 = vunpack.i.l.bf16 %v25094_v21  ;;  %v25098_v43 = vpop.permute.xlu0 %21119  ;;  %19408 = vmatprep.subr.bf16.mxu1 %v21735_v1  ;;  %18520 = vmatmul.mubr.msk.f32.vlgmr.msra.gmra.mrb[0].mxu1 %vm522_vm2, %v25089_v56  ;;  %v21670_v46 = vld [vmem:[%s21952_s30 + $0x20] sm:$0xff]  ;;  %s21804_s30 = smov 61  }
 0x33e   : > { %v21122_v45 = vunpack.i.h.bf16 %v25098_v43  ;;  %v21121_v9 = vunpack.i.l.bf16 %v25098_v43  ;;  %11891 = vrot.lane.b32.xlu1 %v24566_v44, %s21798_s26  ;;  %18528 = vmatprep.mubr.msk.f32.mxu1 %vm21737_vm0, %v21736_v2  ;;  %v25362_v43 = vld [vmem:[%s27905_s1 + $0xf4] sm:$0x7] }
 0x33f   : > { %v11320_v18 = vsel %vm11314_vm8, %v21126_v24, %v21127_v50  ;;  %11893 = vrot.lane.b32.xlu0 %v25113_v23, %s21798_s26  ;;  %s21803_s26 = smov 62   ;;  %v25192_v50 = vpack.i.bf16 %v21670_v46, %v21669_v33 }
 0x340   : > { %v11317_v44 = vsel %vm11314_vm8, %v21121_v9, %v21122_v45  ;;  %v10527_v39 = vpop.permute.xlu1 %10526 }
 0x341   : > { %v10529_v12 = vpop.permute.xlu0 %10528  ;;  %v19409_v59 = vpack.c.bf16 %v11320_v18, %v11317_v44 }
 0x342   : > { %v10541_v37 = vsel %vm10534_vm15, %v10527_v39, %v10529_v12  ;;  %21274 = vrot.lane.b32.xlu1 %v24574_v25, %s21799_s21  ;;  %v10542_v55 = vsel %vm10534_vm15, %v10529_v12, %v24891_v58  ;;  %vm12679_vm15 = vcmask 515072  }
 0x343   : > { %21269 = vrot.lane.b32.xlu0 %v25119_v4, %s21799_s21  ;;  %16905 = vmatprep.subr.msk.mxu0 %vm526_vm1, %v10542_v55 }
 0x344   : > { %19410 = vmatpush3.bf16.msra.mxu1 %v19409_v59  ;;  %16906 = vmatpush1.msk.msra.mxu0 %vm526_vm1, %v10541_v37  ;;  %v21135_v29 = vpop.permute.xlu1 %21134 }
 0x345   : > { %v21137_v48 = vunpack.i.h.bf16 %v21135_v29  ;;  %v21136_v52 = vunpack.i.l.bf16 %v21135_v29  ;;  %v21130_v5 = vpop.permute.xlu0 %21129  ;;  %18526 = vmatprep.subr.mxu1 %v21736_v2  ;;  %16907 = vmatmul.mubr.msk.f32.vlgmr.msra.gmra.mrb[0].mxu0 %vm522_vm2, %v24900_v63 }
 0x346   : > { %v21132_v25 = vunpack.i.h.bf16 %v21130_v5  ;;  %v21131_v58 = vunpack.i.l.bf16 %v21130_v5  ;;  %12677 = vrot.lane.b32.xlu1 %v24941_v61, %s21802_s29  ;;  %10818 = vmatprep.mubr.f32.mxu0 %v21736_v2 }
 0x347   : > { %12675 = vrot.lane.b32.xlu0 %v25144_v28, %s21802_s29 }
 0x348   : > { %v10733_v63 = vsel %vm10729_vm4, %v21137_v48, %v21132_v25  ;;  %v10730_v26 = vsel %vm10729_vm4, %v21136_v52, %v21131_v58  ;;  %v11313_v47 = vpop.permute.xlu1 %11312  ;;  %v10731_v32 = vsel %vm10729_vm4, %v21131_v58, %v21061_v40  ;;  %v10734_v42 = vsel %vm10729_vm4, %v21132_v25, %v21066_v30 }
 0x349   : > { %v25160_v3 = vpop.permute.xlu0 %11310  ;;  %v19383_v14 = vpack.c.bf16 %v10734_v42, %v10731_v32  ;;  %v19385_v17 = vpack.c.bf16 %v10733_v63, %v10730_v26 }
 0x34a   : > { %v11323_v53 = vsel %vm11314_vm8, %v25160_v3, %v11313_v47  ;;  %21284 = vrot.lane.b32.xlu1 %v25140_v0, %s21803_s26 }
 0x34b   : > { %21279 = vrot.lane.b32.xlu0 %v25150_v38, %s21803_s26  ;;  %19384 = vmatprep.subr.bf16.mxu0 %v19383_v14 }
 0x34c   : > { %18527 = vmatpush3.msk.msra.mxu1 %vm526_vm1, %v11323_v53  ;;  %19386 = vmatpush1.bf16.msra.mxu0 %v19385_v17  ;;  %v25174_v35 = vpop.permute.xlu1 %21144 }
 0x34d   : > { %v21147_v30 = vunpack.i.h.bf16 %v25174_v35  ;;  %v21146_v40 = vunpack.i.l.bf16 %v25174_v35  ;;  %v25178_v41 = vpop.permute.xlu0 %21139  ;;  %19415 = vmatprep.subr.bf16.mxu1 %v21735_v1  ;;  %18529 = vmatmul.mubr.msk.f32.vlgmr.msra.gmra.mrb[0].mxu1 %vm522_vm2, %v25169_v36 }
 0x34e   : > { %v21142_v54 = vunpack.i.h.bf16 %v25178_v41  ;;  %v21141_v22 = vunpack.i.l.bf16 %v25178_v41  ;;  %12086 = vrot.lane.b32.xlu1 %v25186_v31, %s21799_s21  ;;  %18537 = vmatprep.mubr.msk.f32.mxu1 %vm21737_vm0, %v21736_v2  ;;  %v25424_v41 = vld [vmem:[%s27905_s1 + $0xf8] sm:$0x7] }
 0x34f   : > { %v11515_v45 = vsel %vm11509_vm9, %v21146_v40, %v21147_v30  ;;  %12088 = vrot.lane.b32.xlu0 %v25113_v23, %s21799_s21 }
 0x350   : > { %v11512_v18 = vsel %vm11509_vm9, %v21141_v22, %v21142_v54  ;;  %v10722_v16 = vpop.permute.xlu1 %10721 }
 0x351   : > { %v10724_v20 = vpop.permute.xlu0 %10723  ;;  %v19416_v44 = vpack.c.bf16 %v11515_v45, %v11512_v18 }
 0x352   : > { %v10736_v39 = vsel %vm10729_vm4, %v10722_v16, %v10724_v20  ;;  %21294 = vrot.lane.b32.xlu1 %v25192_v50, %s21800_s27  ;;  %v10737_v12 = vsel %vm10729_vm4, %v10724_v20, %v24956_v15  ;;  %vm13069_vm4 = vcmask 498688  }
 0x353   : > { %21289 = vrot.lane.b32.xlu0 %v25119_v4, %s21800_s27  ;;  %16911 = vmatprep.subr.msk.mxu0 %vm526_vm1, %v10737_v12 }
 0x354   : > { %19417 = vmatpush3.bf16.msra.mxu1 %v19416_v44  ;;  %16912 = vmatpush1.msk.msra.mxu0 %vm526_vm1, %v10736_v39  ;;  %v21155_v59 = vpop.permute.xlu1 %21154 }
 0x355   : > { %v21157_v37 = vunpack.i.h.bf16 %v21155_v59  ;;  %v21156_v55 = vunpack.i.l.bf16 %v21155_v59  ;;  %v21150_v29 = vpop.permute.xlu0 %21149  ;;  %18535 = vmatprep.subr.mxu1 %v21736_v2  ;;  %16913 = vmatmul.mubr.msk.f32.vlgmr.msra.gmra.mrb[0].mxu0 %vm522_vm2, %v24965_v27 }
 0x356   : > { %v21152_v48 = vunpack.i.h.bf16 %v21150_v29  ;;  %v21151_v52 = vunpack.i.l.bf16 %v21150_v29  ;;  %12872 = vrot.lane.b32.xlu1 %v24941_v61, %s21803_s26  ;;  %11013 = vmatprep.mubr.f32.mxu0 %v21736_v2 }
 0x357   : > { %12870 = vrot.lane.b32.xlu0 %v25144_v28, %s21803_s26 }
 0x358   : > { %v10928_v15 = vsel %vm10924_vm6, %v21157_v37, %v21152_v48  ;;  %v10925_v5 = vsel %vm10924_vm6, %v21156_v55, %v21151_v52  ;;  %v11508_v25 = vpop.permute.xlu1 %11507  ;;  %v10926_v58 = vsel %vm10924_vm6, %v21151_v52, %v21081_v51  ;;  %v10929_v27 = vsel %vm10924_vm6, %v21152_v48, %v21086_v7 }
 0x359   : > { %v25229_v13 = vpop.permute.xlu0 %11505  ;;  %v19390_v49 = vpack.c.bf16 %v10929_v27, %v10926_v58  ;;  %v19392_v63 = vpack.c.bf16 %v10928_v15, %v10925_v5 }
 0x35a   : > { %v11518_v26 = vsel %vm11509_vm9, %v25229_v13, %v11508_v25  ;;  %21304 = vrot.lane.b32.xlu1 %v25140_v0, %s21804_s30 }
 0x35b   : > { %21299 = vrot.lane.b32.xlu0 %v25150_v38, %s21804_s30  ;;  %19391 = vmatprep.subr.bf16.mxu0 %v19390_v49 }
 0x35c   : > { %18536 = vmatpush3.msk.msra.mxu1 %vm526_vm1, %v11518_v26  ;;  %19393 = vmatpush1.bf16.msra.mxu0 %v19392_v63  ;;  %v25243_v6 = vpop.permute.xlu1 %21164 }
 0x35d   : > { %v21167_v7 = vunpack.i.h.bf16 %v25243_v6  ;;  %v21166_v51 = vunpack.i.l.bf16 %v25243_v6  ;;  %v25247_v47 = vpop.permute.xlu0 %21159  ;;  %19422 = vmatprep.subr.bf16.mxu1 %v21735_v1  ;;  %18538 = vmatmul.mubr.msk.f32.vlgmr.msra.gmra.mrb[0].mxu1 %vm522_vm2, %v25238_v60 }
 0x35e   : > { %v21162_v32 = vunpack.i.h.bf16 %v25247_v47  ;;  %v21161_v42 = vunpack.i.l.bf16 %v25247_v47  ;;  %12281 = vrot.lane.b32.xlu1 %v25186_v31, %s21800_s27  ;;  %18546 = vmatprep.mubr.msk.f32.mxu1 %vm21737_vm0, %v21736_v2 }
 0x35f   : > { %v11710_v14 = vsel %vm11704_vm10, %v21166_v51, %v21167_v7  ;;  %12283 = vrot.lane.b32.xlu0 %v25113_v23, %s21800_s27  ;;  %s21805_s27 = smov 60  }
 0x360   : > { %v11707_v17 = vsel %vm11704_vm10, %v21161_v42, %v21162_v32  ;;  %v10917_v53 = vpop.permute.xlu1 %10916 }
 0x361   : > { %v10919_v30 = vpop.permute.xlu0 %10918  ;;  %v19423_v54 = vpack.c.bf16 %v11710_v14, %v11707_v17 }
 0x362   : > { %v10931_v33 = vsel %vm10924_vm6, %v10917_v53, %v10919_v30  ;;  %21314 = vrot.lane.b32.xlu1 %v25192_v50, %s21801_s22  ;;  %v10932_v46 = vsel %vm10924_vm6, %v10919_v30, %v25018_v11  ;;  %vm13264_vm6 = vcmask 490496  }
 0x363   : > { %21309 = vrot.lane.b32.xlu0 %v25119_v4, %s21801_s22  ;;  %16917 = vmatprep.subr.msk.mxu0 %vm526_vm1, %v10932_v46 }
 0x364   : > { %19424 = vmatpush3.bf16.msra.mxu1 %v19423_v54  ;;  %16918 = vmatpush1.msk.msra.mxu0 %vm526_vm1, %v10931_v33  ;;  %v21175_v45 = vpop.permute.xlu1 %21174 }
 0x365   : > { %v21177_v18 = vunpack.i.h.bf16 %v21175_v45  ;;  %v21176_v16 = vunpack.i.l.bf16 %v21175_v45  ;;  %v21170_v20 = vpop.permute.xlu0 %21169  ;;  %18544 = vmatprep.subr.mxu1 %v21736_v2  ;;  %16919 = vmatmul.mubr.msk.f32.vlgmr.msra.gmra.mrb[0].mxu0 %vm522_vm2, %v25027_v19 }
 0x366   : > { %v21172_v44 = vunpack.i.h.bf16 %v21170_v20  ;;  %v21171_v39 = vunpack.i.l.bf16 %v21170_v20  ;;  %13067 = vrot.lane.b32.xlu1 %v24941_v61, %s21804_s30  ;;  %11208 = vmatprep.mubr.f32.mxu0 %v21736_v2 }
 0x367   : > { %13065 = vrot.lane.b32.xlu0 %v25144_v28, %s21804_s30 }
 0x368   : > { %v11123_v11 = vsel %vm11119_vm7, %v21177_v18, %v21172_v44  ;;  %v11120_v12 = vsel %vm11119_vm7, %v21176_v16, %v21171_v39  ;;  %v11703_v59 = vpop.permute.xlu1 %11702  ;;  %v11121_v37 = vsel %vm11119_vm7, %v21171_v39, %v21101_v62  ;;  %v11124_v19 = vsel %vm11119_vm7, %v21172_v44, %v21106_v34 }
 0x369   : > { %v25291_v55 = vpop.permute.xlu0 %11700  ;;  %v19397_v29 = vpack.c.bf16 %v11124_v19, %v11121_v37  ;;  %v19399_v48 = vpack.c.bf16 %v11123_v11, %v11120_v12 }
 0x36a   : > { %v11713_v52 = vsel %vm11704_vm10, %v25291_v55, %v11703_v59  ;;  %21324 = vrot.lane.b32.xlu1 %v25140_v0, %s21805_s27 }
 0x36b   : > { %21319 = vrot.lane.b32.xlu0 %v25150_v38, %s21805_s27  ;;  %19398 = vmatprep.subr.bf16.mxu0 %v19397_v29 }
 0x36c   : > { %18545 = vmatpush3.msk.msra.mxu1 %vm526_vm1, %v11713_v52  ;;  %19400 = vmatpush1.bf16.msra.mxu0 %v19399_v48  ;;  %v25305_v10 = vpop.permute.xlu1 %21184 }
 0x36d   : > { %v21187_v34 = vunpack.i.h.bf16 %v25305_v10  ;;  %v21186_v62 = vunpack.i.l.bf16 %v25305_v10  ;;  %v25309_v0 = vpop.permute.xlu0 %21179  ;;  %19429 = vmatprep.subr.bf16.mxu1 %v21735_v1  ;;  %18547 = vmatmul.mubr.msk.f32.vlgmr.msra.gmra.mrb[0].mxu1 %vm522_vm2, %v25300_v57 }
 0x36e   : > { %v21182_v38 = vunpack.i.h.bf16 %v25309_v0  ;;  %v21181_v15 = vunpack.i.l.bf16 %v25309_v0  ;;  %12476 = vrot.lane.b32.xlu1 %v25186_v31, %s21801_s22  ;;  %18555 = vmatprep.mubr.msk.f32.mxu1 %vm21737_vm0, %v21736_v2 }
 0x36f   : > { %v11905_v5 = vsel %vm11899_vm11, %v21186_v62, %v21187_v34  ;;  %12478 = vrot.lane.b32.xlu0 %v25113_v23, %s21801_s22  ;;  %s16509_s22 = scalar_lea.sflag [#allocation4], %s460_s0 }
 0x370   : > { %v11902_v25 = vsel %vm11899_vm11, %v21181_v15, %v21182_v38  ;;  %v11112_v58 = vpop.permute.xlu1 %11111 }
 0x371   : > { %v11114_v27 = vpop.permute.xlu0 %11113  ;;  %v19430_v49 = vpack.c.bf16 %v11905_v5, %v11902_v25 }
 0x372   : > { %v11126_v63 = vsel %vm11119_vm7, %v11112_v58, %v11114_v27  ;;  %21334 = vrot.lane.b32.xlu1 %v25192_v50, %s21802_s29  ;;  %v11127_v26 = vsel %vm11119_vm7, %v11114_v27, %v25080_v8  ;;  %vm13479_vm7 = vcmask 1043456  }
 0x373   : > { %21329 = vrot.lane.b32.xlu0 %v25119_v4, %s21802_s29  ;;  %16923 = vmatprep.subr.msk.mxu0 %vm526_vm1, %v11127_v26 }
 0x374   : > { %19431 = vmatpush3.bf16.msra.mxu1 %v19430_v49  ;;  %16924 = vmatpush1.msk.msra.mxu0 %vm526_vm1, %v11126_v63  ;;  %v21195_v7 = vpop.permute.xlu1 %21194 }
 0x375   : > { %v21197_v32 = vunpack.i.h.bf16 %v21195_v7  ;;  %v21196_v14 = vunpack.i.l.bf16 %v21195_v7  ;;  %v21190_v17 = vpop.permute.xlu0 %21189  ;;  %18553 = vmatprep.subr.mxu1 %v21736_v2  ;;  %16925 = vmatmul.mubr.msk.f32.vlgmr.msra.gmra.mrb[0].mxu0 %vm522_vm2, %v25089_v56 }
 0x376   : > { %v21192_v53 = vunpack.i.h.bf16 %v21190_v17  ;;  %v21191_v30 = vunpack.i.l.bf16 %v21190_v17  ;;  %13262 = vrot.lane.b32.xlu1 %v24941_v61, %s21805_s27  ;;  %11403 = vmatprep.mubr.f32.mxu0 %v21736_v2 }
 0x377   : > { %13260 = vrot.lane.b32.xlu0 %v25144_v28, %s21805_s27 }
 0x378   : > { %v11318_v8 = vsel %vm11314_vm8, %v21197_v32, %v21192_v53  ;;  %v11315_v54 = vsel %vm11314_vm8, %v21196_v14, %v21191_v30  ;;  %v11898_v33 = vpop.permute.xlu1 %11897  ;;  %v11316_v46 = vsel %vm11314_vm8, %v21191_v30, %v21121_v9  ;;  %v11319_v56 = vsel %vm11314_vm8, %v21192_v53, %v21126_v24 }
 0x379   : > { %v25353_v45 = vpop.permute.xlu0 %11895  ;;  %v19404_v61 = vpack.c.bf16 %v11319_v56, %v11316_v46  ;;  %v19406_v18 = vpack.c.bf16 %v11318_v8, %v11315_v54 }
 0x37a   : > { %v11908_v28 = vsel %vm11899_vm11, %v25353_v45, %v11898_v33  ;;  %12671 = vrot.lane.b32.xlu1 %v25186_v31, %s21802_s29 }
 0x37b   : > { %12673 = vrot.lane.b32.xlu0 %v25113_v23, %s21802_s29  ;;  %19405 = vmatprep.subr.bf16.mxu0 %v19404_v61 }
 0x37c   : > { %18554 = vmatpush3.msk.msra.mxu1 %vm526_vm1, %v11908_v28  ;;  %19407 = vmatpush1.bf16.msra.mxu0 %v19406_v18  ;;  %v25367_v21 = vpop.permute.xlu1 %21204 }
 0x37d   : > { %v21207_v24 = vunpack.i.h.bf16 %v25367_v21  ;;  %v21206_v9 = vunpack.i.l.bf16 %v25367_v21  ;;  %v25371_v16 = vpop.permute.xlu0 %21199  ;;  %19436 = vmatprep.subr.bf16.mxu1 %v21735_v1  ;;  %18556 = vmatmul.mubr.msk.f32.vlgmr.msra.gmra.mrb[0].mxu1 %vm522_vm2, %v25362_v43 }
 0x37e   : > { %v21202_v20 = vunpack.i.h.bf16 %v25371_v16  ;;  %v21201_v44 = vunpack.i.l.bf16 %v25371_v16  ;;  %21344 = vrot.lane.b32.xlu1 %v25192_v50, %s21803_s26  ;;  %18564 = vmatprep.mubr.msk.f32.mxu1 %vm21737_vm0, %v21736_v2 }
 0x37f   : > { %v12100_v39 = vsel %vm12094_vm12, %v21206_v9, %v21207_v24  ;;  %21339 = vrot.lane.b32.xlu0 %v25119_v4, %s21803_s26 }
 0x380   : > { %v12097_v11 = vsel %vm12094_vm12, %v21201_v44, %v21202_v20  ;;  %v11307_v12 = vpop.permute.xlu1 %11306 }
 0x381   : > { %v11309_v59 = vpop.permute.xlu0 %11308  ;;  %v19437_v37 = vpack.c.bf16 %v12100_v39, %v12097_v11 }
 0x382   : > { %v11321_v19 = vsel %vm11314_vm8, %v11307_v12, %v11309_v59  ;;  %12866 = vrot.lane.b32.xlu1 %v25186_v31, %s21803_s26  ;;  %v11322_v29 = vsel %vm11314_vm8, %v11309_v59, %v25160_v3  ;;  %vm21806_vm8 = vmmov 1  }
 0x383   : > { %12868 = vrot.lane.b32.xlu0 %v25113_v23, %s21803_s26  ;;  %16929 = vmatprep.subr.msk.mxu0 %vm526_vm1, %v11322_v29  ;;  %s17331_s26 = sshll.u32 %s21916_s5, 4  ;;  %s21816_s5 = smov [#allocation3]  }
 0x384   : > { %19438 = vmatpush3.bf16.msra.mxu1 %v19437_v37  ;;  %16930 = vmatpush1.msk.msra.mxu0 %vm526_vm1, %v11321_v19  ;;  %v21215_v48 = vpop.permute.xlu1 %21214  ;;  %v25480_v19 = vld [vmem:[%s27905_s1 + $0xfc] sm:$0x7]  ;;  %s27833_s21 = scalar_lea.hbm %s27889_s14, %s17331_s26  ;;  %s21675_s29 = sshll.u32 %s21816_s5, 4  ;;  %s21676_s29 = int_to_ptr.vmem [resolvable:$false] %s21675_s29 }
 0x385   : > { %v21217_v52 = vunpack.i.h.bf16 %v21215_v48  ;;  %v21216_v34 = vunpack.i.l.bf16 %v21215_v48  ;;  %v21210_v38 = vpop.permute.xlu0 %21209  ;;  %18562 = vmatprep.subr.mxu1 %v21736_v2  ;;  %16931 = vmatmul.mubr.msk.f32.vlgmr.msra.gmra.mrb[0].mxu0 %vm522_vm2, %v25169_v36 }
 0x386   : > { %v21212_v5 = vunpack.i.h.bf16 %v21210_v38  ;;  %v21211_v25 = vunpack.i.l.bf16 %v21210_v38  ;;  %21354 = vrot.lane.b32.xlu1 %v25192_v50, %s21804_s30  ;;  %11598 = vmatprep.mubr.f32.mxu0 %v21736_v2 }
 0x387   : > { %21349 = vrot.lane.b32.xlu0 %v25119_v4, %s21804_s30 }
 0x388   : > { %v11513_v3 = vsel %vm11509_vm9, %v21217_v52, %v21212_v5  ;;  %v11510_v58 = vsel %vm11509_vm9, %v21216_v34, %v21211_v25  ;;  %v12093_v27 = vpop.permute.xlu1 %12092  ;;  %v11511_v49 = vsel %vm11509_vm9, %v21211_v25, %v21141_v22  ;;  %v11514_v36 = vsel %vm11509_vm9, %v21212_v5, %v21146_v40 }
 0x389   : > { %v25415_v63 = vpop.permute.xlu0 %12090  ;;  %v19411_v26 = vpack.c.bf16 %v11514_v36, %v11511_v49  ;;  %v19413_v7 = vpack.c.bf16 %v11513_v3, %v11510_v58 }
 0x38a   : > { %v12103_v32 = vsel %vm12094_vm12, %v25415_v63, %v12093_v27  ;;  %13061 = vrot.lane.b32.xlu1 %v25186_v31, %s21804_s30 }
 0x38b   : > { %13063 = vrot.lane.b32.xlu0 %v25113_v23, %s21804_s30  ;;  %19412 = vmatprep.subr.bf16.mxu0 %v19411_v26  ;;  %s461_s30 = scalar_lea.vmem [#allocation3], %s460_s0 }
 0x38c   : > { %18563 = vmatpush3.msk.msra.mxu1 %vm526_vm1, %v12103_v32  ;;  %19414 = vmatpush1.bf16.msra.mxu0 %v19413_v7  ;;  %v25429_v35 = vpop.permute.xlu1 %21224 }
 0x38d   : > { %v21227_v40 = vunpack.i.h.bf16 %v25429_v35  ;;  %v21226_v22 = vunpack.i.l.bf16 %v25429_v35  ;;  %v25433_v14 = vpop.permute.xlu0 %21219  ;;  %19443 = vmatprep.subr.bf16.mxu1 %v21735_v1  ;;  %18565 = vmatmul.mubr.msk.f32.vlgmr.msra.gmra.mrb[0].mxu1 %vm522_vm2, %v25424_v41 }
 0x38e   : > { %v21222_v17 = vunpack.i.h.bf16 %v25433_v14  ;;  %v21221_v53 = vunpack.i.l.bf16 %v25433_v14  ;;  %21364 = vrot.lane.b32.xlu1 %v25192_v50, %s21805_s27  ;;  %18573 = vmatprep.mubr.msk.f32.mxu1 %vm21737_vm0, %v21736_v2 }
 0x38f   : > { %v12295_v30 = vsel %vm12289_vm13, %v21226_v22, %v21227_v40  ;;  %21359 = vrot.lane.b32.xlu0 %v25119_v4, %s21805_s27 }
 0x390   : > { %v12292_v8 = vsel %vm12289_vm13, %v21221_v53, %v21222_v17  ;;  %v11502_v54 = vpop.permute.xlu1 %11501 }
 0x391   : > { %v11504_v33 = vpop.permute.xlu0 %11503  ;;  %v19444_v46 = vpack.c.bf16 %v12295_v30, %v12292_v8 }
 0x392   : > { %v11516_v56 = vsel %vm11509_vm9, %v11502_v54, %v11504_v33  ;;  %v11517_v50 = vsel %vm11509_vm9, %v11504_v33, %v25229_v13  ;;  %13256 = vrot.lane.b32.xlu1 %v25186_v31, %s21805_s27  ;;  %vm25773_vm9 = vmpackc.low %vm13479_vm7, %vm21806_vm8 }
 0x393   : > { %13258 = vrot.lane.b32.xlu0 %v25113_v23, %s21805_s27  ;;  %16935 = vmatprep.subr.msk.mxu0 %vm526_vm1, %v11517_v50 }
 0x394   : > { %19445 = vmatpush3.bf16.msra.mxu1 %v19444_v46  ;;  %16936 = vmatpush1.msk.msra.mxu0 %vm526_vm1, %v11516_v56  ;;  %v21235_v4 = vpop.permute.xlu1 %21234  ;;  %v25526_v56 = vld [vmem:[%s27905_s1 + $0x100] sm:$0x7] }
 0x395   : > { %v21237_v61 = vunpack.i.h.bf16 %v21235_v4  ;;  %v21236_v18 = vunpack.i.l.bf16 %v21235_v4  ;;  %v21230_v28 = vpop.permute.xlu0 %21229  ;;  %18571 = vmatprep.subr.mxu1 %v21736_v2  ;;  %16937 = vmatmul.mubr.msk.f32.vlgmr.msra.gmra.mrb[0].mxu0 %vm522_vm2, %v25238_v60 }
 0x396   : > { %v21232_v13 = vunpack.i.h.bf16 %v21230_v28  ;;  %v21231_v24 = vunpack.i.l.bf16 %v21230_v28  ;;  %11793 = vmatprep.mubr.f32.mxu0 %v21736_v2 }
 0x398   : > { %v11708_v23 = vsel %vm11704_vm10, %v21237_v61, %v21232_v13  ;;  %v11705_v31 = vsel %vm11704_vm10, %v21236_v18, %v21231_v24  ;;  %v12288_v20 = vpop.permute.xlu1 %12287  ;;  %v11706_v39 = vsel %vm11704_vm10, %v21231_v24, %v21161_v42  ;;  %v11709_v11 = vsel %vm11704_vm10, %v21232_v13, %v21166_v51 }
 0x399   : > { %v25473_v12 = vpop.permute.xlu0 %12285  ;;  %v19418_v60 = vpack.c.bf16 %v11709_v11, %v11706_v39  ;;  %v19420_v59 = vpack.c.bf16 %v11708_v23, %v11705_v31 }
 0x39a   : > { %v12298_v37 = vsel %vm12289_vm13, %v25473_v12, %v12288_v20 }
 0x39b   : > { %19419 = vmatprep.subr.bf16.mxu0 %v19418_v60  ;;  %18572 = vmatpush3.msk.msra.mxu1 %vm526_vm1, %v12298_v37 }
 0x39c   : > { %19421 = vmatpush1.bf16.msra.mxu0 %v19420_v59  ;;  %v25483_v6 = vpop.permute.xlu1 %21244  ;;  %19450 = vmatprep.subr.bf16.mxu1 %v21735_v1 }
 0x39d   : > { %v21247_v51 = vunpack.i.h.bf16 %v25483_v6  ;;  %v21246_v47 = vunpack.i.l.bf16 %v25483_v6  ;;  %v25488_v42 = vpop.permute.xlu0 %21239  ;;  %18574 = vmatmul.mubr.msk.f32.vlgmr.msra.gmra.mrb[0].mxu1 %vm522_vm2, %v25480_v19 }
 0x39e   : > { %v21242_v29 = vunpack.i.h.bf16 %v25488_v42  ;;  %v21241_v48 = vunpack.i.l.bf16 %v25488_v42  ;;  %18582 = vmatprep.mubr.msk.f32.mxu1 %vm21737_vm0, %v21736_v2 }
 0x39f   : > { %v12490_v52 = vsel %vm12484_vm14, %v21246_v47, %v21247_v51 }
 0x3a0   : > { %v12487_v34 = vsel %vm12484_vm14, %v21241_v48, %v21242_v29  ;;  %v11697_v38 = vpop.permute.xlu1 %11696 }
 0x3a1   : > { %v11699_v5 = vpop.permute.xlu0 %11698  ;;  %v19451_v25 = vpack.c.bf16 %v12490_v52, %v12487_v34 }
 0x3a2   : > { %v11711_v3 = vsel %vm11704_vm10, %v11697_v38, %v11699_v5  ;;  %v11712_v58 = vsel %vm11704_vm10, %v11699_v5, %v25291_v55 }
 0x3a3   : > { %16941 = vmatprep.subr.msk.mxu0 %vm526_vm1, %v11712_v58  ;;  %19452 = vmatpush3.bf16.msra.mxu1 %v19451_v25 }
 0x3a4   : > { %16942 = vmatpush1.msk.msra.mxu0 %vm526_vm1, %v11711_v3  ;;  %v21255_v27 = vpop.permute.xlu1 %21254  ;;  %18580 = vmatprep.subr.mxu1 %v21736_v2  ;;  %v25572_v3 = vld [vmem:[%s27905_s1 + $0x104] sm:$0x7] }
 0x3a5   : > { %v21257_v49 = vunpack.i.h.bf16 %v21255_v27  ;;  %v21256_v36 = vunpack.i.l.bf16 %v21255_v27  ;;  %v21250_v26 = vpop.permute.xlu0 %21249  ;;  %16943 = vmatmul.mubr.msk.f32.vlgmr.msra.gmra.mrb[0].mxu0 %vm522_vm2, %v25300_v57 }
 0x3a6   : > { %v21252_v7 = vunpack.i.h.bf16 %v21250_v26  ;;  %v21251_v32 = vunpack.i.l.bf16 %v21250_v26  ;;  %11988 = vmatprep.mubr.f32.mxu0 %v21736_v2 }
 0x3a8   : > { %v11903_v55 = vsel %vm11899_vm11, %v21257_v49, %v21252_v7  ;;  %v11900_v40 = vsel %vm11899_vm11, %v21256_v36, %v21251_v32  ;;  %v12483_v17 = vpop.permute.xlu1 %12482  ;;  %v11901_v30 = vsel %vm11899_vm11, %v21251_v32, %v21181_v15  ;;  %v11904_v8 = vsel %vm11899_vm11, %v21252_v7, %v21186_v62 }
 0x3a9   : > { %v25519_v54 = vpop.permute.xlu0 %12480  ;;  %v19425_v57 = vpack.c.bf16 %v11904_v8, %v11901_v30  ;;  %v19427_v33 = vpack.c.bf16 %v11903_v55, %v11900_v40 }
 0x3aa   : > { %v12493_v46 = vsel %vm12484_vm14, %v25519_v54, %v12483_v17 }
 0x3ab   : > { %19426 = vmatprep.subr.bf16.mxu0 %v19425_v57  ;;  %18581 = vmatpush3.msk.msra.mxu1 %vm526_vm1, %v12493_v46 }
 0x3ac   : > { %19428 = vmatpush1.bf16.msra.mxu0 %v19427_v33  ;;  %v25529_v10 = vpop.permute.xlu1 %21264  ;;  %19457 = vmatprep.subr.bf16.mxu1 %v21735_v1 }
 0x3ad   : > { %v21267_v62 = vunpack.i.h.bf16 %v25529_v10  ;;  %v21266_v0 = vunpack.i.l.bf16 %v25529_v10  ;;  %v25534_v15 = vpop.permute.xlu0 %21259  ;;  %18583 = vmatmul.mubr.msk.f32.vlgmr.msra.gmra.mrb[0].mxu1 %vm522_vm2, %v25526_v56  ;;  %v13468_v10 = vld [vmem:[%s27906_s2 + $0x110] sm:$0xff] }
 0x3ae   : > { %v21262_v50 = vunpack.i.h.bf16 %v25534_v15  ;;  %v21261_v4 = vunpack.i.l.bf16 %v25534_v15  ;;  %18591 = vmatprep.mubr.msk.f32.mxu1 %vm21737_vm0, %v21736_v2 }
 0x3af   : > { %v12685_v61 = vsel %vm12679_vm15, %v21266_v0, %v21267_v62 }
 0x3b0   : > { %v12682_v18 = vsel %vm12679_vm15, %v21261_v4, %v21262_v50  ;;  %v11892_v28 = vpop.permute.xlu1 %11891 }
 0x3b1   : > { %v11894_v13 = vpop.permute.xlu0 %11893  ;;  %v19458_v24 = vpack.c.bf16 %v12685_v61, %v12682_v18 }
 0x3b2   : > { %v11906_v23 = vsel %vm11899_vm11, %v11892_v28, %v11894_v13  ;;  %v11907_v31 = vsel %vm11899_vm11, %v11894_v13, %v25353_v45 }
 0x3b3   : > { %16947 = vmatprep.subr.msk.mxu0 %vm526_vm1, %v11907_v31  ;;  %19459 = vmatpush3.bf16.msra.mxu1 %v19458_v24 }
 0x3b4   : > { %16948 = vmatpush1.msk.msra.mxu0 %vm526_vm1, %v11906_v23  ;;  %v21275_v20 = vpop.permute.xlu1 %21274  ;;  %18589 = vmatprep.subr.mxu1 %v21736_v2  ;;  %v25618_v23 = vld [vmem:[%s27905_s1 + $0x108] sm:$0x7] }
 0x3b5   : > { %v21277_v39 = vunpack.i.h.bf16 %v21275_v20  ;;  %v21276_v11 = vunpack.i.l.bf16 %v21275_v20  ;;  %v21270_v60 = vpop.permute.xlu0 %21269  ;;  %16949 = vmatmul.mubr.msk.f32.vlgmr.msra.gmra.mrb[0].mxu0 %vm522_vm2, %v25362_v43 }
 0x3b6   : > { %v21272_v59 = vunpack.i.h.bf16 %v21270_v60  ;;  %v21271_v37 = vunpack.i.l.bf16 %v21270_v60  ;;  %12183 = vmatprep.mubr.f32.mxu0 %v21736_v2 }
 0x3b8   : > { %v12098_v45 = vsel %vm12094_vm12, %v21277_v39, %v21272_v59  ;;  %v12095_v51 = vsel %vm12094_vm12, %v21276_v11, %v21271_v37  ;;  %v12678_v29 = vpop.permute.xlu1 %12677  ;;  %v12096_v52 = vsel %vm12094_vm12, %v21271_v37, %v21201_v44  ;;  %v12099_v34 = vsel %vm12094_vm12, %v21272_v59, %v21206_v9 }
 0x3b9   : > { %v25565_v38 = vpop.permute.xlu0 %12675  ;;  %v19432_v43 = vpack.c.bf16 %v12099_v34, %v12096_v52  ;;  %v19434_v5 = vpack.c.bf16 %v12098_v45, %v12095_v51 }
 0x3ba   : > { %v12688_v25 = vsel %vm12679_vm15, %v25565_v38, %v12678_v29 }
 0x3bb   : > { %19433 = vmatprep.subr.bf16.mxu0 %v19432_v43  ;;  %18590 = vmatpush3.msk.msra.mxu1 %vm526_vm1, %v12688_v25 }
 0x3bc   : > { %19435 = vmatpush1.bf16.msra.mxu0 %v19434_v5  ;;  %v25575_v21 = vpop.permute.xlu1 %21284  ;;  %19464 = vmatprep.subr.bf16.mxu1 %v21735_v1 }
 0x3bd   : > { %v21287_v9 = vunpack.i.h.bf16 %v25575_v21  ;;  %v21286_v16 = vunpack.i.l.bf16 %v25575_v21  ;;  %v25580_v44 = vpop.permute.xlu0 %21279  ;;  %18592 = vmatmul.mubr.msk.f32.vlgmr.msra.gmra.mrb[0].mxu1 %vm522_vm2, %v25572_v3 }
 0x3be   : > { %v21282_v58 = vunpack.i.h.bf16 %v25580_v44  ;;  %v21281_v27 = vunpack.i.l.bf16 %v25580_v44  ;;  %18600 = vmatprep.mubr.msk.f32.mxu1 %vm21737_vm0, %v21736_v2  ;;  %v13475_v44 = vld [vmem:[%s27906_s2 + $0x148] sm:$0xf] }
 0x3bf   : > { %v12880_v49 = vsel %vm12874_vm3, %v21286_v16, %v21287_v9 }
 0x3c0   : > { %v12877_v36 = vsel %vm12874_vm3, %v21281_v27, %v21282_v58  ;;  %v12087_v26 = vpop.permute.xlu1 %12086 }
 0x3c1   : > { %v12089_v7 = vpop.permute.xlu0 %12088  ;;  %v19465_v32 = vpack.c.bf16 %v12880_v49, %v12877_v36 }
 0x3c2   : > { %v12101_v55 = vsel %vm12094_vm12, %v12087_v26, %v12089_v7  ;;  %v12102_v40 = vsel %vm12094_vm12, %v12089_v7, %v25415_v63 }
 0x3c3   : > { %16953 = vmatprep.subr.msk.mxu0 %vm526_vm1, %v12102_v40  ;;  %19466 = vmatpush3.bf16.msra.mxu1 %v19465_v32 }
 0x3c4   : > { %16954 = vmatpush1.msk.msra.mxu0 %vm526_vm1, %v12101_v55  ;;  %v21295_v17 = vpop.permute.xlu1 %21294  ;;  %18598 = vmatprep.subr.mxu1 %v21736_v2  ;;  %v25664_v55 = vld [vmem:[%s27905_s1 + $0x10c] sm:$0x7] }
 0x3c5   : > { %v21297_v30 = vunpack.i.h.bf16 %v21295_v17  ;;  %v21296_v8 = vunpack.i.l.bf16 %v21295_v17  ;;  %v21290_v57 = vpop.permute.xlu0 %21289  ;;  %16955 = vmatmul.mubr.msk.f32.vlgmr.msra.gmra.mrb[0].mxu0 %vm522_vm2, %v25424_v41 }
 0x3c6   : > { %v21292_v33 = vunpack.i.h.bf16 %v21290_v57  ;;  %v21291_v46 = vunpack.i.l.bf16 %v21290_v57  ;;  %12378 = vmatprep.mubr.f32.mxu0 %v21736_v2 }
 0x3c8   : > { %v12293_v63 = vsel %vm12289_vm13, %v21297_v30, %v21292_v33  ;;  %v12290_v62 = vsel %vm12289_vm13, %v21296_v8, %v21291_v46  ;;  %v12873_v50 = vpop.permute.xlu1 %12872  ;;  %v12291_v61 = vsel %vm12289_vm13, %v21291_v46, %v21221_v53  ;;  %v12294_v18 = vsel %vm12289_vm13, %v21292_v33, %v21226_v22 }
 0x3c9   : > { %v25611_v28 = vpop.permute.xlu0 %12870  ;;  %v19439_v41 = vpack.c.bf16 %v12294_v18, %v12291_v61  ;;  %v19441_v13 = vpack.c.bf16 %v12293_v63, %v12290_v62 }
 0x3ca   : > { %v12883_v24 = vsel %vm12874_vm3, %v25611_v28, %v12873_v50 }
 0x3cb   : > { %19440 = vmatprep.subr.bf16.mxu0 %v19439_v41  ;;  %18599 = vmatpush3.msk.msra.mxu1 %vm526_vm1, %v12883_v24 }
 0x3cc   : > { %19442 = vmatpush1.bf16.msra.mxu0 %v19441_v13  ;;  %v25621_v35 = vpop.permute.xlu1 %21304  ;;  %19471 = vmatprep.subr.bf16.mxu1 %v21735_v1 }
 0x3cd   : > { %v21307_v22 = vunpack.i.h.bf16 %v25621_v35  ;;  %v21306_v14 = vunpack.i.l.bf16 %v25621_v35  ;;  %v25626_v53 = vpop.permute.xlu0 %21299  ;;  %18601 = vmatmul.mubr.msk.f32.vlgmr.msra.gmra.mrb[0].mxu1 %vm522_vm2, %v25618_v23 }
 0x3ce   : > { %v21302_v31 = vunpack.i.h.bf16 %v25626_v53  ;;  %v21301_v20 = vunpack.i.l.bf16 %v25626_v53  ;;  %18609 = vmatprep.mubr.msk.f32.mxu1 %vm21737_vm0, %v21736_v2 }
 0x3cf   : > { %v13075_v39 = vsel %vm13069_vm4, %v21306_v14, %v21307_v22  ;;  %v13467_v22 = vld [vmem:[%s27906_s2 + $0x108] sm:$0xff] }
 0x3d0   : > { %v13072_v11 = vsel %vm13069_vm4, %v21301_v20, %v21302_v31  ;;  %v12282_v60 = vpop.permute.xlu1 %12281 }
 0x3d1   : > { %v12284_v59 = vpop.permute.xlu0 %12283  ;;  %v19472_v37 = vpack.c.bf16 %v13075_v39, %v13072_v11 }
 0x3d2   : > { %v12296_v45 = vsel %vm12289_vm13, %v12282_v60, %v12284_v59  ;;  %v12297_v51 = vsel %vm12289_vm13, %v12284_v59, %v25473_v12 }
 0x3d3   : > { %16959 = vmatprep.subr.msk.mxu0 %vm526_vm1, %v12297_v51  ;;  %19473 = vmatpush3.bf16.msra.mxu1 %v19472_v37  ;;  %v25714_v51 = vld [vmem:[%s27905_s1 + $0x110] sm:$0x7]  ;;  %s27913_s1 = smov 126  }
 0x3d4   : > { %16960 = vmatpush1.msk.msra.mxu0 %vm526_vm1, %v12296_v45  ;;  %v21315_v29 = vpop.permute.xlu1 %21314  ;;  %18607 = vmatprep.subr.mxu1 %v21736_v2 }
 0x3d5   : > { %v21317_v52 = vunpack.i.h.bf16 %v21315_v29  ;;  %v21316_v34 = vunpack.i.l.bf16 %v21315_v29  ;;  %v21310_v43 = vpop.permute.xlu0 %21309  ;;  %16961 = vmatmul.mubr.msk.f32.vlgmr.msra.gmra.mrb[0].mxu0 %vm522_vm2, %v25480_v19 }
 0x3d6   : > { %v21312_v5 = vunpack.i.h.bf16 %v21310_v43  ;;  %v21311_v25 = vunpack.i.l.bf16 %v21310_v43  ;;  %12573 = vmatprep.mubr.f32.mxu0 %v21736_v2 }
 0x3d8   : > { %v12488_v12 = vsel %vm12484_vm14, %v21317_v52, %v21312_v5  ;;  %v12485_v9 = vsel %vm12484_vm14, %v21316_v34, %v21311_v25  ;;  %v13068_v58 = vpop.permute.xlu1 %13067  ;;  %v12486_v49 = vsel %vm12484_vm14, %v21311_v25, %v21241_v48  ;;  %v12489_v36 = vsel %vm12484_vm14, %v21312_v5, %v21246_v47  ;;  %v13470_v25 = vld [vmem:[%s27906_s2 + $0x120] sm:$0xff] }
 0x3d9   : > { %v25657_v26 = vpop.permute.xlu0 %13065  ;;  %v19446_v19 = vpack.c.bf16 %v12489_v36, %v12486_v49  ;;  %v19448_v7 = vpack.c.bf16 %v12488_v12, %v12485_v9  ;;  %v13471_v12 = vld [vmem:[%s27906_s2 + $0x128] sm:$0xff] }
 0x3da   : > { %v13078_v32 = vsel %vm13069_vm4, %v25657_v26, %v13068_v58 }
 0x3db   : > { %19447 = vmatprep.subr.bf16.mxu0 %v19446_v19  ;;  %18608 = vmatpush3.msk.msra.mxu1 %vm526_vm1, %v13078_v32  ;;  %v13472_v32 = vld [vmem:[%s27906_s2 + $0x130] sm:$0xff] }
 0x3dc   : > { %19449 = vmatpush1.bf16.msra.mxu0 %v19448_v7  ;;  %v25667_v6 = vpop.permute.xlu1 %21324  ;;  %19478 = vmatprep.subr.bf16.mxu1 %v21735_v1  ;;  %v19520_v7 = vpack.c.bf16 %v13471_v12, %v13470_v25  ;;  %v13435_v12 = vld [vmem:[%s27906_s2 + $0x8] sm:$0xff] }
 0x3dd   : > { %v21327_v47 = vunpack.i.h.bf16 %v25667_v6  ;;  %v21326_v42 = vunpack.i.l.bf16 %v25667_v6  ;;  %v25672_v48 = vpop.permute.xlu0 %21319  ;;  %18610 = vmatmul.mubr.msk.f32.vlgmr.msra.gmra.mrb[0].mxu1 %vm522_vm2, %v25664_v55  ;;  %v13451_v6 = vld [vmem:[%s27906_s2 + $0x88] sm:$0xff] }
 0x3de   : > { %v21322_v40 = vunpack.i.h.bf16 %v25672_v48  ;;  %v21321_v17 = vunpack.i.l.bf16 %v25672_v48  ;;  %18618 = vmatprep.mubr.msk.f32.mxu1 %vm21737_vm0, %v21736_v2 }
 0x3df   : > { %v13270_v30 = vsel %vm13264_vm6, %v21326_v42, %v21327_v47  ;;  %v13473_v47 = vld [vmem:[%s27906_s2 + $0x138] sm:$0xff] }
 0x3e0   : > { %v13267_v8 = vsel %vm13264_vm6, %v21321_v17, %v21322_v40  ;;  %v12477_v57 = vpop.permute.xlu1 %12476 }
 0x3e1   : > { %v12479_v33 = vpop.permute.xlu0 %12478  ;;  %v19479_v46 = vpack.c.bf16 %v13270_v30, %v13267_v8 }
 0x3e2   : > { %v12491_v63 = vsel %vm12484_vm14, %v12477_v57, %v12479_v33  ;;  %v12492_v62 = vsel %vm12484_vm14, %v12479_v33, %v25519_v54  ;;  %v13466_v54 = vld [vmem:[%s27906_s2 + $0x100] sm:$0xff] }
 0x3e3   : > { %16965 = vmatprep.subr.msk.mxu0 %vm526_vm1, %v12492_v62  ;;  %19480 = vmatpush3.bf16.msra.mxu1 %v19479_v46  ;;  %v19514_v52 = vpack.c.bf16 %v13467_v22, %v13466_v54  ;;  %v19523_v62 = vpack.c.bf16 %v13473_v47, %v13472_v32 }
 0x3e4   : > { %16966 = vmatpush1.msk.msra.mxu0 %vm526_vm1, %v12491_v63  ;;  %v21335_v50 = vpop.permute.xlu1 %21334  ;;  %18616 = vmatprep.subr.mxu1 %v21736_v2 }
 0x3e5   : > { %v21337_v61 = vunpack.i.h.bf16 %v21335_v50  ;;  %v21336_v18 = vunpack.i.l.bf16 %v21335_v50  ;;  %v21330_v41 = vpop.permute.xlu0 %21329  ;;  %16967 = vmatmul.mubr.msk.f32.vlgmr.msra.gmra.mrb[0].mxu0 %vm522_vm2, %v25526_v56  ;;  %v13474_v50 = vld [vmem:[%s27906_s2 + $0x140] sm:$0xff] }
 0x3e6   : > { %v21332_v13 = vunpack.i.h.bf16 %v21330_v41  ;;  %v21331_v24 = vunpack.i.l.bf16 %v21330_v41  ;;  %12768 = vmatprep.mubr.f32.mxu0 %v21736_v2 }
 0x3e8   : > { %v12683_v31 = vsel %vm12679_vm15, %v21337_v61, %v21332_v13  ;;  %v12680_v39 = vsel %vm12679_vm15, %v21336_v18, %v21331_v24  ;;  %v13263_v11 = vpop.permute.xlu1 %13262  ;;  %v12681_v56 = vsel %vm12679_vm15, %v21331_v24, %v21261_v4  ;;  %v12684_v60 = vsel %vm12679_vm15, %v21332_v13, %v21266_v0  ;;  %v13469_v0 = vld [vmem:[%s27906_s2 + $0x118] sm:$0xff] }
 0x3e9   : > { %v25709_v59 = vpop.permute.xlu0 %13260  ;;  %v19453_v37 = vpack.c.bf16 %v12684_v60, %v12681_v56  ;;  %v19455_v45 = vpack.c.bf16 %v12683_v31, %v12680_v39  ;;  %v19517_v5 = vpack.c.bf16 %v13469_v0, %v13468_v10  ;;  %v19526_v24 = vpack.c.bf16 %v13475_v44, %v13474_v50  ;;  %v13441_v44 = vld [vmem:[%s27906_s2 + $0x38] sm:$0xff] }
 0x3ea   : > { %v13273_v29 = vsel %vm13264_vm6, %v25709_v59, %v13263_v11 }
 0x3eb   : > { %19454 = vmatprep.subr.bf16.mxu0 %v19453_v37  ;;  %18617 = vmatpush3.msk.msra.mxu1 %vm526_vm1, %v13273_v29 }
 0x3ec   : > { %19456 = vmatpush1.bf16.msra.mxu0 %v19455_v45  ;;  %18619 = vmatmul.mubr.msk.f32.vlgmr.msra.gmra.mrb[0].mxu1 %vm522_vm2, %v25714_v51  ;;  %v12672_v15 = vpop.permute.xlu1 %12671 }
 0x3ed   : > { %v12674_v4 = vpop.permute.xlu0 %12673  ;;  %19513 = vmatprep.subr.bf16.mxu1 %v21735_v1  ;;  %18641 = vmatprep.mubr.msk.f32.mxu1 %vm21737_vm0, %v21736_v2 }
 0x3ee   : > { %v12686_v34 = vsel %vm12679_vm15, %v12672_v15, %v12674_v4  ;;  %v12687_v43 = vsel %vm12679_vm15, %v12674_v4, %v25565_v38  ;;  %19515 = vmatpush3.bf16.msra.mxu1 %v19514_v52 }
 0x3ef   : > { %16971 = vmatprep.subr.msk.mxu0 %vm526_vm1, %v12687_v43  ;;  %19516 = vmatprep.subr.bf16.mxu1 %v21735_v1 }
 0x3f0   : > { %16972 = vmatpush1.msk.msra.mxu0 %vm526_vm1, %v12686_v34  ;;  %v21345_v9 = vpop.permute.xlu1 %21344 }
 0x3f1   : > { %v21347_v58 = vunpack.i.h.bf16 %v21345_v9  ;;  %v21346_v49 = vunpack.i.l.bf16 %v21345_v9  ;;  %v21340_v38 = vpop.permute.xlu0 %21339  ;;  %16973 = vmatmul.mubr.msk.f32.vlgmr.msra.gmra.mrb[0].mxu0 %vm522_vm2, %v25572_v3  ;;  %v17013_v9 = vld [vmem:[%s27906_s2 + $0x1d8] sm:$0xff] }
 0x3f2   : > { %v21342_v36 = vunpack.i.h.bf16 %v21340_v38  ;;  %v21341_v19 = vunpack.i.l.bf16 %v21340_v38  ;;  %12963 = vmatprep.mubr.f32.mxu0 %v21736_v2  ;;  %19518 = vmatpush3.bf16.msra.mxu1 %v19517_v5  ;;  %v13452_v38 = vld [vmem:[%s27906_s2 + $0x90] sm:$0xff] }
 0x3f3   : > { %19519 = vmatprep.subr.bf16.mxu1 %v21735_v1 }
 0x3f4   : > { %v12878_v40 = vsel %vm12874_vm3, %v21347_v58, %v21342_v36  ;;  %v12875_v3 = vsel %vm12874_vm3, %v21346_v49, %v21341_v19  ;;  %v12867_v30 = vpop.permute.xlu1 %12866  ;;  %v12876_v8 = vsel %vm12874_vm3, %v21341_v19, %v21281_v27  ;;  %v12879_v57 = vsel %vm12874_vm3, %v21342_v36, %v21286_v16  ;;  %v13453_v36 = vld [vmem:[%s27906_s2 + $0x98] sm:$0xff]  ;;  %v13436_v19 = vld [vmem:[%s27906_s2 + $0x10] sm:$0xff] }
 0x3f5   : > { %v12869_v33 = vpop.permute.xlu0 %12868  ;;  %v19460_v46 = vpack.c.bf16 %v12879_v57, %v12876_v8  ;;  %v19462_v63 = vpack.c.bf16 %v12878_v40, %v12875_v3  ;;  %v19485_v32 = vpack.c.bf16 %v13453_v36, %v13452_v38  ;;  %v13454_v40 = vld [vmem:[%s27906_s2 + $0xa0] sm:$0xff]  ;;  %v13455_v3 = vld [vmem:[%s27906_s2 + $0xa8] sm:$0xff] }
 0x3f6   : > { %19521 = vmatpush3.bf16.msra.mxu1 %v19520_v7  ;;  %v12882_v16 = vsel %vm12874_vm3, %v12869_v33, %v25611_v28  ;;  %v12881_v54 = vsel %vm12874_vm3, %v12867_v30, %v12869_v33  ;;  %v13437_v7 = vld [vmem:[%s27906_s2 + $0x18] sm:$0xff]  ;;  %v19489_v30 = vpack.c.bf16 %v13455_v3, %v13454_v40  ;;  %v13438_v8 = vld [vmem:[%s27906_s2 + $0x20] sm:$0xff]  ;;  %v13439_v57 = vld [vmem:[%s27906_s2 + $0x28] sm:$0xff] }
 0x3f7   : > { %19461 = vmatprep.subr.bf16.mxu0 %v19460_v46  ;;  %19522 = vmatprep.subr.bf16.mxu1 %v21735_v1  ;;  %v19487_v47 = vpack.c.bf16 %v13437_v7, %v13436_v19  ;;  %v19491_v33 = vpack.c.bf16 %v13439_v57, %v13438_v8  ;;  %v13456_v46 = vld [vmem:[%s27906_s2 + $0xb0] sm:$0xff]  ;;  %v17018_v38 = vld [vmem:[%s27906_s2 + $0x200] sm:$0xff]  ;;  %v17019_v36 = vld [vmem:[%s27906_s2 + $0x208] sm:$0xff] }
 0x3f8   : > { %19463 = vmatpush1.bf16.msra.mxu0 %v19462_v63  ;;  %v21355_v21 = vpop.permute.xlu1 %21354  ;;  %v13457_v63 = vld [vmem:[%s27906_s2 + $0xb8] sm:$0xff]  ;;  %v19541_v7 = vpack.c.bf16 %v17019_v36, %v17018_v38  ;;  %v17020_v40 = vld [vmem:[%s27906_s2 + $0x210] sm:$0xff] }
 0x3f9   : > { %v21357_v27 = vunpack.i.h.bf16 %v21355_v21  ;;  %v21356_v61 = vunpack.i.l.bf16 %v21355_v21  ;;  %v21350_v18 = vpop.permute.xlu0 %21349  ;;  %16977 = vmatprep.subr.msk.mxu0 %vm526_vm1, %v12882_v16  ;;  %v19493_v50 = vpack.c.bf16 %v13457_v63, %v13456_v46  ;;  %v13458_v16 = vld [vmem:[%s27906_s2 + $0xc0] sm:$0xff]  ;;  %v17021_v3 = vld [vmem:[%s27906_s2 + $0x218] sm:$0xff]  ;;  %v17004_v57 = vld [vmem:[%s27906_s2 + $0x190] sm:$0xff] }
 0x3fa   : > { %v21352_v41 = vunpack.i.h.bf16 %v21350_v18  ;;  %v21351_v13 = vunpack.i.l.bf16 %v21350_v18  ;;  %19524 = vmatpush3.bf16.msra.mxu1 %v19523_v62  ;;  %v13440_v62 = vld [vmem:[%s27906_s2 + $0x30] sm:$0xff]  ;;  %v19545_v8 = vpack.c.bf16 %v17021_v3, %v17020_v40  ;;  %v17022_v46 = vld [vmem:[%s27906_s2 + $0x220] sm:$0xff]  ;;  %v17023_v63 = vld [vmem:[%s27906_s2 + $0x228] sm:$0xff] }
 0x3fb   : > { %19525 = vmatprep.subr.bf16.mxu1 %v21735_v1  ;;  %v19495_v21 = vpack.c.bf16 %v13441_v44, %v13440_v62  ;;  %v17006_v44 = vld [vmem:[%s27906_s2 + $0x1a0] sm:$0xff]  ;;  %v17065_v40 = vld [vmem:[%s27906_s2 + $0x368] sm:$0xff] }
 0x3fc   : > { %v13073_v28 = vsel %vm13069_vm4, %v21357_v27, %v21352_v41  ;;  %v13070_v31 = vsel %vm13069_vm4, %v21356_v61, %v21351_v13  ;;  %16978 = vmatpush1.msk.msra.mxu0 %vm526_vm1, %v12881_v54  ;;  %v13062_v39 = vpop.permute.xlu1 %13061  ;;  %v13071_v11 = vsel %vm13069_vm4, %v21351_v13, %v21301_v20  ;;  %v13074_v56 = vsel %vm13069_vm4, %v21352_v41, %v21306_v14  ;;  %v13459_v27 = vld [vmem:[%s27906_s2 + $0xc8] sm:$0xff]  ;;  %v13442_v61 = vld [vmem:[%s27906_s2 + $0x40] sm:$0xff]  ;;  %v13461_v54 = vld [vmem:[%s27906_s2 + $0xd8] sm:$0xff] }
 0x3fd   : > { %v13064_v60 = vpop.permute.xlu0 %13063  ;;  %16979 = vmatmul.mubr.msk.f32.vlgmr.msra.gmra.mrb[0].mxu0 %vm522_vm2, %v25618_v23  ;;  %v19467_v37 = vpack.c.bf16 %v13074_v56, %v13071_v11  ;;  %v19469_v45 = vpack.c.bf16 %v13073_v28, %v13070_v31  ;;  %v19497_v18 = vpack.c.bf16 %v13459_v27, %v13458_v16  ;;  %v13443_v41 = vld [vmem:[%s27906_s2 + $0x48] sm:$0xff]  ;;  %v13444_v28 = vld [vmem:[%s27906_s2 + $0x50] sm:$0xff]  ;;  %v13462_v56 = vld [vmem:[%s27906_s2 + $0xe0] sm:$0xff] }
 0x3fe   : > { %13158 = vmatprep.mubr.f32.mxu0 %v21736_v2  ;;  %19528 = vmatpush3.bf16.msk.msra.mxu1 %vm25773_vm9, %v19526_v24  ;;  %v13077_v20 = vsel %vm13069_vm4, %v13064_v60, %v25657_v26  ;;  %v13076_v10 = vsel %vm13069_vm4, %v13062_v39, %v13064_v60  ;;  %v19499_v13 = vpack.c.bf16 %v13443_v41, %v13442_v61  ;;  %v13460_v24 = vld [vmem:[%s27906_s2 + $0xd0] sm:$0xff]  ;;  %v13445_v39 = vld [vmem:[%s27906_s2 + $0x58] sm:$0xff]  ;;  %v13463_v60 = vld [vmem:[%s27906_s2 + $0xe8] sm:$0xff] }
 0x3ff   : > { %19468 = vmatprep.subr.bf16.mxu0 %v19467_v37  ;;  %v19501_v31 = vpack.c.bf16 %v13461_v54, %v13460_v24  ;;  %v19503_v11 = vpack.c.bf16 %v13445_v39, %v13444_v28  ;;  %v13446_v37 = vld [vmem:[%s27906_s2 + $0x60] sm:$0xff]  ;;  %v17024_v16 = vld [vmem:[%s27906_s2 + $0x230] sm:$0xff]  ;;  %v17025_v27 = vld [vmem:[%s27906_s2 + $0x238] sm:$0xff] }
 0x400   : > { %19470 = vmatpush1.bf16.msra.mxu0 %v19469_v45  ;;  %v21365_v53 = vpop.permute.xlu1 %21364  ;;  %v19505_v45 = vpack.c.bf16 %v13463_v60, %v13462_v56  ;;  %v17008_v41 = vld [vmem:[%s27906_s2 + $0x1b0] sm:$0xff]  ;;  %v17026_v24 = vld [vmem:[%s27906_s2 + $0x240] sm:$0xff]  ;;  %v17027_v54 = vld [vmem:[%s27906_s2 + $0x248] sm:$0xff] }
 0x401   : > { %v21367_v35 = vunpack.i.h.bf16 %v21365_v53  ;;  %v21366_v29 = vunpack.i.l.bf16 %v21365_v53  ;;  %v21360_v14 = vpop.permute.xlu0 %21359  ;;  %16983 = vmatprep.subr.msk.mxu0 %vm526_vm1, %v13077_v20  ;;  %v13447_v53 = vld [vmem:[%s27906_s2 + $0x68] sm:$0xff]  ;;  %v17010_v39 = vld [vmem:[%s27906_s2 + $0x1c0] sm:$0xff] }
 0x402   : > { %v21362_v52 = vunpack.i.h.bf16 %v21360_v14  ;;  %v21361_v23 = vunpack.i.l.bf16 %v21360_v14  ;;  %v19507_v20 = vpack.c.bf16 %v13447_v53, %v13446_v37  ;;  %v13448_v14 = vld [vmem:[%s27906_s2 + $0x70] sm:$0xff]  ;;  %v17040_v60 = vld [vmem:[%s27906_s2 + $0x2a0] sm:$0xff]  ;;  %v17041_v37 = vld [vmem:[%s27906_s2 + $0x2a8] sm:$0xff] }
 0x403   : > { %v17029_v53 = vld [vmem:[%s27906_s2 + $0x258] sm:$0xff]  ;;  %v17034_v3 = vld [vmem:[%s27906_s2 + $0x280] sm:$0xff] }
 0x404   : > { %v13268_v0 = vsel %vm13264_vm6, %v21367_v35, %v21362_v52  ;;  %v13265_v15 = vsel %vm13264_vm6, %v21366_v29, %v21361_v23  ;;  %16984 = vmatpush1.msk.msra.mxu0 %vm526_vm1, %v13076_v10  ;;  %v13266_v4 = vsel %vm13264_vm6, %v21361_v23, %v21321_v17  ;;  %v13269_v26 = vsel %vm13264_vm6, %v21362_v52, %v21326_v42  ;;  %v13257_v25 = vpop.permute.xlu1 %13256  ;;  %v13434_v42 = vld [vmem:[%s27906_s2] sm:$0xff]  ;;  %v13464_v35 = vld [vmem:[%s27906_s2 + $0xf0] sm:$0xff]  ;;  %v13465_v29 = vld [vmem:[%s27906_s2 + $0xf8] sm:$0xff] }
 0x405   : > { %v13259_v34 = vpop.permute.xlu0 %13258  ;;  %16985 = vmatmul.mubr.msk.f32.vlgmr.msra.gmra.mrb[0].mxu0 %vm522_vm2, %v25664_v55  ;;  %v19474_v43 = vpack.c.bf16 %v13269_v26, %v13266_v4  ;;  %v19476_v5 = vpack.c.bf16 %v13268_v0, %v13265_v15  ;;  %v13450_v55 = vld [vmem:[%s27906_s2 + $0x80] sm:$0xff]  ;;  %v19483_v58 = vpack.c.bf16 %v13435_v12, %v13434_v42  ;;  %v19509_v52 = vpack.c.bf16 %v13465_v29, %v13464_v35  ;;  %v13449_v23 = vld [vmem:[%s27906_s2 + $0x78] sm:$0xff]  ;;  %v17057_v15 = vld [vmem:[%s27906_s2 + $0x328] sm:$0xff] }
 0x406   : > { %13353 = vmatprep.mubr.f32.mxu0 %v21736_v2  ;;  %v13272_v48 = vsel %vm13264_vm6, %v13259_v34, %v25709_v59  ;;  %v13271_v17 = vsel %vm13264_vm6, %v13257_v25, %v13259_v34  ;;  %v19481_v59 = vpack.c.bf16 %v13451_v6, %v13450_v55  ;;  %v19511_v10 = vpack.c.bf16 %v13449_v23, %v13448_v14  ;;  %v17056_v0 = vld [vmem:[%s27906_s2 + $0x320] sm:$0xff]  ;;  %v16996_v26 = vld [vmem:[%s27906_s2 + $0x150] sm:$0xff]  ;;  %v16997_v34 = vld [vmem:[%s27906_s2 + $0x158] sm:$0xff] }
 0x407   : > { %19475 = vmatprep.subr.bf16.mxu0 %v19474_v43  ;;  %v19577_v4 = vpack.c.bf16 %v17057_v15, %v17056_v0  ;;  %v17014_v43 = vld [vmem:[%s27906_s2 + $0x1e0] sm:$0xff]  ;;  %v19531_v25 = vpack.c.bf16 %v16997_v34, %v16996_v26  ;;  %v16999_v55 = vld [vmem:[%s27906_s2 + $0x168] sm:$0xff]  ;;  %v17016_v42 = vld [vmem:[%s27906_s2 + $0x1f0] sm:$0xff]  ;;  %v19579_v14 = vpack.c.bf16 %v17041_v37, %v17040_v60 }
 0x408   : > { %19477 = vmatpush1.bf16.msra.mxu0 %v19476_v5  ;;  %v17015_v5 = vld [vmem:[%s27906_s2 + $0x1e8] sm:$0xff]  ;;  %v17059_v35 = vld [vmem:[%s27906_s2 + $0x338] sm:$0xff]  ;;  %v17042_v23 = vld [vmem:[%s27906_s2 + $0x2b0] sm:$0xff] }
 0x409   : > { %16989 = vmatprep.subr.msk.mxu0 %vm526_vm1, %v13272_v48  ;;  %v19533_v48 = vpack.c.bf16 %v17015_v5, %v17014_v43  ;;  %v17060_v34 = vld [vmem:[%s27906_s2 + $0x340] sm:$0xff]  ;;  %v17061_v43 = vld [vmem:[%s27906_s2 + $0x348] sm:$0xff]  ;;  %v17070_v37 = vld [vmem:[%s27906_s2 + $0x390] sm:$0xff] }
 0x40c   : > { %16990 = vmatpush1.msk.msra.mxu0 %vm526_vm1, %v13271_v17  ;;  %v16998_v17 = vld [vmem:[%s27906_s2 + $0x160] sm:$0xff] }
 0x40d   : > { %16991 = vmatmul.mubr.msk.f32.vlgmr.msra.gmra.mrb[0].mxu0 %vm522_vm2, %v25714_v51  ;;  %v17012_v51 = vld [vmem:[%s27906_s2 + $0x1d0] sm:$0xff]  ;;  %19482 = vmatprep.subr.bf16.mxu0 %v19481_v59  ;;  %v17017_v59 = vld [vmem:[%s27906_s2 + $0x1f8] sm:$0xff]  ;;  %vm14562_vm2 = vcmask 72704  }
 0x40e   : > { %v19529_v49 = vpack.c.bf16 %v17013_v9, %v17012_v51  ;;  %19484 = vmatpush3.bf16.msra.mxu0 %v19483_v58  ;;  %v19535_v51 = vpack.c.bf16 %v16999_v55, %v16998_v17  ;;  %v19537_v9 = vpack.c.bf16 %v17017_v59, %v17016_v42  ;;  %v17000_v58 = vld [vmem:[%s27906_s2 + $0x170] sm:$0xff]  ;;  %v19585_v55 = vpack.c.bf16 %v17061_v43, %v17060_v34  ;;  %v17044_v42 = vld [vmem:[%s27906_s2 + $0x2c0] sm:$0xff]  ;;  %v17045_v59 = vld [vmem:[%s27906_s2 + $0x2c8] sm:$0xff] }
 0x40f   : > { %19486 = vmatprep.subr.bf16.mxu0 %v19485_v32  ;;  %v17002_v32 = vld [vmem:[%s27906_s2 + $0x180] sm:$0xff]  ;;  %v19587_v38 = vpack.c.bf16 %v17045_v59, %v17044_v42  ;;  %v17079_v43 = vld [vmem:[%s27906_s2 + $0x3d8] sm:$0xff]  ;;  %v21807_v42 = vmov 1   ;;  %v21808_v59 = vmov 0  }
 0x410   : > { %19530 = vmatprep.subr.bf16.mxu1 %v19529_v49  ;;  %v17001_v49 = vld [vmem:[%s27906_s2 + $0x178] sm:$0xff]  ;;  %21369 = vset.pattern.permute.xlu1 %v21807_v42  ;;  %v14020_v42 = vld [vmem:[%s27879_s4 + $0x30] sm:$0xff] }
 0x411   : > { %v19539_v19 = vpack.c.bf16 %v17001_v49, %v17000_v58  ;;  %v17032_v58 = vld [vmem:[%s27906_s2 + $0x270] sm:$0xff]  ;;  %v17033_v49 = vld [vmem:[%s27906_s2 + $0x278] sm:$0xff]  ;;  %21368 = vset.pattern.permute.xlu0 %v21808_v59 }
 0x412   : > { %19488 = vmatpush3.bf16.msra.mxu0 %v19487_v47  ;;  %v17003_v47 = vld [vmem:[%s27906_s2 + $0x188] sm:$0xff] }
 0x413   : > { %19490 = vmatprep.subr.bf16.mxu0 %v19489_v30  ;;  %v19543_v30 = vpack.c.bf16 %v17003_v47, %v17002_v32  ;;  %v19568_v32 = vpack.c.bf16 %v17033_v49, %v17032_v58  ;;  %v17064_v47 = vld [vmem:[%s27906_s2 + $0x360] sm:$0xff] }
 0x416   : > { %19492 = vmatpush3.bf16.msra.mxu0 %v19491_v33  ;;  %v17005_v33 = vld [vmem:[%s27906_s2 + $0x198] sm:$0xff] }
 0x417   : > { %19494 = vmatprep.subr.bf16.mxu0 %v19493_v50  ;;  %v19547_v62 = vpack.c.bf16 %v17005_v33, %v17004_v57  ;;  %v19549_v50 = vpack.c.bf16 %v17023_v63, %v17022_v46  ;;  %v19593_v57 = vpack.c.bf16 %v17065_v40, %v17064_v47  ;;  %v17048_v33 = vld [vmem:[%s27906_s2 + $0x2e0] sm:$0xff]  ;;  %v17049_v46 = vld [vmem:[%s27906_s2 + $0x2e8] sm:$0xff] }
 0x41a   : > { %19496 = vmatpush3.bf16.msra.mxu0 %v19495_v21  ;;  %v17007_v21 = vld [vmem:[%s27906_s2 + $0x1a8] sm:$0xff] }
 0x41b   : > { %19498 = vmatprep.subr.bf16.mxu0 %v19497_v18  ;;  %v19551_v61 = vpack.c.bf16 %v17007_v21, %v17006_v44  ;;  %v19553_v18 = vpack.c.bf16 %v17025_v27, %v17024_v16  ;;  %v17036_v44 = vld [vmem:[%s27906_s2 + $0x290] sm:$0xff]  ;;  %v17037_v21 = vld [vmem:[%s27906_s2 + $0x298] sm:$0xf]  ;;  %v19595_v16 = vpack.c.bf16 %v17049_v46, %v17048_v33  ;;  %v21809_v46 = vmov 2  }
 0x41e   : > { %19500 = vmatpush3.bf16.msra.mxu0 %v19499_v13  ;;  %v17009_v13 = vld [vmem:[%s27906_s2 + $0x1b8] sm:$0xff] }
 0x41f   : > { %19502 = vmatprep.subr.bf16.mxu0 %v19501_v31  ;;  %v19555_v28 = vpack.c.bf16 %v17009_v13, %v17008_v41  ;;  %v19557_v31 = vpack.c.bf16 %v17027_v54, %v17026_v24  ;;  %v19574_v41 = vpack.c.bf16 %v17037_v21, %v17036_v44  ;;  %v17068_v13 = vld [vmem:[%s27906_s2 + $0x380] sm:$0xff]  ;;  %v17069_v24 = vld [vmem:[%s27906_s2 + $0x388] sm:$0xff]  ;;  %v21813_v21 = vmov 5  }
 0x420   : > { %v17072_v54 = vld [vmem:[%s27906_s2 + $0x3a0] sm:$0xff] }
 0x421   : > { %v17212_v44 = vld [vmem:[#allocation2] ss:$0 sm:$0xff] }
 0x422   : > { %19504 = vmatpush3.bf16.msra.mxu0 %v19503_v11  ;;  %v17011_v11 = vld [vmem:[%s27906_s2 + $0x1c8] sm:$0xff] }
 0x423   : > { %19506 = vmatprep.subr.bf16.mxu0 %v19505_v45  ;;  %v19559_v56 = vpack.c.bf16 %v17011_v11, %v17010_v39  ;;  %v17028_v45 = vld [vmem:[%s27906_s2 + $0x250] sm:$0xff]  ;;  %v19601_v39 = vpack.c.bf16 %v17069_v24, %v17068_v13  ;;  %v17052_v11 = vld [vmem:[%s27906_s2 + $0x300] sm:$0xff] }
 0x424   : > { %v14760_v13 = vld [vmem:[%s27883_s8] sm:$0xff] }
 0x426   : > { %19508 = vmatpush3.bf16.msra.mxu0 %v19507_v20  ;;  %v17058_v20 = vld [vmem:[%s27906_s2 + $0x330] sm:$0xff] }
 0x427   : > { %19510 = vmatprep.subr.bf16.mxu0 %v19509_v52  ;;  %v19581_v26 = vpack.c.bf16 %v17059_v35, %v17058_v20  ;;  %v17074_v20 = vld [vmem:[%s27906_s2 + $0x3b0] sm:$0xff]  ;;  %v17075_v35 = vld [vmem:[%s27906_s2 + $0x3b8] sm:$0xff] }
 0x42a   : > { %19512 = vmatpush3.bf16.msra.mxu0 %v19511_v10  ;;  %v17043_v10 = vld [vmem:[%s27906_s2 + $0x2b8] sm:$0xff] }
 0x42b   : > { %19578 = vmatprep.subr.bf16.mxu0 %v19577_v4  ;;  %v19562_v4 = vpack.c.bf16 %v17029_v53, %v17028_v45  ;;  %v19583_v17 = vpack.c.bf16 %v17043_v10, %v17042_v23  ;;  %v17071_v45 = vld [vmem:[%s27906_s2 + $0x398] sm:$0xff]  ;;  %v17054_v23 = vld [vmem:[%s27906_s2 + $0x310] sm:$0xff] }
 0x42c   : > { %v17055_v10 = vld [vmem:[%s27906_s2 + $0x318] sm:$0xff] }
 0x4bf   : > { %v25940_v6 = vpop.f32.mrb[0].mxu1 }
 0x4c0   : > { %v18620_v12 = vpop.f32.mrb[1].mxu1  ;;  %18642 = vmatmul.mubr.msk.f32.vlgmr.msra.gmra.mrb[2].mxu1 %vm10144_vm5, %v25940_v6  ;;  %v13671_v53 = vrot.slane %v25940_v6, 1 }
 0x4c1   : > { %19532 = vmatpush3.bf16.msra.mxu1 %v19531_v25  ;;  %v17030_v25 = vld [vmem:[%s27906_s2 + $0x260] sm:$0xff] }
 0x4c2   : > { %19534 = vmatprep.subr.bf16.mxu1 %v19533_v48  ;;  %v17031_v48 = vld [vmem:[%s27906_s2 + $0x268] sm:$0xff] }
 0x4c3   : > { %v19565_v12 = vpack.c.bf16 %v17031_v48, %v17030_v25  ;;  %v17080_v48 = vld [vmem:[%s27906_s2 + $0x3e0] sm:$0xff] }
 0x4c5   : > { %19536 = vmatpush3.bf16.msra.mxu1 %v19535_v51  ;;  %v17062_v51 = vld [vmem:[%s27906_s2 + $0x350] sm:$0xff] }
 0x4c6   : > { %19538 = vmatprep.subr.bf16.mxu1 %v19537_v9  ;;  %v17063_v9 = vld [vmem:[%s27906_s2 + $0x358] sm:$0xff] }
 0x4c7   : > { %v19589_v36 = vpack.c.bf16 %v17063_v9, %v17062_v51  ;;  %v13433_v51 = vld [vmem:[%s27878_s3] sm:$0x1] }
 0x4c9   : > { %19540 = vmatpush3.bf16.msra.mxu1 %v19539_v19  ;;  %v17046_v19 = vld [vmem:[%s27906_s2 + $0x2d0] sm:$0xff] }
 0x4ca   : > { %19542 = vmatprep.subr.bf16.mxu1 %v19541_v7  ;;  %v17047_v7 = vld [vmem:[%s27906_s2 + $0x2d8] sm:$0xff] }
 0x4cd   : > { %19544 = vmatpush3.bf16.msra.mxu1 %v19543_v30  ;;  %v17035_v30 = vld [vmem:[%s27906_s2 + $0x288] sm:$0xff] }
 0x4ce   : > { %19546 = vmatprep.subr.bf16.mxu1 %v19545_v8  ;;  %v19591_v8 = vpack.c.bf16 %v17047_v7, %v17046_v19  ;;  %v19571_v63 = vpack.c.bf16 %v17035_v30, %v17034_v3  ;;  %v14031_v7 = vlaneseq }
 0x4d0   : > { %v14032_v40 = vshrl.u32 %v14031_v7, 7 }
 0x4d1   : > { %19548 = vmatpush3.bf16.msra.mxu1 %v19547_v62  ;;  %v17066_v62 = vld [vmem:[%s27906_s2 + $0x370] sm:$0xff] }
 0x4d2   : > { %19550 = vmatprep.subr.bf16.mxu1 %v19549_v50  ;;  %v17067_v50 = vld [vmem:[%s27906_s2 + $0x378] sm:$0xff]  ;;  %v14033_v3 = vsub.s32 0, %v14032_v40 }
 0x4d3   : > { %v19597_v27 = vpack.c.bf16 %v17067_v50, %v17066_v62  ;;  %v21811_v62 = vmov 4   ;;  %v21812_v50 = vmov 6  }
 0x4d5   : > { %19552 = vmatpush3.bf16.msra.mxu1 %v19551_v61  ;;  %v17050_v61 = vld [vmem:[%s27906_s2 + $0x2f0] sm:$0xff] }
 0x4d6   : > { %19554 = vmatprep.subr.bf16.mxu1 %v19553_v18  ;;  %v17051_v18 = vld [vmem:[%s27906_s2 + $0x2f8] sm:$0xff] }
 0x4d9   : > { %19556 = vmatpush3.bf16.msra.mxu1 %v19555_v28  ;;  %v17073_v28 = vld [vmem:[%s27906_s2 + $0x3a8] sm:$0xff] }
 0x4da   : > { %19558 = vmatprep.subr.bf16.mxu1 %v19557_v31  ;;  %v19599_v31 = vpack.c.bf16 %v17051_v18, %v17050_v61  ;;  %v19610_v60 = vpack.c.bf16 %v17073_v28, %v17072_v54  ;;  %v21815_v61 = vmov 8   ;;  %v14553_v18 = vld [vmem:[%s27881_s6] sm:$0xff]  ;;  %v14761_v54 = vld [vmem:[%s27883_s8 + $0x8] sm:$0x1] }
 0x4db   : > { %v19631_v28 = vpack.c.bf16 %v14761_v54, %v14760_v13 }
 0x4dd   : > { %19560 = vmatpush3.bf16.msra.mxu1 %v19559_v56  ;;  %v17053_v56 = vld [vmem:[%s27906_s2 + $0x308] sm:$0xff] }
 0x4de   : > { %19561 = vmatprep.subr.bf16.mxu1 %v21735_v1 }
 0x4e0   : > { %v26035_v29 = vpop.f32.mrb[0].mxu0 }
 0x4e1   : > { %v13357_v52 = vpop.f32.mrb[1].mxu0  ;;  %v13669_v5 = vrot.slane %v26035_v29, 1 }
 0x4e2   : > { %v13670_v0 = vrot.slane %v13357_v52, 1  ;;  %v13864_v15 = vrot.slane %v13357_v52, 2  ;;  %13547 = vmatprep.mubr.f32.mxu0 %v13357_v52  ;;  %v19605_v52 = vpack.c.bf16 %v17071_v45, %v17070_v37  ;;  %v14015_v37 = vld [vmem:[%s27879_s4 + $0x8] sm:$0xff] }
 0x4e3   : > { %13548 = vmatmul.mubr.f32.vlgmr.msra.gmra.mrb[2].mxu0 %v26035_v29  ;;  %v17085_v45 = vld [vmem:[%s27879_s4 + $0x88] sm:$0xff] }
 0x4e4   : > { %19580 = vmatpush3.bf16.msra.mxu0 %v19579_v14  ;;  %13743 = vmatprep.mubr.f32.mxu1 %v13670_v0  ;;  %v19603_v14 = vpack.c.bf16 %v17053_v56, %v17052_v11  ;;  %v19613_v0 = vpack.c.bf16 %v17075_v35, %v17074_v20  ;;  %v14014_v56 = vld [vmem:[%s27879_s4] sm:$0xff]  ;;  %v17086_v20 = vld [vmem:[%s27879_s4 + $0x90] sm:$0xff]  ;;  %v14017_v35 = vld [vmem:[%s27879_s4 + $0x18] sm:$0xff] }
 0x4e5   : > { %13937 = vmatprep.mubr.f32.mxu0 %v13864_v15  ;;  %13744 = vmatmul.mubr.f32.vlgmr.msra.gmra.mrb[4].mxu1 %v13669_v5  ;;  %v17076_v15 = vld [vmem:[%s27906_s2 + $0x3c0] sm:$0xff]  ;;  %v13863_v5 = vrot.slane %v26035_v29, 2  ;;  %v13865_v29 = vrot.slane %v25940_v6, 2 }
 0x4e6   : > { %19563 = vmatpush3.bf16.msra.mxu1 %v19562_v4  ;;  %19582 = vmatprep.subr.bf16.mxu0 %v19581_v26  ;;  %v17077_v4 = vld [vmem:[%s27906_s2 + $0x3c8] sm:$0xff]  ;;  %v19607_v26 = vpack.c.bf16 %v17055_v10, %v17054_v23  ;;  %v14018_v10 = vld [vmem:[%s27879_s4 + $0x20] sm:$0xff] }
 0x4e7   : > { %19564 = vmatprep.subr.bf16.mxu1 %v21735_v1  ;;  %18664 = vmatprep.mubr.msk.f32.mxu1 %vm21737_vm0, %v21736_v2  ;;  %v19616_v34 = vpack.c.bf16 %v17077_v4, %v17076_v15 }
 0x4e8   : > { %19584 = vmatpush3.bf16.msra.mxu0 %v19583_v17  ;;  %v17081_v17 = vld [vmem:[%s27906_s2 + $0x3e8] sm:$0xf] }
 0x4e9   : > { %19586 = vmatprep.subr.bf16.mxu0 %v19585_v55  ;;  %v19622_v55 = vpack.c.bf16 %v17081_v17, %v17080_v48 }
 0x4ea   : > { %19566 = vmatpush3.bf16.msra.mxu1 %v19565_v12 }
 0x4eb   : > { %19567 = vmatprep.subr.bf16.mxu1 %v21735_v1 }
 0x4ec   : > { %19588 = vmatpush3.bf16.msra.mxu0 %v19587_v38 }
 0x4ed   : > { %19590 = vmatprep.subr.bf16.mxu0 %v19589_v36 }
 0x4ee   : > { %19569 = vmatpush3.bf16.msra.mxu1 %v19568_v32 }
 0x4ef   : > { %19570 = vmatprep.subr.bf16.mxu1 %v21735_v1 }
 0x4f0   : > { %19592 = vmatpush3.bf16.msra.mxu0 %v19591_v8 }
 0x4f1   : > { %19594 = vmatprep.subr.bf16.mxu0 %v19593_v57 }
 0x4f2   : > { %19572 = vmatpush3.bf16.msra.mxu1 %v19571_v63  ;;  %v21810_v63 = vmov 3  }
 0x4f3   : > { %19573 = vmatprep.subr.bf16.mxu1 %v21735_v1 }
 0x4f4   : > { %19596 = vmatpush3.bf16.msra.mxu0 %v19595_v16  ;;  %v21814_v16 = vmov 7  }
 0x4f5   : > { %19598 = vmatprep.subr.bf16.mxu0 %v19597_v27 }
 0x4f6   : > { %19576 = vmatpush3.bf16.msk.msra.mxu1 %vm25773_vm9, %v19574_v41  ;;  %v14554_v41 = vld [vmem:[%s27881_s6 + $0x8] sm:$0x1] }
 0x4f7   : > { %19609 = vmatprep.subr.bf16.mxu1 %v21735_v1  ;;  %v19625_v24 = vpack.c.bf16 %v14554_v41, %v14553_v18  ;;  %v17105_v41 = vld [vmem:[%s27879_s4 + $0x128] sm:$0xff] }
 0x4f8   : > { %19600 = vmatpush3.bf16.msra.mxu0 %v19599_v31  ;;  %v14917_v31 = vld [vmem:[%s27885_s10] sm:$0xff] }
 0x4f9   : > { %18665 = vmatmul.mubr.msk.f32.vlgmr.msra.gmra.mrb[2].mxu1 %vm10144_vm5, %v13671_v53  ;;  %19602 = vmatprep.subr.bf16.mxu0 %v19601_v39  ;;  %v14918_v39 = vld [vmem:[%s27885_s10 + $0x8] sm:$0x1]  ;;  %v14016_v53 = vld [vmem:[%s27879_s4 + $0x10] sm:$0xff] }
 0x4fa   : > { %19611 = vmatpush3.bf16.msra.mxu1 %v19610_v60  ;;  %18687 = vmatprep.mubr.msk.f32.mxu1 %vm21737_vm0, %v21736_v2  ;;  %v17078_v2 = vld [vmem:[%s27906_s2 + $0x3d0] sm:$0xff]  ;;  %vm14611_vm0 = vcmask 1040384   ;;  %v26227_v11 = vpack.c.bf16 %v14918_v39, %v14917_v31  ;;  %v17084_v60 = vld [vmem:[%s27879_s4 + $0x80] sm:$0xff]  ;;  %s16521_s2 = sshll.u32 %s461_s30, 4  ;;  %s27835_s2 = int_to_ptr.vmem [resolvable:$true] %s16521_s2 }
 0x4fb   : > { %19612 = vmatprep.subr.bf16.mxu1 %v21735_v1  ;;  %v19619_v25 = vpack.c.bf16 %v17079_v43, %v17078_v2  ;;  %vm26197_vm1 = vmpackc.low %vm14611_vm0, %vm21806_vm8  ;;  %v14019_v2 = vld [vmem:[%s27879_s4 + $0x28] sm:$0xff]  ;;  %s21671_s19 = scalar_lea.vmem %s27835_s2, 16  ;;  %p21678_p0 = scmp.lt.s32.totalorder %s27835_s2, %s21676_s29 }
 0x4fc   : > { %19604 = vmatpush3.bf16.msra.mxu0 %v19603_v14  ;;  %v17087_v14 = vld [vmem:[%s27879_s4 + $0x98] sm:$0xff]  ;;  %v17089_v43 = vld [vmem:[%s27879_s4 + $0xa8] sm:$0xff]  ;;  %p21672_p11 = scmp.ne.s32.totalorder %s27835_s2, %s21671_s19 }
 0x4fd   : > { %19606 = vmatprep.subr.bf16.mxu0 %v19605_v52 }
 0x4fe   : > { %19614 = vmatpush3.bf16.msra.mxu1 %v19613_v0  ;;  %v17088_v0 = vld [vmem:[%s27879_s4 + $0xa0] sm:$0xff]  ;;  %p21673_p12 = pnand %p21672_p11, %p21933_p5 }
 0x4ff   : > { %19615 = vmatprep.subr.bf16.mxu1 %v21735_v1 }
 0x500   : > { %19608 = vmatpush3.bf16.msra.mxu0 %v19607_v26  ;;  %p21674_p13 = pneg %p21673_p12 }
 0x501   : > { %19627 = vmatprep.subr.msk.bf16.mxu0 %vm26197_vm1, %v19625_v24 }
 0x502   : > { %19617 = vmatpush3.bf16.msra.mxu1 %v19616_v34 }
 0x503   : > { %13938 = vmatmul.mubr.f32.vlgmr.msra.gmra.mrb[4].mxu0 %v13863_v5  ;;  %19618 = vmatprep.subr.bf16.mxu1 %v21735_v1  ;;  %v17100_v5 = vld [vmem:[%s27879_s4 + $0x100] sm:$0xff] }
 0x504   : > { %19630 = vmatpush3.bf16.msk.msra.mxu0 %vm26197_vm1, %v19625_v24  ;;  %v17164_v24 = vld [vmem:[%s27879_s4 + $0x300] sm:$0xff] }
 0x505   : > { %19639 = vmatprep.subr.msk.bf16.mxu0 %vm26197_vm1, %v26227_v11 }
 0x506   : > { %19620 = vmatpush3.bf16.msra.mxu1 %v19619_v25  ;;  %v17116_v25 = vld [vmem:[%s27879_s4 + $0x180] sm:$0xff] }
 0x507   : > { %19621 = vmatprep.subr.bf16.mxu1 %v21735_v1 }
 0x50a   : > { %19624 = vmatpush3.bf16.msk.msra.mxu1 %vm25773_vm9, %v19622_v55 }
 0x50b   : > { %19633 = vmatprep.subr.msk.bf16.mxu1 %vm26197_vm1, %v19631_v28 }
 0x50d   : > { %18688 = vmatmul.mubr.msk.f32.vlgmr.msra.gmra.mrb[2].mxu1 %vm10144_vm5, %v13865_v29 }
 0x50e   : > { %19636 = vmatpush3.bf16.msk.msra.mxu1 %vm26197_vm1, %v19631_v28  ;;  %v17133_v28 = vld [vmem:[%s27879_s4 + $0x208] sm:$0xff] }
 0x5b6   : > { %v17642_v12 = vpop.f32.mrb[2].mxu0 }
 0x5b7   : > { %v17643_v9 = vpop.f32.mrb[3].mxu0 }
 0x5b8   : > { %v17644_v58 = vadd.f32 %v17643_v9, %v17642_v12  ;;  %v17688_v49 = vpop.f32.mrb[4].mxu1  ;;  %v17117_v12 = vld [vmem:[%s27879_s4 + $0x188] sm:$0xff] }
 0x5b9   : > { %v17689_v1 = vpop.f32.mrb[5].mxu1 }
 0x5ba   : > { %v19867_v38 = vadd.f32 %v17644_v58, %v13433_v51  ;;  %v17690_v22 = vadd.f32 %v17689_v1, %v17688_v49  ;;  %v17090_v58 = vld [vmem:[%s27879_s4 + $0xb0] sm:$0xff] }
 0x5bc   : > { %v19868_v36 = vadd.f32 %v19867_v38, %v17690_v22  ;;  %v17102_v22 = vld [vmem:[%s27879_s4 + $0x110] sm:$0xff] }
 0x5d6   : > { %v17734_v19 = vpop.f32.mrb[4].mxu0 }
 0x5d7   : > { %v17735_v6 = vpop.f32.mrb[5].mxu0 }
 0x5d8   : > { %v17736_v32 = vadd.f32 %v17735_v6, %v17734_v19  ;;  %v17103_v6 = vld [vmem:[%s27879_s4 + $0x118] sm:$0xff] }
 0x5da   : > { %v19869_v47 = vadd.f32 %v19868_v36, %v17736_v32  ;;  %v17118_v36 = vld [vmem:[%s27879_s4 + $0x190] sm:$0xff] }
 0x5e0   : > { %v14009_v30 = vpop.f32.mrb[2].mxu1 }
 0x5e1   : > { %v19870_v8 = vadd.f32 %v19869_v47, %v14009_v30  ;;  %v18689_v57 = vpop.f32.mrb[3].mxu1  ;;  %v17119_v47 = vld [vmem:[%s27879_s4 + $0x198] sm:$0xff] }
 0x5e3   : > { %v14034_v33 = vrot.slane %v19870_v8, %v14033_v3  ;;  %v17104_v3 = vld [vmem:[%s27879_s4 + $0x120] sm:$0xff] }
 0x5e5   : > { %14089 = vperm.xlu1 %21369, %v14034_v33   ;;  %14036 = vperm.xlu0 %21368, %v14034_v33  }
 0x5e9   : > { %21370 = vset.pattern.permute.xlu1 %v21809_v46  ;;  %21371 = vset.pattern.permute.xlu0 %v21810_v63 }
 0x5ea   : > { %14142 = vperm.xlu1 %21370, %v14034_v33   ;;  %14195 = vperm.xlu0 %21371, %v14034_v33  }
 0x5ee   : > { %21372 = vset.pattern.permute.xlu1 %v21811_v62  ;;  %21374 = vset.pattern.permute.xlu0 %v21812_v50  ;;  %v17120_v62 = vld [vmem:[%s27879_s4 + $0x1a0] sm:$0xff] }
 0x5ef   : > { %14248 = vperm.xlu1 %21372, %v14034_v33   ;;  %14354 = vperm.xlu0 %21374, %v14034_v33  }
 0x5f3   : > { %21373 = vset.pattern.permute.xlu1 %v21813_v21  ;;  %21377 = vset.pattern.permute.xlu0 %v21808_v59  ;;  %v17101_v59 = vld [vmem:[%s27879_s4 + $0x108] sm:$0xff] }
 0x5f4   : > { %14301 = vperm.xlu1 %21373, %v14034_v33   ;;  %14518 = vperm.xlu0 %21377, %v17212_v44   ;;  %v17132_v44 = vld [vmem:[%s27879_s4 + $0x200] sm:$0xff] }
 0x5f8   : > { %21375 = vset.pattern.permute.xlu1 %v21814_v16 }
 0x5f9   : > { %14407 = vperm.xlu1 %21375, %v14034_v33  }
 0x5fd   : > { %21376 = vset.pattern.permute.xlu1 %v21815_v61 }
 0x5fe   : > { %14460 = vperm.xlu1 %21376, %v14034_v33  }
 0x664   : > { %v26256_v52 = vpop.permute.xlu1 %14089  ;;  %v26258_v23 = vpop.permute.xlu0 %14036 }
 0x665   : > { %v14039_v15 = vmul.f32 %v26258_v23, %v14014_v56  ;;  %v14092_v4 = vmul.f32 %v17084_v60, %v26256_v52  ;;  %v14040_v26 = vmul.f32 %v26258_v23, %v14015_v37  ;;  %v14093_v34 = vmul.f32 %v17085_v45, %v26256_v52  ;;  %v17121_v56 = vld [vmem:[%s27879_s4 + $0x1a8] sm:$0xff]  ;;  %v17134_v45 = vld [vmem:[%s27879_s4 + $0x210] sm:$0xff] }
 0x666   : > { %v14041_v48 = vmul.f32 %v26258_v23, %v14016_v53  ;;  %v14094_v17 = vmul.f32 %v17086_v20, %v26256_v52  ;;  %v14042_v55 = vmul.f32 %v26258_v23, %v14017_v35  ;;  %v14095_v29 = vmul.f32 %v17087_v14, %v26256_v52  ;;  %v17165_v60 = vld [vmem:[%s27879_s4 + $0x308] sm:$0xff] }
 0x667   : > { %v14043_v51 = vmul.f32 %v26258_v23, %v14018_v10  ;;  %v14096_v9 = vmul.f32 %v17088_v0, %v26256_v52  ;;  %v14108_v49 = vadd.f32 %v14092_v4, %v14039_v15  ;;  %v14109_v1 = vadd.f32 %v14093_v34, %v14040_v26  ;;  %v17166_v4 = vld [vmem:[%s27879_s4 + $0x310] sm:$0xff]  ;;  %v17135_v26 = vld [vmem:[%s27879_s4 + $0x218] sm:$0xff] }
 0x668   : > { %v14110_v38 = vadd.f32 %v14094_v17, %v14041_v48  ;;  %v14111_v19 = vadd.f32 %v14095_v29, %v14042_v55  ;;  %v14044_v30 = vmul.f32 %v26258_v23, %v14019_v2  ;;  %v14097_v8 = vmul.f32 %v17089_v43, %v26256_v52  ;;  %v17167_v48 = vld [vmem:[%s27879_s4 + $0x318] sm:$0xff]  ;;  %v17136_v17 = vld [vmem:[%s27879_s4 + $0x220] sm:$0xff] }
 0x669   : > { %v26309_v7 = vpop.permute.xlu1 %14142  ;;  %v26311_v32 = vpop.permute.xlu0 %14195  ;;  %v14112_v40 = vadd.f32 %v14096_v9, %v14043_v51  ;;  %v26322_v57 = vmul.f32 %v26258_v23, %v14020_v42  ;;  %v26331_v50 = vmul.f32 %v17090_v58, %v26256_v52  ;;  %v17148_v29 = vld [vmem:[%s27879_s4 + $0x280] sm:$0xff]  ;;  %v17137_v58 = vld [vmem:[%s27879_s4 + $0x228] sm:$0xff] }
 0x66a   : > { %v14145_v33 = vmul.f32 %v17100_v5, %v26309_v7  ;;  %v14198_v46 = vmul.f32 %v17116_v25, %v26311_v32  ;;  %v14146_v63 = vmul.f32 %v17101_v59, %v26309_v7  ;;  %v14199_v21 = vmul.f32 %v17117_v12, %v26311_v32  ;;  %v17168_v9 = vld [vmem:[%s27879_s4 + $0x320] sm:$0xff] }
 0x66b   : > { %v14147_v16 = vmul.f32 %v17102_v22, %v26309_v7  ;;  %v14200_v61 = vmul.f32 %v17118_v36, %v26311_v32  ;;  %v14148_v18 = vmul.f32 %v17103_v6, %v26309_v7  ;;  %v14201_v31 = vmul.f32 %v17119_v47, %v26311_v32  ;;  %v17150_v22 = vld [vmem:[%s27879_s4 + $0x290] sm:$0xff]  ;;  %v17151_v6 = vld [vmem:[%s27879_s4 + $0x298] sm:$0xff] }
 0x66c   : > { %v14161_v13 = vadd.f32 %v14145_v33, %v14108_v49  ;;  %v14162_v54 = vadd.f32 %v14146_v63, %v14109_v1  ;;  %v14149_v39 = vmul.f32 %v17104_v3, %v26309_v7  ;;  %v14202_v20 = vmul.f32 %v17120_v62, %v26311_v32  ;;  %v17153_v33 = vld [vmem:[%s27879_s4 + $0x2a8] sm:$0xff] }
 0x66d   : > { %v14163_v37 = vadd.f32 %v14147_v16, %v14110_v38  ;;  %v14164_v53 = vadd.f32 %v14148_v18, %v14111_v19  ;;  %v14113_v35 = vadd.f32 %v14097_v8, %v14044_v30  ;;  %v14150_v2 = vmul.f32 %v17105_v41, %v26309_v7  ;;  %v17149_v38 = vld [vmem:[%s27879_s4 + $0x288] sm:$0xff]  ;;  %v17152_v8 = vld [vmem:[%s27879_s4 + $0x2a0] sm:$0xff] }
 0x66e   : > { %v26361_v14 = vpop.permute.xlu1 %14248  ;;  %v26363_v10 = vpop.permute.xlu0 %14354  ;;  %v14214_v0 = vadd.f32 %v14198_v46, %v14161_v13  ;;  %v14215_v15 = vadd.f32 %v14199_v21, %v14162_v54  ;;  %v14165_v34 = vadd.f32 %v14149_v39, %v14112_v40  ;;  %v14203_v55 = vmul.f32 %v17121_v56, %v26311_v32  ;;  %v17169_v13 = vld [vmem:[%s27879_s4 + $0x328] sm:$0xff]  ;;  %v17180_v54 = vld [vmem:[%s27879_s4 + $0x380] sm:$0xff] }
 0x66f   : > { %v14251_v43 = vmul.f32 %v17132_v44, %v26361_v14  ;;  %v14357_v5 = vmul.f32 %v17164_v24, %v26363_v10  ;;  %v14252_v25 = vmul.f32 %v17133_v28, %v26361_v14  ;;  %v14358_v42 = vmul.f32 %v17165_v60, %v26363_v10  ;;  %v17106_v24 = vld [vmem:[%s27879_s4 + $0x130] sm:$0xff] }
 0x670   : > { %v14216_v59 = vadd.f32 %v14200_v61, %v14163_v37  ;;  %v14253_v12 = vmul.f32 %v17134_v45, %v26361_v14  ;;  %v14217_v51 = vadd.f32 %v14201_v31, %v14164_v53  ;;  %v14359_v36 = vmul.f32 %v17166_v4, %v26363_v10  ;;  %v17181_v45 = vld [vmem:[%s27879_s4 + $0x388] sm:$0xff]  ;;  %v17184_v4 = vld [vmem:[%s27879_s4 + $0x3a0] sm:$0xff] }
 0x671   : > { %v14267_v49 = vadd.f32 %v14251_v43, %v14214_v0  ;;  %v14268_v1 = vadd.f32 %v14252_v25, %v14215_v15  ;;  %v14254_v19 = vmul.f32 %v17135_v26, %v26361_v14  ;;  %v14360_v40 = vmul.f32 %v17167_v48, %v26363_v10  ;;  %v17183_v0 = vld [vmem:[%s27879_s4 + $0x398] sm:$0xff] }
 0x672   : > { %v14269_v47 = vadd.f32 %v14253_v12, %v14216_v59  ;;  %v14218_v3 = vadd.f32 %v14202_v20, %v14165_v34  ;;  %v14255_v30 = vmul.f32 %v17136_v17, %v26361_v14  ;;  %v14361_v62 = vmul.f32 %v17168_v9, %v26363_v10  ;;  %v17182_v20 = vld [vmem:[%s27879_s4 + $0x390] sm:$0xff] }
 0x673   : > { %v26412_v46 = vpop.permute.xlu1 %14301  ;;  %v14270_v63 = vadd.f32 %v14254_v19, %v14217_v51  ;;  %v14166_v44 = vadd.f32 %v14150_v2, %v14113_v35  ;;  %v14256_v21 = vmul.f32 %v17137_v58, %v26361_v14  ;;  %v14362_v34 = vmul.f32 %v17169_v13, %v26363_v10  ;;  %v17196_v58 = vld [vmem:[%s27879_s4 + $0x400] sm:$0xff]  ;;  %v17197_v19 = vld [vmem:[%s27879_s4 + $0x408] sm:$0xff] }
 0x674   : > { %v14304_v16 = vmul.f32 %v17148_v29, %v26412_v46  ;;  %v14305_v61 = vmul.f32 %v17149_v38, %v26412_v46  ;;  %v14306_v18 = vmul.f32 %v17150_v22, %v26412_v46  ;;  %v14307_v41 = vmul.f32 %v17151_v6, %v26412_v46  ;;  %v17185_v29 = vld [vmem:[%s27879_s4 + $0x3a8] sm:$0xff]  ;;  %v17122_v38 = vld [vmem:[%s27879_s4 + $0x1b0] sm:$0xff] }
 0x675   : > { %v14271_v28 = vadd.f32 %v14255_v30, %v14218_v3  ;;  %v14308_v31 = vmul.f32 %v17152_v8, %v26412_v46  ;;  %v14219_v39 = vadd.f32 %v14203_v55, %v14166_v44  ;;  %v14309_v56 = vmul.f32 %v17153_v33, %v26412_v46  ;;  %v17138_v22 = vld [vmem:[%s27879_s4 + $0x230] sm:$0xff]  ;;  %v17200_v3 = vld [vmem:[%s27879_s4 + $0x420] sm:$0xff]  ;;  %v17201_v8 = vld [vmem:[%s27879_s4 + $0x428] sm:$0xff] }
 0x676   : > { %v14320_v60 = vadd.f32 %v14304_v16, %v14267_v49  ;;  %v14321_v37 = vadd.f32 %v14305_v61, %v14268_v1  ;;  %v14322_v53 = vadd.f32 %v14306_v18, %v14269_v47  ;;  %v14323_v35 = vadd.f32 %v14307_v41, %v14270_v63  ;;  %v17198_v6 = vld [vmem:[%s27879_s4 + $0x410] sm:$0xff] }
 0x677   : > { %v14324_v15 = vadd.f32 %v14308_v31, %v14271_v28  ;;  %v14272_v26 = vadd.f32 %v14256_v21, %v14219_v39  ;;  %v14151_v2 = vmul.f32 %v17106_v24, %v26309_v7  ;;  %v14114_v1 = vadd.f32 %v26331_v50, %v26322_v57  ;;  %v17199_v57 = vld [vmem:[%s27879_s4 + $0x418] sm:$0xff]  ;;  %v17154_v24 = vld [vmem:[%s27879_s4 + $0x2b0] sm:$0xff]  ;;  %v26496_v28 = vpop.permute.xlu0 %14518 }
 0x678   : > { %v26445_v43 = vpop.permute.xlu1 %14407  ;;  %v14373_v25 = vadd.f32 %v14357_v5, %v14320_v60  ;;  %v14374_v48 = vadd.f32 %v14358_v42, %v14321_v37  ;;  %v14375_v17 = vadd.f32 %v14359_v36, %v14322_v53  ;;  %v14376_v55 = vadd.f32 %v14360_v40, %v14323_v35  ;;  %v17170_v35 = vld [vmem:[%s27879_s4 + $0x330] sm:$0xff] }
 0x679   : > { %v14410_v59 = vmul.f32 %v17180_v54, %v26445_v43  ;;  %v14411_v12 = vmul.f32 %v17181_v45, %v26445_v43  ;;  %v14412_v51 = vmul.f32 %v17182_v20, %v26445_v43  ;;  %v14413_v9 = vmul.f32 %v17183_v0, %v26445_v43  ;;  %v14021_v54 = vld [vmem:[%s27879_s4 + $0x38] sm:$0xff] }
 0x67a   : > { %v14377_v5 = vadd.f32 %v14361_v62, %v14324_v15  ;;  %v14414_v42 = vmul.f32 %v17184_v4, %v26445_v43  ;;  %v14325_v49 = vadd.f32 %v14309_v56, %v14272_v26  ;;  %v14415_v50 = vmul.f32 %v17185_v29, %v26445_v43  ;;  %v17091_v29 = vld [vmem:[%s27879_s4 + $0xb8] sm:$0xff] }
 0x67b   : > { %v14426_v36 = vadd.f32 %v14410_v59, %v14373_v25  ;;  %v14427_v47 = vadd.f32 %v14411_v12, %v14374_v48  ;;  %v14428_v40 = vadd.f32 %v14412_v51, %v14375_v17  ;;  %v14167_v33 = vadd.f32 %v14151_v2, %v14114_v1  ;;  %v17186_v25 = vld [vmem:[%s27879_s4 + $0x3b0] sm:$0xff] }
 0x67c   : > { %v14378_v30 = vadd.f32 %v14362_v34, %v14325_v49  ;;  %v14429_v62 = vadd.f32 %v14413_v9, %v14376_v55  ;;  %v14430_v44 = vadd.f32 %v14414_v42, %v14377_v5  ;;  %v14204_v21 = vmul.f32 %v17122_v38, %v26311_v32  ;;  %v17107_v5 = vld [vmem:[%s27879_s4 + $0x138] sm:$0xff] }
 0x67d   : > { %v26482_v63 = vpop.permute.xlu1 %14460  ;;  %v14257_v16 = vmul.f32 %v17138_v22, %v26361_v14  ;;  %v14310_v4 = vmul.f32 %v17154_v24, %v26412_v46  ;;  %v14046_v26 = vmul.f32 %v26258_v23, %v14021_v54  ;;  %v14363_v55 = vmul.f32 %v17170_v35, %v26363_v10  ;;  %v17203_v24 = vld [vmem:[%s27879_s4 + $0x438] sm:$0xff] }
 0x67e   : > { %v14463_v61 = vmul.f32 %v17196_v58, %v26482_v63  ;;  %v14464_v18 = vmul.f32 %v17197_v19, %v26482_v63  ;;  %v14465_v41 = vmul.f32 %v17198_v6, %v26482_v63  ;;  %v14466_v13 = vmul.f32 %v17199_v57, %v26482_v63  ;;  %v17202_v58 = vld [vmem:[%s27879_s4 + $0x430] sm:$0xff]  ;;  %v17139_v19 = vld [vmem:[%s27879_s4 + $0x238] sm:$0xff]  ;;  %v14022_v6 = vld [vmem:[%s27879_s4 + $0x40] sm:$0xff] }
 0x67f   : > { %v14467_v31 = vmul.f32 %v17200_v3, %v26482_v63  ;;  %v14431_v39 = vadd.f32 %v14415_v50, %v14378_v30  ;;  %v14468_v56 = vmul.f32 %v17201_v8, %v26482_v63  ;;  %v14220_v60 = vadd.f32 %v14204_v21, %v14167_v33  ;;  %v17155_v33 = vld [vmem:[%s27879_s4 + $0x2b8] sm:$0xff] }
 0x680   : > { %v14479_v37 = vadd.f32 %v14463_v61, %v14426_v36  ;;  %v14480_v45 = vadd.f32 %v14464_v18, %v14427_v47  ;;  %v14481_v53 = vadd.f32 %v14465_v41, %v14428_v40  ;;  %v14482_v20 = vadd.f32 %v14466_v13, %v14429_v62  ;;  %v17123_v36 = vld [vmem:[%s27879_s4 + $0x1b8] sm:$0xff]  ;;  %v17092_v47 = vld [vmem:[%s27879_s4 + $0xc0] sm:$0xff]  ;;  %v14023_v13 = vld [vmem:[%s27879_s4 + $0x48] sm:$0xff] }
 0x681   : > { %v14483_v0 = vadd.f32 %v14467_v31, %v14430_v44  ;;  %v14484_v15 = vadd.f32 %v14468_v56, %v14431_v39  ;;  %v14273_v17 = vadd.f32 %v14257_v16, %v14220_v60  ;;  %v14416_v49 = vmul.f32 %v17186_v25, %v26445_v43  ;;  %v17171_v62 = vld [vmem:[%s27879_s4 + $0x338] sm:$0xff]  ;;  %v17108_v44 = vld [vmem:[%s27879_s4 + $0x140] sm:$0xff] }
 0x682   : > { %vm14495_vm5 = vcmp.gt.f32.partialorder %v14479_v37, 0.0  ;;  %v14521_v34 = vmul.f32 %v26496_v28, %v14479_v37  ;;  %vm14496_vm10 = vcmp.gt.f32.partialorder %v14480_v45, 0.0  ;;  %v14522_v2 = vmul.f32 %v26496_v28, %v14480_v45  ;;  %v17187_v18 = vld [vmem:[%s27879_s4 + $0x3b8] sm:$0xff]  ;;  %v17124_v31 = vld [vmem:[%s27879_s4 + $0x1c0] sm:$0xff] }
 0x683   : > { %vm14497_vm11 = vcmp.gt.f32.partialorder %v14481_v53, 0.0  ;;  %v14523_v48 = vmul.f32 %v26496_v28, %v14481_v53  ;;  %v14524_v51 = vmul.f32 %v26496_v28, %v14482_v20  ;;  %v14525_v9 = vmul.f32 %v26496_v28, %v14483_v0  ;;  %v17140_v39 = vld [vmem:[%s27879_s4 + $0x240] sm:$0xff] }
 0x684   : > { %v26515_v59 = vsel %vm14495_vm5, %v14479_v37, %v14521_v34  ;;  %v26517_v12 = vsel %vm14496_vm10, %v14480_v45, %v14522_v2  ;;  %vm14498_vm12 = vcmp.gt.f32.partialorder %v14482_v20, 0.0  ;;  %vm14499_vm13 = vcmp.gt.f32.partialorder %v14483_v0, 0.0  ;;  %v17093_v45 = vld [vmem:[%s27879_s4 + $0xc8] sm:$0xff] }
 0x685   : > { %18694 = vmatprep.mubr.msk.f32.mxu0 %vm14562_vm2, %v26515_v59  ;;  %18722 = vmatprep.mubr.msk.f32.mxu1 %vm14562_vm2, %v26515_v59  ;;  %v14526_v42 = vmul.f32 %v26496_v28, %v14484_v15  ;;  %v26538_v1 = vsel %vm14497_vm11, %v14481_v53, %v14523_v48  ;;  %vm14500_vm14 = vcmp.gt.f32.partialorder %v14484_v15, 0.0  ;;  %v14326_v38 = vadd.f32 %v14310_v4, %v14273_v17  ;;  %v17172_v4 = vld [vmem:[%s27879_s4 + $0x340] sm:$0xff] }
 0x686   : > { %18695 = vmatmul.mubr.msk.f32.vlgmr.msra.gmra.mrb[6].mxu0 %vm14562_vm2, %v26517_v12  ;;  %18723 = vmatmul.mubr.msk.f32.vlgmr.msra.gmra.mrb[6].mxu1 %vm14562_vm2, %v26517_v12  ;;  %v14099_v22 = vmul.f32 %v17091_v29, %v26256_v52  ;;  %v14469_v57 = vmul.f32 %v17202_v58, %v26482_v63  ;;  %v14152_v50 = vmul.f32 %v17107_v5, %v26309_v7  ;;  %v17188_v48 = vld [vmem:[%s27879_s4 + $0x3c0] sm:$0xff]  ;;  %v17125_v58 = vld [vmem:[%s27879_s4 + $0x1c8] sm:$0xff]  ;;  %vm15074_vm10 = vcmask 15360  }
 0x687   : > { %18697 = vmatprep.mubr.msk.f32.mxu0 %vm14562_vm2, %v26538_v1  ;;  %18725 = vmatprep.mubr.msk.f32.mxu1 %vm14562_vm2, %v26538_v1  ;;  %v26560_v40 = vsel %vm14498_vm12, %v14482_v20, %v14524_v51  ;;  %v26563_v3 = vsel %vm14499_vm13, %v14483_v0, %v14525_v9  ;;  %v14379_v30 = vadd.f32 %v14363_v55, %v14326_v38  ;;  %v17204_v9 = vld [vmem:[%s27879_s4 + $0x440] sm:$0xff]  ;;  %vm16506_vm11 = vcmask 516096  }
 0x688   : > { %v14115_v8 = vadd.f32 %v14099_v22, %v14046_v26  ;;  %19642 = vmatpush3.bf16.msk.msra.mxu0 %vm26197_vm1, %v26227_v11  ;;  %v26578_v21 = vsel %vm14500_vm14, %v14484_v15, %v14526_v42  ;;  %v14205_v16 = vmul.f32 %v17123_v36, %v26311_v32  ;;  %v14258_v61 = vmul.f32 %v17139_v19, %v26361_v14  ;;  %v17156_v15 = vld [vmem:[%s27879_s4 + $0x2c0] sm:$0xff]  ;;  %v17109_v26 = vld [vmem:[%s27879_s4 + $0x148] sm:$0xff]  ;;  %v14024_v36 = vld [vmem:[%s27879_s4 + $0x50] sm:$0xff] }
 0x689   : > { %v14047_v41 = vmul.f32 %v26258_v23, %v14022_v6  ;;  %v14432_v27 = vadd.f32 %v14416_v49, %v14379_v30  ;;  %v14100_v54 = vmul.f32 %v17092_v47, %v26256_v52  ;;  %v14311_v56 = vmul.f32 %v17155_v33, %v26412_v46  ;;  %v17141_v22 = vld [vmem:[%s27879_s4 + $0x248] sm:$0xff]  ;;  %v17094_v30 = vld [vmem:[%s27879_s4 + $0xd0] sm:$0xff] }
 0x68a   : > { %18698 = vmatmul.mubr.msk.f32.gmra.mrb[8].mxu0 %vm14562_vm2, %v26560_v40  ;;  %18726 = vmatmul.mubr.msk.f32.gmra.mrb[8].mxu1 %vm14562_vm2, %v26560_v40  ;;  %v14168_v11 = vadd.f32 %v14152_v50, %v14115_v8  ;;  %v14364_v60 = vmul.f32 %v17171_v62, %v26363_v10  ;;  %v14153_v37 = vmul.f32 %v17108_v44, %v26309_v7  ;;  %v17157_v47 = vld [vmem:[%s27879_s4 + $0x2c8] sm:$0xff]  ;;  %v17110_v8 = vld [vmem:[%s27879_s4 + $0x150] sm:$0xff] }
 0x68b   : > { %18700 = vmatprep.mubr.msk.f32.mxu0 %vm14562_vm2, %v26563_v3  ;;  %18728 = vmatprep.mubr.msk.f32.mxu1 %vm14562_vm2, %v26563_v3  ;;  %v14485_v53 = vadd.f32 %v14469_v57, %v14432_v27  ;;  %v14417_v35 = vmul.f32 %v17187_v18, %v26445_v43  ;;  %v14116_v0 = vadd.f32 %v14100_v54, %v14047_v41  ;;  %v17205_v27 = vld [vmem:[%s27879_s4 + $0x448] sm:$0xff] }
 0x68c   : > { %v14221_v20 = vadd.f32 %v14205_v16, %v14168_v11  ;;  %v14470_v34 = vmul.f32 %v17203_v24, %v26482_v63  ;;  %v14206_v2 = vmul.f32 %v17124_v31, %v26311_v32  ;;  %v14259_v25 = vmul.f32 %v17140_v39, %v26361_v14  ;;  %v17173_v16 = vld [vmem:[%s27879_s4 + $0x348] sm:$0xff]  ;;  %v17126_v24 = vld [vmem:[%s27879_s4 + $0x1d0] sm:$0xff] }
 0x68d   : > { %v14048_v17 = vmul.f32 %v26258_v23, %v14023_v13  ;;  %vm14501_vm15 = vcmp.gt.f32.partialorder %v14485_v53, 0.0  ;;  %v14527_v55 = vmul.f32 %v26496_v28, %v14485_v53  ;;  %v14169_v51 = vadd.f32 %v14153_v37, %v14116_v0  ;;  %v14025_v37 = vld [vmem:[%s27879_s4 + $0x58] sm:$0xff] }
 0x68e   : > { %18701 = vmatmul.mubr.msk.f32.gmra.mrb[10].mxu0 %vm14562_vm2, %v26578_v21  ;;  %18729 = vmatmul.mubr.msk.f32.gmra.mrb[10].mxu1 %vm14562_vm2, %v26578_v21  ;;  %v14274_v29 = vadd.f32 %v14258_v61, %v14221_v20  ;;  %v14312_v5 = vmul.f32 %v17156_v15, %v26412_v46  ;;  %v14365_v42 = vmul.f32 %v17172_v4, %v26363_v10  ;;  %v17189_v61 = vld [vmem:[%s27879_s4 + $0x3c8] sm:$0xff]  ;;  %v17095_v15 = vld [vmem:[%s27879_s4 + $0xd8] sm:$0xff] }
 0x68f   : > { %v14101_v49 = vmul.f32 %v17093_v45, %v26256_v52  ;;  %v14154_v38 = vmul.f32 %v17109_v26, %v26309_v7  ;;  %v26651_v19 = vsel %vm14501_vm15, %v14485_v53, %v14527_v55  ;;  %v14222_v57 = vadd.f32 %v14206_v2, %v14169_v51  ;;  %v17111_v4 = vld [vmem:[%s27879_s4 + $0x158] sm:$0xff]  ;;  %v17174_v51 = vld [vmem:[%s27879_s4 + $0x350] sm:$0xff] }
 0x690   : > { %v14327_v6 = vadd.f32 %v14311_v56, %v14274_v29  ;;  %v14418_v50 = vmul.f32 %v17188_v48, %v26445_v43  ;;  %18703 = vmatprep.mubr.msk.f32.mxu0 %vm14562_vm2, %v26651_v19  ;;  %18731 = vmatprep.mubr.msk.f32.mxu1 %vm14562_vm2, %v26651_v19  ;;  %v14471_v33 = vmul.f32 %v17204_v9, %v26482_v63 }
 0x691   : > { %v14117_v62 = vadd.f32 %v14101_v49, %v14048_v17  ;;  %v14207_v44 = vmul.f32 %v17125_v58, %v26311_v32  ;;  %v14275_v41 = vadd.f32 %v14259_v25, %v14222_v57  ;;  %v14260_v13 = vmul.f32 %v17141_v22, %v26361_v14  ;;  %v17127_v22 = vld [vmem:[%s27879_s4 + $0x1d8] sm:$0xff] }
 0x692   : > { %v14380_v18 = vadd.f32 %v14364_v60, %v14327_v6  ;;  %v14049_v11 = vmul.f32 %v26258_v23, %v14024_v36  ;;  %v14313_v31 = vmul.f32 %v17157_v47, %v26412_v46  ;;  %v14102_v39 = vmul.f32 %v17094_v30, %v26256_v52  ;;  %v17142_v60 = vld [vmem:[%s27879_s4 + $0x250] sm:$0xff] }
 0x693   : > { %v14170_v54 = vadd.f32 %v14154_v38, %v14117_v62  ;;  %v14155_v56 = vmul.f32 %v17110_v8, %v26309_v7  ;;  %v14328_v53 = vadd.f32 %v14312_v5, %v14275_v41  ;;  %v14366_v20 = vmul.f32 %v17173_v16, %v26363_v10  ;;  %v17190_v8 = vld [vmem:[%s27879_s4 + $0x3d0] sm:$0xff]  ;;  %v14026_v41 = vld [vmem:[%s27879_s4 + $0x60] sm:$0xff] }
 0x694   : > { %v14433_v45 = vadd.f32 %v14417_v35, %v14380_v18  ;;  %v14419_v0 = vmul.f32 %v17189_v61, %v26445_v43  ;;  %v14472_v2 = vmul.f32 %v17205_v27, %v26482_v63  ;;  %v14118_v25 = vadd.f32 %v14102_v39, %v14049_v11  ;;  %v17158_v35 = vld [vmem:[%s27879_s4 + $0x2d0] sm:$0xff] }
 0x695   : > { %v14223_v26 = vadd.f32 %v14207_v44, %v14170_v54  ;;  %v14208_v48 = vmul.f32 %v17126_v24, %v26311_v32  ;;  %v14381_v55 = vadd.f32 %v14365_v42, %v14328_v53  ;;  %v14261_v29 = vmul.f32 %v17142_v60, %v26361_v14  ;;  %v17159_v44 = vld [vmem:[%s27879_s4 + $0x2d8] sm:$0xff]  ;;  %v17096_v24 = vld [vmem:[%s27879_s4 + $0xe0] sm:$0xff] }
 0x696   : > { %v14486_v17 = vadd.f32 %v14470_v34, %v14433_v45  ;;  %v14050_v9 = vmul.f32 %v26258_v23, %v14025_v37  ;;  %v14171_v5 = vadd.f32 %v14155_v56, %v14118_v25  ;;  %v14103_v49 = vmul.f32 %v17095_v15, %v26256_v52  ;;  %v17143_v34 = vld [vmem:[%s27879_s4 + $0x258] sm:$0xff]  ;;  %v17112_v54 = vld [vmem:[%s27879_s4 + $0x160] sm:$0xff] }
 0x697   : > { %v14276_v58 = vadd.f32 %v14260_v13, %v14223_v26  ;;  %v14156_v38 = vmul.f32 %v17111_v4, %v26309_v7  ;;  %v14434_v36 = vadd.f32 %v14418_v50, %v14381_v55  ;;  %v14314_v6 = vmul.f32 %v17158_v35, %v26412_v46  ;;  %v17175_v53 = vld [vmem:[%s27879_s4 + $0x358] sm:$0xff] }
 0x698   : > { %vm14502_vm3 = vcmp.gt.f32.partialorder %v14486_v17, 0.0  ;;  %v14528_v42 = vmul.f32 %v26496_v28, %v14486_v17  ;;  %v14224_v47 = vadd.f32 %v14208_v48, %v14171_v5  ;;  %v14367_v30 = vmul.f32 %v17174_v51, %v26363_v10  ;;  %v17207_v15 = vld [vmem:[%s27879_s4 + $0x458] sm:$0xff]  ;;  %v17144_v51 = vld [vmem:[%s27879_s4 + $0x260] sm:$0xff] }
 0x699   : > { %v14329_v57 = vadd.f32 %v14313_v31, %v14276_v58  ;;  %v14119_v62 = vadd.f32 %v14103_v49, %v14050_v9  ;;  %v14487_v61 = vadd.f32 %v14471_v33, %v14434_v36  ;;  %v14209_v50 = vmul.f32 %v17127_v22, %v26311_v32  ;;  %v17206_v33 = vld [vmem:[%s27879_s4 + $0x450] sm:$0xff]  ;;  %v14027_v9 = vld [vmem:[%s27879_s4 + $0x68] sm:$0xff]  ;;  %v17160_v36 = vld [vmem:[%s27879_s4 + $0x2e0] sm:$0xff] }
 0x69a   : > { %v26727_v16 = vsel %vm14502_vm3, %v14486_v17, %v14528_v42  ;;  %v14262_v18 = vmul.f32 %v17143_v34, %v26361_v14  ;;  %v14277_v27 = vadd.f32 %v14261_v29, %v14224_v47  ;;  %v14420_v39 = vmul.f32 %v17190_v8, %v26445_v43  ;;  %v17128_v29 = vld [vmem:[%s27879_s4 + $0x1e0] sm:$0xff] }
 0x69b   : > { %18704 = vmatmul.mubr.msk.f32.gmra.mrb[12].mxu0 %vm14562_vm2, %v26727_v16  ;;  %18732 = vmatmul.mubr.msk.f32.gmra.mrb[12].mxu1 %vm14562_vm2, %v26727_v16  ;;  %v14382_v13 = vadd.f32 %v14366_v20, %v14329_v57  ;;  %v14172_v11 = vadd.f32 %v14156_v38, %v14119_v62  ;;  %vm14503_vm4 = vcmp.gt.f32.partialorder %v14487_v61, 0.0  ;;  %v14529_v31 = vmul.f32 %v26496_v28, %v14487_v61  ;;  %v17191_v20 = vld [vmem:[%s27879_s4 + $0x3d8] sm:$0xff]  ;;  %v17097_v38 = vld [vmem:[%s27879_s4 + $0xe8] sm:$0xff] }
 0x69c   : > { %v14315_v56 = vmul.f32 %v17159_v44, %v26412_v46  ;;  %v14330_v37 = vadd.f32 %v14314_v6, %v14277_v27  ;;  %v14051_v4 = vmul.f32 %v26258_v23, %v14026_v41  ;;  %v14104_v25 = vmul.f32 %v17096_v24, %v26256_v52  ;;  %v17113_v6 = vld [vmem:[%s27879_s4 + $0x168] sm:$0xff] }
 0x69d   : > { %v14435_v60 = vadd.f32 %v14419_v0, %v14382_v13  ;;  %v14225_v45 = vadd.f32 %v14209_v50, %v14172_v11  ;;  %v26760_v26 = vsel %vm14503_vm4, %v14487_v61, %v14529_v31  ;;  %v14473_v0 = vmul.f32 %v17206_v33, %v26482_v63  ;;  %v17176_v50 = vld [vmem:[%s27879_s4 + $0x360] sm:$0xff]  ;;  %v17129_v13 = vld [vmem:[%s27879_s4 + $0x1e8] sm:$0xff] }
 0x69e   : > { %v14157_v48 = vmul.f32 %v17112_v54, %v26309_v7  ;;  %18706 = vmatprep.mubr.msk.f32.mxu0 %vm14562_vm2, %v26760_v26  ;;  %18734 = vmatprep.mubr.msk.f32.mxu1 %vm14562_vm2, %v26760_v26  ;;  %v14383_v17 = vadd.f32 %v14367_v30, %v14330_v37  ;;  %v14368_v58 = vmul.f32 %v17175_v53, %v26363_v10  ;;  %v17145_v24 = vld [vmem:[%s27879_s4 + $0x268] sm:$0xff] }
 0x69f   : > { %v14488_v35 = vadd.f32 %v14472_v2, %v14435_v60  ;;  %v14278_v55 = vadd.f32 %v14262_v18, %v14225_v45  ;;  %v14421_v5 = vmul.f32 %v17191_v20, %v26445_v43  ;;  %v14474_v2 = vmul.f32 %v17207_v15, %v26482_v63  ;;  %v17192_v18 = vld [vmem:[%s27879_s4 + $0x3e0] sm:$0xff]  ;;  %v14028_v60 = vld [vmem:[%s27879_s4 + $0x70] sm:$0xff] }
 0x6a0   : > { %v14120_v49 = vadd.f32 %v14104_v25, %v14051_v4  ;;  %v14436_v34 = vadd.f32 %v14420_v39, %v14383_v17  ;;  %v14210_v47 = vmul.f32 %v17128_v29, %v26311_v32  ;;  %v14263_v30 = vmul.f32 %v17144_v51, %v26361_v14  ;;  %v17098_v15 = vld [vmem:[%s27879_s4 + $0xf0] sm:$0xff]  ;;  %v17208_v25 = vld [vmem:[%s27879_s4 + $0x460] sm:$0xff]  ;;  %v17177_v51 = vld [vmem:[%s27879_s4 + $0x368] sm:$0xff] }
 0x6a1   : > { %vm14504_vm6 = vcmp.gt.f32.partialorder %v14488_v35, 0.0  ;;  %v14530_v22 = vmul.f32 %v26496_v28, %v14488_v35  ;;  %v14331_v42 = vadd.f32 %v14315_v56, %v14278_v55  ;;  %v14052_v8 = vmul.f32 %v26258_v23, %v14027_v9  ;;  %v17161_v56 = vld [vmem:[%s27879_s4 + $0x2e8] sm:$0xff]  ;;  %v17114_v17 = vld [vmem:[%s27879_s4 + $0x170] sm:$0xff] }
 0x6a2   : > { %v14173_v57 = vadd.f32 %v14157_v48, %v14120_v49  ;;  %v14489_v44 = vadd.f32 %v14473_v0, %v14436_v34  ;;  %v14105_v41 = vmul.f32 %v17097_v38, %v26256_v52  ;;  %v14316_v33 = vmul.f32 %v17160_v36, %v26412_v46  ;;  %v17130_v38 = vld [vmem:[%s27879_s4 + $0x1f0] sm:$0xff] }
 0x6a3   : > { %v26794_v62 = vsel %vm14504_vm6, %v14488_v35, %v14530_v22  ;;  %v14384_v61 = vadd.f32 %v14368_v58, %v14331_v42  ;;  %v14158_v11 = vmul.f32 %v17113_v6, %v26309_v7  ;;  %v14369_v45 = vmul.f32 %v17176_v50, %v26363_v10  ;;  %v17146_v36 = vld [vmem:[%s27879_s4 + $0x270] sm:$0xff]  ;;  %v14029_v6 = vld [vmem:[%s27879_s4 + $0x78] sm:$0xff] }
 0x6a4   : > { %18707 = vmatmul.mubr.msk.f32.gmra.mrb[14].mxu0 %vm14562_vm2, %v26794_v62  ;;  %18735 = vmatmul.mubr.msk.f32.gmra.mrb[14].mxu1 %vm14562_vm2, %v26794_v62  ;;  %v14226_v27 = vadd.f32 %v14210_v47, %v14173_v57  ;;  %vm14505_vm7 = vcmp.gt.f32.partialorder %v14489_v44, 0.0  ;;  %v14531_v54 = vmul.f32 %v26496_v28, %v14489_v44  ;;  %v14121_v39 = vadd.f32 %v14105_v41, %v14052_v8  ;;  %v17209_v41 = vld [vmem:[%s27879_s4 + $0x468] sm:$0xff] }
 0x6a5   : > { %v14437_v31 = vadd.f32 %v14421_v5, %v14384_v61  ;;  %v14422_v53 = vmul.f32 %v17192_v18, %v26445_v43  ;;  %v14211_v20 = vmul.f32 %v17129_v13, %v26311_v32  ;;  %v14264_v35 = vmul.f32 %v17145_v24, %v26361_v14  ;;  %v17115_v61 = vld [vmem:[%s27879_s4 + $0x178] sm:$0xff] }
 0x6a6   : > { %v14279_v37 = vadd.f32 %v14263_v30, %v14226_v27  ;;  %v26828_v4 = vsel %vm14505_vm7, %v14489_v44, %v14531_v54  ;;  %v14174_v48 = vadd.f32 %v14158_v11, %v14121_v39  ;;  %v14317_v29 = vmul.f32 %v17161_v56, %v26412_v46  ;;  %v17099_v44 = vld [vmem:[%s27879_s4 + $0xf8] sm:$0xff]  ;;  %v17162_v27 = vld [vmem:[%s27879_s4 + $0x2f0] sm:$0xff] }
 0x6a7   : > { %v14490_v0 = vadd.f32 %v14474_v2, %v14437_v31  ;;  %18709 = vmatprep.mubr.msk.f32.mxu0 %vm14562_vm2, %v26828_v4  ;;  %18737 = vmatprep.mubr.msk.f32.mxu1 %vm14562_vm2, %v26828_v4  ;;  %v14053_v9 = vmul.f32 %v26258_v23, %v14028_v60  ;;  %v17193_v2 = vld [vmem:[%s27879_s4 + $0x3e8] sm:$0xff]  ;;  %v14106_v49 = vmul.f32 %v17098_v15, %v26256_v52  ;;  %v17178_v39 = vld [vmem:[%s27879_s4 + $0x370] sm:$0xff]  ;;  %v17131_v15 = vld [vmem:[%s27879_s4 + $0x1f8] sm:$0xff] }
 0x6a8   : > { %v14332_v55 = vadd.f32 %v14316_v33, %v14279_v37  ;;  %v14227_v5 = vadd.f32 %v14211_v20, %v14174_v48  ;;  %v14475_v34 = vmul.f32 %v17208_v25, %v26482_v63  ;;  %v14159_v42 = vmul.f32 %v17114_v17, %v26309_v7  ;;  %v17163_v17 = vld [vmem:[%s27879_s4 + $0x2f8] sm:$0xff] }
 0x6a9   : > { %vm14506_vm8 = vcmp.gt.f32.partialorder %v14490_v0, 0.0  ;;  %v14532_v58 = vmul.f32 %v26496_v28, %v14490_v0  ;;  %v14370_v30 = vmul.f32 %v17177_v51, %v26363_v10  ;;  %v14122_v8 = vadd.f32 %v14106_v49, %v14053_v9 }
 0x6aa   : > { %v14385_v22 = vadd.f32 %v14369_v45, %v14332_v55  ;;  %v14280_v47 = vadd.f32 %v14264_v35, %v14227_v5  ;;  %v14423_v18 = vmul.f32 %v17193_v2, %v26445_v43  ;;  %v14212_v13 = vmul.f32 %v17130_v38, %v26311_v32 }
 0x6ab   : > { %v26862_v57 = vsel %vm14506_vm8, %v14490_v0, %v14532_v58  ;;  %v14175_v11 = vadd.f32 %v14159_v42, %v14122_v8  ;;  %v14265_v24 = vmul.f32 %v17146_v36, %v26361_v14  ;;  %v14054_v54 = vmul.f32 %v26258_v23, %v14029_v6  ;;  %v17147_v23 = vld [vmem:[%s27879_s4 + $0x278] sm:$0xff] }
 0x6ac   : > { %18710 = vmatmul.mubr.msk.f32.gmra.mrb[16].mxu0 %vm14562_vm2, %v26862_v57  ;;  %18738 = vmatmul.mubr.msk.f32.gmra.mrb[16].mxu1 %vm14562_vm2, %v26862_v57  ;;  %v14438_v50 = vadd.f32 %v14422_v53, %v14385_v22  ;;  %v14333_v33 = vadd.f32 %v14317_v29, %v14280_v47  ;;  %v14107_v56 = vmul.f32 %v17099_v44, %v26256_v52  ;;  %v17194_v52 = vld [vmem:[%s27879_s4 + $0x3f0] sm:$0xff] }
 0x6ad   : > { %v14160_v60 = vmul.f32 %v17115_v61, %v26309_v7  ;;  %v14476_v45 = vmul.f32 %v17209_v41, %v26482_v63  ;;  %v14228_v53 = vadd.f32 %v14212_v13, %v14175_v11  ;;  %v14318_v20 = vmul.f32 %v17162_v27, %v26412_v46  ;;  %v17210_v29 = vld [vmem:[%s27879_s4 + $0x470] sm:$0xff] }
 0x6ae   : > { %v14491_v31 = vadd.f32 %v14475_v34, %v14438_v50  ;;  %v14386_v37 = vadd.f32 %v14370_v30, %v14333_v33  ;;  %v14123_v7 = vadd.f32 %v14107_v56, %v14054_v54  ;;  %v14371_v35 = vmul.f32 %v17178_v39, %v26363_v10 }
 0x6af   : > { %v14281_v48 = vadd.f32 %v14265_v24, %v14228_v53  ;;  %v14213_v9 = vmul.f32 %v17131_v15, %v26311_v32  ;;  %v14266_v58 = vmul.f32 %v17147_v23, %v26361_v14  ;;  %v14424_v49 = vmul.f32 %v17194_v52, %v26445_v43  ;;  %v17179_v32 = vld [vmem:[%s27879_s4 + $0x378] sm:$0xff] }
 0x6b0   : > { %vm14507_vm9 = vcmp.gt.f32.partialorder %v14491_v31, 0.0  ;;  %v14533_v0 = vmul.f32 %v26496_v28, %v14491_v31  ;;  %v14439_v25 = vadd.f32 %v14423_v18, %v14386_v37  ;;  %v14176_v51 = vadd.f32 %v14160_v60, %v14123_v7  ;;  %v17195_v14 = vld [vmem:[%s27879_s4 + $0x3f8] sm:$0xff] }
 0x6b1   : > { %v14334_v2 = vadd.f32 %v14318_v20, %v14281_v48  ;;  %v14319_v22 = vmul.f32 %v17163_v17, %v26412_v46  ;;  %v14477_v36 = vmul.f32 %v17210_v29, %v26482_v63  ;;  %v17211_v46 = vld [vmem:[%s27879_s4 + $0x478] sm:$0xff]  ;;  %v14372_v44 = vmul.f32 %v17179_v32, %v26363_v10 }
 0x6b2   : > { %v14549_v55 = vsel %vm14507_vm9, %v14491_v31, %v14533_v0  ;;  %v14492_v5 = vadd.f32 %v14476_v45, %v14439_v25  ;;  %v14229_v38 = vadd.f32 %v14213_v9, %v14176_v51  ;;  %v14425_v61 = vmul.f32 %v17195_v14, %v26445_v43  ;;  %v26968_v43 = vld [vmem:[%s27882_s7] ss:$0 sm:$0xff] }
 0x6b3   : > { %18712 = vmatprep.mubr.msk.f32.mxu0 %vm14562_vm2, %v14549_v55  ;;  %18740 = vmatprep.mubr.msk.f32.mxu1 %vm14562_vm2, %v14549_v55  ;;  %v14387_v42 = vadd.f32 %v14371_v35, %v14334_v2  ;;  %v14478_v41 = vmul.f32 %v17211_v46, %v26482_v63  ;;  %v26973_v63 = vld [vmem:[%s27884_s9] ss:$0 sm:$0xff] }
 0x6b4   : > { %vm14508_vm0 = vcmp.gt.f32.partialorder %v14492_v5, 0.0  ;;  %v14534_v34 = vmul.f32 %v26496_v28, %v14492_v5  ;;  %v14282_v6 = vadd.f32 %v14266_v58, %v14229_v38 }
 0x6b5   : > { %v14440_v30 = vadd.f32 %v14424_v49, %v14387_v42 }
 0x6b6   : > { %v14550_v47 = vsel %vm14508_vm0, %v14492_v5, %v14534_v34  ;;  %v14335_v8 = vadd.f32 %v14319_v22, %v14282_v6 }
 0x6b7   : > { %18713 = vmatmul.mubr.msk.f32.gmra.mrb[18].mxu0 %vm14562_vm2, %v14550_v47  ;;  %18741 = vmatmul.mubr.msk.f32.gmra.mrb[18].mxu1 %vm14562_vm2, %v14550_v47  ;;  %v14493_v50 = vadd.f32 %v14477_v36, %v14440_v30 }
 0x6b8   : > { %v14388_v18 = vadd.f32 %v14372_v44, %v14335_v8 }
 0x6b9   : > { %vm14509_vm1 = vcmp.gt.f32.partialorder %v14493_v50, 0.0  ;;  %v14535_v13 = vmul.f32 %v26496_v28, %v14493_v50 }
 0x6ba   : > { %v14441_v27 = vadd.f32 %v14425_v61, %v14388_v18 }
 0x6bb   : > { %v14551_v33 = vsel %vm14509_vm1, %v14493_v50, %v14535_v13 }
 0x6bc   : > { %18715 = vmatprep.mubr.msk.f32.mxu0 %vm14562_vm2, %v14551_v33  ;;  %18743 = vmatprep.mubr.msk.f32.mxu1 %vm14562_vm2, %v14551_v33  ;;  %v14494_v11 = vadd.f32 %v14478_v41, %v14441_v27 }
 0x6be   : > { %vm14510_vm5 = vcmp.gt.f32.partialorder %v14494_v11, 0.0  ;;  %v14536_v24 = vmul.f32 %v26496_v28, %v14494_v11 }
 0x6c0   : > { %v14552_v10 = vsel %vm14510_vm5, %v14494_v11, %v14536_v24 }
 0x6c1   : > { %18716 = vmatmul.mubr.msk.f32.gmra.mrb[20].mxu0 %vm14562_vm2, %v14552_v10  ;;  %18744 = vmatmul.mubr.msk.f32.gmra.mrb[20].mxu1 %vm14562_vm2, %v14552_v10 }
 0x6c2   : > { %18750 = vmatprep.mubr.msk.f32.mxu0 %vm14562_vm2, %v26515_v59 }
 0x6c5   : > { %18751 = vmatmul.mubr.msk.f32.vlgmr.msra.gmra.mrb[22].mxu0 %vm14562_vm2, %v26517_v12 }
 0x6c6   : > { %18753 = vmatprep.mubr.msk.f32.mxu0 %vm14562_vm2, %v26538_v1 }
 0x6c9   : > { %18754 = vmatmul.mubr.msk.f32.gmra.mrb[24].mxu0 %vm14562_vm2, %v26560_v40 }
 0x6ca   : > { %18756 = vmatprep.mubr.msk.f32.mxu0 %vm14562_vm2, %v26563_v3 }
 0x6cd   : > { %18757 = vmatmul.mubr.msk.f32.gmra.mrb[26].mxu0 %vm14562_vm2, %v26578_v21 }
 0x6ce   : > { %18759 = vmatprep.mubr.msk.f32.mxu0 %vm14562_vm2, %v26651_v19 }
 0x6d1   : > { %18760 = vmatmul.mubr.msk.f32.gmra.mrb[28].mxu0 %vm14562_vm2, %v26727_v16 }
 0x6d2   : > { %18762 = vmatprep.mubr.msk.f32.mxu0 %vm14562_vm2, %v26760_v26 }
 0x6d5   : > { %18763 = vmatmul.mubr.msk.f32.gmra.mrb[30].mxu0 %vm14562_vm2, %v26794_v62 }
 0x6d6   : > { %18765 = vmatprep.mubr.msk.f32.mxu0 %vm14562_vm2, %v26828_v4 }
 0x6d9   : > { %18766 = vmatmul.mubr.msk.f32.gmra.mrb[32].mxu0 %vm14562_vm2, %v26862_v57 }
 0x6da   : > { %18768 = vmatprep.mubr.msk.f32.mxu0 %vm14562_vm2, %v14549_v55 }
 0x6dd   : > { %18769 = vmatmul.mubr.msk.f32.gmra.mrb[34].mxu0 %vm14562_vm2, %v14550_v47 }
 0x6de   : > { %18771 = vmatprep.mubr.msk.f32.mxu0 %vm14562_vm2, %v14551_v33 }
 0x6e1   : > { %18772 = vmatmul.mubr.msk.f32.gmra.mrb[36].mxu0 %vm14562_vm2, %v14552_v10  ;;  %vm26985_vm2 = vmpackc.low %vm15074_vm10, %vm15074_vm10 }
 0x759   : > { %v18696_v28 = vpop.f32.mrb[6].mxu0  ;;  %v18724_v59 = vpop.f32.mrb[6].mxu1 }
 0x75a   : > { %v26976_v12 = vadd.f32 %v18696_v28, %v26968_v43  ;;  %v14844_v1 = vadd.f32 %v18724_v59, %v26973_v63  ;;  %v14681_v40 = vpop.f32.mrb[7].mxu0  ;;  %v14838_v3 = vpop.f32.mrb[7].mxu1 }
 0x75b   : > { %v26980_v21 = vadd.f32 %v26968_v43, %v14681_v40  ;;  %v14839_v19 = vadd.f32 %v26973_v63, %v14838_v3 }
 0x75d   : > { %v21378_v26 = vpack.i.bf16 %v14844_v1, %v14839_v19  ;;  %v19643_v62 = vpack.c.bf16 %v14844_v1, %v14839_v19  ;;  %v18699_v4 = vpop.f32.mrb[8].mxu0  ;;  %v18727_v57 = vpop.f32.mrb[8].mxu1  ;;  %18806 = vmatprep.mubr.msk.f32.mxu1 %vm15074_vm10, %v26980_v21 }
 0x75e   : > { %v26992_v54 = vadd.f32 %v18699_v4, %v26968_v43  ;;  %v26995_v31 = vadd.f32 %v18727_v57, %v26973_v63  ;;  %v14691_v39 = vpop.f32.mrb[9].mxu0  ;;  %v14848_v56 = vpop.f32.mrb[9].mxu1 }
 0x75f   : > { %v26998_v60 = vadd.f32 %v26968_v43, %v14691_v39  ;;  %v27001_v37 = vadd.f32 %v26973_v63, %v14848_v56  ;;  %21379 = vrot.lane.b32.xlu1 %v21378_v26, %s27913_s1  ;;  %19645 = vmatprep.subr.msk.bf16.mxu1 %vm26985_vm2, %v19643_v62 }
 0x760   : > { %19648 = vmatpush3.bf16.xpose.msk.msra.mxu1 %vm26985_vm2, %v19643_v62 }
 0x761   : > { %v21383_v45 = vpack.i.bf16 %v26995_v31, %v27001_v37  ;;  %v19649_v53 = vpack.c.bf16 %v26995_v31, %v27001_v37  ;;  %v18702_v20 = vpop.f32.mrb[10].mxu0  ;;  %v18730_v15 = vpop.f32.mrb[10].mxu1 }
 0x762   : > { %v27013_v23 = vadd.f32 %v18702_v20, %v26968_v43  ;;  %v14864_v0 = vadd.f32 %v18730_v15, %v26973_v63  ;;  %v14701_v52 = vpop.f32.mrb[11].mxu0  ;;  %v14858_v7 = vpop.f32.mrb[11].mxu1 }
 0x763   : > { %v27017_v25 = vadd.f32 %v26968_v43, %v14701_v52  ;;  %v14859_v48 = vadd.f32 %v26973_v63, %v14858_v7  ;;  %19651 = vmatprep.subr.msk.bf16.mxu1 %vm26985_vm2, %v19649_v53  ;;  %v27117_v7 = vld [vmem:[%s27886_s11] ss:$0 sm:$0xff] }
 0x765   : > { %v21388_v35 = vpack.i.bf16 %v14864_v0, %v14859_v48  ;;  %v19655_v17 = vpack.c.bf16 %v14864_v0, %v14859_v48 }
 0x767   : > { %21389 = vrot.lane.b32.xlu1 %v21388_v35, %s27913_s1 }
 0x768   : > { %19654 = vmatpush3.bf16.xpose.msk.msra.mxu1 %vm26985_vm2, %v19649_v53 }
 0x769   : > { %19657 = vmatprep.subr.msk.bf16.mxu1 %vm26985_vm2, %v19655_v17 }
 0x76e   : > { %v18705_v55 = vpop.f32.mrb[12].mxu0  ;;  %v18733_v29 = vpop.f32.mrb[12].mxu1 }
 0x76f   : > { %v27028_v51 = vadd.f32 %v18705_v55, %v26968_v43  ;;  %v14874_v9 = vadd.f32 %v18733_v29, %v26973_v63  ;;  %v14711_v58 = vpop.f32.mrb[13].mxu0  ;;  %v14868_v5 = vpop.f32.mrb[13].mxu1 }
 0x770   : > { %v27032_v2 = vadd.f32 %v26968_v43, %v14711_v58  ;;  %v14869_v49 = vadd.f32 %v26973_v63, %v14868_v5  ;;  %19660 = vmatpush3.bf16.xpose.msk.msra.mxu1 %vm26985_vm2, %v19655_v17 }
 0x772   : > { %v21393_v38 = vpack.i.bf16 %v14874_v9, %v14869_v49  ;;  %v19661_v22 = vpack.c.bf16 %v14874_v9, %v14869_v49 }
 0x774   : > { %21394 = vrot.lane.b32.xlu1 %v21393_v38, %s27913_s1  ;;  %19663 = vmatprep.subr.msk.bf16.mxu1 %vm26985_vm2, %v19661_v22 }
 0x777   : > { %v18708_v34 = vpop.f32.mrb[14].mxu0  ;;  %v18736_v42 = vpop.f32.mrb[14].mxu1 }
 0x778   : > { %v27041_v36 = vadd.f32 %v18708_v34, %v26968_v43  ;;  %v27044_v32 = vadd.f32 %v18736_v42, %v26973_v63  ;;  %v14721_v14 = vpop.f32.mrb[15].mxu0  ;;  %v14878_v6 = vpop.f32.mrb[15].mxu1  ;;  %19666 = vmatpush3.bf16.xpose.msk.msra.mxu1 %vm26985_vm2, %v19661_v22 }
 0x779   : > { %v27049_v47 = vadd.f32 %v26968_v43, %v14721_v14  ;;  %v27052_v30 = vadd.f32 %v26973_v63, %v14878_v6 }
 0x77b   : > { %v19667_v8 = vpack.c.bf16 %v27044_v32, %v27052_v30 }
 0x77d   : > { %19669 = vmatprep.subr.msk.bf16.mxu1 %vm26985_vm2, %v19667_v8 }
 0x77f   : > { %v18711_v44 = vpop.f32.mrb[16].mxu0  ;;  %v18739_v61 = vpop.f32.mrb[16].mxu1 }
 0x780   : > { %v27061_v50 = vadd.f32 %v18711_v44, %v26968_v43  ;;  %v27064_v18 = vadd.f32 %v18739_v61, %v26973_v63  ;;  %v14731_v41 = vpop.f32.mrb[17].mxu0  ;;  %v14888_v13 = vpop.f32.mrb[17].mxu1  ;;  %19672 = vmatpush3.bf16.xpose.msk.msra.mxu1 %vm26985_vm2, %v19667_v8 }
 0x781   : > { %v27069_v27 = vadd.f32 %v26968_v43, %v14731_v41  ;;  %v27072_v33 = vadd.f32 %v26973_v63, %v14888_v13 }
 0x783   : > { %v21403_v11 = vpack.i.bf16 %v27064_v18, %v27072_v33  ;;  %v19673_v24 = vpack.c.bf16 %v27064_v18, %v27072_v33 }
 0x785   : > { %19675 = vmatprep.subr.msk.bf16.mxu1 %vm26985_vm2, %v19673_v24 }
 0x788   : > { %19678 = vmatpush3.bf16.xpose.msk.msra.mxu1 %vm26985_vm2, %v19673_v24 }
 0x78a   : > { %v18714_v10 = vpop.f32.mrb[18].mxu0  ;;  %v18742_v28 = vpop.f32.mrb[18].mxu1 }
 0x78b   : > { %v27083_v59 = vadd.f32 %v18714_v10, %v26968_v43  ;;  %v27086_v1 = vadd.f32 %v18742_v28, %v26973_v63  ;;  %v14741_v40 = vpop.f32.mrb[19].mxu0  ;;  %v14898_v3 = vpop.f32.mrb[19].mxu1 }
 0x78c   : > { %v27089_v19 = vadd.f32 %v26968_v43, %v14741_v40  ;;  %v27092_v26 = vadd.f32 %v26973_v63, %v14898_v3 }
 0x78e   : > { %v21408_v62 = vpack.i.bf16 %v27086_v1, %v27092_v26  ;;  %v19679_v4 = vpack.c.bf16 %v27086_v1, %v27092_v26 }
 0x790   : > { %19681 = vmatprep.subr.msk.bf16.mxu1 %vm26985_vm2, %v19679_v4 }
 0x791   : > { %19684 = vmatpush3.bf16.xpose.msk.msra.mxu1 %vm26985_vm2, %v19679_v4 }
 0x794   : > { %v18717_v57 = vpop.f32.mrb[20].mxu0  ;;  %v18745_v39 = vpop.f32.mrb[20].mxu1 }
 0x795   : > { %v27103_v56 = vadd.f32 %v18717_v57, %v26968_v43  ;;  %v27106_v53 = vadd.f32 %v18745_v39, %v26973_v63  ;;  %v14751_v20 = vpop.f32.mrb[21].mxu0  ;;  %v14908_v15 = vpop.f32.mrb[21].mxu1 }
 0x796   : > { %v27109_v0 = vadd.f32 %v26968_v43, %v14751_v20  ;;  %v27112_v52 = vadd.f32 %v26973_v63, %v14908_v15 }
 0x798   : > { %v19685_v35 = vpack.c.bf16 %v27106_v53, %v27112_v52  ;;  %v18752_v17 = vpop.f32.mrb[22].mxu0 }
 0x799   : > { %v27124_v55 = vadd.f32 %v18752_v17, %v27117_v7  ;;  %v14995_v43 = vpop.f32.mrb[23].mxu0 }
 0x79a   : > { %v27127_v29 = vadd.f32 %v27117_v7, %v14995_v43  ;;  %19687 = vmatprep.subr.msk.bf16.mxu1 %vm26985_vm2, %v19685_v35 }
 0x79b   : > { %19690 = vmatpush3.bf16.xpose.msk.msra.mxu1 %vm26985_vm2, %v19685_v35 }
 0x79c   : > { %v19691_v9 = vpack.c.bf16 %v27124_v55, %v27127_v29  ;;  %v18755_v58 = vpop.f32.mrb[24].mxu0 }
 0x79d   : > { %v27138_v5 = vadd.f32 %v18755_v58, %v27117_v7  ;;  %v15005_v49 = vpop.f32.mrb[25].mxu0 }
 0x79e   : > { %v27141_v38 = vadd.f32 %v27117_v7, %v15005_v49  ;;  %19692 = vmatprep.subr.bf16.mxu0 %v19691_v9 }
 0x79f   : > { %19694 = vmatpush3.bf16.msra.mxu0 %v19691_v9 }
 0x7a0   : > { %v19695_v34 = vpack.c.bf16 %v27138_v5, %v27141_v38  ;;  %v18758_v42 = vpop.f32.mrb[26].mxu0 }
 0x7a1   : > { %v27148_v14 = vadd.f32 %v18758_v42, %v27117_v7  ;;  %v15015_v6 = vpop.f32.mrb[27].mxu0 }
 0x7a2   : > { %v27151_v8 = vadd.f32 %v27117_v7, %v15015_v6  ;;  %19696 = vmatprep.subr.bf16.mxu0 %v19695_v34  ;;  %18807 = vmatmul.mubr.msk.f32.vlgmr.msra.gmra.mrb[22].mxu1 %vm15074_vm10, %v26976_v12 }
 0x7a3   : > { %19698 = vmatpush3.bf16.msra.mxu0 %v19695_v34  ;;  %18809 = vmatprep.mubr.msk.f32.mxu1 %vm15074_vm10, %v26998_v60 }
 0x7a4   : > { %v19699_v61 = vpack.c.bf16 %v27148_v14, %v27151_v8  ;;  %v18761_v41 = vpop.f32.mrb[28].mxu0 }
 0x7a5   : > { %v27162_v13 = vadd.f32 %v18761_v41, %v27117_v7  ;;  %v15025_v24 = vpop.f32.mrb[29].mxu0 }
 0x7a6   : > { %v27165_v10 = vadd.f32 %v27117_v7, %v15025_v24  ;;  %19700 = vmatprep.subr.bf16.mxu0 %v19699_v61  ;;  %18810 = vmatmul.mubr.msk.f32.gmra.mrb[24].mxu1 %vm15074_vm10, %v26992_v54 }
 0x7a7   : > { %19702 = vmatpush3.bf16.msra.mxu0 %v19699_v61  ;;  %18812 = vmatprep.mubr.msk.f32.mxu1 %vm15074_vm10, %v27017_v25 }
 0x7a8   : > { %v19703_v40 = vpack.c.bf16 %v27162_v13, %v27165_v10  ;;  %v18764_v3 = vpop.f32.mrb[30].mxu0 }
 0x7a9   : > { %v27176_v4 = vadd.f32 %v18764_v3, %v27117_v7  ;;  %v15035_v57 = vpop.f32.mrb[31].mxu0 }
 0x7aa   : > { %v27179_v39 = vadd.f32 %v27117_v7, %v15035_v57  ;;  %19704 = vmatprep.subr.bf16.mxu0 %v19703_v40  ;;  %18813 = vmatmul.mubr.msk.f32.gmra.mrb[26].mxu1 %vm15074_vm10, %v27013_v23 }
 0x7ab   : > { %19706 = vmatpush3.bf16.msra.mxu0 %v19703_v40  ;;  %18815 = vmatprep.mubr.msk.f32.mxu1 %vm15074_vm10, %v27032_v2 }
 0x7ac   : > { %v19707_v15 = vpack.c.bf16 %v27176_v4, %v27179_v39  ;;  %v18767_v35 = vpop.f32.mrb[32].mxu0 }
 0x7ad   : > { %v27190_v17 = vadd.f32 %v18767_v35, %v27117_v7  ;;  %v15045_v43 = vpop.f32.mrb[33].mxu0 }
 0x7ae   : > { %v27193_v9 = vadd.f32 %v27117_v7, %v15045_v43  ;;  %19708 = vmatprep.subr.bf16.mxu0 %v19707_v15  ;;  %18816 = vmatmul.mubr.msk.f32.gmra.mrb[28].mxu1 %vm15074_vm10, %v27028_v51 }
 0x7af   : > { %27914 = vst [vmem:[#allocation7_spill] sm:$0xff] %v27190_v17  ;;  %19710 = vmatpush3.bf16.msra.mxu0 %v19707_v15  ;;  %18818 = vmatprep.mubr.msk.f32.mxu1 %vm15074_vm10, %v27049_v47 }
 0x7b0   : > { %27915 = vst [vmem:[#allocation8_spill] sm:$0xff] %v27193_v9  ;;  %v19711_v49 = vpack.c.bf16 %v27190_v17, %v27193_v9  ;;  %v18770_v34 = vpop.f32.mrb[34].mxu0 }
 0x7b1   : > { %v27204_v42 = vadd.f32 %v18770_v34, %v27117_v7  ;;  %v15055_v6 = vpop.f32.mrb[35].mxu0 }
 0x7b2   : > { %v27207_v61 = vadd.f32 %v27117_v7, %v15055_v6  ;;  %19712 = vmatprep.subr.bf16.mxu0 %v19711_v49  ;;  %18819 = vmatmul.mubr.msk.f32.gmra.mrb[30].mxu1 %vm15074_vm10, %v27041_v36 }
 0x7b3   : > { %27916 = vst [vmem:[#allocation9_spill] sm:$0xff] %v27204_v42  ;;  %19714 = vmatpush3.bf16.msra.mxu0 %v19711_v49  ;;  %18821 = vmatprep.mubr.msk.f32.mxu1 %vm15074_vm10, %v27069_v27 }
 0x7b4   : > { %27917 = vst [vmem:[#allocation10_spill] sm:$0xff] %v27207_v61  ;;  %v19715_v24 = vpack.c.bf16 %v27204_v42, %v27207_v61  ;;  %v18773_v40 = vpop.f32.mrb[36].mxu0 }
 0x7b5   : > { %v27218_v3 = vadd.f32 %v18773_v40, %v27117_v7  ;;  %v15065_v57 = vpop.f32.mrb[37].mxu0 }
 0x7b6   : > { %v27221_v15 = vadd.f32 %v27117_v7, %v15065_v57  ;;  %19716 = vmatprep.subr.bf16.mxu0 %v19715_v24  ;;  %18822 = vmatmul.mubr.msk.f32.gmra.mrb[32].mxu1 %vm15074_vm10, %v27061_v50 }
 0x7b7   : > { %27918 = vst [vmem:[#allocation11_spill] sm:$0xff] %v27218_v3  ;;  %19718 = vmatpush3.bf16.msra.mxu0 %v19715_v24  ;;  %18824 = vmatprep.mubr.msk.f32.mxu1 %vm15074_vm10, %v27089_v19 }
 0x7b8   : > { %27919 = vst [vmem:[#allocation12_spill] sm:$0xff] %v27221_v15  ;;  %v19719_v43 = vpack.c.bf16 %v27218_v3, %v27221_v15  ;;  %v27920_v15 = vpack.i.bf16 %v27106_v53, %v27112_v52 }
 0x7ba   : > { %19720 = vmatprep.subr.bf16.mxu0 %v19719_v43  ;;  %18825 = vmatmul.mubr.msk.f32.gmra.mrb[34].mxu1 %vm15074_vm10, %v27083_v59 }
 0x7bb   : > { %19722 = vmatpush3.bf16.msra.mxu0 %v19719_v43  ;;  %18827 = vmatprep.mubr.msk.f32.mxu1 %vm15074_vm10, %v27109_v0 }
 0x7be   : > { %18828 = vmatmul.mubr.msk.f32.gmra.mrb[36].mxu1 %vm15074_vm10, %v27103_v56 }
 0x7d1   : > { %v21380_v7 = vpop.permute.xlu1 %21379 }
 0x7d2   : > { %v21382_v49 = vunpack.i.h.bf16 %v21380_v7  ;;  %v21381_v34 = vunpack.i.l.bf16 %v21380_v7 }
 0x7d4   : > { %v27237_v6 = vpack.c.bf16 %v21382_v49, %v21381_v34 }
 0x7d6   : > { %19725 = vmatprep.subr.msk.bf16.mxu0 %vm26985_vm2, %v27237_v6 }
 0x7d9   : > { %v27284_v31 = vpop.permute.xlu1 %21389 }
 0x7e6   : > { %v27286_v37 = vpop.permute.xlu1 %21394 }
 0x875   : > { %v18808_v24 = vpop.f32.mrb[22].mxu1 }
 0x876   : > { %15318 = vmax.xlane.f32.xlu0 %v18808_v24  ;;  %v15237_v40 = vpop.f32.mrb[23].mxu1 }
 0x877   : > { %15316 = vmax.xlane.f32.xlu1 %v15237_v40 }
 0x879   : > { %v18811_v57 = vpop.f32.mrb[24].mxu1 }
 0x87a   : > { %v15247_v43 = vpop.f32.mrb[25].mxu1 }
 0x87b   : > { %15320 = vmax.xlane.f32.xlu1 %v15247_v43 }
 0x87d   : > { %v18814_v35 = vpop.f32.mrb[26].mxu1 }
 0x87e   : > { %v15257_v41 = vpop.f32.mrb[27].mxu1 }
 0x87f   : > { %15324 = vmax.xlane.f32.xlu1 %v15257_v41 }
 0x881   : > { %v27242_v58 = vpop.f32.mrb[28].mxu1 }
 0x882   : > { %v27244_v20 = vpop.f32.mrb[29].mxu1 }
 0x883   : > { %15328 = vmax.xlane.f32.xlu1 %v27244_v20 }
 0x885   : > { %v27247_v7 = vpop.f32.mrb[30].mxu1 }
 0x886   : > { %v27249_v49 = vpop.f32.mrb[31].mxu1 }
 0x887   : > { %15332 = vmax.xlane.f32.xlu1 %v27249_v49 }
 0x889   : > { %v27252_v34 = vpop.f32.mrb[32].mxu1 }
 0x88a   : > { %v27254_v28 = vpop.f32.mrb[33].mxu1 }
 0x88b   : > { %15336 = vmax.xlane.f32.xlu1 %v27254_v28 }
 0x88c   : > { %21384 = vrot.lane.b32.xlu0 %v21383_v45, %s27913_s1 }
 0x88d   : > { %v27261_v44 = vpop.f32.mrb[34].mxu1 }
 0x88e   : > { %v27263_v22 = vpop.f32.mrb[35].mxu1 }
 0x88f   : > { %15340 = vmax.xlane.f32.xlu1 %v27263_v22 }
 0x891   : > { %v27266_v63 = vpop.f32.mrb[36].mxu1 }
 0x892   : > { %v27268_v46 = vpop.f32.mrb[37].mxu1 }
 0x893   : > { %15344 = vmax.xlane.f32.xlu1 %v27268_v46 }
 0x8a4   : > { %21404 = vrot.lane.b32.xlu1 %v21403_v11, %s27913_s1 }
 0x8a8   : > { %21409 = vrot.lane.b32.xlu1 %v21408_v62, %s27913_s1 }
 0x8ab   : > { %15322 = vmax.xlane.f32.xlu0 %v18811_v57 }
 0x8af   : > { %15326 = vmax.xlane.f32.xlu0 %v18814_v35 }
 0x8b3   : > { %15330 = vmax.xlane.f32.xlu0 %v27242_v58 }
 0x8b7   : > { %15334 = vmax.xlane.f32.xlu0 %v27247_v7 }
 0x8bb   : > { %15338 = vmax.xlane.f32.xlu0 %v27252_v34 }
 0x8bf   : > { %15342 = vmax.xlane.f32.xlu0 %v27261_v44 }
 0x8c3   : > { %15346 = vmax.xlane.f32.xlu0 %v27266_v63 }
 0x903   : > { %v15319_v45 = vpop.xlane.xlu0 %15318 }
 0x904   : > { %v15349_v18 = vsub.f32 %v18808_v24, %v15319_v45  ;;  %v15317_v33 = vpop.xlane.xlu1 %15316  ;;  %v27921_v24 = vpack.i.bf16 %v27044_v32, %v27052_v30 }
 0x905   : > { %v15348_v11 = vsub.f32 %v15237_v40, %v15317_v33 }
 0x906   : > { %v15366_v1 = vmul.f32 1.442695, %v15349_v18 }
 0x907   : > { %v15364_v26 = vmul.f32 1.442695, %v15348_v11  ;;  %v27302_v45 = vpop.permute.xlu0 %21384 }
 0x908   : > { %21495 = vpow2.f32 %v15366_v1  ;;  %v15321_v40 = vpop.xlane.xlu1 %15320 }
 0x909   : > { %21497 = vpow2.f32 %v15364_v26  ;;  %v15350_v18 = vsub.f32 %v15247_v43, %v15321_v40 }
 0x90b   : > { %v15368_v26 = vmul.f32 1.442695, %v15350_v18 }
 0x90c   : > { %v15325_v33 = vpop.xlane.xlu1 %15324 }
 0x90d   : > { %v15352_v3 = vsub.f32 %v15257_v41, %v15325_v33 }
 0x90f   : > { %v15372_v52 = vmul.f32 1.442695, %v15352_v3 }
 0x910   : > { %v15329_v9 = vpop.xlane.xlu1 %15328 }
 0x911   : > { %v15354_v32 = vsub.f32 %v27244_v20, %v15329_v9 }
 0x912   : > { %v27288_v62 = vpop.eup %21495 }
 0x913   : > { %v27290_v48 = vpop.eup %21497  ;;  %15398 = vadd.xlane.f32.xlu0 %v27288_v62  ;;  %v15376_v40 = vmul.f32 1.442695, %v15354_v32 }
 0x914   : > { %15396 = vadd.xlane.f32.xlu1 %v27290_v48  ;;  %v15333_v43 = vpop.xlane.xlu1 %15332 }
 0x915   : > { %v15356_v20 = vsub.f32 %v27249_v49, %v15333_v43 }
 0x925   : > { %21414 = vrot.lane.b32.xlu1 %v27920_v15, %s27913_s1 }
 0x929   : > { %21399 = vrot.lane.b32.xlu0 %v27921_v24, %s27913_s1 }
 0x938   : > { %v15323_v11 = vpop.xlane.xlu0 %15322 }
 0x939   : > { %v15351_v1 = vsub.f32 %v18811_v57, %v15323_v11 }
 0x93b   : > { %v15370_v61 = vmul.f32 1.442695, %v15351_v1  ;;  %v15380_v1 = vmul.f32 1.442695, %v15356_v20 }
 0x93c   : > { %v15327_v42 = vpop.xlane.xlu0 %15326 }
 0x93d   : > { %21499 = vpow2.f32 %v15370_v61  ;;  %v15353_v53 = vsub.f32 %v18814_v35, %v15327_v42 }
 0x93e   : > { %21501 = vpow2.f32 %v15368_v26 }
 0x93f   : > { %v15374_v15 = vmul.f32 1.442695, %v15353_v53 }
 0x940   : > { %v15331_v17 = vpop.xlane.xlu0 %15330 }
 0x941   : > { %21503 = vpow2.f32 %v15374_v15  ;;  %v15355_v30 = vsub.f32 %v27242_v58, %v15331_v17  ;;  %v15337_v17 = vpop.xlane.xlu1 %15336 }
 0x942   : > { %21505 = vpow2.f32 %v15372_v52  ;;  %v15358_v33 = vsub.f32 %v27254_v28, %v15337_v17 }
 0x943   : > { %v15378_v24 = vmul.f32 1.442695, %v15355_v30 }
 0x944   : > { %v15335_v57 = vpop.xlane.xlu0 %15334 }
 0x945   : > { %21507 = vpow2.f32 %v15378_v24  ;;  %v15357_v41 = vsub.f32 %v27247_v7, %v15335_v57  ;;  %v15341_v26 = vpop.xlane.xlu1 %15340 }
 0x946   : > { %21509 = vpow2.f32 %v15376_v40  ;;  %v15360_v30 = vsub.f32 %v27263_v22, %v15341_v26 }
 0x947   : > { %v27307_v18 = vpop.eup %21499  ;;  %v15382_v61 = vmul.f32 1.442695, %v15357_v41 }
 0x948   : > { %v27309_v42 = vpop.eup %21501  ;;  %v15339_v3 = vpop.xlane.xlu0 %15338  ;;  %15402 = vadd.xlane.f32.xlu0 %v27307_v18 }
 0x949   : > { %v15359_v9 = vsub.f32 %v27252_v34, %v15339_v3  ;;  %15400 = vadd.xlane.f32.xlu1 %v27309_v42  ;;  %21511 = vpow2.f32 %v15382_v61  ;;  %v15384_v34 = vmul.f32 1.442695, %v15358_v33  ;;  %v15345_v57 = vpop.xlane.xlu1 %15344 }
 0x94b   : > { %v27315_v58 = vpop.eup %21503  ;;  %v15386_v35 = vmul.f32 1.442695, %v15359_v9 }
 0x94c   : > { %v27317_v7 = vpop.eup %21505  ;;  %v15343_v11 = vpop.xlane.xlu0 %15342  ;;  %15406 = vadd.xlane.f32.xlu0 %v27315_v58 }
 0x94d   : > { %21513 = vpow2.f32 %v15386_v35  ;;  %15404 = vadd.xlane.f32.xlu1 %v27317_v7  ;;  %v15361_v52 = vsub.f32 %v27261_v44, %v15343_v11  ;;  %v15362_v44 = vsub.f32 %v27268_v46, %v15345_v57 }
 0x94e   : > { %21515 = vpow2.f32 %v15380_v1 }
 0x94f   : > { %v27322_v49 = vpop.eup %21507  ;;  %21517 = vpow2.f32 %v15384_v34  ;;  %v15390_v43 = vmul.f32 1.442695, %v15361_v52  ;;  %v15392_v22 = vmul.f32 1.442695, %v15362_v44 }
 0x950   : > { %15410 = vadd.xlane.f32.xlu0 %v27322_v49  ;;  %v15347_v53 = vpop.xlane.xlu0 %15346  ;;  %v27327_v15 = vpop.eup %21509 }
 0x951   : > { %v15363_v28 = vsub.f32 %v27266_v63, %v15347_v53  ;;  %v15388_v63 = vmul.f32 1.442695, %v15360_v30 }
 0x953   : > { %v15394_v32 = vmul.f32 1.442695, %v15363_v28  ;;  %v27331_v24 = vpop.eup %21511 }
 0x954   : > { %15408 = vadd.xlane.f32.xlu0 %v27327_v15 }
 0x955   : > { %21519 = vpow2.f32 %v15394_v32 }
 0x956   : > { %21521 = vpow2.f32 %v15390_v43 }
 0x957   : > { %v27333_v40 = vpop.eup %21513  ;;  %21523 = vpow2.f32 %v15388_v63 }
 0x958   : > { %15414 = vadd.xlane.f32.xlu0 %v27331_v24  ;;  %15418 = vadd.xlane.f32.xlu1 %v27333_v40  ;;  %v27338_v41 = vpop.eup %21515  ;;  %21525 = vpow2.f32 %v15392_v22 }
 0x959   : > { %v27341_v61 = vpop.eup %21517 }
 0x95c   : > { %15412 = vadd.xlane.f32.xlu0 %v27338_v41 }
 0x95f   : > { %v27343_v3 = vpop.eup %21519 }
 0x960   : > { %15416 = vadd.xlane.f32.xlu0 %v27341_v61  ;;  %15426 = vadd.xlane.f32.xlu1 %v27343_v3  ;;  %v27347_v20 = vpop.eup %21521 }
 0x961   : > { %v27350_v46 = vpop.eup %21523 }
 0x962   : > { %v27353_v17 = vpop.eup %21525 }
 0x964   : > { %15422 = vadd.xlane.f32.xlu0 %v27347_v20 }
 0x968   : > { %15420 = vadd.xlane.f32.xlu0 %v27350_v46 }
 0x96c   : > { %15424 = vadd.xlane.f32.xlu0 %v27353_v17 }
 0x971   : > { %15639 = vrot.lane.b32.xlu1 %v26976_v12, %s27913_s1  ;;  %v21405_v12 = vpop.permute.xlu1 %21404 }
 0x975   : > { %15641 = vrot.lane.b32.xlu1 %v26998_v60, %s27913_s1  ;;  %v21410_v60 = vpop.permute.xlu1 %21409 }
 0x979   : > { %15643 = vrot.lane.b32.xlu1 %v26992_v54, %s27913_s1  ;;  %v27923_v54 = vpack.i.bf16 %v27138_v5, %v27141_v38  ;;  %v21396_v38 = vunpack.i.l.bf16 %v27286_v37 }
 0x97d   : > { %15645 = vrot.lane.b32.xlu1 %v27017_v25, %s27913_s1  ;;  %v27925_v25 = vpack.i.bf16 %v27162_v13, %v27165_v10 }
 0x981   : > { %15647 = vrot.lane.b32.xlu1 %v27013_v23, %s27913_s1  ;;  %v27924_v23 = vpack.i.bf16 %v27148_v14, %v27151_v8 }
 0x982   : > { %15637 = vrot.lane.b32.xlu0 %v26980_v21, %s27913_s1  ;;  %v27922_v21 = vpack.i.bf16 %v27124_v55, %v27127_v29  ;;  %v21392_v55 = vunpack.i.h.bf16 %v27284_v31  ;;  %v21391_v29 = vunpack.i.l.bf16 %v27284_v31 }
 0x984   : > { %v19735_v5 = vpack.c.bf16 %v21392_v55, %v21391_v29 }
 0x985   : > { %15651 = vrot.lane.b32.xlu1 %v27028_v51, %s27913_s1 }
 0x986   : > { %15649 = vrot.lane.b32.xlu0 %v27032_v2, %s27913_s1  ;;  %v27926_v2 = vpack.i.bf16 %v27176_v4, %v27179_v39  ;;  %v21407_v39 = vunpack.i.h.bf16 %v21405_v12 }
 0x989   : > { %15655 = vrot.lane.b32.xlu1 %v27041_v36, %s27913_s1 }
 0x98a   : > { %15653 = vrot.lane.b32.xlu0 %v27049_v47, %s27913_s1 }
 0x98d   : > { %15659 = vrot.lane.b32.xlu1 %v27061_v50, %s27913_s1 }
 0x98e   : > { %15657 = vrot.lane.b32.xlu0 %v27069_v27, %s27913_s1  ;;  %v21387_v27 = vunpack.i.h.bf16 %v27302_v45 }
 0x991   : > { %15663 = vrot.lane.b32.xlu1 %v27083_v59, %s27913_s1  ;;  %v21386_v59 = vunpack.i.l.bf16 %v27302_v45  ;;  %v21411_v45 = vunpack.i.l.bf16 %v21410_v60 }
 0x992   : > { %15661 = vrot.lane.b32.xlu0 %v27089_v19, %s27913_s1 }
 0x995   : > { %15667 = vrot.lane.b32.xlu1 %v27103_v56, %s27913_s1 }
 0x996   : > { %15665 = vrot.lane.b32.xlu0 %v27109_v0, %s27913_s1  ;;  %v19729_v0 = vpack.c.bf16 %v21387_v27, %v21386_v59 }
 0x999   : > { %21419 = vrot.lane.b32.xlu1 %v27922_v21, %s27913_s1 }
 0x99a   : > { %21424 = vrot.lane.b32.xlu0 %v27923_v54, %s27913_s1 }
 0x99d   : > { %21429 = vrot.lane.b32.xlu1 %v27924_v23, %s27913_s1 }
 0x99e   : > { %21434 = vrot.lane.b32.xlu0 %v27925_v25, %s27913_s1 }
 0x9a0   : > { %v15399_v51 = vpop.xlane.xlu0 %15398 }
 0x9a1   : > { %21527 = vrcp.f32 %v15399_v51  ;;  %21439 = vrot.lane.b32.xlu1 %v27926_v2, %s27913_s1  ;;  %v15397_v36 = vpop.xlane.xlu1 %15396 }
 0x9a2   : > { %21529 = vrcp.f32 %v15397_v36 }
 0x9a4   : > { %v21400_v8 = vpop.permute.xlu0 %21399 }
 0x9a5   : > { %v21402_v13 = vunpack.i.h.bf16 %v21400_v8  ;;  %v21401_v10 = vunpack.i.l.bf16 %v21400_v8 }
 0x9a7   : > { %v19747_v4 = vpack.c.bf16 %v21402_v13, %v21401_v10 }
 0x9ab   : > { %v21528_v47 = vpop.eup %21527 }
 0x9ac   : > { %v21530_v50 = vpop.eup %21529  ;;  %v15445_v56 = vmul.f32 %v21528_v47, %v27288_v62  ;;  %v21412_v62 = vunpack.i.h.bf16 %v21410_v60 }
 0x9ad   : > { %v15444_v19 = vmul.f32 %v21530_v50, %v27290_v48  ;;  %v21397_v48 = vunpack.i.h.bf16 %v27286_v37  ;;  %v21415_v37 = vpop.permute.xlu1 %21414 }
 0x9ae   : > { %v19759_v33 = vpack.c.bf16 %v21412_v62, %v21411_v45  ;;  %v21417_v34 = vunpack.i.h.bf16 %v21415_v37  ;;  %v21416_v26 = vunpack.i.l.bf16 %v21415_v37 }
 0x9af   : > { %18862 = vmatprep.mubr.f32.mxu0 %v15444_v19  ;;  %v19741_v14 = vpack.c.bf16 %v21397_v48, %v21396_v38 }
 0x9b0   : > { %18863 = vmatmul.mubr.f32.vlgmr.msra.gmra.mrb[38].mxu0 %v15445_v56  ;;  %v19765_v28 = vpack.c.bf16 %v21417_v34, %v21416_v26 }
 0x9b1   : > { %19728 = vmatpush3.bf16.xpose.msk.msra.mxu0 %vm26985_vm2, %v27237_v6  ;;  %v21406_v6 = vunpack.i.l.bf16 %v21405_v12 }
 0x9b2   : > { %19731 = vmatprep.subr.msk.bf16.mxu0 %vm26985_vm2, %v19729_v0 }
 0x9b3   : > { %v19753_v31 = vpack.c.bf16 %v21407_v39, %v21406_v6 }
 0x9b9   : > { %19734 = vmatpush3.bf16.xpose.msk.msra.mxu0 %vm26985_vm2, %v19729_v0 }
 0x9ba   : > { %19737 = vmatprep.subr.msk.bf16.mxu0 %vm26985_vm2, %v19735_v5 }
 0x9c1   : > { %19740 = vmatpush3.bf16.xpose.msk.msra.mxu0 %vm26985_vm2, %v19735_v5 }
 0x9c2   : > { %19743 = vmatprep.subr.msk.bf16.mxu0 %vm26985_vm2, %v19741_v14 }
 0x9c9   : > { %19746 = vmatpush3.bf16.xpose.msk.msra.mxu0 %vm26985_vm2, %v19741_v14 }
 0x9ca   : > { %19749 = vmatprep.subr.msk.bf16.mxu0 %vm26985_vm2, %v19747_v4 }
 0x9d1   : > { %19752 = vmatpush3.bf16.xpose.msk.msra.mxu0 %vm26985_vm2, %v19747_v4 }
 0x9d2   : > { %19755 = vmatprep.subr.msk.bf16.mxu0 %vm26985_vm2, %v19753_v31 }
 0x9d5   : > { %v15403_v9 = vpop.xlane.xlu0 %15402 }
 0x9d6   : > { %21531 = vrcp.f32 %v15403_v9  ;;  %v15401_v35 = vpop.xlane.xlu1 %15400 }
 0x9d7   : > { %21533 = vrcp.f32 %v15401_v35 }
 0x9d9   : > { %19758 = vmatpush3.bf16.xpose.msk.msra.mxu0 %vm26985_vm2, %v19753_v31  ;;  %v15407_v11 = vpop.xlane.xlu0 %15406 }
 0x9da   : > { %21535 = vrcp.f32 %v15407_v11  ;;  %19761 = vmatprep.subr.msk.bf16.mxu0 %vm26985_vm2, %v19759_v33  ;;  %v15405_v1 = vpop.xlane.xlu1 %15404 }
 0x9db   : > { %21537 = vrcp.f32 %v15405_v1 }
 0x9dd   : > { %v15411_v53 = vpop.xlane.xlu0 %15410 }
 0x9de   : > { %21539 = vrcp.f32 %v15411_v53 }
 0x9e0   : > { %v21532_v52 = vpop.eup %21531 }
 0x9e1   : > { %v21534_v32 = vpop.eup %21533  ;;  %19764 = vmatpush3.bf16.xpose.msk.msra.mxu0 %vm26985_vm2, %v19759_v33  ;;  %v15409_v30 = vpop.xlane.xlu0 %15408  ;;  %v15447_v57 = vmul.f32 %v21532_v52, %v27307_v18 }
 0x9e2   : > { %21541 = vrcp.f32 %v15409_v30  ;;  %19767 = vmatprep.subr.msk.bf16.mxu0 %vm26985_vm2, %v19765_v28  ;;  %v15446_v43 = vmul.f32 %v21534_v32, %v27309_v42 }
 0x9e4   : > { %v21536_v63 = vpop.eup %21535  ;;  %18865 = vmatprep.mubr.f32.mxu0 %v15446_v43 }
 0x9e5   : > { %v21538_v44 = vpop.eup %21537  ;;  %v15415_v22 = vpop.xlane.xlu0 %15414  ;;  %18866 = vmatmul.mubr.f32.gmra.mrb[40].mxu0 %v15447_v57  ;;  %v15449_v21 = vmul.f32 %v21536_v63, %v27315_v58 }
 0x9e6   : > { %v15448_v12 = vmul.f32 %v21538_v44, %v27317_v7  ;;  %21543 = vrcp.f32 %v15415_v22  ;;  %v15419_v54 = vpop.xlane.xlu1 %15418 }
 0x9e8   : > { %18868 = vmatprep.mubr.f32.mxu0 %v15448_v12  ;;  %v21540_v42 = vpop.eup %21539 }
 0x9e9   : > { %19770 = vmatpush3.bf16.xpose.msk.msra.mxu0 %vm26985_vm2, %v19765_v28  ;;  %v15413_v60 = vpop.xlane.xlu0 %15412  ;;  %v15451_v7 = vmul.f32 %v21540_v42, %v27322_v49 }
 0x9ea   : > { %21545 = vrcp.f32 %v15413_v60  ;;  %18869 = vmatmul.mubr.f32.gmra.mrb[42].mxu0 %v15449_v21 }
 0x9eb   : > { %21547 = vrcp.f32 %v15419_v54 }
 0x9ec   : > { %v21542_v18 = vpop.eup %21541 }
 0x9ed   : > { %v15417_v23 = vpop.xlane.xlu0 %15416  ;;  %v15427_v25 = vpop.xlane.xlu1 %15426  ;;  %v15450_v51 = vmul.f32 %v21542_v18, %v27327_v15 }
 0x9ee   : > { %21549 = vrcp.f32 %v15417_v23 }
 0x9ef   : > { %18871 = vmatprep.mubr.f32.mxu0 %v15450_v51 }
 0x9f0   : > { %18872 = vmatmul.mubr.f32.gmra.mrb[44].mxu0 %v15451_v7  ;;  %v21544_v36 = vpop.eup %21543 }
 0x9f1   : > { %v15423_v58 = vpop.xlane.xlu0 %15422  ;;  %v15640_v2 = vpop.permute.xlu1 %15639  ;;  %v15453_v59 = vmul.f32 %v21544_v36, %v27331_v24 }
 0x9f2   : > { %21551 = vrcp.f32 %v15423_v58 }
 0x9f4   : > { %v21546_v16 = vpop.eup %21545 }
 0x9f5   : > { %v15421_v47 = vpop.xlane.xlu0 %15420  ;;  %v15642_v50 = vpop.permute.xlu1 %15641  ;;  %v15452_v27 = vmul.f32 %v21546_v16, %v27338_v41 }
 0x9f6   : > { %21553 = vrcp.f32 %v15421_v47  ;;  %v21548_v19 = vpop.eup %21547 }
 0x9f7   : > { %18874 = vmatprep.mubr.f32.mxu0 %v15452_v27  ;;  %21555 = vrcp.f32 %v15427_v25  ;;  %v15455_v55 = vmul.f32 %v21548_v19, %v27333_v40 }
 0x9f8   : > { %v21550_v15 = vpop.eup %21549  ;;  %18875 = vmatmul.mubr.f32.gmra.mrb[46].mxu0 %v15453_v59 }
 0x9f9   : > { %v15425_v49 = vpop.xlane.xlu0 %15424  ;;  %v15644_v56 = vpop.permute.xlu1 %15643  ;;  %v15454_v0 = vmul.f32 %v21550_v15, %v27341_v61 }
 0x9fa   : > { %21557 = vrcp.f32 %v15425_v49 }
 0x9fb   : > { %18877 = vmatprep.mubr.f32.mxu0 %v15454_v0 }
 0x9fc   : > { %18878 = vmatmul.mubr.f32.gmra.mrb[48].mxu0 %v15455_v55  ;;  %v21552_v41 = vpop.eup %21551 }
 0x9fd   : > { %v15638_v29 = vpop.permute.xlu0 %15637  ;;  %v15646_v5 = vpop.permute.xlu1 %15645  ;;  %v15457_v8 = vmul.f32 %v21552_v41, %v27347_v20 }
 0xa00   : > { %v21554_v48 = vpop.eup %21553 }
 0xa01   : > { %v15650_v38 = vpop.permute.xlu0 %15649  ;;  %v15648_v24 = vpop.permute.xlu1 %15647  ;;  %v15456_v14 = vmul.f32 %v21554_v48, %v27350_v46 }
 0xa02   : > { %v21556_v13 = vpop.eup %21555 }
 0xa03   : > { %18880 = vmatprep.mubr.f32.mxu0 %v15456_v14  ;;  %v15459_v39 = vmul.f32 %v21556_v13, %v27343_v3 }
 0xa04   : > { %v21558_v10 = vpop.eup %21557  ;;  %18881 = vmatmul.mubr.f32.gmra.mrb[50].mxu0 %v15457_v8 }
 0xa05   : > { %v15654_v61 = vpop.permute.xlu0 %15653  ;;  %v15652_v4 = vpop.permute.xlu1 %15651  ;;  %v15458_v40 = vmul.f32 %v21558_v10, %v27353_v17  ;;  %v27927_v10 = vld [vmem:[#allocation7_spill] sm:$0xff] }
 0xa07   : > { %18883 = vmatprep.mubr.f32.mxu0 %v15458_v40  ;;  %v27930_v40 = vld [vmem:[#allocation9_spill] sm:$0xff] }
 0xa08   : > { %18884 = vmatmul.mubr.f32.gmra.mrb[52].mxu0 %v15459_v39  ;;  %v27931_v39 = vld [vmem:[#allocation10_spill] sm:$0xff] }
 0xa09   : > { %v15658_v6 = vpop.permute.xlu0 %15657  ;;  %18918 = vmatprep.mubr.msk.f32.mxu0 %vm15074_vm10, %v15638_v29  ;;  %v15656_v31 = vpop.permute.xlu1 %15655 }
 0xa0c   : > { %18919 = vmatmul.mubr.msk.f32.vlgmr.msra.gmra.mrb[54].mxu0 %vm15074_vm10, %v15640_v2 }
 0xa0d   : > { %v15662_v46 = vpop.permute.xlu0 %15661  ;;  %v15660_v20 = vpop.permute.xlu1 %15659  ;;  %18921 = vmatprep.mubr.msk.f32.mxu0 %vm15074_vm10, %v15642_v50 }
 0xa10   : > { %18922 = vmatmul.mubr.msk.f32.gmra.mrb[56].mxu0 %vm15074_vm10, %v15644_v56 }
 0xa11   : > { %v15666_v37 = vpop.permute.xlu0 %15665  ;;  %v15664_v62 = vpop.permute.xlu1 %15663  ;;  %18924 = vmatprep.mubr.msk.f32.mxu0 %vm15074_vm10, %v15646_v5 }
 0xa14   : > { %18925 = vmatmul.mubr.msk.f32.gmra.mrb[58].mxu0 %vm15074_vm10, %v15648_v24 }
 0xa15   : > { %v15668_v3 = vpop.permute.xlu1 %15667  ;;  %18927 = vmatprep.mubr.msk.f32.mxu0 %vm15074_vm10, %v15650_v38  ;;  %v21425_v17 = vpop.permute.xlu0 %21424 }
 0xa16   : > { %v21427_v9 = vunpack.i.h.bf16 %v21425_v17  ;;  %v21426_v35 = vunpack.i.l.bf16 %v21425_v17 }
 0xa18   : > { %18928 = vmatmul.mubr.msk.f32.gmra.mrb[60].mxu0 %vm15074_vm10, %v15652_v4  ;;  %v19775_v26 = vpack.c.bf16 %v21427_v9, %v21426_v35 }
 0xa19   : > { %v21420_v45 = vpop.permute.xlu1 %21419  ;;  %18930 = vmatprep.mubr.msk.f32.mxu0 %vm15074_vm10, %v15654_v61  ;;  %v21435_v28 = vpop.permute.xlu0 %21434  ;;  %v27928_v61 = vld [vmem:[#allocation8_spill] sm:$0xff] }
 0xa1a   : > { %v21422_v33 = vunpack.i.h.bf16 %v21420_v45  ;;  %v21421_v11 = vunpack.i.l.bf16 %v21420_v45  ;;  %v21437_v32 = vunpack.i.h.bf16 %v21435_v28  ;;  %v21436_v30 = vunpack.i.l.bf16 %v21435_v28 }
 0xa1b   : > { %v27929_v4 = vpack.i.bf16 %v27927_v10, %v27928_v61 }
 0xa1c   : > { %v19771_v1 = vpack.c.bf16 %v21422_v33, %v21421_v11  ;;  %18931 = vmatmul.mubr.msk.f32.gmra.mrb[62].mxu0 %vm15074_vm10, %v15656_v31  ;;  %v19783_v63 = vpack.c.bf16 %v21437_v32, %v21436_v30 }
 0xa1d   : > { %v21430_v34 = vpop.permute.xlu1 %21429  ;;  %18933 = vmatprep.mubr.msk.f32.mxu0 %vm15074_vm10, %v15658_v6  ;;  %v27932_v6 = vpack.i.bf16 %v27930_v40, %v27931_v39 }
 0xa1e   : > { %v21432_v53 = vunpack.i.h.bf16 %v21430_v34  ;;  %v21431_v52 = vunpack.i.l.bf16 %v21430_v34  ;;  %19772 = vmatprep.subr.bf16.mxu1 %v19771_v1 }
 0xa1f   : > { %19774 = vmatpush3.bf16.msra.mxu1 %v19771_v1 }
 0xa20   : > { %18934 = vmatmul.mubr.msk.f32.gmra.mrb[64].mxu0 %vm15074_vm10, %v15660_v20  ;;  %19776 = vmatprep.subr.bf16.mxu1 %v19775_v26  ;;  %v19779_v43 = vpack.c.bf16 %v21432_v53, %v21431_v52 }
 0xa21   : > { %18936 = vmatprep.mubr.msk.f32.mxu0 %vm15074_vm10, %v15662_v46  ;;  %v21440_v57 = vpop.permute.xlu1 %21439 }
 0xa22   : > { %v21442_v44 = vunpack.i.h.bf16 %v21440_v57  ;;  %v21441_v22 = vunpack.i.l.bf16 %v21440_v57 }
 0xa23   : > { %19778 = vmatpush3.bf16.msra.mxu1 %v19775_v26 }
 0xa24   : > { %18937 = vmatmul.mubr.msk.f32.gmra.mrb[66].mxu0 %vm15074_vm10, %v15664_v62  ;;  %19780 = vmatprep.subr.bf16.mxu1 %v19779_v43  ;;  %v19787_v12 = vpack.c.bf16 %v21442_v44, %v21441_v22 }
 0xa25   : > { %18939 = vmatprep.mubr.msk.f32.mxu0 %vm15074_vm10, %v15666_v37 }
 0xa27   : > { %19782 = vmatpush3.bf16.msra.mxu1 %v19779_v43 }
 0xa28   : > { %18940 = vmatmul.mubr.msk.f32.gmra.mrb[68].mxu0 %vm15074_vm10, %v15668_v3  ;;  %19784 = vmatprep.subr.bf16.mxu1 %v19783_v63 }
 0xa2b   : > { %19786 = vmatpush3.bf16.msra.mxu1 %v19783_v63 }
 0xa2c   : > { %19788 = vmatprep.subr.bf16.mxu1 %v19787_v12 }
 0xa2f   : > { %19790 = vmatpush3.bf16.msra.mxu1 %v19787_v12 }
 0xa83   : > { %v27477_v21 = vpop.f32.mrb[38].mxu0 }
 0xa84   : > { %v27479_v54 = vpop.f32.mrb[39].mxu0 }
 0xab8   : > { %v27481_v60 = vpop.f32.mrb[40].mxu0 }
 0xab9   : > { %v27483_v42 = vpop.f32.mrb[41].mxu0 }
 0xabd   : > { %v27485_v18 = vpop.f32.mrb[42].mxu0 }
 0xabe   : > { %v27487_v23 = vpop.f32.mrb[43].mxu0 }
 0xac3   : > { %v27489_v25 = vpop.f32.mrb[44].mxu0 }
 0xac4   : > { %v27491_v51 = vpop.f32.mrb[45].mxu0 }
 0xacb   : > { %v27493_v7 = vpop.f32.mrb[46].mxu0 }
 0xacc   : > { %v27495_v58 = vpop.f32.mrb[47].mxu0 }
 0xacf   : > { %v27497_v2 = vpop.f32.mrb[48].mxu0 }
 0xad0   : > { %v27499_v36 = vpop.f32.mrb[49].mxu0 }
 0xad7   : > { %v27501_v16 = vpop.f32.mrb[50].mxu0 }
 0xad8   : > { %v27503_v47 = vpop.f32.mrb[51].mxu0 }
 0xadb   : > { %v27505_v50 = vpop.f32.mrb[52].mxu0 }
 0xadc   : > { %v27507_v27 = vpop.f32.mrb[53].mxu0 }
 0xadf   : > { %v18920_v59 = vpop.f32.mrb[54].mxu0 }
 0xae0   : > { %15912 = vmax.xlane.f32.xlu1 %v18920_v59  ;;  %v15831_v19 = vpop.f32.mrb[55].mxu0 }
 0xae1   : > { %15910 = vmax.xlane.f32.xlu0 %v15831_v19 }
 0xae3   : > { %v18923_v15 = vpop.f32.mrb[56].mxu0 }
 0xae4   : > { %v15841_v49 = vpop.f32.mrb[57].mxu0 }
 0xae5   : > { %15916 = vmax.xlane.f32.xlu0 %v18923_v15 }
 0xae7   : > { %v18926_v56 = vpop.f32.mrb[58].mxu0 }
 0xae8   : > { %v15851_v0 = vpop.f32.mrb[59].mxu0 }
 0xae9   : > { %15914 = vmax.xlane.f32.xlu0 %v15841_v49  ;;  %15918 = vmax.xlane.f32.xlu1 %v15851_v0 }
 0xaeb   : > { %v18929_v55 = vpop.f32.mrb[60].mxu0 }
 0xaec   : > { %v15861_v29 = vpop.f32.mrb[61].mxu0 }
 0xaed   : > { %15920 = vmax.xlane.f32.xlu0 %v18926_v56  ;;  %15922 = vmax.xlane.f32.xlu1 %v15861_v29 }
 0xaef   : > { %v27509_v5 = vpop.f32.mrb[62].mxu0 }
 0xaf0   : > { %v27511_v41 = vpop.f32.mrb[63].mxu0 }
 0xaf1   : > { %15924 = vmax.xlane.f32.xlu0 %v18929_v55  ;;  %15926 = vmax.xlane.f32.xlu1 %v27511_v41 }
 0xaf3   : > { %v27514_v48 = vpop.f32.mrb[64].mxu0 }
 0xaf4   : > { %v27516_v38 = vpop.f32.mrb[65].mxu0 }
 0xaf5   : > { %15928 = vmax.xlane.f32.xlu0 %v27509_v5  ;;  %15930 = vmax.xlane.f32.xlu1 %v27516_v38 }
 0xaf7   : > { %v27520_v24 = vpop.f32.mrb[66].mxu0 }
 0xaf8   : > { %v27522_v14 = vpop.f32.mrb[67].mxu0 }
 0xaf9   : > { %15932 = vmax.xlane.f32.xlu0 %v27514_v48  ;;  %15934 = vmax.xlane.f32.xlu1 %v27522_v14 }
 0xafb   : > { %v27526_v8 = vpop.f32.mrb[68].mxu0 }
 0xafc   : > { %v27528_v13 = vpop.f32.mrb[69].mxu0 }
 0xafd   : > { %15936 = vmax.xlane.f32.xlu0 %v27520_v24  ;;  %15938 = vmax.xlane.f32.xlu1 %v27528_v13 }
 0xb01   : > { %15940 = vmax.xlane.f32.xlu0 %v27526_v8 }
 0xb0e   : > { %21444 = vrot.lane.b32.xlu1 %v27929_v4, %s27913_s1 }
 0xb17   : > { %21449 = vrot.lane.b32.xlu0 %v27932_v6, %s27913_s1 }
 0xb6d   : > { %v15913_v31 = vpop.xlane.xlu1 %15912 }
 0xb6e   : > { %v15943_v46 = vsub.f32 %v18920_v59, %v15913_v31  ;;  %v15911_v20 = vpop.xlane.xlu0 %15910 }
 0xb6f   : > { %v15942_v37 = vsub.f32 %v15831_v19, %v15911_v20 }
 0xb70   : > { %v15960_v62 = vmul.f32 1.442695, %v15943_v46 }
 0xb71   : > { %v15958_v3 = vmul.f32 1.442695, %v15942_v37 }
 0xb72   : > { %21559 = vpow2.f32 %v15960_v62  ;;  %v15917_v17 = vpop.xlane.xlu0 %15916 }
 0xb73   : > { %21561 = vpow2.f32 %v15958_v3  ;;  %v15945_v45 = vsub.f32 %v18923_v15, %v15917_v17 }
 0xb75   : > { %v15964_v9 = vmul.f32 1.442695, %v15945_v45 }
 0xb76   : > { %v15915_v35 = vpop.xlane.xlu0 %15914  ;;  %v15919_v33 = vpop.xlane.xlu1 %15918 }
 0xb77   : > { %21563 = vpow2.f32 %v15964_v9  ;;  %v15944_v11 = vsub.f32 %v15841_v49, %v15915_v35  ;;  %v15946_v1 = vsub.f32 %v15851_v0, %v15919_v33 }
 0xb79   : > { %v15962_v34 = vmul.f32 1.442695, %v15944_v11  ;;  %v15966_v26 = vmul.f32 1.442695, %v15946_v1 }
 0xb7a   : > { %v15921_v53 = vpop.xlane.xlu0 %15920  ;;  %v15923_v52 = vpop.xlane.xlu1 %15922 }
 0xb7b   : > { %21565 = vpow2.f32 %v15962_v34  ;;  %v15947_v28 = vsub.f32 %v18926_v56, %v15921_v53  ;;  %v15948_v44 = vsub.f32 %v15861_v29, %v15923_v52  ;;  %v27933_v53 = vld [vmem:[#allocation11_spill] sm:$0xff]  ;;  %v27934_v52 = vld [vmem:[#allocation12_spill] sm:$0xff] }
 0xb7c   : > { %v27541_v32 = vpop.eup %21559  ;;  %21567 = vpow2.f32 %v15966_v26 }
 0xb7d   : > { %v27543_v30 = vpop.eup %21561  ;;  %v15968_v43 = vmul.f32 1.442695, %v15947_v28  ;;  %15992 = vadd.xlane.f32.xlu0 %v27541_v32  ;;  %v15970_v49 = vmul.f32 1.442695, %v15948_v44  ;;  %v27935_v28 = vpack.i.bf16 %v27933_v53, %v27934_v52 }
 0xb7e   : > { %v15925_v57 = vpop.xlane.xlu0 %15924  ;;  %v15927_v63 = vpop.xlane.xlu1 %15926  ;;  %15990 = vadd.xlane.f32.xlu1 %v27543_v30 }
 0xb7f   : > { %21569 = vpow2.f32 %v15968_v43  ;;  %v15949_v22 = vsub.f32 %v18929_v55, %v15925_v57  ;;  %v15950_v56 = vsub.f32 %v27511_v41, %v15927_v63 }
 0xb81   : > { %v27547_v12 = vpop.eup %21563  ;;  %v15972_v59 = vmul.f32 1.442695, %v15949_v22  ;;  %v15974_v55 = vmul.f32 1.442695, %v15950_v56 }
 0xb82   : > { %v15929_v19 = vpop.xlane.xlu0 %15928  ;;  %v15931_v15 = vpop.xlane.xlu1 %15930  ;;  %15996 = vadd.xlane.f32.xlu0 %v27547_v12 }
 0xb83   : > { %21571 = vpow2.f32 %v15972_v59  ;;  %v15952_v29 = vsub.f32 %v27516_v38, %v15931_v15  ;;  %v15951_v44 = vsub.f32 %v27509_v5, %v15929_v19 }
 0xb84   : > { %21573 = vpow2.f32 %v15970_v49 }
 0xb85   : > { %v27551_v0 = vpop.eup %21565  ;;  %21575 = vpow2.f32 %v15974_v55  ;;  %v15978_v31 = vmul.f32 1.442695, %v15952_v29  ;;  %v15976_v22 = vmul.f32 1.442695, %v15951_v44 }
 0xb86   : > { %v27553_v10 = vpop.eup %21567  ;;  %v15933_v61 = vpop.xlane.xlu0 %15932  ;;  %15994 = vadd.xlane.f32.xlu0 %v27551_v0 }
 0xb87   : > { %v15935_v4 = vpop.xlane.xlu1 %15934  ;;  %15998 = vadd.xlane.f32.xlu1 %v27553_v10  ;;  %21577 = vpow2.f32 %v15978_v31  ;;  %v15953_v59 = vsub.f32 %v27514_v48, %v15933_v61 }
 0xb88   : > { %v15954_v39 = vsub.f32 %v27522_v14, %v15935_v4 }
 0xb89   : > { %v27558_v40 = vpop.eup %21569  ;;  %v15980_v15 = vmul.f32 1.442695, %v15953_v59 }
 0xb8a   : > { %v15937_v6 = vpop.xlane.xlu0 %15936  ;;  %16000 = vadd.xlane.f32.xlu0 %v27558_v40  ;;  %v15982_v20 = vmul.f32 1.442695, %v15954_v39 }
 0xb8b   : > { %v15939_v41 = vpop.xlane.xlu1 %15938  ;;  %v15955_v49 = vsub.f32 %v27520_v24, %v15937_v6 }
 0xb8c   : > { %v15956_v38 = vsub.f32 %v27528_v13, %v15939_v41  ;;  %21579 = vpow2.f32 %v15982_v20 }
 0xb8d   : > { %v27562_v46 = vpop.eup %21571  ;;  %v15984_v56 = vmul.f32 1.442695, %v15955_v49 }
 0xb8e   : > { %16004 = vadd.xlane.f32.xlu0 %v27562_v46  ;;  %v15941_v37 = vpop.xlane.xlu0 %15940  ;;  %v27566_v45 = vpop.eup %21573  ;;  %v15986_v35 = vmul.f32 1.442695, %v15956_v38 }
 0xb8f   : > { %v21445_v62 = vpop.permute.xlu1 %21444  ;;  %v15957_v33 = vsub.f32 %v27526_v8, %v15941_v37  ;;  %v27570_v34 = vpop.eup %21575 }
 0xb90   : > { %v21447_v3 = vunpack.i.h.bf16 %v21445_v62  ;;  %v21446_v17 = vunpack.i.l.bf16 %v21445_v62  ;;  %21581 = vpow2.f32 %v15986_v35 }
 0xb91   : > { %v15988_v13 = vmul.f32 1.442695, %v15957_v33  ;;  %v27577_v43 = vpop.eup %21577 }
 0xb92   : > { %v19791_v14 = vpack.c.bf16 %v21447_v3, %v21446_v17  ;;  %16002 = vadd.xlane.f32.xlu0 %v27566_v45  ;;  %v21450_v9 = vpop.permute.xlu0 %21449 }
 0xb93   : > { %v21452_v11 = vunpack.i.h.bf16 %v21450_v9  ;;  %v21451_v1 = vunpack.i.l.bf16 %v21450_v9  ;;  %21583 = vpow2.f32 %v15988_v13 }
 0xb94   : > { %19792 = vmatprep.subr.bf16.mxu1 %v19791_v14  ;;  %21585 = vpow2.f32 %v15976_v22 }
 0xb95   : > { %19794 = vmatpush3.bf16.msra.mxu1 %v19791_v14  ;;  %v19795_v26 = vpack.c.bf16 %v21452_v11, %v21451_v1  ;;  %21587 = vpow2.f32 %v15980_v15 }
 0xb96   : > { %16006 = vadd.xlane.f32.xlu0 %v27570_v34  ;;  %v27580_v8 = vpop.eup %21579  ;;  %21589 = vpow2.f32 %v15984_v56 }
 0xb97   : > { %19796 = vmatprep.subr.bf16.mxu1 %v19795_v26 }
 0xb98   : > { %21454 = vrot.lane.b32.xlu1 %v27935_v28, %s27913_s1  ;;  %s21677_s1 = scalar_lea.vmem %s21676_s29, 32 }
 0xb99   : > { %19798 = vmatpush3.bf16.msra.mxu1 %v19795_v26  ;;  %p21679_p1 = scmp.lt.s32.totalorder %s21677_s1, %s21671_s19 }
 0xb9a   : > { %16010 = vadd.xlane.f32.xlu0 %v27577_v43  ;;  %v27583_v57 = vpop.eup %21581 }
 0xb9b   : > { %p21680_p2 = por %p21679_p1, %p21678_p0 }
 0xb9d   : > { %v27586_v63 = vpop.eup %21583  ;;  %p21681_p3 = pnand %p21680_p2, %p21674_p13 }
 0xb9e   : > { %16014 = vadd.xlane.f32.xlu0 %v27580_v8  ;;  %v27592_v4 = vpop.eup %21585 }
 0xb9f   : > { %v27595_v55 = vpop.eup %21587 }
 0xba0   : > { %v27598_v29 = vpop.eup %21589 }
 0xba2   : > { %16018 = vadd.xlane.f32.xlu0 %v27583_v57 }
 0xba6   : > { %16020 = vadd.xlane.f32.xlu0 %v27586_v63 }
 0xbbc   : > { %16008 = vadd.xlane.f32.xlu1 %v27592_v4 }
 0xbc0   : > { %16012 = vadd.xlane.f32.xlu1 %v27595_v55 }
 0xbc4   : > { %16016 = vadd.xlane.f32.xlu1 %v27598_v29 }
 0xc0a   : > { %v15993_v5 = vpop.xlane.xlu0 %15992 }
 0xc0b   : > { %v15991_v48 = vpop.xlane.xlu1 %15990 }
 0xc0c   : > { %21591 = vrcp.f32 %v15991_v48 }
 0xc0d   : > { %21593 = vrcp.f32 %v15993_v5 }
 0xc0f   : > { %v15997_v19 = vpop.xlane.xlu0 %15996 }
 0xc13   : > { %v15995_v24 = vpop.xlane.xlu0 %15994 }
 0xc14   : > { %21595 = vrcp.f32 %v15995_v24  ;;  %v15999_v61 = vpop.xlane.xlu1 %15998 }
 0xc15   : > { %21597 = vrcp.f32 %v15997_v19 }
 0xc16   : > { %v21592_v39 = vpop.eup %21591  ;;  %21599 = vrcp.f32 %v15999_v61 }
 0xc17   : > { %v16001_v6 = vpop.xlane.xlu0 %16000  ;;  %v16038_v41 = vmul.f32 %v21592_v39, %v27543_v30  ;;  %v21594_v3 = vpop.eup %21593 }
 0xc18   : > { %v21455_v31 = vpop.permute.xlu1 %21454  ;;  %21601 = vrcp.f32 %v16001_v6  ;;  %v16039_v14 = vmul.f32 %v21594_v3, %v27541_v32  ;;  %v16333_v3 = vld [vmem:[%s27887_s12 + $0x100] sm:$0xff] }
 0xc19   : > { %v21457_v20 = vunpack.i.h.bf16 %v21455_v31  ;;  %v21456_v37 = vunpack.i.l.bf16 %v21455_v31  ;;  %18974 = vmatprep.mubr.f32.mxu1 %v16038_v41 }
 0xc1b   : > { %v19799_v62 = vpack.c.bf16 %v21457_v20, %v21456_v37  ;;  %v16005_v38 = vpop.xlane.xlu0 %16004  ;;  %v16302_v37 = vld [vmem:[%s27887_s12 + $0x8] sm:$0xff] }
 0xc1c   : > { %21603 = vrcp.f32 %v16005_v38 }
 0xc1d   : > { %19800 = vmatprep.subr.bf16.mxu1 %v19799_v62 }
 0xc1e   : > { %v21596_v17 = vpop.eup %21595  ;;  %19802 = vmatpush3.bf16.msra.mxu1 %v19799_v62 }
 0xc1f   : > { %v16003_v9 = vpop.xlane.xlu0 %16002  ;;  %v16040_v35 = vmul.f32 %v21596_v17, %v27551_v0  ;;  %v21598_v33 = vpop.eup %21597  ;;  %v16334_v17 = vld [vmem:[%s27887_s12 + $0x108] sm:$0xff] }
 0xc20   : > { %21605 = vrcp.f32 %v16003_v9  ;;  %v21600_v30 = vpop.eup %21599  ;;  %v16041_v1 = vmul.f32 %v21598_v33, %v27547_v12  ;;  %v19837_v9 = vpack.c.bf16 %v16334_v17, %v16333_v3  ;;  %v16351_v33 = vld [vmem:[%s27887_s12 + $0x190] sm:$0xff]  ;;  %v16342_v3 = vld [vmem:[%s27887_s12 + $0x148] sm:$0xff] }
 0xc21   : > { %18975 = vmatmul.mubr.f32.vlgmr.msra.gmra.mrb[38].mxu1 %v16039_v14  ;;  %v16042_v13 = vmul.f32 %v21600_v30, %v27553_v10  ;;  %v16319_v14 = vld [vmem:[%s27887_s12 + $0x90] sm:$0xff]  ;;  %v16352_v30 = vld [vmem:[%s27887_s12 + $0x198] sm:$0xff] }
 0xc22   : > { %18977 = vmatprep.mubr.f32.mxu1 %v16040_v35  ;;  %v21602_v26 = vpop.eup %21601  ;;  %v16320_v35 = vld [vmem:[%s27887_s12 + $0x98] sm:$0xff]  ;;  %v16327_v17 = vld [vmem:[%s27887_s12 + $0xd0] sm:$0xff] }
 0xc23   : > { %v16007_v11 = vpop.xlane.xlu0 %16006  ;;  %v16043_v32 = vmul.f32 %v21602_v26, %v27558_v40  ;;  %v16303_v26 = vld [vmem:[%s27887_s12 + $0x10] sm:$0xff] }
 0xc24   : > { %21607 = vrcp.f32 %v16007_v11  ;;  %v19807_v11 = vpack.c.bf16 %v16320_v35, %v16319_v14  ;;  %v16328_v14 = vld [vmem:[%s27887_s12 + $0xd8] sm:$0xff] }
 0xc25   : > { %18978 = vmatmul.mubr.f32.gmra.mrb[40].mxu1 %v16041_v1  ;;  %v19839_v1 = vpack.c.bf16 %v16352_v30, %v16351_v33  ;;  %v16360_v35 = vld [vmem:[%s27887_s12 + $0x1d8] sm:$0xff] }
 0xc26   : > { %18980 = vmatprep.mubr.f32.mxu1 %v16042_v13  ;;  %v21604_v53 = vpop.eup %21603  ;;  %v16304_v13 = vld [vmem:[%s27887_s12 + $0x18] sm:$0xff] }
 0xc27   : > { %v16045_v28 = vmul.f32 %v21604_v53, %v27562_v46  ;;  %v16011_v22 = vpop.xlane.xlu0 %16010  ;;  %v19809_v53 = vpack.c.bf16 %v16304_v13, %v16303_v26  ;;  %v16312_v26 = vld [vmem:[%s27887_s12 + $0x58] sm:$0xff]  ;;  %v16343_v13 = vld [vmem:[%s27887_s12 + $0x150] sm:$0xff] }
 0xc28   : > { %21609 = vrcp.f32 %v16011_v22  ;;  %v16353_v22 = vld [vmem:[%s27887_s12 + $0x1a0] sm:$0xff] }
 0xc29   : > { %18981 = vmatmul.mubr.f32.gmra.mrb[42].mxu1 %v16043_v32  ;;  %v16335_v32 = vld [vmem:[%s27887_s12 + $0x110] sm:$0xff] }
 0xc2a   : > { %v21606_v52 = vpop.eup %21605 }
 0xc2b   : > { %v16044_v0 = vmul.f32 %v21606_v52, %v27566_v45  ;;  %v16015_v59 = vpop.xlane.xlu0 %16014  ;;  %v16336_v52 = vld [vmem:[%s27887_s12 + $0x118] sm:$0xff] }
 0xc2d   : > { %18983 = vmatprep.mubr.f32.mxu1 %v16044_v0  ;;  %v16321_v0 = vld [vmem:[%s27887_s12 + $0xa0] sm:$0xff] }
 0xc2e   : > { %v21608_v44 = vpop.eup %21607  ;;  %18984 = vmatmul.mubr.f32.gmra.mrb[44].mxu1 %v16045_v28  ;;  %v16322_v28 = vld [vmem:[%s27887_s12 + $0xa8] sm:$0xff] }
 0xc2f   : > { %v16046_v12 = vmul.f32 %v21608_v44, %v27570_v34  ;;  %v16019_v15 = vpop.xlane.xlu0 %16018  ;;  %v19841_v44 = vpack.c.bf16 %v16336_v52, %v16335_v32  ;;  %v16329_v52 = vld [vmem:[%s27887_s12 + $0xe0] sm:$0xff] }
 0xc31   : > { %18986 = vmatprep.mubr.f32.mxu1 %v16046_v12  ;;  %v19811_v12 = vpack.c.bf16 %v16322_v28, %v16321_v0  ;;  %v16330_v0 = vld [vmem:[%s27887_s12 + $0xe8] sm:$0xff]  ;;  %v16361_v28 = vld [vmem:[%s27887_s12 + $0x1e0] sm:$0xff] }
 0xc32   : > { %v21610_v46 = vpop.eup %21609 }
 0xc33   : > { %v16021_v49 = vpop.xlane.xlu0 %16020  ;;  %v16048_v34 = vmul.f32 %v21610_v46, %v27577_v43 }
 0xc49   : > { %v16009_v10 = vpop.xlane.xlu1 %16008 }
 0xc4a   : > { %21611 = vrcp.f32 %v16009_v10  ;;  %v16305_v10 = vld [vmem:[%s27887_s12 + $0x20] sm:$0xff] }
 0xc4b   : > { %21613 = vrcp.f32 %v16015_v59  ;;  %v16354_v59 = vld [vmem:[%s27887_s12 + $0x1a8] sm:$0xff] }
 0xc4d   : > { %v16013_v40 = vpop.xlane.xlu1 %16012 }
 0xc4e   : > { %21615 = vrcp.f32 %v16013_v40  ;;  %v16306_v40 = vld [vmem:[%s27887_s12 + $0x28] sm:$0xff] }
 0xc4f   : > { %21617 = vrcp.f32 %v16019_v15  ;;  %v19843_v15 = vpack.c.bf16 %v16354_v59, %v16353_v22  ;;  %v19813_v46 = vpack.c.bf16 %v16306_v40, %v16305_v10  ;;  %v19827_v59 = vpack.c.bf16 %v16330_v0, %v16329_v52  ;;  %v16313_v10 = vld [vmem:[%s27887_s12 + $0x60] sm:$0xff] }
 0xc51   : > { %v16017_v45 = vpop.xlane.xlu1 %16016 }
 0xc52   : > { %21619 = vrcp.f32 %v16017_v45  ;;  %v16338_v45 = vld [vmem:[%s27887_s12 + $0x128] sm:$0xff] }
 0xc53   : > { %21621 = vrcp.f32 %v16021_v49  ;;  %v16337_v49 = vld [vmem:[%s27887_s12 + $0x120] sm:$0xff] }
 0xc54   : > { %v21612_v56 = vpop.eup %21611 }
 0xc55   : > { %v16047_v5 = vmul.f32 %v21612_v56, %v27592_v4  ;;  %v21614_v48 = vpop.eup %21613  ;;  %v16317_v4 = vld [vmem:[%s27887_s12 + $0x80] sm:$0xff]  ;;  %v16323_v56 = vld [vmem:[%s27887_s12 + $0xb0] sm:$0xff] }
 0xc56   : > { %v16050_v61 = vmul.f32 %v21614_v48, %v27580_v8  ;;  %v16318_v8 = vld [vmem:[%s27887_s12 + $0x88] sm:$0xff]  ;;  %v19845_v48 = vpack.c.bf16 %v16338_v45, %v16337_v49  ;;  %v16345_v49 = vld [vmem:[%s27887_s12 + $0x160] sm:$0xff] }
 0xc57   : > { %18987 = vmatmul.mubr.f32.gmra.mrb[46].mxu1 %v16047_v5  ;;  %v16324_v5 = vld [vmem:[%s27887_s12 + $0xb8] sm:$0xff]  ;;  %v16346_v45 = vld [vmem:[%s27887_s12 + $0x168] sm:$0xff] }
 0xc58   : > { %v21616_v19 = vpop.eup %21615  ;;  %18989 = vmatprep.mubr.f32.mxu1 %v16048_v34  ;;  %v16355_v34 = vld [vmem:[%s27887_s12 + $0x1b0] sm:$0xff] }
 0xc59   : > { %v16049_v24 = vmul.f32 %v21616_v19, %v27595_v55  ;;  %v21618_v39 = vpop.eup %21617  ;;  %v16349_v55 = vld [vmem:[%s27887_s12 + $0x180] sm:$0xff]  ;;  %v19815_v19 = vpack.c.bf16 %v16324_v5, %v16323_v56  ;;  %v19861_v56 = vpack.c.bf16 %v16346_v45, %v16345_v49 }
 0xc5a   : > { %v16052_v20 = vmul.f32 %v21618_v39, %v27583_v57  ;;  %v16350_v57 = vld [vmem:[%s27887_s12 + $0x188] sm:$0xff]  ;;  %v16308_v39 = vld [vmem:[%s27887_s12 + $0x38] sm:$0xff] }
 0xc5b   : > { %18990 = vmatmul.mubr.f32.gmra.mrb[48].mxu1 %v16049_v24  ;;  %v19835_v62 = vpack.c.bf16 %v16350_v57, %v16349_v55  ;;  %v16356_v24 = vld [vmem:[%s27887_s12 + $0x1b8] sm:$0xff] }
 0xc5c   : > { %v21620_v6 = vpop.eup %21619  ;;  %18992 = vmatprep.mubr.f32.mxu1 %v16050_v61  ;;  %v16307_v61 = vld [vmem:[%s27887_s12 + $0x30] sm:$0xff] }
 0xc5d   : > { %v16051_v41 = vmul.f32 %v21620_v6, %v27598_v29  ;;  %v21622_v31 = vpop.eup %21621  ;;  %v19803_v29 = vpack.c.bf16 %v16318_v8, %v16317_v4  ;;  %19836 = vmatprep.subr.bf16.mxu0 %v19835_v62  ;;  %v19847_v6 = vpack.c.bf16 %v16356_v24, %v16355_v34  ;;  %v16357_v4 = vld [vmem:[%s27887_s12 + $0x1c0] sm:$0xff]  ;;  %v16358_v8 = vld [vmem:[%s27887_s12 + $0x1c8] sm:$0xff]  ;;  %v19817_v55 = vpack.c.bf16 %v16308_v39, %v16307_v61 }
 0xc5e   : > { %v16053_v43 = vmul.f32 %v21622_v31, %v27586_v63  ;;  %v16301_v63 = vld [vmem:[%s27887_s12] sm:$0xff]  ;;  %19838 = vmatpush3.bf16.msra.mxu0 %v19837_v9  ;;  %v16340_v31 = vld [vmem:[%s27887_s12 + $0x138] sm:$0xff]  ;;  %v16359_v9 = vld [vmem:[%s27887_s12 + $0x1d0] sm:$0xff] }
 0xc5f   : > { %18993 = vmatmul.mubr.f32.gmra.mrb[50].mxu1 %v16051_v41  ;;  %v19805_v38 = vpack.c.bf16 %v16302_v37, %v16301_v63  ;;  %19804 = vmatprep.subr.bf16.mxu1 %v19803_v29  ;;  %v16339_v41 = vld [vmem:[%s27887_s12 + $0x130] sm:$0xff]  ;;  %v16309_v63 = vld [vmem:[%s27887_s12 + $0x40] sm:$0xff]  ;;  %v16310_v37 = vld [vmem:[%s27887_s12 + $0x48] sm:$0xff]  ;;  %v19855_v32 = vpack.c.bf16 %v16360_v35, %v16359_v9 }
 0xc60   : > { %18995 = vmatprep.mubr.f32.mxu1 %v16052_v20  ;;  %19840 = vmatprep.subr.bf16.mxu0 %v19839_v1  ;;  %v16325_v20 = vld [vmem:[%s27887_s12 + $0xc0] sm:$0xff]  ;;  %v19849_v29 = vpack.c.bf16 %v16340_v31, %v16339_v41  ;;  %v19821_v33 = vpack.c.bf16 %v16310_v37, %v16309_v63  ;;  %v16311_v1 = vld [vmem:[%s27887_s12 + $0x50] sm:$0xff]  ;;  %v16348_v37 = vld [vmem:[%s27887_s12 + $0x178] sm:$0xff] }
 0xc61   : > { %19806 = vmatpush3.bf16.msra.mxu1 %v19805_v38  ;;  %v16341_v62 = vld [vmem:[%s27887_s12 + $0x140] sm:$0xff]  ;;  %v19851_v38 = vpack.c.bf16 %v16358_v8, %v16357_v4  ;;  %v16347_v63 = vld [vmem:[%s27887_s12 + $0x170] sm:$0xff] }
 0xc62   : > { %19808 = vmatprep.subr.bf16.mxu1 %v19807_v11  ;;  %19842 = vmatpush3.bf16.msra.mxu0 %v19841_v44  ;;  %v19853_v30 = vpack.c.bf16 %v16342_v3, %v16341_v62  ;;  %v19823_v11 = vpack.c.bf16 %v16328_v14, %v16327_v17  ;;  %v16362_v44 = vld [vmem:[%s27887_s12 + $0x1e8] sm:$0xff]  ;;  %v19865_v62 = vpack.c.bf16 %v16348_v37, %v16347_v63 }
 0xc63   : > { %18996 = vmatmul.mubr.f32.gmra.mrb[52].mxu1 %v16053_v43  ;;  %19844 = vmatprep.subr.bf16.mxu0 %v19843_v15  ;;  %v16326_v43 = vld [vmem:[%s27887_s12 + $0xc8] sm:$0xff]  ;;  %v19859_v40 = vpack.c.bf16 %v16362_v44, %v16361_v28 }
 0xc64   : > { %v19819_v57 = vpack.c.bf16 %v16326_v43, %v16325_v20  ;;  %v16314_v15 = vld [vmem:[%s27887_s12 + $0x68] sm:$0xff] }
 0xc65   : > { %19810 = vmatpush3.bf16.msra.mxu1 %v19809_v53  ;;  %v16344_v53 = vld [vmem:[%s27887_s12 + $0x158] sm:$0xff] }
 0xc66   : > { %19812 = vmatprep.subr.bf16.mxu1 %v19811_v12  ;;  %19846 = vmatpush3.bf16.msra.mxu0 %v19845_v48  ;;  %v19825_v12 = vpack.c.bf16 %v16312_v26, %v16311_v1  ;;  %v19857_v22 = vpack.c.bf16 %v16344_v53, %v16343_v13 }
 0xc67   : > { %19848 = vmatprep.subr.bf16.mxu0 %v19847_v6 }
 0xc69   : > { %19814 = vmatpush3.bf16.msra.mxu1 %v19813_v46  ;;  %v19829_v46 = vpack.c.bf16 %v16314_v15, %v16313_v10 }
 0xc6a   : > { %19816 = vmatprep.subr.bf16.mxu1 %v19815_v19  ;;  %19850 = vmatpush3.bf16.msra.mxu0 %v19849_v29 }
 0xc6b   : > { %19852 = vmatprep.subr.bf16.mxu0 %v19851_v38 }
 0xc6d   : > { %19818 = vmatpush3.bf16.msra.mxu1 %v19817_v55  ;;  %v16316_v55 = vld [vmem:[%s27887_s12 + $0x78] sm:$0xff] }
 0xc6e   : > { %19820 = vmatprep.subr.bf16.mxu1 %v19819_v57  ;;  %19854 = vmatpush3.bf16.msra.mxu0 %v19853_v30 }
 0xc6f   : > { %19856 = vmatprep.subr.bf16.mxu0 %v19855_v32 }
 0xc71   : > { %19822 = vmatpush3.bf16.msra.mxu1 %v19821_v33 }
 0xc72   : > { %19824 = vmatprep.subr.bf16.mxu1 %v19823_v11  ;;  %19858 = vmatpush3.bf16.msra.mxu0 %v19857_v22 }
 0xc73   : > { %19860 = vmatprep.subr.bf16.mxu0 %v19859_v40 }
 0xc75   : > { %19826 = vmatpush3.bf16.msra.mxu1 %v19825_v12 }
 0xc76   : > { %19828 = vmatprep.subr.bf16.mxu1 %v19827_v59  ;;  %19862 = vmatpush3.bf16.msra.mxu0 %v19861_v56 }
 0xc79   : > { %19830 = vmatpush3.bf16.msra.mxu1 %v19829_v46 }
 0xcf4   : > { %v18976_v5 = vpop.f32.mrb[38].mxu1 }
 0xcf5   : > { %v21460_v34 = vpack.i.bf16 %v18976_v5, %v27477_v21  ;;  %v16184_v48 = vpop.f32.mrb[39].mxu1 }
 0xcf6   : > { %v21458_v19 = vpack.i.bf16 %v16184_v48, %v27479_v54 }
 0xcf8   : > { %21459 = vxpose.xlu0.b32.start [1/16] (narrow) %v21458_v19, 8  ;;  %v18979_v24 = vpop.f32.mrb[40].mxu1 }
 0xcf9   : > { %v21464_v61 = vpack.i.bf16 %v18979_v24, %v27481_v60  ;;  %v16194_v39 = vpop.f32.mrb[41].mxu1  ;;  %v16331_v60 = vld [vmem:[%s27887_s12 + $0xf0] sm:$0xff] }
 0xcfa   : > { %v21462_v6 = vpack.i.bf16 %v16194_v39, %v27483_v42  ;;  %v16332_v42 = vld [vmem:[%s27887_s12 + $0xf8] sm:$0xff] }
 0xcfc   : > { %21461 = vxpose.xlu0.b32.cont [2/16] (narrow) %v21460_v34, 8  ;;  %v18982_v41 = vpop.f32.mrb[42].mxu1 }
 0xcfd   : > { %v21468_v31 = vpack.i.bf16 %v18982_v41, %v27485_v18  ;;  %v16204_v20 = vpop.f32.mrb[43].mxu1  ;;  %v16363_v18 = vld [vmem:[%s27887_s12 + $0x1f0] sm:$0xff] }
 0xcfe   : > { %v21466_v43 = vpack.i.bf16 %v16204_v20, %v27487_v23  ;;  %v19831_v23 = vpack.c.bf16 %v16332_v42, %v16331_v60 }
 0xd00   : > { %21463 = vxpose.xlu0.b32.cont [3/16] (narrow) %v21462_v6, 8  ;;  %19832 = vmatprep.subr.bf16.mxu1 %v19831_v23 }
 0xd01   : > { %v18985_v4 = vpop.f32.mrb[44].mxu1 }
 0xd02   : > { %v21472_v21 = vpack.i.bf16 %v18985_v4, %v27489_v25  ;;  %v16214_v8 = vpop.f32.mrb[45].mxu1  ;;  %v16364_v25 = vld [vmem:[%s27887_s12 + $0x1f8] sm:$0xff] }
 0xd03   : > { %v21470_v54 = vpack.i.bf16 %v16214_v8, %v27491_v51  ;;  %v16315_v51 = vld [vmem:[%s27887_s12 + $0x70] sm:$0xff]  ;;  %v19863_v29 = vpack.c.bf16 %v16364_v25, %v16363_v18 }
 0xd04   : > { %21465 = vxpose.xlu0.b32.cont [4/16] (narrow) %v21464_v61, 8  ;;  %v19833_v57 = vpack.c.bf16 %v16316_v55, %v16315_v51 }
 0xd05   : > { %19864 = vmatprep.subr.bf16.mxu0 %v19863_v29 }
 0xd06   : > { %19834 = vmatpush3.bf16.msra.mxu1 %v19833_v57  ;;  %19866 = vmatpush3.bf16.msra.mxu0 %v19865_v62 }
 0xd08   : > { %21467 = vxpose.xlu0.b32.cont [5/16] (narrow) %v21466_v43, 8 }
 0xd0c   : > { %21469 = vxpose.xlu0.b32.cont [6/16] (narrow) %v21468_v31, 8 }
 0xd10   : > { %21471 = vxpose.xlu0.b32.cont [7/16] (narrow) %v21470_v54, 8 }
 0xd14   : > { %21473 = vxpose.xlu0.b32.cont [8/16] (narrow) %v21472_v21, 8 }
 0xd2a   : > { %v18988_v38 = vpop.f32.mrb[46].mxu1 }
 0xd2b   : > { %v21476_v3 = vpack.i.bf16 %v18988_v38, %v27493_v7  ;;  %v16224_v17 = vpop.f32.mrb[47].mxu1 }
 0xd2c   : > { %v21474_v14 = vpack.i.bf16 %v16224_v17, %v27495_v58 }
 0xd2e   : > { %21475 = vxpose.xlu0.b32.cont [9/16] (narrow) %v21474_v14, 8  ;;  %v18991_v9 = vpop.f32.mrb[48].mxu1 }
 0xd2f   : > { %v21480_v35 = vpack.i.bf16 %v18991_v9, %v27497_v2  ;;  %v16234_v33 = vpop.f32.mrb[49].mxu1 }
 0xd30   : > { %v21478_v30 = vpack.i.bf16 %v16234_v33, %v27499_v36 }
 0xd32   : > { %21477 = vxpose.xlu0.b32.cont [10/16] (narrow) %v21476_v3, 8  ;;  %v18994_v11 = vpop.f32.mrb[50].mxu1 }
 0xd33   : > { %v21484_v1 = vpack.i.bf16 %v18994_v11, %v27501_v16  ;;  %v16244_v26 = vpop.f32.mrb[51].mxu1 }
 0xd34   : > { %v21482_v13 = vpack.i.bf16 %v16244_v26, %v27503_v47 }
 0xd36   : > { %21479 = vxpose.xlu0.b32.cont [11/16] (narrow) %v21478_v30, 8  ;;  %v18997_v32 = vpop.f32.mrb[52].mxu1 }
 0xd37   : > { %v21488_v7 = vpack.i.bf16 %v18997_v32, %v27505_v50  ;;  %v16254_v53 = vpop.f32.mrb[53].mxu1 }
 0xd38   : > { %v21486_v58 = vpack.i.bf16 %v16254_v53, %v27507_v27  ;;  %v16365_v27 = vld [vmem:[%s27888_s13] sm:$0x1] }
 0xd3a   : > { %21481 = vxpose.xlu0.b32.cont [12/16] (narrow) %v21480_v35, 8 }
 0xd3e   : > { %21483 = vxpose.xlu0.b32.cont [13/16] (narrow) %v21482_v13, 8 }
 0xd42   : > { %21485 = vxpose.xlu0.b32.cont [14/16] (narrow) %v21484_v1, 8 }
 0xd46   : > { %21487 = vxpose.xlu0.b32.cont [15/16] (narrow) %v21486_v58, 8 }
 0xd4a   : > { %21489 = vxpose.xlu0.b32.end [16/16] (narrow) %v21488_v7, 8 }
 0xd8e   : > { %v21490_v2 = vpop.trf.xlu0 }
 0xd8f   : > { %v21494_v36 = vunpack.i.h.bf16 %v21490_v2  ;;  %v21491_v16 = vunpack.i.l.bf16 %v21490_v2 }
 0xd91   : > { %v16296_v52 = vrot.slane %v21491_v16, 1  ;;  %v16299_v0 = vrot.slane %v21494_v36, 1 }
 0xd93   : > { %16430 = vmatprep.mubr.f32.mxu1 %v16296_v52  ;;  %16500 = vmatprep.mubr.f32.mxu0 %v16299_v0 }
 0xd94   : > { %16431 = vmatmul.mubr.f32.vlgmr.msra.gmra.mrb[54].mxu1 %v21491_v16  ;;  %16501 = vmatmul.mubr.f32.vlgmr.msra.gmra.mrb[70].mxu0 %v21494_v36 }
 0xe67   : > { %v17962_v47 = vpop.f32.mrb[54].mxu1  ;;  %v17997_v50 = vpop.f32.mrb[70].mxu0 }
 0xe68   : > { %v17963_v28 = vpop.f32.mrb[55].mxu1  ;;  %v17998_v44 = vpop.f32.mrb[71].mxu0 }
 0xe69   : > { %v17964_v12 = vadd.f32 %v17963_v28, %v17962_v47  ;;  %v17999_v22 = vadd.f32 %v17998_v44, %v17997_v50 }
 0xe6b   : > { %v16433_v59 = vadd.f32 %v17964_v12, %v16365_v27 }
 0xe6d   : > { %v16503_v10 = vadd.f32 %v17999_v22, %v16433_v59 }
 0xe6f   : > { %16507 = vst.msk [vmem:[%s461_s30] sm:$0x1] %vm16506_vm11, %v16503_v10 }
 0xe70   : > { %21684 = shalt.err (!%p21681_p3)
}
 0xe71   : > { %s21685_s0 = scalar_lea.hbm %s27833_s21, 16  ;;  %s21689_s30 = scalar_lea.hbm %s27889_s14, 32 }
 0xe72   : > { %p21686_p4 = scmp.ne.s32.totalorder %s27833_s21, %s21685_s0  ;;  %p21690_p9 = scmp.lt.u32.totalorder %s27833_s21, %s27889_s14 }
 0xe73   : > { %p21691_p10 = scmp.lt.u32.totalorder %s21689_s30, %s21685_s0  ;;  %p21693_p12 = scmp.lt.u32.totalorder %s21685_s0, %s27833_s21 }
 0xe74   : > { %p21687_p7 = pnand %p21686_p4, %p21933_p5 }
 0xe75   : > { %p21692_p11 = por %p21691_p10, %p21690_p9 }
 0xe76   : > { %p21688_p8 = pneg %p21687_p7 }
 0xe77   : > { %p21694_p13 = por %p21693_p12, %p21692_p11 }
 0xe79   : > { %p21695_p0 = pnand %p21694_p13, %p21688_p8 }
 0xe7b   : > { %21698 = shalt.err (!%p21695_p0)
}
 0xe7c   : > { %20148 = dma.vmem_to_hbm [thread:$0]  (%p21933_p5), %s27835_s2, 16, %s27833_s21, %s16509_s22  }
 0xe7d PF: > { %p20154_p1 = scmp.ge.s32.totalorder %s21733_s18, 2  ;;  %s16533_s19 = sand.u32 1, %s21721_s15  }
 0xe7e   : > { %s16534_s5 = scalar_lea.sflag [#allocation4], %s16533_s19 }
 0xe7f   : > { %p20151_p2 = pnand %p20154_p1, %p21937_p6 }
 0xe81   : > { %21716 = dma.done.wait (!%p20151_p2), %s16534_s5, 16  }
 0xe82   : > { %21718 = vsyncadd (!%p20151_p2), %s16534_s5, 4294967280  ;;  %s27936_s29 = sld [smem:[#allocation6_spill]]  ;;  %p26_p3 = scmp.ge.s32.totalorder %s21920_s20, 4  }
 0xe83   : > { %s27937_s15 = smov %s21725_s16  ;;  %s27938_s16 = smov %s21729_s17 }
 0xe84   : > { %s27940_s18 = smov %s21920_s20  ;;  %28 = sbr.rel (!%p26_p3) target bundleno = 7 (0x7), region = 189 }
 0xe88   : > { %s27939_s17 = smov %s27936_s29 }
 0xe8b   :  { %16538 = vsyncpa [#allocation4], 1 }
 0xe8c   :  { %16540 = vsyncpa [#allocation4 + $0x1], 1 }

</bundles_post_ra>
